<compile_context>
chip_gen: v7x
topology: tpu7x:2x2x1
jax: 0.10.0
libtpu: 0.0.40
codegen_flags: <defaults>
</compile_context>

<pallas_src>
import math

import numpy as np
import jax
import jax.numpy as jnp
from jax.experimental import pallas as pl
from jax.experimental.pallas import tpu as pltpu

_C1, _C2, _C3 = 16, 32, 64          # conv channel widths of the architecture


# ------------------------------ Pallas kernel -------------------------------

def _sacn_kernel(x_ref, alpha_ref, b1_ref, bias1_ref, b2_ref, bias2_ref,
                 b3_ref, bias3_ref, s1_ref, s2_ref, wh_ref, bh_ref, sigm_ref,
                 out_ref):
    f32, bf16 = jnp.float32, jnp.bfloat16

    # Static sizes derived from the (trace-time) ref shapes.
    h0 = x_ref.shape[1]
    hc1 = h0 - 2                      # conv1 output height
    wc1 = b1_ref.shape[2] // _C1      # conv1 output width
    hd1 = hc1 - 2                     # dense 3x3-pool height (stage 1)
    ld1 = b2_ref.shape[1]             # dense 3x3-pool lane width (stage 1)
    hp1 = s1_ref.shape[0]             # pooled height (stage 1)
    hc2 = hp1 - 2
    wc2 = b2_ref.shape[2] // _C2
    hd2 = hc2 - 2
    ld2 = b3_ref.shape[1]
    hp2 = s2_ref.shape[0]
    hc3 = hp2 - 2
    wc3 = b3_ref.shape[2] // _C3

    a1 = alpha_ref[0]
    a2 = alpha_ref[1]
    a3 = alpha_ref[2]

    def prelu(z, a):
        return jnp.where(z > 0.0, z, a * z)

    def pool3x3_dense(act, c, hd, ld):
        # Dense (stride-1) 3x3 max over rows and lane-groups of size c.
        ph = jnp.maximum(jnp.maximum(act[0:hd, :], act[1:hd + 1, :]),
                         act[2:hd + 2, :])
        return jnp.maximum(jnp.maximum(ph[:, 0:ld], ph[:, c:ld + c]),
                           ph[:, 2 * c:ld + 2 * c])

    # -------- stage 1: conv(3->16, 3x3) + PReLU + maxpool(3,2) --------
    z1 = jnp.zeros((hc1, wc1 * _C1), f32)
    for dh in range(3):
        z1 = z1 + jnp.dot(x_ref[0, dh:dh + hc1, :], b1_ref[dh],
                          preferred_element_type=f32)
    act1 = prelu(z1 + bias1_ref[...], a1)
    pd1 = pool3x3_dense(act1, _C1, hd1, ld1)
    # exact 0/1 selection matmul: stride-2 row subsample
    p1 = jnp.dot(s1_ref[...], pd1.astype(bf16), preferred_element_type=f32)

    # -------- stage 2: conv(16->32, 3x3) + PReLU + maxpool(3,2) --------
    z2 = jnp.zeros((hc2, wc2 * _C2), f32)
    for dh in range(3):
        z2 = z2 + jnp.dot(p1[dh:dh + hc2, :].astype(bf16), b2_ref[dh],
                          preferred_element_type=f32)
    act2 = prelu(z2 + bias2_ref[...], a2)
    pd2 = pool3x3_dense(act2, _C2, hd2, ld2)
    p2 = jnp.dot(s2_ref[...], pd2.astype(bf16), preferred_element_type=f32)

    # -------- stage 3: conv(32->64, 3x3) + PReLU --------
    z3 = jnp.zeros((hc3, wc3 * _C3), f32)
    for dh in range(3):
        z3 = z3 + jnp.dot(p2[dh:dh + hc3, :].astype(bf16), b3_ref[dh],
                          preferred_element_type=f32)
    act3 = prelu(z3 + bias3_ref[...], a3)

    # -------- fused heads: [face(1) | bbox(4) | rip(1)] per position --------
    hz = jnp.dot(act3.astype(bf16), wh_ref[...], preferred_element_type=f32)
    hz = hz + bh_ref[...]
    # numerically stable sigmoid, reciprocal on the (otherwise idle) EUP
    e = jnp.exp(-jnp.abs(hz))
    r = pl.reciprocal(1.0 + e, approx=True)
    sig = jnp.where(hz >= 0.0, r, e * r)
    out_ref[0] = jnp.where(sigm_ref[...] > 0.5, sig, hz)


# --------------------------- host-side weight packing -----------------------

def _conv_band(w_hwio, lin, gap, wout):
    """Banded matmul weights: input lane = wi*gap + ci, output lane = wo*cout + co."""
    kh, kw, cin, cout = w_hwio.shape
    b = np.zeros((kh, lin, wout * cout), np.float32)
    for dh in range(kh):
        for dw in range(kw):
            for wo in range(wout):
                wi = wo + dw
                b[dh, wi * gap:wi * gap + cin, wo * cout:(wo + 1) * cout] = \
                    w_hwio[dh, dw]
    return b


def _row_select(hp, hd):
    s = np.zeros((hp, hd), np.float32)
    s[np.arange(hp), 2 * np.arange(hp)] = 1.0
    return s


def pack_params(raw, input_hw):
    """Transform raw conv weights into the banded/selection matrices the kernel uses."""
    H, W = input_hw
    w1 = np.asarray(raw['w1'], np.float32)
    w2 = np.asarray(raw['w2'], np.float32)
    w3 = np.asarray(raw['w3'], np.float32)

    hc1, wc1 = H - 2, W - 2
    hp1, wp1 = (hc1 - 3) // 2 + 1, (wc1 - 3) // 2 + 1
    hc2, wc2 = hp1 - 2, wp1 - 2
    hp2, wp2 = (hc2 - 3) // 2 + 1, (wc2 - 3) // 2 + 1
    hc3, wc3 = hp2 - 2, wp2 - 2

    b1m = _conv_band(w1, W * 3, 3, wc1)                       # (3, W*3, wc1*16)
    ld1 = (wc1 - 2) * _C1
    b2m = _conv_band(w2, ld1, 2 * _C1, wc2)                   # (3, ld1, wc2*32)
    ld2 = (wc2 - 2) * _C2
    b3m = _conv_band(w3, ld2, 2 * _C2, wc3)                   # (3, ld2, wc3*64)

    s1 = _row_select(hp1, hc1 - 2)
    s2 = _row_select(hp2, hc2 - 2)

    headw = np.concatenate([np.asarray(raw['wf'], np.float32),
                            np.asarray(raw['wb'], np.float32),
                            np.asarray(raw['wr'], np.float32)], axis=1)  # (64, 6)
    wh = np.zeros((wc3 * _C3, wc3 * 6), np.float32)
    for w in range(wc3):
        wh[w * _C3:(w + 1) * _C3, w * 6:(w + 1) * 6] = headw
    headb = np.concatenate([np.asarray(raw['bf'], np.float32),
                            np.asarray(raw['bb'], np.float32),
                            np.asarray(raw['br'], np.float32)])          # (6,)

    return dict(
        alphas=jnp.asarray(np.array([raw['a1'], raw['a2'], raw['a3']],
                                    np.float32)),
        b1=jnp.asarray(b1m, jnp.bfloat16),
        bias1=jnp.asarray(np.tile(np.asarray(raw['b1'], np.float32), wc1)[None, :]),
        b2=jnp.asarray(b2m, jnp.bfloat16),
        bias2=jnp.asarray(np.tile(np.asarray(raw['b2'], np.float32), wc2)[None, :]),
        b3=jnp.asarray(b3m, jnp.bfloat16),
        bias3=jnp.asarray(np.tile(np.asarray(raw['b3'], np.float32), wc3)[None, :]),
        s1=jnp.asarray(s1, jnp.bfloat16),
        s2=jnp.asarray(s2, jnp.bfloat16),
        wh=jnp.asarray(wh, jnp.bfloat16),
        bh=jnp.asarray(np.tile(headb, wc3)[None, :], jnp.float32),
        sigmask=jnp.asarray(np.tile(np.array([1, 0, 0, 0, 0, 1], np.float32),
                                    wc3)[None, :]),
    )


# --------------------------------- forward ----------------------------------

def _const_spec(shape):
    rank = len(shape)
    return pl.BlockSpec(tuple(shape), lambda n: (0,) * rank)


def _forward_impl(x_nchw, p):
    N, C, H, W = x_nchw.shape
    x2d = jnp.transpose(x_nchw, (0, 2, 3, 1)).reshape(N, H, W * C)
    x2d = x2d.astype(jnp.bfloat16)

    hout = p['s2'].shape[0] - 2
    wout6 = p['wh'].shape[1]
    wout = wout6 // 6

    out = pl.pallas_call(
        _sacn_kernel,
        out_shape=jax.ShapeDtypeStruct((N, hout, wout6), jnp.float32),
        grid=(N,),
        in_specs=[
            pl.BlockSpec((1, H, W * C), lambda n: (n, 0, 0)),
            pl.BlockSpec(memory_space=pltpu.MemorySpace.SMEM),   # PReLU slopes
            _const_spec(p['b1'].shape), _const_spec(p['bias1'].shape),
            _const_spec(p['b2'].shape), _const_spec(p['bias2'].shape),
            _const_spec(p['b3'].shape), _const_spec(p['bias3'].shape),
            _const_spec(p['s1'].shape), _const_spec(p['s2'].shape),
            _const_spec(p['wh'].shape), _const_spec(p['bh'].shape),
            _const_spec(p['sigmask'].shape),
        ],
        out_specs=pl.BlockSpec((1, hout, wout6), lambda n: (n, 0, 0)),
        compiler_params=pltpu.CompilerParams(
            dimension_semantics=("parallel",),
            vmem_limit_bytes=32 * 1024 * 1024),
    )(x2d, p['alphas'], p['b1'], p['bias1'], p['b2'], p['bias2'],
      p['b3'], p['bias3'], p['s1'], p['s2'], p['wh'], p['bh'], p['sigmask'])

    out = out.reshape(N, hout, wout, 6)
    face = jnp.transpose(out[..., 0:1], (0, 3, 1, 2))
    bbox = jnp.transpose(out[..., 1:5], (0, 3, 1, 2))
    rip = jnp.transpose(out[..., 5:6], (0, 3, 1, 2))
    return face, bbox, rip


forward = jax.jit(_forward_impl)


# ------------------------------ raw parameters ------------------------------

def init_params(key):
    ks = jax.random.split(key, 12)

    def xavier(k, kh, kw, cin, cout):
        fan_in, fan_out = cin * kh * kw, cout * kh * kw
        lim = math.sqrt(6.0 / (fan_in + fan_out))
        return jax.random.uniform(k, (kh, kw, cin, cout), jnp.float32, -lim, lim)

    def bias(k, cin, kh, kw, cout):
        bound = 1.0 / math.sqrt(cin * kh * kw)
        return jax.random.uniform(k, (cout,), jnp.float32, -bound, bound)

    return dict(
        w1=xavier(ks[0], 3, 3, 3, 16),  b1=bias(ks[1], 3, 3, 3, 16),  a1=0.25,
        w2=xavier(ks[2], 3, 3, 16, 32), b2=bias(ks[3], 16, 3, 3, 32), a2=0.25,
        w3=xavier(ks[4], 3, 3, 32, 64), b3=bias(ks[5], 32, 3, 3, 64), a3=0.25,
        wf=xavier(ks[6], 1, 1, 64, 1).reshape(64, 1),  bf=bias(ks[7], 64, 1, 1, 1),
        wb=xavier(ks[8], 1, 1, 64, 4).reshape(64, 4),  bb=bias(ks[9], 64, 1, 1, 4),
        wr=xavier(ks[10], 1, 1, 64, 1).reshape(64, 1), br=bias(ks[11], 64, 1, 1, 1),
    )


# --------------------------- pure-JAX f32 reference --------------------------

def reference_forward(x_nchw, raw):
    x = jnp.transpose(x_nchw, (0, 2, 3, 1))

    def conv(h, w, b):
        y = jax.lax.conv_general_dilated(
            h, w, (1, 1), 'VALID',
            dimension_numbers=('NHWC', 'HWIO', 'NHWC'))
        return y + b.reshape(1, 1, 1, -1)

    def prelu(h, a):
        return jnp.where(h > 0, h, a * h)

    def pool(h):
        return jax.lax.reduce_window(h, -jnp.inf, jax.lax.max,
                                     (1, 3, 3, 1), (1, 2, 2, 1), 'VALID')

    h = prelu(conv(x, raw['w1'], raw['b1']), raw['a1'])
    h = pool(h)
    h = prelu(conv(h, raw['w2'], raw['b2']), raw['a2'])
    h = pool(h)
    h = prelu(conv(h, raw['w3'], raw['b3']), raw['a3'])

    face = jax.nn.sigmoid(jnp.einsum('nhwc,co->nhwo', h, raw['wf']) + raw['bf'])
    bbox = jnp.einsum('nhwc,co->nhwo', h, raw['wb']) + raw['bb']
    rip = jax.nn.sigmoid(jnp.einsum('nhwc,co->nhwo', h, raw['wr']) + raw['br'])
    to_nchw = lambda t: jnp.transpose(t, (0, 3, 1, 2))
    return to_nchw(face), to_nchw(bbox), to_nchw(rip)


# ----------------------------------- main ------------------------------------

if __name__ == "__main__":
    key = jax.random.PRNGKey(0)
    pkey, xkey = jax.random.split(key)
    raw = init_params(pkey)

    # 48x48 input -> conv 46 -> pool 22 -> conv 20 -> pool 9 -> conv 7
    x = jax.random.normal(xkey, (2, 3, 48, 48), dtype=jnp.float32)
    packed = pack_params(raw, (48, 48))

    face, bbox, rip = forward(x, packed)
    jax.block_until_ready((face, bbox, rip))

    assert face.shape == (2, 1, 7, 7), face.shape
    assert bbox.shape == (2, 4, 7, 7), bbox.shape
    assert rip.shape == (2, 1, 7, 7), rip.shape
    assert bool(jnp.all(jnp.isfinite(bbox)))
    assert bool(jnp.all((face >= 0.0) & (face <= 1.0)))
    assert bool(jnp.all((rip >= 0.0) & (rip <= 1.0)))

    # correctness vs pure-JAX f32 reference (kernel uses bf16 matmul operands
    # with f32 accumulation -> loose absolute tolerance)
    rf, rb, rr = reference_forward(x, raw)
    for got, want in ((face, rf), (bbox, rb), (rip, rr)):
        err = float(jnp.max(jnp.abs(got - want)))
        assert err < 0.1, f"mismatch vs reference: max abs err {err}"

    print("KERNEL_OK")
</pallas_src>

<mosaic_0001>
module attributes {stable_mosaic.version = 11 : i64} {
  func.func @_sacn_kernel(%arg0: i32, %arg1: memref<1x48x144xbf16, #tpu.memory_space<vmem>>, %arg2: memref<3xf32, #tpu.memory_space<smem>>, %arg3: memref<3x144x736xbf16, #tpu.memory_space<vmem>>, %arg4: memref<1x736xf32, #tpu.memory_space<vmem>>, %arg5: memref<3x704x640xbf16, #tpu.memory_space<vmem>>, %arg6: memref<1x640xf32, #tpu.memory_space<vmem>>, %arg7: memref<3x576x448xbf16, #tpu.memory_space<vmem>>, %arg8: memref<1x448xf32, #tpu.memory_space<vmem>>, %arg9: memref<22x44xbf16, #tpu.memory_space<vmem>>, %arg10: memref<9x18xbf16, #tpu.memory_space<vmem>>, %arg11: memref<448x42xbf16, #tpu.memory_space<vmem>>, %arg12: memref<1x42xf32, #tpu.memory_space<vmem>>, %arg13: memref<1x42xf32, #tpu.memory_space<vmem>>, %arg14: memref<1x7x42xf32, #tpu.memory_space<vmem>>) attributes {dimension_semantics = [#tpu.dimension_semantics<parallel>], iteration_bounds = array<i64: 2>, scalar_prefetch = 0 : i64, scratch_operands = 0 : i64, tpu.core_type = #tpu.core_type<tc>, window_params = [{transform_indices = @transform_0, window_bounds = array<i64: 1, 48, 144>}, {transform_indices = @transform_1, window_bounds = array<i64: 3>}, {pipeline_mode = #tpu.pipeline_mode<synchronous>, transform_indices = @transform_2, window_bounds = array<i64: 3, 144, 736>}, {pipeline_mode = #tpu.pipeline_mode<synchronous>, transform_indices = @transform_3, window_bounds = array<i64: 1, 736>}, {pipeline_mode = #tpu.pipeline_mode<synchronous>, transform_indices = @transform_4, window_bounds = array<i64: 3, 704, 640>}, {pipeline_mode = #tpu.pipeline_mode<synchronous>, transform_indices = @transform_5, window_bounds = array<i64: 1, 640>}, {pipeline_mode = #tpu.pipeline_mode<synchronous>, transform_indices = @transform_6, window_bounds = array<i64: 3, 576, 448>}, {pipeline_mode = #tpu.pipeline_mode<synchronous>, transform_indices = @transform_7, window_bounds = array<i64: 1, 448>}, {pipeline_mode = #tpu.pipeline_mode<synchronous>, transform_indices = @transform_8, window_bounds = array<i64: 22, 44>}, {pipeline_mode = #tpu.pipeline_mode<synchronous>, transform_indices = @transform_9, window_bounds = array<i64: 9, 18>}, {pipeline_mode = #tpu.pipeline_mode<synchronous>, transform_indices = @transform_10, window_bounds = array<i64: 448, 42>}, {pipeline_mode = #tpu.pipeline_mode<synchronous>, transform_indices = @transform_11, window_bounds = array<i64: 1, 42>}, {pipeline_mode = #tpu.pipeline_mode<synchronous>, transform_indices = @transform_12, window_bounds = array<i64: 1, 42>}, {transform_indices = @transform_13, window_bounds = array<i64: 1, 7, 42>}]} {
    %c0 = arith.constant 0 : index
    %0 = memref.load %arg2[%c0] : memref<3xf32, #tpu.memory_space<smem>>
    %c1 = arith.constant 1 : index
    %1 = memref.load %arg2[%c1] : memref<3xf32, #tpu.memory_space<smem>>
    %c2 = arith.constant 2 : index
    %2 = memref.load %arg2[%c2] : memref<3xf32, #tpu.memory_space<smem>>
    %cst = arith.constant 0.000000e+00 : f32
    %3 = vector.broadcast %cst : f32 to vector<46x736xf32>
    %c0_0 = arith.constant 0 : index
    %c0_1 = arith.constant 0 : index
    %c0_2 = arith.constant 0 : index
    %4 = vector.load %arg1[%c0_0, %c0_1, %c0_2] : memref<1x48x144xbf16, #tpu.memory_space<vmem>>, vector<1x46x144xbf16>
    %5 = vector.shape_cast %4 : vector<1x46x144xbf16> to vector<46x144xbf16>
    %c0_3 = arith.constant 0 : index
    %c0_4 = arith.constant 0 : index
    %c0_5 = arith.constant 0 : index
    %6 = vector.load %arg3[%c0_3, %c0_4, %c0_5] : memref<3x144x736xbf16, #tpu.memory_space<vmem>>, vector<1x144x736xbf16>
    %7 = vector.shape_cast %6 : vector<1x144x736xbf16> to vector<144x736xbf16>
    %cst_6 = arith.constant dense<0.000000e+00> : vector<46x736xf32>
    %8 = tpu.matmul %5, %7, %cst_6 {dimension_numbers = #tpu.dot_dimension_numbers<[1], [0], [0], [1], [0, 0, 1, 1], [], []>} : vector<46x144xbf16>, vector<144x736xbf16>, vector<46x736xf32> -> vector<46x736xf32>
    %9 = arith.addf %3, %8 : vector<46x736xf32>
    %c0_7 = arith.constant 0 : index
    %c1_8 = arith.constant 1 : index
    %c0_9 = arith.constant 0 : index
    %10 = vector.load %arg1[%c0_7, %c1_8, %c0_9] : memref<1x48x144xbf16, #tpu.memory_space<vmem>>, vector<1x46x144xbf16>
    %11 = vector.shape_cast %10 : vector<1x46x144xbf16> to vector<46x144xbf16>
    %c1_10 = arith.constant 1 : index
    %c0_11 = arith.constant 0 : index
    %c0_12 = arith.constant 0 : index
    %12 = vector.load %arg3[%c1_10, %c0_11, %c0_12] : memref<3x144x736xbf16, #tpu.memory_space<vmem>>, vector<1x144x736xbf16>
    %13 = vector.shape_cast %12 : vector<1x144x736xbf16> to vector<144x736xbf16>
    %cst_13 = arith.constant dense<0.000000e+00> : vector<46x736xf32>
    %14 = tpu.matmul %11, %13, %cst_13 {dimension_numbers = #tpu.dot_dimension_numbers<[1], [0], [0], [1], [0, 0, 1, 1], [], []>} : vector<46x144xbf16>, vector<144x736xbf16>, vector<46x736xf32> -> vector<46x736xf32>
    %15 = arith.addf %9, %14 : vector<46x736xf32>
    %c0_14 = arith.constant 0 : index
    %c2_15 = arith.constant 2 : index
    %c0_16 = arith.constant 0 : index
    %16 = vector.load %arg1[%c0_14, %c2_15, %c0_16] : memref<1x48x144xbf16, #tpu.memory_space<vmem>>, vector<1x46x144xbf16>
    %17 = vector.shape_cast %16 : vector<1x46x144xbf16> to vector<46x144xbf16>
    %c2_17 = arith.constant 2 : index
    %c0_18 = arith.constant 0 : index
    %c0_19 = arith.constant 0 : index
    %18 = vector.load %arg3[%c2_17, %c0_18, %c0_19] : memref<3x144x736xbf16, #tpu.memory_space<vmem>>, vector<1x144x736xbf16>
    %19 = vector.shape_cast %18 : vector<1x144x736xbf16> to vector<144x736xbf16>
    %cst_20 = arith.constant dense<0.000000e+00> : vector<46x736xf32>
    %20 = tpu.matmul %17, %19, %cst_20 {dimension_numbers = #tpu.dot_dimension_numbers<[1], [0], [0], [1], [0, 0, 1, 1], [], []>} : vector<46x144xbf16>, vector<144x736xbf16>, vector<46x736xf32> -> vector<46x736xf32>
    %21 = arith.addf %15, %20 : vector<46x736xf32>
    %c0_21 = arith.constant 0 : index
    %c0_22 = arith.constant 0 : index
    %22 = vector.load %arg4[%c0_21, %c0_22] : memref<1x736xf32, #tpu.memory_space<vmem>>, vector<1x736xf32>
    %23 = vector.broadcast %22 : vector<1x736xf32> to vector<46x736xf32>
    %24 = arith.addf %21, %23 : vector<46x736xf32>
    %cst_23 = arith.constant 0.000000e+00 : f32
    %25 = vector.broadcast %cst_23 : f32 to vector<46x736xf32>
    %26 = arith.cmpf ogt, %24, %25 : vector<46x736xf32>
    %27 = vector.broadcast %0 : f32 to vector<46x736xf32>
    %28 = arith.mulf %27, %24 : vector<46x736xf32>
    %29 = arith.select %26, %24, %28 : vector<46x736xi1>, vector<46x736xf32>
    %30 = vector.extract_strided_slice %29 {offsets = [0, 0], sizes = [44, 736], strides = [1, 1]} : vector<46x736xf32> to vector<44x736xf32>
    %31 = vector.extract_strided_slice %29 {offsets = [1, 0], sizes = [44, 736], strides = [1, 1]} : vector<46x736xf32> to vector<44x736xf32>
    %32 = arith.maximumf %30, %31 : vector<44x736xf32>
    %33 = vector.extract_strided_slice %29 {offsets = [2, 0], sizes = [44, 736], strides = [1, 1]} : vector<46x736xf32> to vector<44x736xf32>
    %34 = arith.maximumf %32, %33 : vector<44x736xf32>
    %35 = vector.extract_strided_slice %34 {offsets = [0, 0], sizes = [44, 704], strides = [1, 1]} : vector<44x736xf32> to vector<44x704xf32>
    %36 = vector.extract_strided_slice %34 {offsets = [0, 16], sizes = [44, 704], strides = [1, 1]} : vector<44x736xf32> to vector<44x704xf32>
    %37 = arith.maximumf %35, %36 : vector<44x704xf32>
    %38 = vector.extract_strided_slice %34 {offsets = [0, 32], sizes = [44, 704], strides = [1, 1]} : vector<44x736xf32> to vector<44x704xf32>
    %39 = arith.maximumf %37, %38 : vector<44x704xf32>
    %c0_24 = arith.constant 0 : index
    %c0_25 = arith.constant 0 : index
    %40 = vector.load %arg9[%c0_24, %c0_25] : memref<22x44xbf16, #tpu.memory_space<vmem>>, vector<22x44xbf16>
    %41 = arith.truncf %39 : vector<44x704xf32> to vector<44x704xbf16>
    %cst_26 = arith.constant dense<0.000000e+00> : vector<22x704xf32>
    %42 = tpu.matmul %40, %41, %cst_26 {dimension_numbers = #tpu.dot_dimension_numbers<[1], [0], [0], [1], [0, 0, 1, 1], [], []>} : vector<22x44xbf16>, vector<44x704xbf16>, vector<22x704xf32> -> vector<22x704xf32>
    %cst_27 = arith.constant 0.000000e+00 : f32
    %43 = vector.broadcast %cst_27 : f32 to vector<20x640xf32>
    %44 = vector.extract_strided_slice %42 {offsets = [0, 0], sizes = [20, 704], strides = [1, 1]} : vector<22x704xf32> to vector<20x704xf32>
    %45 = arith.truncf %44 : vector<20x704xf32> to vector<20x704xbf16>
    %c0_28 = arith.constant 0 : index
    %c0_29 = arith.constant 0 : index
    %c0_30 = arith.constant 0 : index
    %46 = vector.load %arg5[%c0_28, %c0_29, %c0_30] : memref<3x704x640xbf16, #tpu.memory_space<vmem>>, vector<1x704x640xbf16>
    %47 = vector.shape_cast %46 : vector<1x704x640xbf16> to vector<704x640xbf16>
    %cst_31 = arith.constant dense<0.000000e+00> : vector<20x640xf32>
    %48 = tpu.matmul %45, %47, %cst_31 {dimension_numbers = #tpu.dot_dimension_numbers<[1], [0], [0], [1], [0, 0, 1, 1], [], []>} : vector<20x704xbf16>, vector<704x640xbf16>, vector<20x640xf32> -> vector<20x640xf32>
    %49 = arith.addf %43, %48 : vector<20x640xf32>
    %50 = vector.extract_strided_slice %42 {offsets = [1, 0], sizes = [20, 704], strides = [1, 1]} : vector<22x704xf32> to vector<20x704xf32>
    %51 = arith.truncf %50 : vector<20x704xf32> to vector<20x704xbf16>
    %c1_32 = arith.constant 1 : index
    %c0_33 = arith.constant 0 : index
    %c0_34 = arith.constant 0 : index
    %52 = vector.load %arg5[%c1_32, %c0_33, %c0_34] : memref<3x704x640xbf16, #tpu.memory_space<vmem>>, vector<1x704x640xbf16>
    %53 = vector.shape_cast %52 : vector<1x704x640xbf16> to vector<704x640xbf16>
    %cst_35 = arith.constant dense<0.000000e+00> : vector<20x640xf32>
    %54 = tpu.matmul %51, %53, %cst_35 {dimension_numbers = #tpu.dot_dimension_numbers<[1], [0], [0], [1], [0, 0, 1, 1], [], []>} : vector<20x704xbf16>, vector<704x640xbf16>, vector<20x640xf32> -> vector<20x640xf32>
    %55 = arith.addf %49, %54 : vector<20x640xf32>
    %56 = vector.extract_strided_slice %42 {offsets = [2, 0], sizes = [20, 704], strides = [1, 1]} : vector<22x704xf32> to vector<20x704xf32>
    %57 = arith.truncf %56 : vector<20x704xf32> to vector<20x704xbf16>
    %c2_36 = arith.constant 2 : index
    %c0_37 = arith.constant 0 : index
    %c0_38 = arith.constant 0 : index
    %58 = vector.load %arg5[%c2_36, %c0_37, %c0_38] : memref<3x704x640xbf16, #tpu.memory_space<vmem>>, vector<1x704x640xbf16>
    %59 = vector.shape_cast %58 : vector<1x704x640xbf16> to vector<704x640xbf16>
    %cst_39 = arith.constant dense<0.000000e+00> : vector<20x640xf32>
    %60 = tpu.matmul %57, %59, %cst_39 {dimension_numbers = #tpu.dot_dimension_numbers<[1], [0], [0], [1], [0, 0, 1, 1], [], []>} : vector<20x704xbf16>, vector<704x640xbf16>, vector<20x640xf32> -> vector<20x640xf32>
    %61 = arith.addf %55, %60 : vector<20x640xf32>
    %c0_40 = arith.constant 0 : index
    %c0_41 = arith.constant 0 : index
    %62 = vector.load %arg6[%c0_40, %c0_41] : memref<1x640xf32, #tpu.memory_space<vmem>>, vector<1x640xf32>
    %63 = vector.broadcast %62 : vector<1x640xf32> to vector<20x640xf32>
    %64 = arith.addf %61, %63 : vector<20x640xf32>
    %cst_42 = arith.constant 0.000000e+00 : f32
    %65 = vector.broadcast %cst_42 : f32 to vector<20x640xf32>
    %66 = arith.cmpf ogt, %64, %65 : vector<20x640xf32>
    %67 = vector.broadcast %1 : f32 to vector<20x640xf32>
    %68 = arith.mulf %67, %64 : vector<20x640xf32>
    %69 = arith.select %66, %64, %68 : vector<20x640xi1>, vector<20x640xf32>
    %70 = vector.extract_strided_slice %69 {offsets = [0, 0], sizes = [18, 640], strides = [1, 1]} : vector<20x640xf32> to vector<18x640xf32>
    %71 = vector.extract_strided_slice %69 {offsets = [1, 0], sizes = [18, 640], strides = [1, 1]} : vector<20x640xf32> to vector<18x640xf32>
    %72 = arith.maximumf %70, %71 : vector<18x640xf32>
    %73 = vector.extract_strided_slice %69 {offsets = [2, 0], sizes = [18, 640], strides = [1, 1]} : vector<20x640xf32> to vector<18x640xf32>
    %74 = arith.maximumf %72, %73 : vector<18x640xf32>
    %75 = vector.extract_strided_slice %74 {offsets = [0, 0], sizes = [18, 576], strides = [1, 1]} : vector<18x640xf32> to vector<18x576xf32>
    %76 = vector.extract_strided_slice %74 {offsets = [0, 32], sizes = [18, 576], strides = [1, 1]} : vector<18x640xf32> to vector<18x576xf32>
    %77 = arith.maximumf %75, %76 : vector<18x576xf32>
    %78 = vector.extract_strided_slice %74 {offsets = [0, 64], sizes = [18, 576], strides = [1, 1]} : vector<18x640xf32> to vector<18x576xf32>
    %79 = arith.maximumf %77, %78 : vector<18x576xf32>
    %c0_43 = arith.constant 0 : index
    %c0_44 = arith.constant 0 : index
    %80 = vector.load %arg10[%c0_43, %c0_44] : memref<9x18xbf16, #tpu.memory_space<vmem>>, vector<9x18xbf16>
    %81 = arith.truncf %79 : vector<18x576xf32> to vector<18x576xbf16>
    %cst_45 = arith.constant dense<0.000000e+00> : vector<9x576xf32>
    %82 = tpu.matmul %80, %81, %cst_45 {dimension_numbers = #tpu.dot_dimension_numbers<[1], [0], [0], [1], [0, 0, 1, 1], [], []>} : vector<9x18xbf16>, vector<18x576xbf16>, vector<9x576xf32> -> vector<9x576xf32>
    %cst_46 = arith.constant 0.000000e+00 : f32
    %83 = vector.broadcast %cst_46 : f32 to vector<7x448xf32>
    %84 = vector.extract_strided_slice %82 {offsets = [0, 0], sizes = [7, 576], strides = [1, 1]} : vector<9x576xf32> to vector<7x576xf32>
    %85 = arith.truncf %84 : vector<7x576xf32> to vector<7x576xbf16>
    %c0_47 = arith.constant 0 : index
    %c0_48 = arith.constant 0 : index
    %c0_49 = arith.constant 0 : index
    %86 = vector.load %arg7[%c0_47, %c0_48, %c0_49] : memref<3x576x448xbf16, #tpu.memory_space<vmem>>, vector<1x576x448xbf16>
    %87 = vector.shape_cast %86 : vector<1x576x448xbf16> to vector<576x448xbf16>
    %cst_50 = arith.constant dense<0.000000e+00> : vector<7x448xf32>
    %88 = tpu.matmul %85, %87, %cst_50 {dimension_numbers = #tpu.dot_dimension_numbers<[1], [0], [0], [1], [0, 0, 1, 1], [], []>} : vector<7x576xbf16>, vector<576x448xbf16>, vector<7x448xf32> -> vector<7x448xf32>
    %89 = arith.addf %83, %88 : vector<7x448xf32>
    %90 = vector.extract_strided_slice %82 {offsets = [1, 0], sizes = [7, 576], strides = [1, 1]} : vector<9x576xf32> to vector<7x576xf32>
    %91 = arith.truncf %90 : vector<7x576xf32> to vector<7x576xbf16>
    %c1_51 = arith.constant 1 : index
    %c0_52 = arith.constant 0 : index
    %c0_53 = arith.constant 0 : index
    %92 = vector.load %arg7[%c1_51, %c0_52, %c0_53] : memref<3x576x448xbf16, #tpu.memory_space<vmem>>, vector<1x576x448xbf16>
    %93 = vector.shape_cast %92 : vector<1x576x448xbf16> to vector<576x448xbf16>
    %cst_54 = arith.constant dense<0.000000e+00> : vector<7x448xf32>
    %94 = tpu.matmul %91, %93, %cst_54 {dimension_numbers = #tpu.dot_dimension_numbers<[1], [0], [0], [1], [0, 0, 1, 1], [], []>} : vector<7x576xbf16>, vector<576x448xbf16>, vector<7x448xf32> -> vector<7x448xf32>
    %95 = arith.addf %89, %94 : vector<7x448xf32>
    %96 = vector.extract_strided_slice %82 {offsets = [2, 0], sizes = [7, 576], strides = [1, 1]} : vector<9x576xf32> to vector<7x576xf32>
    %97 = arith.truncf %96 : vector<7x576xf32> to vector<7x576xbf16>
    %c2_55 = arith.constant 2 : index
    %c0_56 = arith.constant 0 : index
    %c0_57 = arith.constant 0 : index
    %98 = vector.load %arg7[%c2_55, %c0_56, %c0_57] : memref<3x576x448xbf16, #tpu.memory_space<vmem>>, vector<1x576x448xbf16>
    %99 = vector.shape_cast %98 : vector<1x576x448xbf16> to vector<576x448xbf16>
    %cst_58 = arith.constant dense<0.000000e+00> : vector<7x448xf32>
    %100 = tpu.matmul %97, %99, %cst_58 {dimension_numbers = #tpu.dot_dimension_numbers<[1], [0], [0], [1], [0, 0, 1, 1], [], []>} : vector<7x576xbf16>, vector<576x448xbf16>, vector<7x448xf32> -> vector<7x448xf32>
    %101 = arith.addf %95, %100 : vector<7x448xf32>
    %c0_59 = arith.constant 0 : index
    %c0_60 = arith.constant 0 : index
    %102 = vector.load %arg8[%c0_59, %c0_60] : memref<1x448xf32, #tpu.memory_space<vmem>>, vector<1x448xf32>
    %103 = vector.broadcast %102 : vector<1x448xf32> to vector<7x448xf32>
    %104 = arith.addf %101, %103 : vector<7x448xf32>
    %cst_61 = arith.constant 0.000000e+00 : f32
    %105 = vector.broadcast %cst_61 : f32 to vector<7x448xf32>
    %106 = arith.cmpf ogt, %104, %105 : vector<7x448xf32>
    %107 = vector.broadcast %2 : f32 to vector<7x448xf32>
    %108 = arith.mulf %107, %104 : vector<7x448xf32>
    %109 = arith.select %106, %104, %108 : vector<7x448xi1>, vector<7x448xf32>
    %110 = arith.truncf %109 : vector<7x448xf32> to vector<7x448xbf16>
    %c0_62 = arith.constant 0 : index
    %c0_63 = arith.constant 0 : index
    %111 = vector.load %arg11[%c0_62, %c0_63] : memref<448x42xbf16, #tpu.memory_space<vmem>>, vector<448x42xbf16>
    %cst_64 = arith.constant dense<0.000000e+00> : vector<7x42xf32>
    %112 = tpu.matmul %110, %111, %cst_64 {dimension_numbers = #tpu.dot_dimension_numbers<[1], [0], [0], [1], [0, 0, 1, 1], [], []>} : vector<7x448xbf16>, vector<448x42xbf16>, vector<7x42xf32> -> vector<7x42xf32>
    %c0_65 = arith.constant 0 : index
    %c0_66 = arith.constant 0 : index
    %113 = vector.load %arg12[%c0_65, %c0_66] : memref<1x42xf32, #tpu.memory_space<vmem>>, vector<1x42xf32>
    %114 = vector.broadcast %113 : vector<1x42xf32> to vector<7x42xf32>
    %115 = arith.addf %112, %114 : vector<7x42xf32>
    %116 = math.absf %115 : vector<7x42xf32>
    %cst_67 = arith.constant 0.000000e+00 : f32
    %117 = vector.broadcast %cst_67 : f32 to vector<7x42xf32>
    %118 = arith.subf %117, %116 : vector<7x42xf32>
    %119 = math.exp %118 : vector<7x42xf32>
    %cst_68 = arith.constant 1.000000e+00 : f32
    %120 = vector.broadcast %cst_68 : f32 to vector<7x42xf32>
    %121 = arith.addf %120, %119 : vector<7x42xf32>
    %122 = tpu.reciprocal %121 {approx = true} : vector<7x42xf32> -> vector<7x42xf32>
    %cst_69 = arith.constant 0.000000e+00 : f32
    %123 = vector.broadcast %cst_69 : f32 to vector<7x42xf32>
    %124 = arith.cmpf oge, %115, %123 : vector<7x42xf32>
    %125 = arith.mulf %119, %122 : vector<7x42xf32>
    %126 = arith.select %124, %122, %125 : vector<7x42xi1>, vector<7x42xf32>
    %c0_70 = arith.constant 0 : index
    %c0_71 = arith.constant 0 : index
    %127 = vector.load %arg13[%c0_70, %c0_71] : memref<1x42xf32, #tpu.memory_space<vmem>>, vector<1x42xf32>
    %cst_72 = arith.constant 5.000000e-01 : f32
    %128 = vector.broadcast %cst_72 : f32 to vector<1x42xf32>
    %129 = arith.cmpf ogt, %127, %128 : vector<1x42xf32>
    %130 = vector.shape_cast %129 : vector<1x42xi1> to vector<1x42xi1>
    %131 = vector.broadcast %130 : vector<1x42xi1> to vector<7x42xi1>
    %132 = arith.select %131, %126, %115 : vector<7x42xi1>, vector<7x42xf32>
    %c0_73 = arith.constant 0 : index
    %c0_74 = arith.constant 0 : index
    %c0_75 = arith.constant 0 : index
    %133 = vector.load %arg14[%c0_73, %c0_74, %c0_75] : memref<1x7x42xf32, #tpu.memory_space<vmem>>, vector<1x7x42xf32>
    %134 = vector.shape_cast %133 : vector<1x7x42xf32> to vector<7x42xf32>
    %135 = vector.shape_cast %132 : vector<7x42xf32> to vector<1x7x42xf32>
    tpu.vector_store %arg14[%c0_73, %c0_74, %c0_75], %135 {strides = array<i32>} : memref<1x7x42xf32, #tpu.memory_space<vmem>>, vector<1x7x42xf32>,
    return
  }
  func.func @transform_0(%arg0: i32) -> (i32, i32, i32) {
    %c0_i32 = arith.constant 0 : i32
    %c0_i32_0 = arith.constant 0 : i32
    %c0_i32_1 = arith.constant 0 : i32
    return %arg0, %c0_i32, %c0_i32_0 : i32, i32, i32
  }
  func.func @transform_1(%arg0: i32) -> i32 {
    %c0_i32 = arith.constant 0 : i32
    %c0_i32_0 = arith.constant 0 : i32
    return %c0_i32 : i32
  }
  func.func @transform_2(%arg0: i32) -> (i32, i32, i32) {
    %c0_i32 = arith.constant 0 : i32
    %c0_i32_0 = arith.constant 0 : i32
    %c0_i32_1 = arith.constant 0 : i32
    %c0_i32_2 = arith.constant 0 : i32
    return %c0_i32, %c0_i32_0, %c0_i32_1 : i32, i32, i32
  }
  func.func @transform_3(%arg0: i32) -> (i32, i32) {
    %c0_i32 = arith.constant 0 : i32
    %c0_i32_0 = arith.constant 0 : i32
    %c0_i32_1 = arith.constant 0 : i32
    return %c0_i32, %c0_i32_0 : i32, i32
  }
  func.func @transform_4(%arg0: i32) -> (i32, i32, i32) {
    %c0_i32 = arith.constant 0 : i32
    %c0_i32_0 = arith.constant 0 : i32
    %c0_i32_1 = arith.constant 0 : i32
    %c0_i32_2 = arith.constant 0 : i32
    return %c0_i32, %c0_i32_0, %c0_i32_1 : i32, i32, i32
  }
  func.func @transform_5(%arg0: i32) -> (i32, i32) {
    %c0_i32 = arith.constant 0 : i32
    %c0_i32_0 = arith.constant 0 : i32
    %c0_i32_1 = arith.constant 0 : i32
    return %c0_i32, %c0_i32_0 : i32, i32
  }
  func.func @transform_6(%arg0: i32) -> (i32, i32, i32) {
    %c0_i32 = arith.constant 0 : i32
    %c0_i32_0 = arith.constant 0 : i32
    %c0_i32_1 = arith.constant 0 : i32
    %c0_i32_2 = arith.constant 0 : i32
    return %c0_i32, %c0_i32_0, %c0_i32_1 : i32, i32, i32
  }
  func.func @transform_7(%arg0: i32) -> (i32, i32) {
    %c0_i32 = arith.constant 0 : i32
    %c0_i32_0 = arith.constant 0 : i32
    %c0_i32_1 = arith.constant 0 : i32
    return %c0_i32, %c0_i32_0 : i32, i32
  }
  func.func @transform_8(%arg0: i32) -> (i32, i32) {
    %c0_i32 = arith.constant 0 : i32
    %c0_i32_0 = arith.constant 0 : i32
    %c0_i32_1 = arith.constant 0 : i32
    return %c0_i32, %c0_i32_0 : i32, i32
  }
  func.func @transform_9(%arg0: i32) -> (i32, i32) {
    %c0_i32 = arith.constant 0 : i32
    %c0_i32_0 = arith.constant 0 : i32
    %c0_i32_1 = arith.constant 0 : i32
    return %c0_i32, %c0_i32_0 : i32, i32
  }
  func.func @transform_10(%arg0: i32) -> (i32, i32) {
    %c0_i32 = arith.constant 0 : i32
    %c0_i32_0 = arith.constant 0 : i32
    %c0_i32_1 = arith.constant 0 : i32
    return %c0_i32, %c0_i32_0 : i32, i32
  }
  func.func @transform_11(%arg0: i32) -> (i32, i32) {
    %c0_i32 = arith.constant 0 : i32
    %c0_i32_0 = arith.constant 0 : i32
    %c0_i32_1 = arith.constant 0 : i32
    return %c0_i32, %c0_i32_0 : i32, i32
  }
  func.func @transform_12(%arg0: i32) -> (i32, i32) {
    %c0_i32 = arith.constant 0 : i32
    %c0_i32_0 = arith.constant 0 : i32
    %c0_i32_1 = arith.constant 0 : i32
    return %c0_i32, %c0_i32_0 : i32, i32
  }
  func.func @transform_13(%arg0: i32) -> (i32, i32, i32) {
    %c0_i32 = arith.constant 0 : i32
    %c0_i32_0 = arith.constant 0 : i32
    %c0_i32_1 = arith.constant 0 : i32
    return %arg0, %c0_i32, %c0_i32_0 : i32, i32, i32
  }
}

</mosaic_0001>

<bundles_post_ra>
// kernel: _forward_impl.1
= control target key start
LH: loop header
LB: loop body
LE: loop exit
PB: predicated region body
PF: predicated region fallthrough
CT: control target
= control target key end

     0   :  { %18 = vsyncpa [#allocation3], 0  ;;  %s18278_s25 = smov 0   ;;  %s23949_s0 = inlined_call_operand.vmem [shape: bf16[2,48,144], index: 0, kind: input, shape index: {}]   ;;  %s23950_s1 = inlined_call_operand.vmem [shape: f32[3], index: 1, kind: input, shape index: {}]   ;;  %s23951_s2 = inlined_call_operand.vmem [shape: bf16[3,144,736], index: 2, kind: input, shape index: {}]   ;;  %s23952_s3 = inlined_call_operand.vmem [shape: f32[1,736], index: 3, kind: input, shape index: {}]   ;;  %s23953_s4 = inlined_call_operand.vmem [shape: bf16[3,704,640], index: 4, kind: input, shape index: {}]   ;;  %s23954_s5 = inlined_call_operand.vmem [shape: f32[1,640], index: 5, kind: input, shape index: {}]   ;;  %s23955_s6 = inlined_call_operand.vmem [shape: bf16[3,576,448], index: 6, kind: input, shape index: {}]   ;;  %s23956_s7 = inlined_call_operand.vmem [shape: f32[1,448], index: 7, kind: input, shape index: {}]   ;;  %s23957_s8 = inlined_call_operand.vmem [shape: bf16[22,44], index: 8, kind: input, shape index: {}]   ;;  %s23958_s9 = inlined_call_operand.vmem [shape: bf16[9,18], index: 9, kind: input, shape index: {}]   ;;  %s23959_s10 = inlined_call_operand.vmem [shape: bf16[448,42], index: 10, kind: input, shape index: {}]   ;;  %s23960_s11 = inlined_call_operand.vmem [shape: f32[1,42], index: 11, kind: input, shape index: {}]   ;;  %s23961_s12 = inlined_call_operand.vmem [shape: f32[1,42], index: 12, kind: input, shape index: {}]   ;;  %s23962_s13 = inlined_call_operand.vmem [shape: f32[2,7,42], index: 13, kind: output, shape index: {}]  }
   0x1 LB: > { %s18284_s26 = sadd.s32 4294967295, %s18199_s25   ;;  %p13400_p0 = scmp.ge.s32.totalorder %s18199_s25, 1  ;;  %s18199_s25 = sphi %s18278_s25, %s24_s25  }
   0x2   : > { %p333_p1 = scmp.lt.s32.totalorder %s18199_s25, 3  ;;  %s346_s29 = sshll.u32 %s23950_s1, 4  ;;  %s347_s29 = int_to_ptr.vmem [resolvable:$true] %s346_s29 }
   0x3   : > { %p16043_p3 = scmp.eq.s32.totalorder %s18284_s26, 0  ;;  %s18174_s14 = scalar_lea.vmem %s347_s29, 16 }
   0x4   : > { %p18291_p2 = pnand %p13400_p0, %p333_p1  ;;  %p18175_p6 = scmp.ne.s32.totalorder %s347_s29, %s18174_s14 }
   0x5   : > { %p18182_p10 = scmp.lt.s32.totalorder %s347_s29, %s347_s29  ;;  %p18183_p11 = scmp.lt.s32.totalorder %s18174_s14, %s18174_s14 }
   0x6   : > { %p16039_p4 = pneg %p18291_p2 }
   0x7   : > { %p18184_p12 = por %p18183_p11, %p18182_p10 }
   0x8   : > { %p16040_p5 = pnand %p16043_p3, %p16039_p4 }
   0xa   : > { %p18176_p7 = pneg %p16040_p5 }
   0xc   : > { %p18177_p8 = pnand %p18176_p7, %p18175_p6 }
   0xe   : > { %p18178_p9 = pneg %p18177_p8 }
  0x10   : > { %p18185_p13 = pnand %p18184_p12, %p18178_p9 }
  0x12   : > { %18188 = shalt.err (!%p18185_p13)
}
  0x13   : > { %s18201_s15 = smov [#allocation2]   ;;  %400 = sbr.rel (%p18291_p2) target bundleno = 2946 (0xb82), region = 72 }
  0x14   : > { %16042 = dma.vmem_to_smem (!%p16040_p5), %s347_s29, 16, %s18201_s15, [#allocation3]  }
  0x1a   : > { %18194 = dma.done.wait (%p16043_p3), [#allocation3], 16  }
  0x1b   : > { %18196 = vsyncadd (%p16043_p3), [#allocation3], 4294967280 }
  0x1c   : > { %406 = sfence }
  0x1d   : > { %v16310_v0 = vld [vmem:[%s23951_s2 + $0x1b4] ss:$24 sps:$4 sm:$0xff]   ;;  %v16314_v2 = vld [vmem:[%s23951_s2 + $0x1b0] ss:$24 sps:$4 sm:$0xff]   ;;  %v16316_v4 = vld [vmem:[%s23951_s2 + $0x1e4] ss:$24 sps:$4 sm:$0xff]  }
  0x1e   : > { %v16312_v1 = vld [vmem:[%s23951_s2 + $0x1bc] ss:$24 sps:$4 sm:$0xff]   ;;  %927 = vmatprep.subr.bf16.mxu0 %v16310_v0  ;;  %v16315_v3 = vld [vmem:[%s23951_s2 + $0x1b8] ss:$24 sps:$4 sm:$0xff]   ;;  %v16318_v5 = vld [vmem:[%s23951_s2 + $0x1ec] ss:$24 sps:$4 sm:$0xff]  }
  0x1f   : > { %990 = vmatprep.subr.bf16.mxu1 %v16312_v1  ;;  %928 = vmatpush1.bf16.msra.mxu0 %v16314_v2  ;;  %v16320_v6 = vld [vmem:[%s23951_s2 + $0x1e0] ss:$24 sps:$4 sm:$0xff]   ;;  %v16322_v8 = vld [vmem:[%s23951_s2 + $0x214] ss:$24 sps:$4 sm:$0xff]   ;;  %v16326_v10 = vld [vmem:[%s23951_s2 + $0x210] ss:$24 sps:$4 sm:$0xff]  }
  0x20   : > { %991 = vmatpush1.bf16.msra.mxu1 %v16315_v3  ;;  %929 = vmatprep.subr.bf16.mxu0 %v16316_v4  ;;  %v16321_v7 = vld [vmem:[%s23951_s2 + $0x1e8] ss:$24 sps:$4 sm:$0xff]   ;;  %v16324_v9 = vld [vmem:[%s23951_s2 + $0x21c] ss:$24 sps:$4 sm:$0xff]   ;;  %v16327_v11 = vld [vmem:[%s23951_s2 + $0x218] ss:$24 sps:$4 sm:$0xff]  }
  0x21   : > { %992 = vmatprep.subr.bf16.mxu1 %v16318_v5  ;;  %v16328_v12 = vld [vmem:[%s23951_s2 + $0x244] ss:$24 sps:$4 sm:$0xff]   ;;  %p444_p0 = scmp.lt.s32.totalorder %s18284_s26, 1  ;;  %v16332_v14 = vld [vmem:[%s23951_s2 + $0x240] ss:$24 sps:$4 sm:$0xff]   ;;  %vm917_vm1 = vcmask 130048  }
  0x22   : > { %v16330_v13 = vld [vmem:[%s23951_s2 + $0x24c] ss:$24 sps:$4 sm:$0xff]   ;;  %v16333_v15 = vld [vmem:[%s23951_s2 + $0x248] ss:$24 sps:$4 sm:$0xff]   ;;  %v16336_v17 = vld [vmem:[%s23951_s2 + $0x27c] ss:$24 sps:$4 sm:$0xff]  }
  0x23   : > { %930 = vmatpush1.bf16.msra.mxu0 %v16320_v6  ;;  %v16334_v16 = vld [vmem:[%s23951_s2 + $0x274] ss:$24 sps:$4 sm:$0xff]   ;;  %s24007_s26 = smov (!%p444_p0, %s18284_s26), 1  ;;  %v16338_v18 = vld [vmem:[%s23951_s2 + $0x270] ss:$24 sps:$4 sm:$0xff]   ;;  %vm1651_vm2 = vcmask 1046528  }
  0x24   : > { %993 = vmatpush1.bf16.msra.mxu1 %v16321_v7  ;;  %931 = vmatprep.subr.bf16.mxu0 %v16322_v8  ;;  %v16339_v19 = vld [vmem:[%s23951_s2 + $0x278] ss:$24 sps:$4 sm:$0xff]   ;;  %v16340_v20 = vld [vmem:[%s23951_s2 + $0x2a4] ss:$24 sps:$4 sm:$0xff]   ;;  %s16034_s15 = smul.u32 48, %s24007_s26  ;;  %s454_s17 = sld [smem:[#allocation2]] }
  0x25   : > { %994 = vmatprep.subr.bf16.mxu1 %v16324_v9  ;;  %v16342_v21 = vld [vmem:[%s23951_s2 + $0x2ac] ss:$24 sps:$4 sm:$0xff]   ;;  %v16344_v22 = vld [vmem:[%s23951_s2 + $0x2a0] ss:$24 sps:$4 sm:$0xff]   ;;  %v16348_v25 = vld [vmem:[%s23951_s2 + $0x2dc] ss:$24 sps:$4 sm:$0xff]  }
  0x26   : > { %v16345_v23 = vld [vmem:[%s23951_s2 + $0x2a8] ss:$24 sps:$4 sm:$0xff]   ;;  %v16346_v24 = vld [vmem:[%s23951_s2 + $0x2d4] ss:$24 sps:$4 sm:$0xff]   ;;  %s18392_s28 = scalar_lea.vmem %s23949_s0, %s16034_s15  ;;  %v16351_v27 = vld [vmem:[%s23951_s2 + $0x2d8] ss:$24 sps:$4 sm:$0xff]  }
  0x27   : > { %932 = vmatpush1.bf16.msra.mxu0 %v16326_v10  ;;  %v16350_v26 = vld [vmem:[%s23951_s2 + $0x2d0] ss:$24 sps:$4 sm:$0xff]   ;;  %v16352_v28 = vld [vmem:[%s23951_s2 + $0x304] ss:$24 sps:$4 sm:$0xff]   ;;  %v16356_v35 = vld [vmem:[%s23951_s2 + $0x300] ss:$24 sps:$4 sm:$0xff]  }
  0x28   : > { %995 = vmatpush1.bf16.msra.mxu1 %v16327_v11  ;;  %933 = vmatprep.subr.bf16.mxu0 %v16328_v12  ;;  %v16354_v29 = vld [vmem:[%s23951_s2 + $0x30c] ss:$24 sps:$4 sm:$0xff]   ;;  %v18414_v33 = vld [vmem:[%s18392_s28 + $0x14] ss:$8 sps:$4 sm:$0xff]   ;;  %v16357_v36 = vld [vmem:[%s23951_s2 + $0x308] ss:$24 sps:$4 sm:$0xff]  }
  0x29   : > { %996 = vmatprep.subr.bf16.mxu1 %v16330_v13  ;;  %v457_v30 = vld [vmem:[%s18392_s28] sm:$0xff]  ;;  %v18408_v31 = vld [vmem:[%s18392_s28 + $0x8] sm:$0xff]  ;;  %v618_v40 = vshll.u32 %v18414_v33, 16  ;;  %v16360_v41 = vld [vmem:[%s23951_s2 + $0x33c] ss:$24 sps:$4 sm:$0xff]   ;;  %v630_v1 = vshrl.u32 %v18414_v33, 16 }
  0x2a   : > { %v18411_v32 = vcombine.high %v457_v30, %v18408_v31  ;;  %v18417_v34 = vcombine.low %v457_v30, %v18408_v31  ;;  %v16358_v37 = vld [vmem:[%s23951_s2 + $0x334] ss:$24 sps:$4 sm:$0xff]   ;;  %v18435_v42 = vld [vmem:[%s18392_s28 + $0x10] ss:$8 sps:$4 sm:$0xff]   ;;  %vm597_vm0 = vsmask.f32 7424 }
  0x2b   : > { %934 = vmatpush1.bf16.msra.mxu0 %v16332_v14  ;;  %v620_v45 = vrot.slane %v618_v40, 1  ;;  %v606_v47 = vshll.u32 %v18435_v42, 16  ;;  %v16362_v48 = vld [vmem:[%s23951_s2 + $0x330] ss:$24 sps:$4 sm:$0xff]   ;;  %v16369_v52 = vld [vmem:[%s23951_s2 + $0x1c4] ss:$24 sps:$4 sm:$0xff]  }
  0x2c   : > { %997 = vmatpush1.bf16.msra.mxu1 %v16333_v15  ;;  %935 = vmatprep.subr.bf16.mxu0 %v16334_v16  ;;  %v611_v38 = vshrl.u32 %v18411_v32, 16  ;;  %v613_v39 = vshll.u32 %v18411_v32, 16  ;;  %v599_v43 = vshrl.u32 %v18417_v34, 16  ;;  %v601_v46 = vshll.u32 %v18417_v34, 16  ;;  %v16363_v51 = vld [vmem:[%s23951_s2 + $0x338] ss:$24 sps:$4 sm:$0xff]  }
  0x2d   : > { %998 = vmatprep.subr.bf16.mxu1 %v16336_v17  ;;  %v608_v53 = vrot.slane %v606_v47, 1  ;;  %v16372_v55 = vld [vmem:[%s23951_s2 + $0xc] ss:$24 sps:$4 sm:$0xff]   ;;  %v16367_v57 = vld [vmem:[%s23951_s2 + $0x1c0] ss:$24 sps:$4 sm:$0xff]   ;;  %v622_v3 = vshrl.u32 %v18435_v42, 16  ;;  %v632_v9 = vor.u32 %v630_v1, %v620_v45 }
  0x2e   : > { %v615_v44 = vrot.slane %v613_v39, 1  ;;  %v603_v50 = vrot.slane %v601_v46, 1  ;;  %v16370_v58 = vld [vmem:[%s23951_s2 + $0x8] ss:$24 sps:$4 sm:$0xff]   ;;  %v16377_v60 = vld [vmem:[%s23951_s2 + $0x1f4] ss:$24 sps:$4 sm:$0xff]  }
  0x2f   : > { %936 = vmatpush1.bf16.msra.mxu0 %v16338_v18  ;;  %v16380_v61 = vld [vmem:[%s23951_s2 + $0x3c] ss:$24 sps:$4 sm:$0xff]   ;;  %v16375_v62 = vld [vmem:[%s23951_s2 + $0x1f0] ss:$24 sps:$4 sm:$0xff]   ;;  %v18483_v0 = vld [vmem:[%s18392_s28 + $0x20] sm:$0xff]  ;;  %v624_v13 = vor.u32 %v622_v3, %v608_v53  ;;  %vm2521_vm7 = vcmask 1045504  }
  0x30   : > { %999 = vmatpush1.bf16.msra.mxu1 %v16339_v19  ;;  %937 = vmatprep.subr.bf16.mxu0 %v16340_v20  ;;  %v616_v49 = vor.u32 %v615_v44, %v611_v38  ;;  %v604_v56 = vor.u32 %v603_v50, %v599_v43  ;;  %v16378_v63 = vld [vmem:[%s23951_s2 + $0x38] ss:$24 sps:$4 sm:$0xff]   ;;  %v517_v2 = vld [vmem:[%s18392_s28 + $0x28] sm:$0xff]  ;;  %v16383_v4 = vld [vmem:[%s23951_s2 + $0x224] ss:$24 sps:$4 sm:$0xff]   ;;  %s18202_s18 = smov 96  }
  0x31   : > { %1000 = vmatprep.subr.bf16.mxu1 %v16342_v21  ;;  %v16386_v5 = vld [vmem:[%s23951_s2 + $0x6c] ss:$24 sps:$4 sm:$0xff]   ;;  %v18495_v6 = vcombine.high %v18483_v0, %v517_v2  ;;  %v18498_v7 = vcombine.low %v18483_v0, %v517_v2  ;;  %v16381_v8 = vld [vmem:[%s23951_s2 + $0x220] ss:$24 sps:$4 sm:$0xff]   ;;  %v16392_v15 = vld [vmem:[%s23951_s2 + $0x9c] ss:$24 sps:$4 sm:$0xff]  }
  0x32   : > { %v18450_v54 = vsel %vm597_vm0, %v616_v49, %v620_v45  ;;  %v18466_v59 = vsel %vm597_vm0, %v604_v56, %v608_v53  ;;  %v16384_v12 = vld [vmem:[%s23951_s2 + $0x68] ss:$24 sps:$4 sm:$0xff]   ;;  %v16389_v14 = vld [vmem:[%s23951_s2 + $0x254] ss:$24 sps:$4 sm:$0xff]   ;;  %v16390_v21 = vld [vmem:[%s23951_s2 + $0x98] ss:$24 sps:$4 sm:$0xff]  }
  0x33   : > { %938 = vmatpush1.bf16.msra.mxu0 %v16344_v22  ;;  %13523 = vmatprep.mubr.msk.bf16.mxu0 %vm917_vm1, %v18450_v54  ;;  %v634_v10 = vshll.u32 %v18495_v6, 16  ;;  %v626_v11 = vshll.u32 %v18498_v7, 16  ;;  %v641_v18 = vshrl.u32 %v18495_v6, 16  ;;  %v16387_v20 = vld [vmem:[%s23951_s2 + $0x250] ss:$24 sps:$4 sm:$0xff]   ;;  %s18203_s19 = smov 112  }
  0x34   : > { %1001 = vmatpush1.bf16.msra.mxu1 %v16345_v23  ;;  %939 = vmatprep.subr.bf16.mxu0 %v16346_v24  ;;  %v16395_v23 = vld [vmem:[%s23951_s2 + $0x284] ss:$24 sps:$4 sm:$0xff]   ;;  %v16407_v40 = vld [vmem:[%s23951_s2 + $0x2e0] ss:$24 sps:$4 sm:$0xff]   ;;  %v16415_v43 = vld [vmem:[%s23951_s2 + $0x314] ss:$24 sps:$4 sm:$0xff]  }
  0x35   : > { %1002 = vmatprep.subr.bf16.mxu1 %v16348_v25  ;;  %13526 = vmatprep.mubr.msk.bf16.mxu1 %vm917_vm1, %v18450_v54  ;;  %v636_v16 = vrot.slane %v634_v10, 1  ;;  %v628_v17 = vrot.slane %v626_v11, 1  ;;  %v16398_v24 = vld [vmem:[%s23951_s2 + $0xcc] ss:$24 sps:$4 sm:$0xff]   ;;  %v16405_v30 = vld [vmem:[%s23951_s2 + $0xfc] ss:$24 sps:$4 sm:$0xff]  }
  0x36   : > { %v16409_v38 = vld [vmem:[%s23951_s2 + $0x2e4] ss:$24 sps:$4 sm:$0xff]   ;;  %v16413_v45 = vld [vmem:[%s23951_s2 + $0x310] ss:$24 sps:$4 sm:$0xff]   ;;  %v16419_v49 = vld [vmem:[%s23951_s2 + $0x340] ss:$24 sps:$4 sm:$0xff]  }
  0x37   : > { %940 = vmatpush1.bf16.msra.mxu0 %v16350_v26  ;;  %v18516_v19 = vsel %vm597_vm0, %v632_v9, %v636_v16  ;;  %v18525_v22 = vsel %vm597_vm0, %v624_v13, %v628_v17  ;;  %v18537_v25 = vor.u32 %v641_v18, %v636_v16  ;;  %v638_v26 = vshrl.u32 %v18498_v7, 16  ;;  %v16412_v39 = vld [vmem:[%s23951_s2 + $0x12c] ss:$24 sps:$4 sm:$0xff]   ;;  %v16418_v44 = vld [vmem:[%s23951_s2 + $0x15c] ss:$24 sps:$4 sm:$0xff]   ;;  %s13407_s14 = sld [smem:[#allocation2 + $0x1]] }
  0x38   : > { %1003 = vmatpush1.bf16.msra.mxu1 %v16351_v27  ;;  %941 = vmatprep.subr.bf16.mxu0 %v16352_v28  ;;  %v16393_v27 = vld [vmem:[%s23951_s2 + $0x280] ss:$24 sps:$4 sm:$0xff]   ;;  %v16421_v47 = vld [vmem:[%s23951_s2 + $0x344] ss:$24 sps:$4 sm:$0xff]   ;;  %v462_v2 = vld [vmem:[%s18392_s28 + $0x28] sm:$0x77] }
  0x39   : > { %1004 = vmatprep.subr.bf16.mxu1 %v16354_v29  ;;  %v16396_v28 = vld [vmem:[%s23951_s2 + $0xc8] ss:$24 sps:$4 sm:$0xff]   ;;  %v16402_v29 = vld [vmem:[%s23951_s2 + $0x2b4] ss:$24 sps:$4 sm:$0xff]   ;;  %v16416_v46 = vld [vmem:[%s23951_s2 + $0x158] ss:$24 sps:$4 sm:$0xff]  }
  0x3a   : > { %v16422_v50 = vld [vmem:[%s23951_s2 + $0x188] ss:$24 sps:$4 sm:$0xff]   ;;  %v16436_v56 = vld [vmem:[%s23951_s2 + $0x39c] ss:$24 sps:$4 sm:$0xff]   ;;  %v16446_v10 = vld [vmem:[%s23951_s2 + $0x3f8] ss:$24 sps:$4 sm:$0xff]  }
  0x3b   : > { %942 = vmatpush1.bf16.msra.mxu0 %v16356_v35  ;;  %v18558_v35 = vor.u32 %v638_v26, %v628_v17  ;;  %v16425_v53 = vld [vmem:[%s23951_s2] ss:$24 sps:$4 sm:$0xff]   ;;  %v16443_v9 = vld [vmem:[%s23951_s2 + $0x90] ss:$24 sps:$4 sm:$0xff]   ;;  %v16451_v11 = vld [vmem:[%s23951_s2 + $0xc4] ss:$24 sps:$4 sm:$0xff]  }
  0x3c   : > { %1005 = vmatpush1.bf16.msra.mxu1 %v16357_v36  ;;  %943 = vmatprep.subr.bf16.mxu0 %v16358_v37  ;;  %v16400_v36 = vld [vmem:[%s23951_s2 + $0x2b0] ss:$24 sps:$4 sm:$0xff]   ;;  %v16437_v1 = vld [vmem:[%s23951_s2 + $0x60] ss:$24 sps:$4 sm:$0xff]   ;;  %v1656_v16 = vrot.slane %v18414_v33, 1  ;;  %s13408_s27 = sld [smem:[#allocation2 + $0x2]] }
  0x3d   : > { %1006 = vmatprep.subr.bf16.mxu1 %v16360_v41  ;;  %v16403_v37 = vld [vmem:[%s23951_s2 + $0xf8] ss:$24 sps:$4 sm:$0xff]   ;;  %v16410_v41 = vld [vmem:[%s23951_s2 + $0x128] ss:$24 sps:$4 sm:$0xff]   ;;  %v16457_v18 = vld [vmem:[%s23951_s2 + $0xf4] ss:$24 sps:$4 sm:$0xff]  }
  0x3e   : > { %v16440_v3 = vld [vmem:[%s23951_s2 + $0x3c8] ss:$24 sps:$4 sm:$0xff]   ;;  %v16470_v26 = vld [vmem:[%s23951_s2 + $0x154] ss:$24 sps:$4 sm:$0xff]  }
  0x3f   : > { %944 = vmatpush1.bf16.msra.mxu0 %v16362_v48  ;;  %v16424_v48 = vld [vmem:[%s23951_s2 + $0x18c] ss:$24 sps:$4 sm:$0xff]   ;;  %v16449_v13 = vld [vmem:[%s23951_s2 + $0xc0] ss:$24 sps:$4 sm:$0xff]  }
  0x40   : > { %1007 = vmatpush1.bf16.msra.mxu1 %v16363_v51  ;;  %1053 = vmatprep.subr.bf16.mxu0 %v16369_v52  ;;  %v16427_v51 = vld [vmem:[%s23951_s2 + $0x4] ss:$24 sps:$4 sm:$0xff]   ;;  %v16452_v17 = vld [vmem:[%s23951_s2 + $0x428] ss:$24 sps:$4 sm:$0xff]  }
  0x41   : > { %1464 = vmatprep.subr.bf16.mxu1 %v16372_v55  ;;  %v16430_v52 = vld [vmem:[%s23951_s2 + $0x36c] ss:$24 sps:$4 sm:$0xff]  }
  0x42   : > { %960 = vmatmul.mubr.bf16.vlgmr.msra.gmra.mrb[0].mxu0 %v18466_v59  ;;  %v16433_v55 = vld [vmem:[%s23951_s2 + $0x34] ss:$24 sps:$4 sm:$0xff]  }
  0x43   : > { %1023 = vmatmul.mubr.bf16.vlgmr.msra.gmra.mrb[0].mxu1 %v18466_v59  ;;  %1054 = vmatpush1.bf16.msra.mxu0 %v16367_v57  ;;  %v16431_v57 = vld [vmem:[%s23951_s2 + $0x30] ss:$24 sps:$4 sm:$0xff]  }
  0x44   : > { %1465 = vmatpush1.bf16.msra.mxu1 %v16370_v58  ;;  %1055 = vmatprep.subr.bf16.mxu0 %v16377_v60  ;;  %v16434_v58 = vld [vmem:[%s23951_s2 + $0x398] ss:$24 sps:$4 sm:$0xff]   ;;  %v18635_v60 = vld [vmem:[%s18392_s28] sm:$0xee] }
  0x45   : > { %1466 = vmatprep.subr.bf16.mxu1 %v16380_v61  ;;  %13524 = vmatprep.mubr.msk.bf16.mxu0 %vm917_vm1, %v18516_v19  ;;  %v16439_v61 = vld [vmem:[%s23951_s2 + $0x64] ss:$24 sps:$4 sm:$0xff]  }
  0x46   : > { %13527 = vmatprep.mubr.msk.bf16.mxu1 %vm917_vm1, %v18516_v19 }
  0x47   : > { %1056 = vmatpush1.bf16.msra.mxu0 %v16375_v62  ;;  %v13652_v62 = vcombine.high %v18635_v60, %v18408_v31 }
  0x48   : > { %1467 = vmatpush1.bf16.msra.mxu1 %v16378_v63  ;;  %1057 = vmatprep.subr.bf16.mxu0 %v16383_v4  ;;  %v16442_v63 = vld [vmem:[%s23951_s2 + $0x3cc] ss:$24 sps:$4 sm:$0xff]  }
  0x49   : > { %1468 = vmatprep.subr.bf16.mxu1 %v16386_v5  ;;  %v16445_v4 = vld [vmem:[%s23951_s2 + $0x94] ss:$24 sps:$4 sm:$0xff]  }
  0x4a   : > { %970 = vmatmul.mubr.bf16.gmra.mrb[4].mxu0 %v18525_v22  ;;  %v16448_v5 = vld [vmem:[%s23951_s2 + $0x3fc] ss:$24 sps:$4 sm:$0xff]  }
  0x4b   : > { %1058 = vmatpush1.bf16.msra.mxu0 %v16381_v8  ;;  %1033 = vmatmul.mubr.bf16.gmra.mrb[4].mxu1 %v18525_v22  ;;  %v18665_v8 = vcombine.high %v18483_v0, %v462_v2 }
  0x4c   : > { %1469 = vmatpush1.bf16.msra.mxu1 %v16384_v12  ;;  %1059 = vmatprep.subr.bf16.mxu0 %v16389_v14  ;;  %v16454_v12 = vld [vmem:[%s23951_s2 + $0x42c] ss:$24 sps:$4 sm:$0xff]   ;;  %v18689_v14 = vcombine.low %v18483_v0, %v462_v2  ;;  %v16460_v0 = vld [vmem:[%s23951_s2 + $0x45c] ss:$24 sps:$4 sm:$0xff]  }
  0x4d   : > { %1470 = vmatprep.subr.bf16.mxu1 %v16392_v15  ;;  %13525 = vmatprep.mubr.msk.bf16.mxu0 %vm917_vm1, %v18537_v25  ;;  %v1655_v15 = vrot.slane %v13652_v62, 1  ;;  %v16518_v62 = vld [vmem:[%s23951_s2 + $0x3c4] ss:$24 sps:$4 sm:$0xff]   ;;  %v16521_v2 = vld [vmem:[%s23951_s2 + $0x3f4] ss:$24 sps:$4 sm:$0xff]  }
  0x4e   : > { %13528 = vmatprep.mubr.msk.bf16.mxu1 %vm917_vm1, %v18537_v25 }
  0x4f   : > { %1060 = vmatpush1.bf16.msra.mxu0 %v16387_v20  ;;  %v18707_v20 = vsel %vm1651_vm2, %v1655_v15, %v1656_v16  ;;  %v16534_v15 = vld [vmem:[%s23951_s2 + $0x4e0] ss:$24 sps:$4 sm:$0xff]  }
  0x50   : > { %1471 = vmatpush1.bf16.msra.mxu1 %v16390_v21  ;;  %1061 = vmatprep.subr.bf16.mxu0 %v16395_v23  ;;  %v16458_v21 = vld [vmem:[%s23951_s2 + $0x458] ss:$24 sps:$4 sm:$0xff]   ;;  %v16466_v23 = vld [vmem:[%s23951_s2 + $0x48c] ss:$24 sps:$4 sm:$0xff]  }
  0x51   : > { %1472 = vmatprep.subr.bf16.mxu1 %v16398_v24  ;;  %v16461_v24 = vld [vmem:[%s23951_s2 + $0x120] ss:$24 sps:$4 sm:$0xff]  }
  0x52   : > { %980 = vmatmul.mubr.bf16.gmra.mrb[8].mxu0 %v18558_v35 }
  0x53   : > { %1062 = vmatpush1.bf16.msra.mxu0 %v16393_v27  ;;  %1043 = vmatmul.mubr.bf16.gmra.mrb[8].mxu1 %v18558_v35  ;;  %v16474_v27 = vld [vmem:[%s23951_s2 + $0x4bc] ss:$24 sps:$4 sm:$0xff]  }
  0x54   : > { %1473 = vmatpush1.bf16.msra.mxu1 %v16396_v28  ;;  %1063 = vmatprep.subr.bf16.mxu0 %v16402_v29  ;;  %v16468_v28 = vld [vmem:[%s23951_s2 + $0x150] ss:$24 sps:$4 sm:$0xff]  }
  0x55   : > { %1474 = vmatprep.subr.bf16.mxu1 %v16405_v30  ;;  %13529 = vmatprep.mubr.msk.bf16.mxu0 %vm917_vm1, %v18450_v54  ;;  %v16428_v54 = vld [vmem:[%s23951_s2 + $0x368] ss:$24 sps:$4 sm:$0xff]   ;;  %v16472_v29 = vld [vmem:[%s23951_s2 + $0x4b8] ss:$24 sps:$4 sm:$0xff]   ;;  %v16477_v30 = vld [vmem:[%s23951_s2 + $0x184] ss:$24 sps:$4 sm:$0xff]  }
  0x56   : > { %13591 = vmatprep.mubr.msk.bf16.mxu1 %vm917_vm1, %v18411_v32 }
  0x57   : > { %1064 = vmatpush1.bf16.msra.mxu0 %v16400_v36  ;;  %v16475_v36 = vld [vmem:[%s23951_s2 + $0x180] ss:$24 sps:$4 sm:$0xff]  }
  0x58   : > { %1475 = vmatpush1.bf16.msra.mxu1 %v16403_v37  ;;  %1065 = vmatprep.subr.bf16.mxu0 %v16409_v38  ;;  %v16478_v37 = vld [vmem:[%s23951_s2 + $0x4e8] ss:$24 sps:$4 sm:$0xff]  }
  0x59   : > { %1476 = vmatprep.subr.bf16.mxu1 %v16412_v39  ;;  %v1653_v39 = vrot.slane %v18435_v42, 1 }
  0x5b   : > { %1066 = vmatpush1.bf16.msra.mxu0 %v16407_v40  ;;  %v16485_v40 = vld [vmem:[%s23951_s2 + $0x14] ss:$24 sps:$4 sm:$0xff]  }
  0x5c   : > { %1477 = vmatpush1.bf16.msra.mxu1 %v16410_v41  ;;  %1067 = vmatprep.subr.bf16.mxu0 %v16415_v43  ;;  %v18760_v41 = vrot.slane %v18495_v6, 1  ;;  %v16483_v43 = vld [vmem:[%s23951_s2 + $0x10] ss:$24 sps:$4 sm:$0xff]   ;;  %v16486_v6 = vld [vmem:[%s23951_s2 + $0x40] ss:$24 sps:$4 sm:$0xff]  }
  0x5d   : > { %1478 = vmatprep.subr.bf16.mxu1 %v16418_v44  ;;  %v16488_v44 = vld [vmem:[%s23951_s2 + $0x44] ss:$24 sps:$4 sm:$0xff]  }
  0x5f   : > { %1068 = vmatpush1.bf16.msra.mxu0 %v16413_v45  ;;  %v18773_v45 = vsel %vm1651_vm2, %v1656_v16, %v18760_v41  ;;  %v16539_v16 = vld [vmem:[%s23951_s2 + $0x374] ss:$24 sps:$4 sm:$0xff]  }
  0x60   : > { %1479 = vmatpush1.bf16.msra.mxu1 %v16416_v46  ;;  %1069 = vmatprep.subr.bf16.mxu0 %v16421_v47  ;;  %v18781_v46 = vrot.slane %v18498_v7, 1  ;;  %v16491_v47 = vld [vmem:[%s23951_s2 + $0x74] ss:$24 sps:$4 sm:$0xff]   ;;  %v16494_v7 = vld [vmem:[%s23951_s2 + $0xa4] ss:$24 sps:$4 sm:$0xff]  }
  0x61   : > { %1480 = vmatprep.subr.bf16.mxu1 %v16424_v48  ;;  %v16489_v48 = vld [vmem:[%s23951_s2 + $0x70] ss:$24 sps:$4 sm:$0xff]  }
  0x63   : > { %1070 = vmatpush1.bf16.msra.mxu0 %v16419_v49  ;;  %v18798_v49 = vsel %vm1651_vm2, %v1653_v39, %v18781_v46 }
  0x64   : > { %1481 = vmatpush1.bf16.msra.mxu1 %v16422_v50  ;;  %1401 = vmatprep.subr.bf16.mxu0 %v16427_v51  ;;  %v16492_v50 = vld [vmem:[%s23951_s2 + $0xa0] ss:$24 sps:$4 sm:$0xff]   ;;  %v16495_v51 = vld [vmem:[%s23951_s2 + $0xd0] ss:$24 sps:$4 sm:$0xff]  }
  0x65   : > { %2007 = vmatprep.subr.bf16.mxu1 %v16430_v52  ;;  %v16500_v52 = vld [vmem:[%s23951_s2 + $0x104] ss:$24 sps:$4 sm:$0xff]  }
  0x66   : > { %1086 = vmatmul.mubr.bf16.vlgmr.msra.gmra.mrb[12].mxu0 %v18466_v59  ;;  %v13651_v59 = vcombine.low %v18635_v60, %v18408_v31  ;;  %v16510_v60 = vld [vmem:[%s23951_s2 + $0x360] ss:$24 sps:$4 sm:$0xff]  }
  0x67   : > { %1497 = vmatmul.mubr.bf16.vlgmr.msra.gmra.mrb[0].mxu1 %v18417_v34  ;;  %1402 = vmatpush1.bf16.msra.mxu0 %v16425_v53  ;;  %v16503_v53 = vld [vmem:[%s23951_s2 + $0x134] ss:$24 sps:$4 sm:$0xff]  }
  0x68   : > { %2008 = vmatpush1.bf16.msra.mxu1 %v16428_v54  ;;  %1403 = vmatprep.subr.bf16.mxu0 %v16433_v55  ;;  %v1652_v38 = vrot.slane %v13651_v59, 1  ;;  %v16501_v54 = vld [vmem:[%s23951_s2 + $0x130] ss:$24 sps:$4 sm:$0xff]   ;;  %v16506_v55 = vld [vmem:[%s23951_s2 + $0x164] ss:$24 sps:$4 sm:$0xff]  }
  0x69   : > { %2009 = vmatprep.subr.bf16.mxu1 %v16436_v56  ;;  %13592 = vmatprep.mubr.msk.bf16.mxu1 %vm917_vm1, %v18414_v33  ;;  %v16504_v56 = vld [vmem:[%s23951_s2 + $0x160] ss:$24 sps:$4 sm:$0xff]   ;;  %v16513_v59 = vld [vmem:[%s23951_s2 + $0x390] ss:$24 sps:$4 sm:$0xff]  }
  0x6a   : > { %13530 = vmatprep.mubr.msk.bf16.mxu0 %vm917_vm1, %v18516_v19  ;;  %v16455_v19 = vld [vmem:[%s23951_s2 + $0xf0] ss:$24 sps:$4 sm:$0xff]   ;;  %v18766_v31 = vsel %vm1651_vm2, %v1652_v38, %v1653_v39  ;;  %v18981_v39 = vld [vmem:[%s23952_s3] sm:$0x3f] }
  0x6b   : > { %1404 = vmatpush1.bf16.msra.mxu0 %v16431_v57  ;;  %v16507_v57 = vld [vmem:[%s23951_s2 + $0x190] ss:$24 sps:$4 sm:$0xff]  }
  0x6c   : > { %2010 = vmatpush1.bf16.msra.mxu1 %v16434_v58  ;;  %1405 = vmatprep.subr.bf16.mxu0 %v16439_v61  ;;  %v16512_v58 = vld [vmem:[%s23951_s2 + $0x364] ss:$24 sps:$4 sm:$0xff]   ;;  %v16515_v61 = vld [vmem:[%s23951_s2 + $0x394] ss:$24 sps:$4 sm:$0xff]  }
  0x6d   : > { %2011 = vmatprep.subr.bf16.mxu1 %v16442_v63  ;;  %v18171_v63 = vld [vmem:[%s18392_s28 + $0x14] ss:$8 sps:$4 sm:$0xff]  }
  0x6e   : > { %1096 = vmatmul.mubr.bf16.gmra.mrb[16].mxu0 %v18525_v22  ;;  %v16463_v22 = vld [vmem:[%s23951_s2 + $0x124] ss:$24 sps:$4 sm:$0xff]  }
  0x6f   : > { %1507 = vmatmul.mubr.bf16.gmra.mrb[4].mxu1 %v18435_v42  ;;  %1406 = vmatpush1.bf16.msra.mxu0 %v16437_v1  ;;  %v16516_v1 = vld [vmem:[%s23951_s2 + $0x3c0] ss:$24 sps:$4 sm:$0xff]  }
  0x70   : > { %2012 = vmatpush1.bf16.msra.mxu1 %v16440_v3  ;;  %1407 = vmatprep.subr.bf16.mxu0 %v16445_v4  ;;  %v16524_v3 = vld [vmem:[%s23951_s2 + $0x424] ss:$24 sps:$4 sm:$0xff]   ;;  %v18172_v4 = vld [vmem:[%s18392_s28 + $0x10] ss:$8 sps:$4 sm:$0xff]  }
  0x71   : > { %2013 = vmatprep.subr.bf16.mxu1 %v16448_v5  ;;  %13593 = vmatprep.mubr.msk.bf16.mxu1 %vm917_vm1, %v18665_v8  ;;  %v16522_v5 = vld [vmem:[%s23951_s2 + $0x420] ss:$24 sps:$4 sm:$0xff]  }
  0x72   : > { %13531 = vmatprep.mubr.msk.bf16.mxu0 %vm917_vm1, %v18537_v25  ;;  %v16464_v25 = vld [vmem:[%s23951_s2 + $0x488] ss:$24 sps:$4 sm:$0xff]  }
  0x73   : > { %1408 = vmatpush1.bf16.msra.mxu0 %v16443_v9  ;;  %v16527_v9 = vld [vmem:[%s23951_s2 + $0x454] ss:$24 sps:$4 sm:$0xff]  }
  0x74   : > { %2014 = vmatpush1.bf16.msra.mxu1 %v16446_v10  ;;  %1409 = vmatprep.subr.bf16.mxu0 %v16451_v11  ;;  %v16525_v10 = vld [vmem:[%s23951_s2 + $0x450] ss:$24 sps:$4 sm:$0xff]   ;;  %v16530_v11 = vld [vmem:[%s23951_s2 + $0x484] ss:$24 sps:$4 sm:$0xff]  }
  0x75   : > { %2015 = vmatprep.subr.bf16.mxu1 %v16454_v12  ;;  %v16533_v12 = vld [vmem:[%s23951_s2 + $0x4b4] ss:$24 sps:$4 sm:$0xff]  }
  0x76   : > { %1106 = vmatmul.mubr.bf16.gmra.mrb[20].mxu0 %v18558_v35  ;;  %v16480_v35 = vld [vmem:[%s23951_s2 + $0x4ec] ss:$24 sps:$4 sm:$0xff]  }
  0x77   : > { %1517 = vmatmul.mubr.bf16.gmra.mrb[8].mxu1 %v18689_v14  ;;  %1410 = vmatpush1.bf16.msra.mxu0 %v16449_v13  ;;  %v16531_v13 = vld [vmem:[%s23951_s2 + $0x4b0] ss:$24 sps:$4 sm:$0xff]  }
  0x78   : > { %2016 = vmatpush1.bf16.msra.mxu1 %v16452_v17  ;;  %1411 = vmatprep.subr.bf16.mxu0 %v16457_v18  ;;  %v16537_v17 = vld [vmem:[%s23951_s2 + $0x370] ss:$24 sps:$4 sm:$0xff]   ;;  %v16542_v18 = vld [vmem:[%s23951_s2 + $0x3a4] ss:$24 sps:$4 sm:$0xff]  }
  0x79   : > { %2017 = vmatprep.subr.bf16.mxu1 %v16460_v0  ;;  %13710 = vmatprep.mubr.msk.bf16.mxu1 %vm917_vm1, %v18707_v20  ;;  %v16540_v0 = vld [vmem:[%s23951_s2 + $0x3a0] ss:$24 sps:$4 sm:$0xff]  }
  0x7a   : > { %13588 = vmatprep.mubr.msk.bf16.mxu0 %vm917_vm1, %v18411_v32 }
  0x7b   : > { %1412 = vmatpush1.bf16.msra.mxu0 %v16455_v19  ;;  %v16545_v19 = vld [vmem:[%s23951_s2 + $0x3d4] ss:$24 sps:$4 sm:$0xff]  }
  0x7c   : > { %2018 = vmatpush1.bf16.msra.mxu1 %v16458_v21  ;;  %1413 = vmatprep.subr.bf16.mxu0 %v16463_v22  ;;  %v16543_v21 = vld [vmem:[%s23951_s2 + $0x3d0] ss:$24 sps:$4 sm:$0xff]   ;;  %v16548_v22 = vld [vmem:[%s23951_s2 + $0x404] ss:$24 sps:$4 sm:$0xff]  }
  0x7d   : > { %2019 = vmatprep.subr.bf16.mxu1 %v16466_v23  ;;  %v16546_v23 = vld [vmem:[%s23951_s2 + $0x400] ss:$24 sps:$4 sm:$0xff]  }
  0x7f   : > { %1414 = vmatpush1.bf16.msra.mxu0 %v16461_v24  ;;  %v16551_v24 = vld [vmem:[%s23951_s2 + $0x434] ss:$24 sps:$4 sm:$0xff]  }
  0x80   : > { %2020 = vmatpush1.bf16.msra.mxu1 %v16464_v25  ;;  %1415 = vmatprep.subr.bf16.mxu0 %v16470_v26  ;;  %v16549_v25 = vld [vmem:[%s23951_s2 + $0x430] ss:$24 sps:$4 sm:$0xff]   ;;  %v16554_v26 = vld [vmem:[%s23951_s2 + $0x464] ss:$24 sps:$4 sm:$0xff]  }
  0x81   : > { %2021 = vmatprep.subr.bf16.mxu1 %v16474_v27  ;;  %v16552_v27 = vld [vmem:[%s23951_s2 + $0x460] ss:$24 sps:$4 sm:$0xff]  }
  0x83   : > { %1416 = vmatpush1.bf16.msra.mxu0 %v16468_v28  ;;  %v16557_v28 = vld [vmem:[%s23951_s2 + $0x494] ss:$24 sps:$4 sm:$0xff]  }
  0x84   : > { %2022 = vmatpush1.bf16.msra.mxu1 %v16472_v29  ;;  %1417 = vmatprep.subr.bf16.mxu0 %v16477_v30  ;;  %v16555_v29 = vld [vmem:[%s23951_s2 + $0x490] ss:$24 sps:$4 sm:$0xff]   ;;  %v16560_v30 = vld [vmem:[%s23951_s2 + $0x4c4] ss:$24 sps:$4 sm:$0xff]  }
  0x85   : > { %2023 = vmatprep.subr.bf16.mxu1 %v16480_v35  ;;  %v16558_v35 = vld [vmem:[%s23951_s2 + $0x4c0] ss:$24 sps:$4 sm:$0xff]  }
  0x87   : > { %1418 = vmatpush1.bf16.msra.mxu0 %v16475_v36  ;;  %v16563_v36 = vld [vmem:[%s23951_s2 + $0x4f4] ss:$24 sps:$4 sm:$0xff]  }
  0x88   : > { %2024 = vmatpush1.bf16.msra.mxu1 %v16478_v37  ;;  %1527 = vmatprep.subr.bf16.mxu0 %v16485_v40  ;;  %v2171_v37 = vlaneseq }
  0x8a   : > { %1434 = vmatmul.mubr.bf16.vlgmr.msra.gmra.mrb[0].mxu0 %v18417_v34  ;;  %v18976_v38 = vshrl.u32 %v2171_v37, 7 }
  0x8b   : > { %2040 = vmatmul.mubr.bf16.vlgmr.msra.gmra.mrb[0].mxu1 %v18766_v31  ;;  %1528 = vmatpush1.bf16.msra.mxu0 %v16483_v43 }
  0x8c   : > { %13711 = vmatprep.mubr.msk.bf16.mxu1 %vm917_vm1, %v18773_v45  ;;  %1529 = vmatprep.subr.bf16.mxu0 %v16488_v44  ;;  %23983 = vst [vmem:[#allocation5_spill] sm:$0xff] %v18976_v38  ;;  %v2193_v40 = vsub.s32 5, %v18976_v38 }
  0x8d   : > { %13589 = vmatprep.mubr.msk.bf16.mxu0 %vm917_vm1, %v18414_v33  ;;  %v16497_v33 = vld [vmem:[%s23951_s2 + $0xd4] ss:$24 sps:$4 sm:$0xff]  }
  0x8e   : > { %v18985_v43 = vrot.slane %v18981_v39, %v2193_v40 }
  0x8f   : > { %1530 = vmatpush1.bf16.msra.mxu0 %v16486_v6 }
  0x90   : > { %1531 = vmatprep.subr.bf16.mxu0 %v16491_v47 }
  0x92   : > { %1444 = vmatmul.mubr.bf16.gmra.mrb[4].mxu0 %v18435_v42  ;;  %v16498_v42 = vld [vmem:[%s23951_s2 + $0x100] ss:$24 sps:$4 sm:$0xff]  }
  0x93   : > { %2050 = vmatmul.mubr.bf16.gmra.mrb[4].mxu1 %v18798_v49  ;;  %1532 = vmatpush1.bf16.msra.mxu0 %v16489_v48 }
  0x94   : > { %13712 = vmatprep.mubr.msk.bf16.mxu1 %vm917_vm1, %v18760_v41  ;;  %1533 = vmatprep.subr.bf16.mxu0 %v16494_v7 }
  0x95   : > { %13590 = vmatprep.mubr.msk.bf16.mxu0 %vm917_vm1, %v18665_v8 }
  0x97   : > { %1534 = vmatpush1.bf16.msra.mxu0 %v16492_v50 }
  0x98   : > { %1535 = vmatprep.subr.bf16.mxu0 %v16497_v33 }
  0x9a   : > { %1454 = vmatmul.mubr.bf16.gmra.mrb[8].mxu0 %v18689_v14 }
  0x9b   : > { %2060 = vmatmul.mubr.bf16.gmra.mrb[8].mxu1 %v18781_v46  ;;  %1536 = vmatpush1.bf16.msra.mxu0 %v16495_v51 }
  0x9c   : > { %13594 = vmatprep.mubr.msk.bf16.mxu0 %vm917_vm1, %v18411_v32  ;;  %1537 = vmatprep.subr.bf16.mxu0 %v16500_v52  ;;  %v16509_v32 = vld [vmem:[%s23951_s2 + $0x194] ss:$24 sps:$4 sm:$0xff]  }
  0x9f   : > { %1538 = vmatpush1.bf16.msra.mxu0 %v16498_v42 }
  0xa0   : > { %1539 = vmatprep.subr.bf16.mxu0 %v16503_v53 }
  0xa3   : > { %1540 = vmatpush1.bf16.msra.mxu0 %v16501_v54 }
  0xa4   : > { %1541 = vmatprep.subr.bf16.mxu0 %v16506_v55 }
  0xa7   : > { %1542 = vmatpush1.bf16.msra.mxu0 %v16504_v56 }
  0xa8   : > { %1543 = vmatprep.subr.bf16.mxu0 %v16509_v32 }
  0xab   : > { %1544 = vmatpush1.bf16.msra.mxu0 %v16507_v57 }
  0xac   : > { %1944 = vmatprep.subr.bf16.mxu0 %v16512_v58 }
  0xae   : > { %1560 = vmatmul.mubr.bf16.vlgmr.msra.gmra.mrb[12].mxu0 %v18417_v34  ;;  %v16519_v34 = vld [vmem:[%s23951_s2 + $0x3f0] ss:$24 sps:$4 sm:$0xff]  }
  0xaf   : > { %1945 = vmatpush1.bf16.msra.mxu0 %v16510_v60  ;;  %13595 = vmatprep.mubr.msk.bf16.mxu0 %vm917_vm1, %v18171_v63 }
  0xb0   : > { %1946 = vmatprep.subr.bf16.mxu0 %v16515_v61 }
  0xb3   : > { %1947 = vmatpush1.bf16.msra.mxu0 %v16513_v59 }
  0xb4   : > { %1948 = vmatprep.subr.bf16.mxu0 %v16518_v62 }
  0xb6   : > { %1570 = vmatmul.mubr.bf16.gmra.mrb[16].mxu0 %v18172_v4 }
  0xb7   : > { %1949 = vmatpush1.bf16.msra.mxu0 %v16516_v1  ;;  %13596 = vmatprep.mubr.msk.bf16.mxu0 %vm917_vm1, %v18665_v8  ;;  %v16528_v8 = vld [vmem:[%s23951_s2 + $0x480] ss:$24 sps:$4 sm:$0xff]  }
  0xb8   : > { %1950 = vmatprep.subr.bf16.mxu0 %v16521_v2 }
  0xbb   : > { %1951 = vmatpush1.bf16.msra.mxu0 %v16519_v34 }
  0xbc   : > { %1952 = vmatprep.subr.bf16.mxu0 %v16524_v3 }
  0xbe   : > { %1580 = vmatmul.mubr.bf16.gmra.mrb[20].mxu0 %v18689_v14  ;;  %v16536_v14 = vld [vmem:[%s23951_s2 + $0x4e4] ss:$24 sps:$4 sm:$0xff]  }
  0xbf   : > { %1953 = vmatpush1.bf16.msra.mxu0 %v16522_v5  ;;  %13707 = vmatprep.mubr.msk.bf16.mxu0 %vm917_vm1, %v18707_v20 }
  0xc0   : > { %1954 = vmatprep.subr.bf16.mxu0 %v16527_v9 }
  0xc3   : > { %1955 = vmatpush1.bf16.msra.mxu0 %v16525_v10 }
  0xc4   : > { %1956 = vmatprep.subr.bf16.mxu0 %v16530_v11 }
  0xc7   : > { %1957 = vmatpush1.bf16.msra.mxu0 %v16528_v8 }
  0xc8   : > { %1958 = vmatprep.subr.bf16.mxu0 %v16533_v12 }
  0xcb   : > { %1959 = vmatpush1.bf16.msra.mxu0 %v16531_v13 }
  0xcc   : > { %1960 = vmatprep.subr.bf16.mxu0 %v16536_v14 }
  0xcf   : > { %1961 = vmatpush1.bf16.msra.mxu0 %v16534_v15 }
  0xd0   : > { %2070 = vmatprep.subr.bf16.mxu0 %v16539_v16 }
  0xd2   : > { %1977 = vmatmul.mubr.bf16.vlgmr.msra.gmra.mrb[0].mxu0 %v18766_v31 }
  0xd3   : > { %2071 = vmatpush1.bf16.msra.mxu0 %v16537_v17  ;;  %13708 = vmatprep.mubr.msk.bf16.mxu0 %vm917_vm1, %v18773_v45 }
  0xd4   : > { %2072 = vmatprep.subr.bf16.mxu0 %v16542_v18 }
  0xd7   : > { %2073 = vmatpush1.bf16.msra.mxu0 %v16540_v0 }
  0xd8   : > { %2074 = vmatprep.subr.bf16.mxu0 %v16545_v19 }
  0xda   : > { %1987 = vmatmul.mubr.bf16.gmra.mrb[4].mxu0 %v18798_v49 }
  0xdb   : > { %2075 = vmatpush1.bf16.msra.mxu0 %v16543_v21  ;;  %13709 = vmatprep.mubr.msk.bf16.mxu0 %vm917_vm1, %v18760_v41 }
  0xdc   : > { %2076 = vmatprep.subr.bf16.mxu0 %v16548_v22 }
  0xdf   : > { %2077 = vmatpush1.bf16.msra.mxu0 %v16546_v23 }
  0xe0   : > { %2078 = vmatprep.subr.bf16.mxu0 %v16551_v24 }
  0xe2   : > { %1997 = vmatmul.mubr.bf16.gmra.mrb[8].mxu0 %v18781_v46 }
  0xe3   : > { %2079 = vmatpush1.bf16.msra.mxu0 %v16549_v25  ;;  %13713 = vmatprep.mubr.msk.bf16.mxu0 %vm917_vm1, %v18707_v20  ;;  %v16561_v20 = vld [vmem:[%s23951_s2 + $0x4f0] ss:$24 sps:$4 sm:$0xff]  }
  0xe4   : > { %2080 = vmatprep.subr.bf16.mxu0 %v16554_v26 }
  0xe7   : > { %2081 = vmatpush1.bf16.msra.mxu0 %v16552_v27 }
  0xe8   : > { %2082 = vmatprep.subr.bf16.mxu0 %v16557_v28 }
  0xeb   : > { %2083 = vmatpush1.bf16.msra.mxu0 %v16555_v29 }
  0xec   : > { %2084 = vmatprep.subr.bf16.mxu0 %v16560_v30 }
  0xef   : > { %2085 = vmatpush1.bf16.msra.mxu0 %v16558_v35 }
  0xf0   : > { %2086 = vmatprep.subr.bf16.mxu0 %v16563_v36 }
  0xf3   : > { %2087 = vmatpush1.bf16.msra.mxu0 %v16561_v20 }
  0xf6   : > { %2103 = vmatmul.mubr.bf16.vlgmr.msra.gmra.mrb[12].mxu0 %v18766_v31  ;;  %v18988_v31 = vsub.s32 2, %v18976_v38 }
  0xf7   : > { %13714 = vmatprep.mubr.msk.bf16.mxu0 %vm917_vm1, %v18773_v45 }
  0xf8   : > { %v18995_v44 = vrot.slane %v18981_v39, %v18988_v31 }
  0xfe   : > { %2113 = vmatmul.mubr.bf16.gmra.mrb[16].mxu0 %v18798_v49 }
  0xff   : > { %13715 = vmatprep.mubr.msk.bf16.mxu0 %vm917_vm1, %v18760_v41  ;;  %v18991_v41 = vsub.s32 3, %v18976_v38 }
 0x101   : > { %v18999_v45 = vrot.slane %v18981_v39, %v18991_v41 }
 0x106   : > { %2123 = vmatmul.mubr.bf16.gmra.mrb[20].mxu0 %v18781_v46  ;;  %v19001_v46 = vstv %s454_s17 }
 0x15e   : > { %v2041_v6 = vpop.f32.mrb[0].mxu1 }
 0x15f   : > { %v2203_v47 = vadd.f32 %v18995_v44, %v2041_v6  ;;  %v2043_v48 = vpop.f32.mrb[1].mxu1 }
 0x160   : > { %v2204_v7 = vadd.f32 %v18999_v45, %v2043_v48  ;;  %v2045_v49 = vpop.f32.mrb[2].mxu1 }
 0x161   : > { %vm2239_vm3 = vcmp.gt.f32.partialorder %v2203_v47, 0.0  ;;  %v2276_v50 = vmul.f32 %v19001_v46, %v2203_v47  ;;  %v2209_v33 = vadd.f32 %v18995_v44, %v2045_v49  ;;  %v2047_v51 = vpop.f32.mrb[3].mxu1 }
 0x162   : > { %vm2240_vm4 = vcmp.gt.f32.partialorder %v2204_v7, 0.0  ;;  %v2277_v52 = vmul.f32 %v19001_v46, %v2204_v7  ;;  %v2210_v42 = vadd.f32 %v18999_v45, %v2047_v51 }
 0x163   : > { %v2312_v53 = vsel %vm2239_vm3, %v2203_v47, %v2276_v50  ;;  %vm2245_vm5 = vcmp.gt.f32.partialorder %v2209_v33, 0.0  ;;  %v2282_v54 = vmul.f32 %v19001_v46, %v2209_v33 }
 0x164   : > { %v19010_v55 = vsel %vm2240_vm4, %v2204_v7, %v2277_v52  ;;  %vm2246_vm6 = vcmp.gt.f32.partialorder %v2210_v42, 0.0  ;;  %v2389_v56 = vrot.slane %v2312_v53, 1  ;;  %v2528_v32 = vrot.slane %v2312_v53, 2 }
 0x165   : > { %v2318_v57 = vsel %vm2245_vm5, %v2209_v33, %v2282_v54  ;;  %v2283_v58 = vmul.f32 %v19001_v46, %v2210_v42  ;;  %v2392_v62 = vrot.slane %v19010_v55, 1  ;;  %v2531_v63 = vrot.slane %v19010_v55, 2 }
 0x166   : > { %v2390_v60 = vrot.slane %v2318_v57, 1  ;;  %v2529_v61 = vrot.slane %v2318_v57, 2  ;;  %v2051_v59 = vpop.f32.mrb[4].mxu1 }
 0x167   : > { %v19015_v1 = vsel %vm2246_vm6, %v2210_v42, %v2283_v58  ;;  %v2215_v2 = vadd.f32 %v18995_v44, %v2051_v59  ;;  %v2053_v34 = vpop.f32.mrb[5].mxu1 }
 0x168   : > { %v2393_v3 = vrot.slane %v19015_v1, 1  ;;  %v2532_v4 = vrot.slane %v19015_v1, 2  ;;  %v2216_v5 = vadd.f32 %v18999_v45, %v2053_v34  ;;  %v2055_v9 = vpop.f32.mrb[6].mxu1  ;;  %v2391_v10 = vsel %vm1651_vm2, %v2389_v56, %v2390_v60 }
 0x169   : > { %vm2251_vm8 = vcmp.gt.f32.partialorder %v2215_v2, 0.0  ;;  %v2288_v11 = vmul.f32 %v19001_v46, %v2215_v2  ;;  %v2221_v8 = vadd.f32 %v18995_v44, %v2055_v9  ;;  %v2057_v12 = vpop.f32.mrb[7].mxu1  ;;  %v2487_v13 = vmax.f32 %v2312_v53, %v2391_v10 }
 0x16a   : > { %vm2252_vm9 = vcmp.gt.f32.partialorder %v2216_v5, 0.0  ;;  %v2289_v14 = vmul.f32 %v19001_v46, %v2216_v5  ;;  %v2222_v15 = vadd.f32 %v18999_v45, %v2057_v12  ;;  %v2530_v16 = vsel %vm2521_vm7, %v2528_v32, %v2529_v61 }
 0x16b   : > { %v2324_v17 = vsel %vm2251_vm8, %v2215_v2, %v2288_v11  ;;  %vm2257_vm10 = vcmp.gt.f32.partialorder %v2221_v8, 0.0  ;;  %v2294_v18 = vmul.f32 %v19001_v46, %v2221_v8  ;;  %v19028_v0 = vmax.f32 %v2487_v13, %v2530_v16 }
 0x16c   : > { %v2405_v19 = vrot.slane %v2324_v17, 1  ;;  %v2544_v21 = vrot.slane %v2324_v17, 2  ;;  %v19030_v22 = vsel %vm2252_vm9, %v2216_v5, %v2289_v14  ;;  %vm2258_vm11 = vcmp.gt.f32.partialorder %v2222_v15, 0.0 }
 0x16d   : > { %v2407_v23 = vrot.slane %v19030_v22, 1  ;;  %v2546_v24 = vrot.slane %v19030_v22, 2  ;;  %v2330_v25 = vsel %vm2257_vm10, %v2221_v8, %v2294_v18  ;;  %v2295_v26 = vmul.f32 %v19001_v46, %v2222_v15 }
 0x16e   : > { %v2417_v27 = vrot.slane %v2330_v25, 1  ;;  %v2556_v28 = vrot.slane %v2330_v25, 2  ;;  %v2061_v29 = vpop.f32.mrb[8].mxu1  ;;  %v2406_v30 = vsel %vm1651_vm2, %v2390_v60, %v2405_v19  ;;  %v2545_v35 = vsel %vm2521_vm7, %v2529_v61, %v2544_v21 }
 0x16f   : > { %v19037_v36 = vsel %vm2258_vm11, %v2222_v15, %v2295_v26  ;;  %v2227_v20 = vadd.f32 %v18995_v44, %v2061_v29  ;;  %v2063_v37 = vpop.f32.mrb[9].mxu1  ;;  %v2493_v40 = vmax.f32 %v2318_v57, %v2406_v30  ;;  %v2394_v6 = vsel %vm1651_vm2, %v2392_v62, %v2393_v3 }
 0x170   : > { %v2419_v47 = vrot.slane %v19037_v36, 1  ;;  %v2558_v48 = vrot.slane %v19037_v36, 2  ;;  %v2228_v7 = vadd.f32 %v18999_v45, %v2063_v37  ;;  %v2065_v49 = vpop.f32.mrb[10].mxu1  ;;  %v2418_v50 = vsel %vm1651_vm2, %v2405_v19, %v2417_v27 }
 0x171   : > { %vm2263_vm12 = vcmp.gt.f32.partialorder %v2227_v20, 0.0  ;;  %v2300_v33 = vmul.f32 %v19001_v46, %v2227_v20  ;;  %v2233_v51 = vadd.f32 %v18995_v44, %v2065_v49  ;;  %v2067_v52 = vpop.f32.mrb[11].mxu1  ;;  %v19049_v42 = vmax.f32 %v2493_v40, %v2545_v35 }
 0x172   : > { %vm2264_vm13 = vcmp.gt.f32.partialorder %v2228_v7, 0.0  ;;  %v2301_v53 = vmul.f32 %v19001_v46, %v2228_v7  ;;  %v2234_v54 = vadd.f32 %v18999_v45, %v2067_v52  ;;  %v2499_v56 = vmax.f32 %v2324_v17, %v2418_v50 }
 0x173   : > { %v2336_v32 = vsel %vm2263_vm12, %v2227_v20, %v2300_v33  ;;  %vm2269_vm14 = vcmp.gt.f32.partialorder %v2233_v51, 0.0  ;;  %v2306_v57 = vmul.f32 %v19001_v46, %v2233_v51  ;;  %v2557_v58 = vsel %vm2521_vm7, %v2544_v21, %v2556_v28 }
 0x174   : > { %v2429_v60 = vrot.slane %v2336_v32, 1  ;;  %v2568_v61 = vrot.slane %v2336_v32, 2  ;;  %v2337_v59 = vsel %vm2264_vm13, %v2228_v7, %v2301_v53  ;;  %vm2270_vm15 = vcmp.gt.f32.partialorder %v2234_v54, 0.0 }
 0x175   : > { %v2431_v44 = vrot.slane %v2337_v59, 1  ;;  %v2570_v62 = vrot.slane %v2337_v59, 2  ;;  %v19055_v2 = vsel %vm2269_vm14, %v2233_v51, %v2306_v57  ;;  %v2307_v34 = vmul.f32 %v19001_v46, %v2234_v54 }
 0x176   : > { %v2441_v5 = vrot.slane %v19055_v2, 1  ;;  %v2580_v45 = vrot.slane %v19055_v2, 2  ;;  %v19060_v9 = vmax.f32 %v2499_v56, %v2557_v58  ;;  %v2430_v10 = vsel %vm1651_vm2, %v2417_v27, %v2429_v60 }
 0x177   : > { %v19063_v11 = vsel %vm2270_vm15, %v2234_v54, %v2307_v34  ;;  %v2505_v8 = vmax.f32 %v2330_v25, %v2430_v10  ;;  %v2569_v12 = vsel %vm2521_vm7, %v2556_v28, %v2568_v61  ;;  %v2488_v13 = vmax.f32 %v19010_v55, %v2394_v6 }
 0x178   : > { %v23965_v14 = vrot.slane %v19063_v11, 1  ;;  %v23964_v15 = vrot.slane %v19063_v11, 2  ;;  %v2442_v16 = vsel %vm1651_vm2, %v2429_v60, %v2441_v5  ;;  %v2581_v19 = vsel %vm2521_vm7, %v2568_v61, %v2580_v45 }
 0x179   : > { %v19072_v17 = vmax.f32 %v2505_v8, %v2569_v12  ;;  %v2511_v18 = vmax.f32 %v2336_v32, %v2442_v16  ;;  %v2533_v21 = vsel %vm2521_vm7, %v2531_v63, %v2532_v4  ;;  %v2408_v26 = vsel %vm1651_vm2, %v2393_v3, %v2407_v23 }
 0x17a   : > { %v19082_v25 = vmax.f32 %v2488_v13, %v2533_v21  ;;  %v2494_v28 = vmax.f32 %v19015_v1, %v2408_v26  ;;  %v2547_v29 = vsel %vm2521_vm7, %v2532_v4, %v2546_v24  ;;  %v2420_v30 = vsel %vm1651_vm2, %v2407_v23, %v2419_v47 }
 0x17b   : > { %v19087_v27 = vmax.f32 %v2511_v18, %v2581_v19  ;;  %v2500_v55 = vmax.f32 %v19030_v22, %v2420_v30  ;;  %v2559_v63 = vsel %vm2521_vm7, %v2546_v24, %v2558_v48  ;;  %v2432_v35 = vsel %vm1651_vm2, %v2419_v47, %v2431_v44 }
 0x17c   : > { %v2571_v20 = vsel %vm2521_vm7, %v2558_v48, %v2570_v62  ;;  %v19098_v37 = vmax.f32 %v2494_v28, %v2547_v29  ;;  %v2506_v3 = vmax.f32 %v19037_v36, %v2432_v35  ;;  %v2444_v1 = vsel %vm1651_vm2, %v2431_v44, %v23965_v14 }
 0x17d   : > { %v2583_v4 = vsel %vm2521_vm7, %v2570_v62, %v23964_v15  ;;  %v19107_v23 = vmax.f32 %v2500_v55, %v2559_v63  ;;  %v2512_v22 = vmax.f32 %v2337_v59, %v2444_v1  ;;  %v19114_v6 = vsub.s32 0, %v18976_v38 }
 0x17e   : > { %v19109_v24 = vmax.f32 %v2506_v3, %v2571_v20  ;;  %v19117_v36 = vsub.s32 1, %v18976_v38 }
 0x17f   : > { %v19111_v40 = vmax.f32 %v2512_v22, %v2583_v4  ;;  %23984 = vst [vmem:[#allocation6_spill] sm:$0xff] %v19114_v6  ;;  %v19121_v47 = vrot.slane %v18981_v39, %v19114_v6 }
 0x180   : > { %23985 = vst [vmem:[#allocation7_spill] sm:$0xff] %v19117_v36  ;;  %v19125_v48 = vrot.slane %v18981_v39, %v19117_v36 }
 0x1a5   : > { %v1978_v7 = vpop.f32.mrb[0].mxu0 }
 0x1a6   : > { %v2201_v49 = vadd.f32 %v19121_v47, %v1978_v7  ;;  %v1980_v50 = vpop.f32.mrb[1].mxu0 }
 0x1a7   : > { %v2202_v33 = vadd.f32 %v19125_v48, %v1980_v50  ;;  %v1982_v51 = vpop.f32.mrb[2].mxu0 }
 0x1a8   : > { %vm2237_vm1 = vcmp.gt.f32.partialorder %v2201_v49, 0.0  ;;  %v2274_v52 = vmul.f32 %v19001_v46, %v2201_v49  ;;  %v2207_v53 = vadd.f32 %v19121_v47, %v1982_v51  ;;  %v1984_v54 = vpop.f32.mrb[3].mxu0 }
 0x1a9   : > { %vm2238_vm3 = vcmp.gt.f32.partialorder %v2202_v33, 0.0  ;;  %v2275_v56 = vmul.f32 %v19001_v46, %v2202_v33  ;;  %v2208_v32 = vadd.f32 %v19125_v48, %v1984_v54 }
 0x1aa   : > { %v19133_v39 = vsel %vm2237_vm1, %v2201_v49, %v2274_v52  ;;  %vm2243_vm4 = vcmp.gt.f32.partialorder %v2207_v53, 0.0  ;;  %v2280_v57 = vmul.f32 %v19001_v46, %v2207_v53 }
 0x1ab   : > { %v2311_v58 = vsel %vm2238_vm3, %v2202_v33, %v2275_v56  ;;  %vm2244_vm5 = vcmp.gt.f32.partialorder %v2208_v32, 0.0  ;;  %v2281_v61 = vmul.f32 %v19001_v46, %v2208_v32  ;;  %v2383_v59 = vrot.slane %v19133_v39, 1 }
 0x1ac   : > { %v19136_v60 = vsel %vm2243_vm4, %v2207_v53, %v2280_v57  ;;  %v2386_v34 = vrot.slane %v2311_v58, 1  ;;  %v2525_v20 = vrot.slane %v2311_v58, 2  ;;  %v2522_v50 = vrot.slane %v19133_v39, 2 }
 0x1ad   : > { %v2384_v44 = vrot.slane %v19136_v60, 1  ;;  %v1988_v62 = vpop.f32.mrb[4].mxu0  ;;  %v19141_v10 = vsel %vm2244_vm5, %v2208_v32, %v2281_v61  ;;  %v2523_v3 = vrot.slane %v19136_v60, 2 }
 0x1ae   : > { %v2213_v8 = vadd.f32 %v19121_v47, %v1988_v62  ;;  %v1990_v12 = vpop.f32.mrb[5].mxu0  ;;  %v2387_v13 = vrot.slane %v19141_v10, 1  ;;  %v2526_v16 = vrot.slane %v19141_v10, 2 }
 0x1af   : > { %v2214_v18 = vadd.f32 %v19125_v48, %v1990_v12  ;;  %v1992_v19 = vpop.f32.mrb[6].mxu0  ;;  %v2385_v21 = vsel %vm1651_vm2, %v2383_v59, %v2384_v44 }
 0x1b0   : > { %vm2249_vm6 = vcmp.gt.f32.partialorder %v2213_v8, 0.0  ;;  %v2286_v26 = vmul.f32 %v19001_v46, %v2213_v8  ;;  %v2219_v28 = vadd.f32 %v19121_v47, %v1992_v19  ;;  %v1994_v29 = vpop.f32.mrb[7].mxu0  ;;  %v2485_v30 = vmax.f32 %v19133_v39, %v2385_v21 }
 0x1b1   : > { %vm2250_vm8 = vcmp.gt.f32.partialorder %v2214_v18, 0.0  ;;  %v2287_v55 = vmul.f32 %v19001_v46, %v2214_v18  ;;  %v2220_v63 = vadd.f32 %v19125_v48, %v1994_v29  ;;  %v2388_v35 = vsel %vm1651_vm2, %v2386_v34, %v2387_v13 }
 0x1b2   : > { %v19157_v1 = vsel %vm2249_vm6, %v2213_v8, %v2286_v26  ;;  %v2486_v4 = vmax.f32 %v2311_v58, %v2388_v35  ;;  %v2292_v49 = vmul.f32 %v19001_v46, %v2219_v28  ;;  %vm2255_vm10 = vcmp.gt.f32.partialorder %v2219_v28, 0.0 }
 0x1b3   : > { %v2401_v22 = vrot.slane %v19157_v1, 1  ;;  %v19160_v7 = vsel %vm2250_vm8, %v2214_v18, %v2287_v55  ;;  %vm2256_vm9 = vcmp.gt.f32.partialorder %v2220_v63, 0.0  ;;  %v2540_v33 = vrot.slane %v19157_v1, 2 }
 0x1b4   : > { %v2293_v51 = vmul.f32 %v19001_v46, %v2220_v63  ;;  %v2403_v52 = vrot.slane %v19160_v7, 1  ;;  %v2542_v53 = vrot.slane %v19160_v7, 2  ;;  %v2527_v56 = vsel %vm2521_vm7, %v2525_v20, %v2526_v16 }
 0x1b5   : > { %v1998_v54 = vpop.f32.mrb[8].mxu0  ;;  %v2402_v32 = vsel %vm1651_vm2, %v2384_v44, %v2401_v22  ;;  %v19177_v61 = vmax.f32 %v2486_v4, %v2527_v56  ;;  %v19180_v62 = vsel %vm2255_vm10, %v2219_v28, %v2292_v49  ;;  %v2524_v18 = vsel %vm2521_vm7, %v2522_v50, %v2523_v3 }
 0x1b6   : > { %v19174_v57 = vsel %vm2256_vm9, %v2220_v63, %v2293_v51  ;;  %v2225_v39 = vadd.f32 %v19121_v47, %v1998_v54  ;;  %v2000_v58 = vpop.f32.mrb[9].mxu0  ;;  %v2491_v59 = vmax.f32 %v19136_v60, %v2402_v32  ;;  %v2541_v63 = vsel %vm2521_vm7, %v2523_v3, %v2540_v33 }
 0x1b7   : > { %v2415_v34 = vrot.slane %v19174_v57, 1  ;;  %v2226_v8 = vadd.f32 %v19125_v48, %v2000_v58  ;;  %v2002_v12 = vpop.f32.mrb[10].mxu0  ;;  %v16065_v19 = vpack.i.bf16 %v19028_v0, %v19177_v61  ;;  %v2554_v29 = vrot.slane %v19174_v57, 2 }
 0x1b8   : > { %vm2261_vm11 = vcmp.gt.f32.partialorder %v2225_v39, 0.0  ;;  %v2298_v44 = vmul.f32 %v19001_v46, %v2225_v39  ;;  %v2004_v21 = vpop.f32.mrb[11].mxu0  ;;  %v2231_v60 = vadd.f32 %v19121_v47, %v2002_v12  ;;  %v19199_v35 = vmax.f32 %v2485_v30, %v2524_v18 }
 0x1b9   : > { %vm2262_vm12 = vcmp.gt.f32.partialorder %v2226_v8, 0.0  ;;  %v2299_v26 = vmul.f32 %v19001_v46, %v2226_v8  ;;  %v2232_v28 = vadd.f32 %v19125_v48, %v2004_v21  ;;  %16066 = vrot.lane.b32.xlu1 %v16065_v19, %s18202_s18  ;;  %16061 = vrot.lane.b32.xlu0 %v16065_v19, %s18203_s19  ;;  %v2413_v47 = vrot.slane %v19180_v62, 1 }
 0x1ba   : > { %v19192_v55 = vsel %vm2261_vm11, %v2225_v39, %v2298_v44  ;;  %vm2267_vm13 = vcmp.gt.f32.partialorder %v2231_v60, 0.0  ;;  %v23963_v48 = vsub.s32 4, %v18976_v38  ;;  %v2304_v49 = vmul.f32 %v19001_v46, %v2231_v60 }
 0x1bb   : > { %v2425_v20 = vrot.slane %v19192_v55, 1  ;;  %v2335_v4 = vsel %vm2262_vm12, %v2226_v8, %v2299_v26  ;;  %vm2268_vm14 = vcmp.gt.f32.partialorder %v2232_v28, 0.0  ;;  %v2305_v50 = vmul.f32 %v19001_v46, %v2232_v28 }
 0x1bc   : > { %v19207_v51 = vmax.f32 %v2491_v59, %v2541_v63  ;;  %v2404_v30 = vsel %vm1651_vm2, %v2387_v13, %v2403_v52  ;;  %v2543_v3 = vsel %vm2521_vm7, %v2526_v16, %v2542_v53  ;;  %v2340_v54 = vsel %vm2267_vm13, %v2231_v60, %v2304_v49 }
 0x1bd   : > { %v2492_v56 = vmax.f32 %v19141_v10, %v2404_v30  ;;  %v2416_v32 = vsel %vm1651_vm2, %v2403_v52, %v2415_v34  ;;  %v2555_v39 = vsel %vm2521_vm7, %v2542_v53, %v2554_v29  ;;  %v2552_v58 = vrot.slane %v19180_v62, 2 }
 0x1be   : > { %v2564_v59 = vrot.slane %v19192_v55, 2  ;;  %v2341_v8 = vsel %vm2268_vm14, %v2232_v28, %v2305_v50  ;;  %v16070_v12 = vpack.i.bf16 %v19207_v51, %v19199_v35  ;;  %v2427_v13 = vrot.slane %v2335_v4, 1 }
 0x1bf   : > { %v2566_v18 = vrot.slane %v2335_v4, 2  ;;  %v2437_v44 = vrot.slane %v2340_v54, 1  ;;  %v19222_v19 = vmax.f32 %v2492_v56, %v2543_v3  ;;  %v2576_v16 = vrot.slane %v2340_v54, 2 }
 0x1c0   : > { %16071 = vrot.lane.b32.xlu1 %v16070_v12, %s18203_s19  ;;  %v2498_v10 = vmax.f32 %v19160_v7, %v2416_v32  ;;  %v2414_v52 = vsel %vm1651_vm2, %v2401_v22, %v2413_v47  ;;  %v2426_v53 = vsel %vm1651_vm2, %v2413_v47, %v2425_v20  ;;  %v2439_v21 = vrot.slane %v2341_v8, 1 }
 0x1c1   : > { %v16080_v26 = vpack.i.bf16 %v19049_v42, %v19222_v19  ;;  %v2497_v60 = vmax.f32 %v19157_v1, %v2414_v52  ;;  %v2503_v63 = vmax.f32 %v19180_v62, %v2426_v53  ;;  %v2553_v7 = vsel %vm2521_vm7, %v2540_v33, %v2552_v58  ;;  %v18173_v1 = vld [vmem:[%s23952_s3] sm:$0x3f] }
 0x1c2   : > { %v19233_v28 = vmax.f32 %v2498_v10, %v2555_v39  ;;  %v2565_v49 = vsel %vm2521_vm7, %v2552_v58, %v2564_v59  ;;  %v2578_v50 = vrot.slane %v2341_v8, 2  ;;  %v2428_v47 = vsel %vm1651_vm2, %v2415_v34, %v2427_v13 }
 0x1c3   : > { %16081 = vrot.lane.b32.xlu0 %v16080_v26, %s18203_s19  ;;  %v19241_v22 = vmax.f32 %v2497_v60, %v2553_v7  ;;  %v2567_v30 = vsel %vm2521_vm7, %v2554_v29, %v2566_v18  ;;  %v19246_v3 = vmax.f32 %v2503_v63, %v2565_v49  ;;  %v2504_v62 = vmax.f32 %v19174_v57, %v2428_v47 }
 0x1c4   : > { %16076 = vrot.lane.b32.xlu1 %v16070_v12, %s18202_s18  ;;  %v19254_v33 = vrot.slane %v18173_v1, %v23963_v48  ;;  %v2438_v56 = vsel %vm1651_vm2, %v2425_v20, %v2437_v44  ;;  %v2440_v34 = vsel %vm1651_vm2, %v2427_v13, %v2439_v21  ;;  %v2515_v32 = vmax.f32 %v2340_v54, %v2437_v44 }
 0x1c5   : > { %v16095_v29 = vpack.i.bf16 %v19060_v9, %v19233_v28  ;;  %v19260_v39 = vmax.f32 %v2504_v62, %v2567_v30  ;;  %v2509_v57 = vmax.f32 %v19192_v55, %v2438_v56  ;;  %v2510_v58 = vmax.f32 %v2335_v4, %v2440_v34 }
 0x1c6   : > { %v2577_v12 = vsel %vm2521_vm7, %v2564_v59, %v2576_v16  ;;  %v2579_v10 = vsel %vm2521_vm7, %v2566_v18, %v2578_v50  ;;  %v2516_v52 = vmax.f32 %v2341_v8, %v2439_v21  ;;  %v2517_v55 = vmax.f32 %v19055_v2, %v2441_v5 }
 0x1c7   : > { %16086 = vrot.lane.b32.xlu0 %v16080_v26, %s18202_s18  ;;  %v19267_v13 = vmax.f32 %v2509_v57, %v2577_v12  ;;  %v19270_v53 = vmax.f32 %v2510_v58, %v2579_v10  ;;  %v16105_v4 = vpack.i.bf16 %v19246_v3, %v19241_v22  ;;  %v19278_v18 = vmax.f32 %v2515_v32, %v2576_v16 }
 0x1c8   : > { %16096 = vrot.lane.b32.xlu1 %v16095_v29, %s18202_s18  ;;  %v19286_v7 = vmax.f32 %v2516_v52, %v2578_v50  ;;  %v16110_v30 = vpack.i.bf16 %v19072_v17, %v19260_v39  ;;  %v19297_v1 = vmax.f32 %v2517_v55, %v2580_v45  ;;  %vm2768_vm14 = vcmask 916480  }
 0x1c9   : > { %v2104_v20 = vpop.f32.mrb[12].mxu0  ;;  %v19293_v62 = vpack.i.bf16 %v19278_v18, %v19087_v27 }
 0x1ca   : > { %v2205_v54 = vadd.f32 %v19254_v33, %v2104_v20  ;;  %v2106_v44 = vpop.f32.mrb[13].mxu0  ;;  %v16125_v57 = vpack.i.bf16 %v19297_v1, %v19286_v7 }
 0x1cb   : > { %v2206_v59 = vadd.f32 %v18985_v43, %v2106_v44  ;;  %v2108_v8 = vpop.f32.mrb[14].mxu0  ;;  %16091 = vrot.lane.b32.xlu0 %v16095_v29, %s18203_s19 }
 0x1cc   : > { %vm2241_vm15 = vcmp.gt.f32.partialorder %v2205_v54, 0.0  ;;  %v2278_v21 = vmul.f32 %v19001_v46, %v2205_v54  ;;  %v2211_v26 = vadd.f32 %v19254_v33, %v2108_v8  ;;  %v2110_v60 = vpop.f32.mrb[15].mxu0  ;;  %16106 = vrot.lane.b32.xlu1 %v16105_v4, %s18202_s18 }
 0x1cd   : > { %vm2242_vm1 = vcmp.gt.f32.partialorder %v2206_v59, 0.0  ;;  %v2279_v5 = vmul.f32 %v19001_v46, %v2206_v59  ;;  %v2212_v63 = vadd.f32 %v18985_v43, %v2110_v60 }
 0x1ce   : > { %v2314_v49 = vsel %vm2241_vm15, %v2205_v54, %v2278_v21  ;;  %vm2247_vm3 = vcmp.gt.f32.partialorder %v2211_v26, 0.0  ;;  %v2284_v16 = vmul.f32 %v19001_v46, %v2211_v26  ;;  %vm2943_vm15 = vcmask 785408  }
 0x1cf   : > { %v2395_v47 = vrot.slane %v2314_v49, 1  ;;  %16101 = vrot.lane.b32.xlu0 %v16105_v4, %s18203_s19  ;;  %v19300_v50 = vsel %vm2242_vm1, %v2206_v59, %v2279_v5  ;;  %vm2248_vm4 = vcmp.gt.f32.partialorder %v2212_v63, 0.0  ;;  %v2285_v34 = vmul.f32 %v19001_v46, %v2212_v63 }
 0x1d0   : > { %v2320_v56 = vsel %vm2247_vm3, %v2211_v26, %v2284_v16  ;;  %16111 = vrot.lane.b32.xlu1 %v16110_v30, %s18203_s19  ;;  %v2534_v12 = vrot.slane %v2314_v49, 2  ;;  %vm3075_vm1 = vcmask 359424   ;;  %vm5038_vm3 = vcmask 523264  }
 0x1d1   : > { %v2396_v32 = vrot.slane %v2320_v56, 1  ;;  %v2535_v29 = vrot.slane %v2320_v56, 2  ;;  %v2114_v58 = vpop.f32.mrb[16].mxu0  ;;  %v19308_v52 = vsel %vm2248_vm4, %v2212_v63, %v2285_v34  ;;  %v16140_v34 = vpack.i.bf16 %v19270_v53, %v19267_v13 }
 0x1d2   : > { %v2217_v2 = vadd.f32 %v19254_v33, %v2114_v58  ;;  %v2116_v45 = vpop.f32.mrb[17].mxu0 }
 0x1d3   : > { %v2218_v20 = vadd.f32 %v18985_v43, %v2116_v45  ;;  %v2118_v54 = vpop.f32.mrb[18].mxu0  ;;  %v2397_v44 = vsel %vm1651_vm2, %v2395_v47, %v2396_v32  ;;  %16116 = vrot.lane.b32.xlu0 %v16110_v30, %s18202_s18  ;;  %v2536_v60 = vsel %vm2521_vm7, %v2534_v12, %v2535_v29 }
 0x1d4   : > { %vm2253_vm5 = vcmp.gt.f32.partialorder %v2217_v2, 0.0  ;;  %v2290_v55 = vmul.f32 %v19001_v46, %v2217_v2  ;;  %v2223_v4 = vadd.f32 %v19254_v33, %v2118_v54  ;;  %v2120_v59 = vpop.f32.mrb[19].mxu0  ;;  %v2489_v8 = vmax.f32 %v2314_v49, %v2397_v44  ;;  %16121 = vrot.lane.b32.xlu1 %v19293_v62, %s18203_s19 }
 0x1d5   : > { %vm2254_vm6 = vcmp.gt.f32.partialorder %v2218_v20, 0.0  ;;  %v2291_v21 = vmul.f32 %v19001_v46, %v2218_v20  ;;  %v2224_v26 = vadd.f32 %v18985_v43, %v2120_v59  ;;  %v2538_v59 = vrot.slane %v19308_v52, 2 }
 0x1d6   : > { %v2326_v5 = vsel %vm2253_vm5, %v2217_v2, %v2290_v55  ;;  %vm2259_vm8 = vcmp.gt.f32.partialorder %v2223_v4, 0.0  ;;  %v2296_v63 = vmul.f32 %v19001_v46, %v2223_v4  ;;  %v19321_v16 = vmax.f32 %v2489_v8, %v2536_v60 }
 0x1d7   : > { %v2409_v30 = vrot.slane %v2326_v5, 1  ;;  %v2548_v49 = vrot.slane %v2326_v5, 2  ;;  %16126 = vrot.lane.b32.xlu0 %v16125_v57, %s18203_s19  ;;  %v19327_v58 = vsel %vm2254_vm6, %v2218_v20, %v2291_v21  ;;  %vm2260_vm9 = vcmp.gt.f32.partialorder %v2224_v26, 0.0 }
 0x1d8   : > { %v19329_v45 = vsel %vm2259_vm8, %v2223_v4, %v2296_v63  ;;  %v2297_v12 = vmul.f32 %v19001_v46, %v2224_v26  ;;  %v2399_v2 = vrot.slane %v19308_v52, 1  ;;  %16141 = vrot.lane.b32.xlu1 %v16140_v34, %s18202_s18  ;;  %v23987_v6 = vrot.slane %v19327_v58, 1 }
 0x1d9   : > { %v2421_v54 = vrot.slane %v19329_v45, 1  ;;  %v2124_v44 = vpop.f32.mrb[20].mxu0  ;;  %v2410_v55 = vsel %vm1651_vm2, %v2396_v32, %v2409_v30  ;;  %v2549_v4 = vsel %vm2521_vm7, %v2535_v29, %v2548_v49  ;;  %v2560_v63 = vrot.slane %v19329_v45, 2 }
 0x1da   : > { %v2229_v8 = vadd.f32 %v19254_v33, %v2124_v44  ;;  %v2126_v20 = vpop.f32.mrb[21].mxu0  ;;  %v2495_v21 = vmax.f32 %v2320_v56, %v2410_v55  ;;  %v19341_v48 = vsel %vm2260_vm9, %v2224_v26, %v2297_v12 }
 0x1db   : > { %v2230_v15 = vadd.f32 %v18985_v43, %v2126_v20  ;;  %v2128_v14 = vpop.f32.mrb[22].mxu0  ;;  %16131 = vrot.lane.b32.xlu0 %v16140_v34, %s18203_s19  ;;  %v2422_v12 = vsel %vm1651_vm2, %v2409_v30, %v2421_v54  ;;  %v2561_v10 = vsel %vm2521_vm7, %v2548_v49, %v2560_v63 }
 0x1dc   : > { %vm2265_vm10 = vcmp.gt.f32.partialorder %v2229_v8, 0.0  ;;  %v2302_v32 = vmul.f32 %v19001_v46, %v2229_v8  ;;  %v2235_v44 = vadd.f32 %v19254_v33, %v2128_v14  ;;  %v2130_v47 = vpop.f32.mrb[23].mxu0  ;;  %v19347_v56 = vmax.f32 %v2495_v21, %v2549_v4  ;;  %16146 = vrot.lane.b32.xlu1 %v16125_v57, %s18202_s18 }
 0x1dd   : > { %vm2266_vm11 = vcmp.gt.f32.partialorder %v2230_v15, 0.0  ;;  %v2303_v29 = vmul.f32 %v19001_v46, %v2230_v15  ;;  %v2236_v26 = vadd.f32 %v18985_v43, %v2130_v47  ;;  %v2550_v14 = vrot.slane %v19327_v58, 2 }
 0x1de   : > { %v2338_v55 = vsel %vm2265_vm10, %v2229_v8, %v2302_v32  ;;  %vm2271_vm12 = vcmp.gt.f32.partialorder %v2235_v44, 0.0  ;;  %v2308_v34 = vmul.f32 %v19001_v46, %v2235_v44  ;;  %v16160_v20 = vpack.i.bf16 %v19347_v56, %v19098_v37 }
 0x1df   : > { %v2433_v33 = vrot.slane %v2338_v55, 1  ;;  %v2572_v21 = vrot.slane %v2338_v55, 2  ;;  %v2423_v57 = vrot.slane %v19341_v48, 1  ;;  %16136 = vrot.lane.b32.xlu0 %v19293_v62, %s18202_s18  ;;  %v2339_v4 = vsel %vm2266_vm11, %v2230_v15, %v2303_v29 }
 0x1e0   : > { %v2344_v43 = vsel %vm2271_vm12, %v2235_v44, %v2308_v34  ;;  %v16150_v47 = vpack.i.bf16 %v19321_v16, %v19082_v25  ;;  %v2309_v32 = vmul.f32 %v19001_v46, %v2236_v26  ;;  %16161 = vrot.lane.b32.xlu1 %v16160_v20, %s18203_s19  ;;  %v2501_v60 = vmax.f32 %v2326_v5, %v2422_v12 }
 0x1e1   : > { %v2445_v30 = vrot.slane %v2344_v43, 1  ;;  %v2584_v8 = vrot.slane %v2344_v43, 2  ;;  %vm2272_vm13 = vcmp.gt.f32.partialorder %v2236_v26, 0.0  ;;  %v2434_v38 = vsel %vm1651_vm2, %v2421_v54, %v2433_v33 }
 0x1e2   : > { %v2573_v36 = vsel %vm2521_vm7, %v2560_v63, %v2572_v21  ;;  %v2562_v15 = vrot.slane %v19341_v48, 2  ;;  %v19368_v62 = vmax.f32 %v2501_v60, %v2561_v10  ;;  %v2507_v44 = vmax.f32 %v19329_v45, %v2434_v38 }
 0x1e3   : > { %16151 = vrot.lane.b32.xlu0 %v16150_v47, %s18203_s19  ;;  %v2446_v46 = vsel %vm1651_vm2, %v2433_v33, %v2445_v30  ;;  %v2585_v29 = vsel %vm2521_vm7, %v2572_v21, %v2584_v8  ;;  %v23986_v5 = vrot.slane %v19300_v50, 1  ;;  %v2435_v12 = vrot.slane %v2339_v4, 1 }
 0x1e4   : > { %v2574_v54 = vrot.slane %v2339_v4, 2  ;;  %v2345_v34 = vsel %vm2272_vm13, %v2236_v26, %v2309_v32  ;;  %16166 = vrot.lane.b32.xlu1 %v16160_v20, %s18202_s18  ;;  %v2513_v63 = vmax.f32 %v2338_v55, %v2446_v46  ;;  %v2519_v10 = vmax.f32 %v2344_v43, %v2445_v30 }
 0x1e5   : > { %v2400_v49 = vsel %vm1651_vm2, %v23986_v5, %v2399_v2  ;;  %v19378_v60 = vmax.f32 %v2507_v44, %v2573_v36  ;;  %v2412_v38 = vsel %vm1651_vm2, %v2399_v2, %v23987_v6  ;;  %v23988_v5 = vrot.slane %v19300_v50, 2 }
 0x1e6   : > { %v2490_v45 = vmax.f32 %v19300_v50, %v2400_v49  ;;  %v19384_v33 = vmax.f32 %v2513_v63, %v2585_v29  ;;  %v2496_v21 = vmax.f32 %v19308_v52, %v2412_v38  ;;  %v2551_v20 = vsel %vm2521_vm7, %v2538_v59, %v2550_v14 }
 0x1e7   : > { %v2539_v26 = vsel %vm2521_vm7, %v23988_v5, %v2538_v59  ;;  %v2447_v55 = vrot.slane %v2345_v34, 1  ;;  %v2586_v43 = vrot.slane %v2345_v34, 2  ;;  %16156 = vrot.lane.b32.xlu0 %v16150_v47, %s18202_s18  ;;  %v16180_v36 = vpack.i.bf16 %v19378_v60, %v19109_v24 }
 0x1e8   : > { %v23989_v6 = vrot.slane %v19063_v11, 1  ;;  %v16170_v52 = vpack.i.bf16 %v19368_v62, %v19107_v23  ;;  %v19399_v30 = vmax.f32 %v2490_v45, %v2539_v26  ;;  %v19401_v50 = vmax.f32 %v2496_v21, %v2551_v20  ;;  %v16569_v26 = vld [vmem:[%s23953_s4 + $0x6e8] ss:$20 sps:$4 sm:$0xff]   ;;  %v16571_v20 = vld [vmem:[%s23953_s4 + $0x6ec] ss:$20 sps:$4 sm:$0xff]  }
 0x1e9   : > { %16181 = vrot.lane.b32.xlu1 %v16180_v36, %s18203_s19  ;;  %v23990_v59 = vrot.slane %v19327_v58, 1  ;;  %v2436_v32 = vsel %vm1651_vm2, %v2423_v57, %v2435_v12  ;;  %v2563_v44 = vsel %vm2521_vm7, %v2550_v14, %v2562_v15  ;;  %v2575_v46 = vsel %vm2521_vm7, %v2562_v15, %v2574_v54  ;;  %5198 = vmatprep.subr.bf16.mxu0 %v16571_v20 }
 0x1ea   : > { %v2518_v2 = vmax.f32 %v19063_v11, %v23989_v6  ;;  %v19410_v29 = vmax.f32 %v2519_v10, %v2584_v8  ;;  %v2508_v63 = vmax.f32 %v19341_v48, %v2436_v32  ;;  %v2448_v38 = vsel %vm1651_vm2, %v2435_v12, %v2447_v55  ;;  %5199 = vmatpush1.bf16.msra.mxu0 %v16569_v26  ;;  %v16581_v6 = vld [vmem:[%s23953_s4 + $0x738] ss:$20 sps:$4 sm:$0xff]   ;;  %v16601_v32 = vld [vmem:[%s23953_s4 + $0x7b4] ss:$20 sps:$4 sm:$0xff]   ;;  %v16623_v26 = vld [vmem:[%s23953_s4 + $0x850] ss:$20 sps:$4 sm:$0xff]  }
 0x1eb   : > { %v2424_v47 = vsel %vm1651_vm2, %v23990_v59, %v2423_v57  ;;  %16171 = vrot.lane.b32.xlu0 %v16170_v52, %s18203_s19  ;;  %v2587_v45 = vsel %vm2521_vm7, %v2574_v54, %v2586_v43  ;;  %v2514_v57 = vmax.f32 %v2339_v4, %v2448_v38  ;;  %v23971_v14 = vmov 0   ;;  %v16595_v59 = vld [vmem:[%s23953_s4 + $0x78c] ss:$20 sps:$4 sm:$0xff]  }
 0x1ec   : > { %v2502_v49 = vmax.f32 %v19327_v58, %v2424_v47  ;;  %v19419_v5 = vmax.f32 %v2508_v63, %v2575_v46  ;;  %3132 = vmatprep.mubr.bf16.mxu1 %v23971_v14  ;;  %v23991_v58 = vrot.slane %v19063_v11, 2  ;;  %v16195_v12 = vpack.i.bf16 %v19384_v33, %v19111_v40  ;;  %v16593_v47 = vld [vmem:[%s23953_s4 + $0x788] ss:$20 sps:$4 sm:$0xff]   ;;  %v16613_v63 = vld [vmem:[%s23953_s4 + $0x804] ss:$20 sps:$4 sm:$0xff]  }
 0x1ed   : > { %16186 = vrot.lane.b32.xlu1 %v16180_v36, %s18202_s18  ;;  %v19427_v48 = vmax.f32 %v2514_v57, %v2587_v45  ;;  %v2520_v4 = vmax.f32 %v2345_v34, %v2447_v55  ;;  %v16215_v11 = vpack.i.bf16 %v19401_v50, %v19399_v30  ;;  %v16577_v55 = vld [vmem:[%s23953_s4 + $0x714] ss:$20 sps:$4 sm:$0xff]   ;;  %v16583_v36 = vld [vmem:[%s23953_s4 + $0x73c] ss:$20 sps:$4 sm:$0xff]   ;;  %v16619_v57 = vld [vmem:[%s23953_s4 + $0x82c] ss:$20 sps:$4 sm:$0xff]  }
 0x1ee   : > { %v19417_v21 = vmax.f32 %v2502_v49, %v2563_v44  ;;  %v19425_v8 = vmax.f32 %v2518_v2, %v23991_v58  ;;  %5200 = vmatprep.subr.bf16.mxu0 %v16577_v55  ;;  %v16589_v2 = vld [vmem:[%s23953_s4 + $0x764] ss:$20 sps:$4 sm:$0xff]   ;;  %v16607_v46 = vld [vmem:[%s23953_s4 + $0x7dc] ss:$20 sps:$4 sm:$0xff]   ;;  %v16611_v38 = vld [vmem:[%s23953_s4 + $0x800] ss:$20 sps:$4 sm:$0xff]  }
 0x1ef   : > { %16176 = vrot.lane.b32.xlu0 %v16170_v52, %s18202_s18  ;;  %v19444_v10 = vmax.f32 %v2520_v4, %v2586_v43  ;;  %v16575_v43 = vld [vmem:[%s23953_s4 + $0x710] ss:$20 sps:$4 sm:$0xff]   ;;  %v16587_v52 = vld [vmem:[%s23953_s4 + $0x760] ss:$20 sps:$4 sm:$0xff]   ;;  %v16605_v49 = vld [vmem:[%s23953_s4 + $0x7d8] ss:$20 sps:$4 sm:$0xff]  }
 0x1f0   : > { %v16190_v15 = vpack.i.bf16 %v19410_v29, %v19425_v8  ;;  %v16225_v54 = vpack.i.bf16 %v19419_v5, %v19417_v21  ;;  %5201 = vmatpush1.bf16.msra.mxu0 %v16575_v43  ;;  %v16599_v44 = vld [vmem:[%s23953_s4 + $0x7b0] ss:$20 sps:$4 sm:$0xff]  }
 0x1f1   : > { %v16235_v34 = vpack.i.bf16 %v19444_v10, %v19427_v48  ;;  %5202 = vmatprep.subr.bf16.mxu0 %v16583_v36  ;;  %v16631_v55 = vld [vmem:[%s23953_s4 + $0x87c] ss:$20 sps:$4 sm:$0xff]  }
 0x1f2   : > { %16191 = vrot.lane.b32.xlu1 %v16190_v15, %s18203_s19 }
 0x1f3   : > { %16196 = vrot.lane.b32.xlu0 %v16195_v12, %s18203_s19 }
 0x1f4   : > { %5203 = vmatpush1.bf16.msra.mxu0 %v16581_v6 }
 0x1f5   : > { %5204 = vmatprep.subr.bf16.mxu0 %v16589_v2 }
 0x1f6   : > { %16206 = vrot.lane.b32.xlu1 %v16190_v15, %s18202_s18  ;;  %v16617_v15 = vld [vmem:[%s23953_s4 + $0x828] ss:$20 sps:$4 sm:$0xff]  }
 0x1f7   : > { %16201 = vrot.lane.b32.xlu0 %v16195_v12, %s18202_s18 }
 0x1f8   : > { %5205 = vmatpush1.bf16.msra.mxu0 %v16587_v52 }
 0x1f9   : > { %5206 = vmatprep.subr.bf16.mxu0 %v16595_v59 }
 0x1fa   : > { %16216 = vrot.lane.b32.xlu1 %v16215_v11, %s18202_s18 }
 0x1fb   : > { %16211 = vrot.lane.b32.xlu0 %v16215_v11, %s18203_s19 }
 0x1fc   : > { %5207 = vmatpush1.bf16.msra.mxu0 %v16593_v47 }
 0x1fd   : > { %5208 = vmatprep.subr.bf16.mxu0 %v16601_v32 }
 0x1fe   : > { %16226 = vrot.lane.b32.xlu1 %v16225_v54, %s18202_s18 }
 0x1ff   : > { %16221 = vrot.lane.b32.xlu0 %v16225_v54, %s18203_s19  ;;  %v16625_v54 = vld [vmem:[%s23953_s4 + $0x854] ss:$20 sps:$4 sm:$0xff]  }
 0x200   : > { %5209 = vmatpush1.bf16.msra.mxu0 %v16599_v44  ;;  %v16629_v44 = vld [vmem:[%s23953_s4 + $0x878] ss:$20 sps:$4 sm:$0xff]  }
 0x201   : > { %5210 = vmatprep.subr.bf16.mxu0 %v16607_v46 }
 0x202   : > { %16236 = vrot.lane.b32.xlu1 %v16235_v34, %s18202_s18 }
 0x203   : > { %16231 = vrot.lane.b32.xlu0 %v16235_v34, %s18203_s19  ;;  %s18205_s19 = smov 64  }
 0x204   : > { %5211 = vmatpush1.bf16.msra.mxu0 %v16605_v49 }
 0x205   : > { %5212 = vmatprep.subr.bf16.mxu0 %v16613_v63 }
 0x208   : > { %5213 = vmatpush1.bf16.msra.mxu0 %v16611_v38 }
 0x209   : > { %5214 = vmatprep.subr.bf16.mxu0 %v16619_v57  ;;  %v16637_v57 = vld [vmem:[%s23953_s4 + $0x8a4] ss:$20 sps:$4 sm:$0xff]  }
 0x20c   : > { %5215 = vmatpush1.bf16.msra.mxu0 %v16617_v15 }
 0x20d   : > { %5216 = vmatprep.subr.bf16.mxu0 %v16625_v54 }
 0x210   : > { %5217 = vmatpush1.bf16.msra.mxu0 %v16623_v26 }
 0x211   : > { %5218 = vmatprep.subr.bf16.mxu0 %v16631_v55 }
 0x214   : > { %5219 = vmatpush1.bf16.msra.mxu0 %v16629_v44 }
 0x215   : > { %5220 = vmatprep.subr.bf16.mxu0 %v16637_v57 }
 0x22b   : > { %v19500_v45 = vpop.permute.xlu1 %16066  ;;  %v19505_v58 = vpop.permute.xlu0 %16061 }
 0x22c   : > { %v23973_v12 = vunpack.i.h.bf16 %v19505_v58  ;;  %v16063_v4 = vunpack.i.l.bf16 %v19505_v58  ;;  %v16068_v47 = vunpack.i.l.bf16 %v19500_v45  ;;  %v23977_v46 = vunpack.i.h.bf16 %v19500_v45 }
 0x22e   : > { %v2770_v36 = vsel %vm2768_vm14, %v16063_v4, %v23973_v12 }
 0x22f   : > { %v2836_v15 = vmax.f32 %v19177_v61, %v2770_v36  ;;  %v16635_v61 = vld [vmem:[%s23953_s4 + $0x8a0] ss:$20 sps:$4 sm:$0xff]  }
 0x230   : > { %5221 = vmatpush1.bf16.msra.mxu0 %v16635_v61 }
 0x232   : > { %v16072_v11 = vpop.permute.xlu1 %16071 }
 0x233   : > { %v16073_v34 = vunpack.i.l.bf16 %v16072_v11  ;;  %v16074_v20 = vunpack.i.h.bf16 %v16072_v11 }
 0x235   : > { %v19521_v43 = vpop.permute.xlu0 %16081  ;;  %v2769_v6 = vsel %vm2768_vm14, %v16073_v34, %v16063_v4 }
 0x236   : > { %v16084_v2 = vunpack.i.h.bf16 %v19521_v43  ;;  %v16083_v52 = vunpack.i.l.bf16 %v19521_v43  ;;  %v16077_v59 = vpop.permute.xlu1 %16076  ;;  %v2835_v4 = vmax.f32 %v19199_v35, %v2769_v6  ;;  %v2945_v35 = vsel %vm2943_vm15, %v16068_v47, %v23977_v46 }
 0x237   : > { %v16078_v32 = vunpack.i.l.bf16 %v16077_v59  ;;  %v16079_v38 = vunpack.i.h.bf16 %v16077_v59 }
 0x238   : > { %v2774_v49 = vsel %vm2768_vm14, %v16074_v20, %v16083_v52  ;;  %v2775_v63 = vsel %vm2768_vm14, %v16083_v52, %v16084_v2 }
 0x239   : > { %v2944_v11 = vsel %vm2943_vm15, %v16078_v32, %v16068_v47  ;;  %v19544_v54 = vpop.permute.xlu0 %16086  ;;  %v2841_v52 = vmax.f32 %v19207_v51, %v2774_v49  ;;  %v2842_v59 = vmax.f32 %v19222_v19, %v2775_v63  ;;  %v3011_v51 = vmax.f32 %v2836_v15, %v2945_v35 }
 0x23a   : > { %v16089_v34 = vunpack.i.h.bf16 %v19544_v54  ;;  %v16088_v20 = vunpack.i.l.bf16 %v19544_v54  ;;  %v19548_v14 = vpop.permute.xlu1 %16096  ;;  %v3010_v12 = vmax.f32 %v2835_v4, %v2944_v11 }
 0x23b   : > { %v23976_v44 = vunpack.i.h.bf16 %v19548_v14 }
 0x23c   : > { %v2949_v26 = vsel %vm2943_vm15, %v16079_v38, %v16088_v20  ;;  %v2950_v36 = vsel %vm2943_vm15, %v16088_v20, %v16089_v34 }
 0x23d   : > { %v3016_v55 = vmax.f32 %v2841_v52, %v2949_v26  ;;  %v19562_v6 = vpop.permute.xlu0 %16091  ;;  %v3017_v19 = vmax.f32 %v2842_v59, %v2950_v36 }
 0x23e   : > { %v23974_v32 = vunpack.i.h.bf16 %v19562_v6  ;;  %v16093_v49 = vunpack.i.l.bf16 %v19562_v6  ;;  %v16107_v63 = vpop.permute.xlu1 %16106 }
 0x23f   : > { %v3050_v4 = vpack.c.bf16 %v3017_v19, %v3011_v51  ;;  %v3049_v47 = vpack.c.bf16 %v3016_v55, %v3010_v12  ;;  %v16098_v12 = vunpack.i.l.bf16 %v19548_v14  ;;  %v16109_v35 = vunpack.i.h.bf16 %v16107_v63 }
 0x240   : > { %v2780_v11 = vsel %vm2768_vm14, %v16093_v49, %v23974_v32  ;;  %v16108_v26 = vunpack.i.l.bf16 %v16107_v63 }
 0x241   : > { %3100 = vmatprep.subr.bf16.mxu1 %v3050_v4  ;;  %v16102_v38 = vpop.permute.xlu0 %16101  ;;  %v2848_v36 = vmax.f32 %v19233_v28, %v2780_v11  ;;  %v2955_v28 = vsel %vm2943_vm15, %v16098_v12, %v23976_v44 }
 0x242   : > { %v16103_v20 = vunpack.i.l.bf16 %v16102_v38  ;;  %3101 = vmatpush1.bf16.msra.mxu1 %v3049_v47  ;;  %v19569_v15 = vpop.permute.xlu1 %16111  ;;  %v16104_v52 = vunpack.i.h.bf16 %v16102_v38 }
 0x243   : > { %v23975_v59 = vunpack.i.h.bf16 %v19569_v15  ;;  %v16113_v57 = vunpack.i.l.bf16 %v19569_v15 }
 0x244   : > { %v2779_v61 = vsel %vm2768_vm14, %v16103_v20, %v16093_v49 }
 0x245   : > { %v2847_v55 = vmax.f32 %v19241_v22, %v2779_v61  ;;  %v2784_v51 = vsel %vm2768_vm14, %v16104_v52, %v16113_v57  ;;  %v2785_v19 = vsel %vm2768_vm14, %v16113_v57, %v23975_v59  ;;  %v19582_v4 = vpop.permute.xlu0 %16116  ;;  %v2954_v22 = vsel %vm2943_vm15, %v16108_v26, %v16098_v12 }
 0x246   : > { %v2853_v47 = vmax.f32 %v19246_v3, %v2784_v51  ;;  %v2854_v38 = vmax.f32 %v19260_v39, %v2785_v19  ;;  %v16119_v63 = vunpack.i.h.bf16 %v19582_v4  ;;  %v16118_v49 = vunpack.i.l.bf16 %v19582_v4  ;;  %v19588_v20 = vpop.permute.xlu1 %16121 }
 0x247   : > { %v3022_v52 = vmax.f32 %v2847_v55, %v2954_v22  ;;  %v3023_v61 = vmax.f32 %v2848_v36, %v2955_v28  ;;  %v16124_v44 = vunpack.i.h.bf16 %v19588_v20  ;;  %v23979_v46 = vunpack.i.l.bf16 %v19588_v20 }
 0x248   : > { %v2959_v11 = vsel %vm2943_vm15, %v16109_v35, %v16118_v49  ;;  %v2960_v3 = vsel %vm2943_vm15, %v16118_v49, %v16119_v63 }
 0x249   : > { %v3028_v39 = vmax.f32 %v2853_v47, %v2959_v11  ;;  %v19598_v57 = vpop.permute.xlu0 %16126  ;;  %v3029_v51 = vmax.f32 %v2854_v38, %v2960_v3 }
 0x24a   : > { %v23980_v19 = vunpack.i.h.bf16 %v19598_v57  ;;  %v16128_v32 = vunpack.i.l.bf16 %v19598_v57  ;;  %v16142_v59 = vpop.permute.xlu1 %16141 }
 0x24b   : > { %v3056_v12 = vpack.c.bf16 %v3029_v51, %v3023_v61  ;;  %v3055_v26 = vpack.c.bf16 %v3028_v39, %v3022_v52  ;;  %v16144_v11 = vunpack.i.h.bf16 %v16142_v59  ;;  %v16143_v3 = vunpack.i.l.bf16 %v16142_v59 }
 0x24c   : > { %v2795_v55 = vsel %vm2768_vm14, %v16128_v32, %v23980_v19  ;;  %v2794_v49 = vsel %vm2768_vm14, %v16124_v44, %v16128_v32 }
 0x24d   : > { %v16132_v35 = vpop.permute.xlu0 %16131  ;;  %3102 = vmatprep.subr.bf16.mxu1 %v3056_v12  ;;  %v2866_v61 = vmax.f32 %v19286_v7, %v2795_v55  ;;  %v2865_v12 = vmax.f32 %v19278_v18, %v2794_v49  ;;  %v2964_v55 = vsel %vm2943_vm15, %v16143_v3, %v16144_v11 }
 0x24e   : > { %v16134_v47 = vunpack.i.h.bf16 %v16132_v35  ;;  %v16133_v36 = vunpack.i.l.bf16 %v16132_v35  ;;  %3103 = vmatpush1.bf16.msra.mxu1 %v3055_v26  ;;  %v19607_v38 = vpop.permute.xlu1 %16146 }
 0x24f   : > { %v23978_v28 = vunpack.i.h.bf16 %v19607_v38  ;;  %v16148_v22 = vunpack.i.l.bf16 %v19607_v38 }
 0x250   : > { %v2790_v52 = vsel %vm2768_vm14, %v16134_v47, %v23979_v46  ;;  %v2789_v39 = vsel %vm2768_vm14, %v16133_v36, %v16134_v47 }
 0x251   : > { %v2859_v51 = vmax.f32 %v19267_v13, %v2789_v39  ;;  %v2970_v32 = vsel %vm2943_vm15, %v16148_v22, %v23978_v28  ;;  %v19621_v44 = vpop.permute.xlu0 %16136  ;;  %v2860_v47 = vmax.f32 %v19270_v53, %v2790_v52 }
 0x252   : > { %v16139_v59 = vunpack.i.h.bf16 %v19621_v44  ;;  %v16138_v26 = vunpack.i.l.bf16 %v19621_v44  ;;  %v19626_v35 = vpop.permute.xlu1 %16161  ;;  %v3041_v36 = vmax.f32 %v2866_v61, %v2970_v32 }
 0x253   : > { %v16164_v7 = vunpack.i.h.bf16 %v19626_v35  ;;  %v16163_v13 = vunpack.i.l.bf16 %v19626_v35  ;;  %v3034_v19 = vmax.f32 %v2859_v51, %v2964_v55 }
 0x254   : > { %v2969_v39 = vsel %vm2943_vm15, %v16139_v59, %v16148_v22  ;;  %v2965_v18 = vsel %vm2943_vm15, %v16144_v11, %v16138_v26  ;;  %v23992_v59 = vunpack.i.h.bf16 %v19505_v58 }
 0x255   : > { %v3040_v49 = vmax.f32 %v2865_v12, %v2969_v39  ;;  %v3035_v28 = vmax.f32 %v2860_v47, %v2965_v18  ;;  %v19636_v46 = vpop.permute.xlu0 %16151  ;;  %v2776_v61 = vsel %vm2768_vm14, %v16084_v2, %v16163_v13  ;;  %v2777_v22 = vsel %vm2768_vm14, %v16163_v13, %v16164_v7 }
 0x256   : > { %v16154_v53 = vunpack.i.h.bf16 %v19636_v46  ;;  %v16153_v52 = vunpack.i.l.bf16 %v19636_v46  ;;  %v19646_v3 = vpop.permute.xlu1 %16166  ;;  %v2843_v2 = vmax.f32 %v19049_v42, %v2776_v61  ;;  %v2844_v13 = vmax.f32 %v19098_v37, %v2777_v22 }
 0x257   : > { %v3062_v11 = vpack.c.bf16 %v3041_v36, %v3035_v28  ;;  %v3061_v32 = vpack.c.bf16 %v3040_v49, %v3034_v19  ;;  %v16169_v12 = vunpack.i.h.bf16 %v19646_v3  ;;  %v16168_v51 = vunpack.i.l.bf16 %v19646_v3  ;;  %v19668_v36 = vld [vmem:[%s23957_s8] sm:$0xff]  }
 0x258   : > { %v2771_v47 = vsel %vm2768_vm14, %v23992_v59, %v16153_v52  ;;  %v2772_v43 = vsel %vm2768_vm14, %v16153_v52, %v16154_v53  ;;  %v23993_v52 = vunpack.i.h.bf16 %v19500_v45 }
 0x259   : > { %13718 = vmatprep.subr.msk.bf16.mxu1 %vm2521_vm7, %v3062_v11  ;;  %v19659_v28 = vpop.permute.xlu0 %16156  ;;  %v3083_v19 = vsel %vm2521_vm7, %v3061_v32, 0  ;;  %v2951_v58 = vsel %vm2943_vm15, %v16089_v34, %v16168_v51  ;;  %v2952_v37 = vsel %vm2943_vm15, %v16168_v51, %v16169_v12  ;;  %v2837_v39 = vmax.f32 %v19028_v0, %v2771_v47 }
 0x25a   : > { %v16159_v55 = vunpack.i.h.bf16 %v19659_v28  ;;  %v16158_v42 = vunpack.i.l.bf16 %v19659_v28  ;;  %3105 = vmatpush1.bf16.msra.mxu1 %v3083_v19  ;;  %v2838_v54 = vmax.f32 %v19082_v25, %v2772_v43  ;;  %v3018_v34 = vmax.f32 %v2843_v2, %v2951_v58 }
 0x25b   : > { %v19677_v18 = vpop.permute.xlu1 %16181  ;;  %v3019_v49 = vmax.f32 %v2844_v13, %v2952_v37  ;;  %v23994_v47 = vunpack.i.h.bf16 %v19569_v15  ;;  %v23995_v13 = vmov 0   ;;  %v23996_v37 = vunpack.i.h.bf16 %v19562_v6  ;;  %v19717_v6 = vld [vmem:[%s23957_s8 + $0x8] ss:$0 sps:$4 sm:$0x77]  }
 0x25c   : > { %v2946_v61 = vsel %vm2943_vm15, %v23993_v52, %v16158_v42  ;;  %v2947_v22 = vsel %vm2943_vm15, %v16158_v42, %v16159_v55  ;;  %v16184_v11 = vunpack.i.h.bf16 %v19677_v18  ;;  %v16183_v32 = vunpack.i.l.bf16 %v19677_v18 }
 0x25d   : > { %v3012_v51 = vmax.f32 %v2837_v39, %v2946_v61  ;;  %13719 = vmatmul.mubr.msk.bf16.vlgmr.msra.gmra.mrb[12].mxu1 %vm3075_vm1, %v19668_v36  ;;  %v19689_v0 = vpop.permute.xlu0 %16171  ;;  %v3013_v25 = vmax.f32 %v2838_v54, %v2947_v22 }
 0x25e   : > { %v16174_v59 = vunpack.i.h.bf16 %v19689_v0  ;;  %v16173_v45 = vunpack.i.l.bf16 %v19689_v0  ;;  %v2786_v43 = vsel %vm2768_vm14, %v23994_v47, %v16183_v32  ;;  %v2787_v2 = vsel %vm2768_vm14, %v16183_v32, %v16184_v11  ;;  %3142 = vmatprep.mubr.bf16.mxu1 %v23995_v13 }
 0x25f   : > { %v3052_v19 = vpack.c.bf16 %v3019_v49, %v3013_v25  ;;  %v19700_v58 = vpop.permute.xlu1 %16186  ;;  %v3051_v42 = vpack.c.bf16 %v3018_v34, %v3012_v51  ;;  %v2855_v61 = vmax.f32 %v19072_v17, %v2786_v43  ;;  %v2856_v22 = vmax.f32 %v19109_v24, %v2787_v2 }
 0x260   : > { %v2781_v39 = vsel %vm2768_vm14, %v23996_v37, %v16173_v45  ;;  %v2782_v15 = vsel %vm2768_vm14, %v16173_v45, %v16174_v59  ;;  %v16189_v54 = vunpack.i.h.bf16 %v19700_v58  ;;  %v16188_v52 = vunpack.i.l.bf16 %v19700_v58 }
 0x261   : > { %v19712_v49 = vpop.permute.xlu0 %16176  ;;  %3151 = vmatprep.subr.bf16.mxu1 %v3052_v19  ;;  %v2849_v24 = vmax.f32 %v19060_v9, %v2781_v39  ;;  %v2850_v25 = vmax.f32 %v19107_v23, %v2782_v15  ;;  %v23997_v2 = vunpack.i.h.bf16 %v19548_v14  ;;  %v23998_v15 = vunpack.i.h.bf16 %v19598_v57 }
 0x262   : > { %v16179_v34 = vunpack.i.h.bf16 %v19712_v49  ;;  %v16178_v32 = vunpack.i.l.bf16 %v19712_v49  ;;  %v2961_v51 = vsel %vm2943_vm15, %v16119_v63, %v16188_v52  ;;  %v2962_v17 = vsel %vm2943_vm15, %v16188_v52, %v16189_v54  ;;  %3152 = vmatpush1.bf16.msra.mxu1 %v3051_v42 }
 0x263   : > { %v3030_v45 = vmax.f32 %v2855_v61, %v2961_v51  ;;  %v3031_v43 = vmax.f32 %v2856_v22, %v2962_v17  ;;  %v23999_v17 = vunpack.i.l.bf16 %v19588_v20 }
 0x264   : > { %v19729_v47 = vpop.permute.xlu1 %16191  ;;  %v2956_v19 = vsel %vm2943_vm15, %v23997_v2, %v16178_v32  ;;  %v2957_v4 = vsel %vm2943_vm15, %v16178_v32, %v16179_v34 }
 0x265   : > { %v16194_v63 = vunpack.i.h.bf16 %v19729_v47  ;;  %v16193_v42 = vunpack.i.l.bf16 %v19729_v47  ;;  %v3024_v37 = vmax.f32 %v2849_v24, %v2956_v19  ;;  %13720 = vmatmul.mubr.msk.bf16.gmra.mrb[16].mxu1 %vm3075_vm1, %v19717_v6  ;;  %v19741_v9 = vpop.permute.xlu0 %16196  ;;  %v3025_v23 = vmax.f32 %v2850_v25, %v2957_v4 }
 0x266   : > { %v16199_v39 = vunpack.i.h.bf16 %v19741_v9  ;;  %v16198_v14 = vunpack.i.l.bf16 %v19741_v9  ;;  %3183 = vmatprep.mubr.bf16.mxu1 %v23995_v13 }
 0x267   : > { %v2796_v52 = vsel %vm2768_vm14, %v23998_v15, %v16193_v42  ;;  %v2797_v61 = vsel %vm2768_vm14, %v16193_v42, %v16194_v63  ;;  %v3058_v22 = vpack.c.bf16 %v3031_v43, %v3025_v23  ;;  %v3057_v51 = vpack.c.bf16 %v3030_v45, %v3024_v37 }
 0x268   : > { %v19752_v32 = vpop.permute.xlu1 %16206  ;;  %v2791_v24 = vsel %vm2768_vm14, %v23999_v17, %v16198_v14  ;;  %v2792_v57 = vsel %vm2768_vm14, %v16198_v14, %v16199_v39  ;;  %v2867_v19 = vmax.f32 %v19297_v1, %v2796_v52  ;;  %v2868_v4 = vmax.f32 %v19425_v8, %v2797_v61 }
 0x269   : > { %v23981_v25 = vunpack.i.h.bf16 %v19752_v32  ;;  %v16208_v2 = vunpack.i.l.bf16 %v19752_v32  ;;  %v19764_v43 = vpop.permute.xlu0 %16201  ;;  %3153 = vmatprep.subr.bf16.mxu1 %v3058_v22  ;;  %v24000_v42 = vunpack.i.h.bf16 %v19607_v38  ;;  %v2861_v1 = vmax.f32 %v19087_v27, %v2791_v24 }
 0x26a   : > { %v16204_v45 = vunpack.i.h.bf16 %v19764_v43  ;;  %v16203_v20 = vunpack.i.l.bf16 %v19764_v43  ;;  %3154 = vmatpush1.bf16.msra.mxu1 %v3057_v51  ;;  %v2862_v8 = vmax.f32 %v19111_v40, %v2792_v57 }
 0x26b   : > { %v2971_v37 = vsel %vm2943_vm15, %v24000_v42, %v16208_v2  ;;  %v2972_v23 = vsel %vm2943_vm15, %v16208_v2, %v23981_v25 }
 0x26c   : > { %v3042_v14 = vmax.f32 %v2867_v19, %v2971_v37  ;;  %v3043_v15 = vmax.f32 %v2868_v4, %v2972_v23  ;;  %v16217_v52 = vpop.permute.xlu1 %16216  ;;  %v2966_v61 = vsel %vm2943_vm15, %v16138_v26, %v16203_v20  ;;  %v2967_v38 = vsel %vm2943_vm15, %v16203_v20, %v16204_v45 }
 0x26d   : > { %v16219_v22 = vunpack.i.h.bf16 %v16217_v52  ;;  %v16218_v17 = vunpack.i.l.bf16 %v16217_v52  ;;  %v3036_v42 = vmax.f32 %v2861_v1, %v2966_v61  ;;  %v3037_v2 = vmax.f32 %v2862_v8, %v2967_v38  ;;  %v16212_v51 = vpop.permute.xlu0 %16211 }
 0x26e   : > { %v16214_v25 = vunpack.i.h.bf16 %v16212_v51  ;;  %v16213_v27 = vunpack.i.l.bf16 %v16212_v51  ;;  %v24001_v51 = vunpack.i.h.bf16 %v19752_v32 }
 0x26f   : > { %v2953_v40 = vsel %vm2943_vm15, %v16169_v12, %v16219_v22  ;;  %v2948_v44 = vsel %vm2943_vm15, %v16159_v55, %v16218_v17  ;;  %v3064_v24 = vpack.c.bf16 %v3043_v15, %v3037_v2  ;;  %v3063_v57 = vpack.c.bf16 %v3042_v14, %v3036_v42 }
 0x270   : > { %v16227_v26 = vpop.permute.xlu1 %16226  ;;  %v2778_v19 = vsel %vm2768_vm14, %v16164_v7, %v16214_v25  ;;  %v2846_v4 = vmax.f32 %v19401_v50, %v16214_v25  ;;  %v2773_v20 = vsel %vm2768_vm14, %v16154_v53, %v16213_v27  ;;  %v2840_v3 = vmax.f32 %v19399_v30, %v16213_v27 }
 0x271   : > { %v2845_v12 = vmax.f32 %v19347_v56, %v2778_v19  ;;  %v2839_v28 = vmax.f32 %v19321_v16, %v2773_v20  ;;  %v16222_v55 = vpop.permute.xlu0 %16221  ;;  %v16229_v37 = vunpack.i.h.bf16 %v16227_v26  ;;  %v16228_v23 = vunpack.i.l.bf16 %v16227_v26  ;;  %13721 = vmatprep.subr.msk.bf16.mxu1 %vm2521_vm7, %v3064_v24  ;;  %v16574_v26 = vld [vmem:[%s23953_s4 + $0x70c] ss:$20 sps:$4 sm:$0xff]   ;;  %v16572_v24 = vld [vmem:[%s23953_s4 + $0x708] ss:$20 sps:$4 sm:$0xff]   ;;  %v16578_v19 = vld [vmem:[%s23953_s4 + $0x730] ss:$20 sps:$4 sm:$0xff]  }
 0x272   : > { %v3015_v35 = vmax.f32 %v2840_v3, %v16218_v17  ;;  %v3021_v1 = vmax.f32 %v2846_v4, %v16219_v22  ;;  %v16224_v7 = vunpack.i.h.bf16 %v16222_v55  ;;  %v16223_v8 = vunpack.i.l.bf16 %v16222_v55  ;;  %v16584_v4 = vld [vmem:[%s23953_s4 + $0x758] ss:$20 sps:$4 sm:$0xff]   ;;  %v16590_v3 = vld [vmem:[%s23953_s4 + $0x780] ss:$20 sps:$4 sm:$0xff]   ;;  %v16602_v55 = vld [vmem:[%s23953_s4 + $0x7d0] ss:$20 sps:$4 sm:$0xff]  }
 0x273   : > { %v3014_v50 = vmax.f32 %v2839_v28, %v2948_v44  ;;  %v3020_v25 = vmax.f32 %v2845_v12, %v2953_v40  ;;  %v2963_v46 = vsel %vm2943_vm15, %v16189_v54, %v16229_v37  ;;  %v2958_v56 = vsel %vm2943_vm15, %v16179_v34, %v16228_v23  ;;  %v16566_v44 = vld [vmem:[%s23953_s4 + $0x6e0] ss:$20 sps:$4 sm:$0xff]   ;;  %v16592_v20 = vld [vmem:[%s23953_s4 + $0x784] ss:$20 sps:$4 sm:$0xff]   ;;  %v16596_v12 = vld [vmem:[%s23953_s4 + $0x7a8] ss:$20 sps:$4 sm:$0xff]  }
 0x274   : > { %v2788_v16 = vsel %vm2768_vm14, %v16184_v11, %v16224_v7  ;;  %v2858_v30 = vmax.f32 %v19419_v5, %v16224_v7  ;;  %v2783_v53 = vsel %vm2768_vm14, %v16174_v59, %v16223_v8  ;;  %v2852_v14 = vmax.f32 %v19417_v21, %v16223_v8  ;;  %v16237_v15 = vpop.permute.xlu1 %16236  ;;  %v16604_v28 = vld [vmem:[%s23953_s4 + $0x7d4] ss:$20 sps:$4 sm:$0xff]   ;;  %v16622_v7 = vld [vmem:[%s23953_s4 + $0x84c] ss:$20 sps:$4 sm:$0xff]  }
 0x275   : > { %v2857_v58 = vmax.f32 %v19378_v60, %v2788_v16  ;;  %v2851_v54 = vmax.f32 %v19368_v62, %v2783_v53  ;;  %v3089_v49 = vsel %vm2521_vm7, %v3063_v57, 0  ;;  %v16232_v34 = vpop.permute.xlu0 %16231  ;;  %v3054_v52 = vpack.c.bf16 %v3021_v1, %v3015_v35  ;;  %v16580_v57 = vld [vmem:[%s23953_s4 + $0x734] ss:$20 sps:$4 sm:$0xff]   ;;  %v16616_v35 = vld [vmem:[%s23953_s4 + $0x824] ss:$20 sps:$4 sm:$0xff]  }
 0x276   : > { %v3027_v18 = vmax.f32 %v2852_v14, %v16228_v23  ;;  %v3033_v61 = vmax.f32 %v2858_v30, %v16229_v37  ;;  %3156 = vmatpush1.bf16.msra.mxu1 %v3089_v49  ;;  %v16234_v11 = vunpack.i.h.bf16 %v16232_v34  ;;  %v16233_v5 = vunpack.i.l.bf16 %v16232_v34  ;;  %v16610_v37 = vld [vmem:[%s23953_s4 + $0x7fc] ss:$20 sps:$4 sm:$0xff]   ;;  %v16608_v23 = vld [vmem:[%s23953_s4 + $0x7f8] ss:$20 sps:$4 sm:$0xff]   ;;  %v16614_v1 = vld [vmem:[%s23953_s4 + $0x820] ss:$20 sps:$4 sm:$0xff]  }
 0x277   : > { %v3026_v38 = vmax.f32 %v2851_v54, %v2958_v56  ;;  %v3032_v0 = vmax.f32 %v2857_v58, %v2963_v46  ;;  %3202 = vmatprep.subr.bf16.mxu1 %v3054_v52  ;;  %v16239_v59 = vunpack.i.h.bf16 %v16237_v15  ;;  %v16238_v22 = vunpack.i.l.bf16 %v16237_v15  ;;  %v16620_v8 = vld [vmem:[%s23953_s4 + $0x848] ss:$20 sps:$4 sm:$0xff]   ;;  %v16632_v16 = vld [vmem:[%s23953_s4 + $0x898] ss:$20 sps:$4 sm:$0xff]   ;;  %v16647_v14 = vld [vmem:[%s23953_s4 + $0x8f0] ss:$20 sps:$4 sm:$0xff]  }
 0x278   : > { %v2798_v60 = vsel %vm2768_vm14, %v16194_v63, %v16234_v11  ;;  %v2870_v62 = vmax.f32 %v19444_v10, %v16234_v11  ;;  %v2793_v21 = vsel %vm2768_vm14, %v16199_v39, %v16233_v5  ;;  %v2864_v17 = vmax.f32 %v19427_v48, %v16233_v5  ;;  %v16634_v46 = vld [vmem:[%s23953_s4 + $0x89c] ss:$20 sps:$4 sm:$0xff]   ;;  %v16643_v30 = vld [vmem:[%s23953_s4 + $0x8cc] ss:$20 sps:$4 sm:$0xff]   ;;  %v16640_v53 = vld [vmem:[%s23953_s4 + $0x8c4] ss:$20 sps:$4 sm:$0xff]  }
 0x279   : > { %v2869_v42 = vmax.f32 %v19410_v29, %v2798_v60  ;;  %v2863_v2 = vmax.f32 %v19384_v33, %v2793_v21  ;;  %v2973_v27 = vsel %vm2943_vm15, %v24001_v51, %v16239_v59  ;;  %v2968_v47 = vsel %vm2943_vm15, %v16204_v45, %v16238_v22  ;;  %13722 = vmatmul.mubr.msk.bf16.vlgmr.msra.gmra.mrb[20].mxu1 %vm3075_vm1, %v19668_v36  ;;  %v16568_v45 = vld [vmem:[%s23953_s4 + $0x6e4] ss:$20 sps:$4 sm:$0xff]   ;;  %v16641_v56 = vld [vmem:[%s23953_s4 + $0x8c8] ss:$20 sps:$4 sm:$0xff]   ;;  %v16638_v58 = vld [vmem:[%s23953_s4 + $0x8c0] ss:$20 sps:$4 sm:$0xff]  }
 0x27a   : > { %v3039_v10 = vmax.f32 %v2864_v17, %v16238_v22  ;;  %v3045_v63 = vmax.f32 %v2870_v62, %v16239_v59  ;;  %v3053_v9 = vpack.c.bf16 %v3020_v25, %v3014_v50  ;;  %v3060_v39 = vpack.c.bf16 %v3033_v61, %v3027_v18  ;;  %3193 = vmatprep.mubr.bf16.mxu1 %v23995_v13  ;;  %v16628_v50 = vld [vmem:[%s23953_s4 + $0x874] ss:$20 sps:$4 sm:$0xff]   ;;  %v16626_v25 = vld [vmem:[%s23953_s4 + $0x870] ss:$20 sps:$4 sm:$0xff]   ;;  %v16646_v54 = vld [vmem:[%s23953_s4 + $0x8ec] ss:$20 sps:$4 sm:$0xff]  }
 0x27b   : > { %v3038_v29 = vmax.f32 %v2863_v2, %v2968_v47  ;;  %v3044_v48 = vmax.f32 %v2869_v42, %v2973_v27  ;;  %v3059_v33 = vpack.c.bf16 %v3032_v0, %v3026_v38  ;;  %5222 = vmatprep.subr.bf16.mxu0 %v16643_v30  ;;  %v16649_v15 = vld [vmem:[%s23953_s4 + $0x8f4] ss:$20 sps:$4 sm:$0xff]   ;;  %v16653_v34 = vld [vmem:[%s23953_s4 + $0x918] ss:$20 sps:$4 sm:$0xff]   ;;  %v16655_v18 = vld [vmem:[%s23953_s4 + $0x91c] ss:$20 sps:$4 sm:$0xff]  }
 0x27c   : > { %3203 = vmatpush1.bf16.msra.mxu1 %v3053_v9  ;;  %v3066_v32 = vpack.c.bf16 %v3045_v63, %v3039_v10  ;;  %5223 = vmatpush1.bf16.msra.mxu0 %v16641_v56  ;;  %v16644_v49 = vld [vmem:[%s23953_s4 + $0x8e8] ss:$20 sps:$4 sm:$0xff]   ;;  %v16661_v61 = vld [vmem:[%s23953_s4 + $0x944] ss:$20 sps:$4 sm:$0xff]   ;;  %v16659_v5 = vld [vmem:[%s23953_s4 + $0x940] ss:$20 sps:$4 sm:$0xff]  }
 0x27d   : > { %3204 = vmatprep.subr.bf16.mxu1 %v3060_v39  ;;  %v3065_v40 = vpack.c.bf16 %v3044_v48, %v3038_v29  ;;  %5224 = vmatprep.subr.bf16.mxu0 %v16649_v15  ;;  %v16652_v52 = vld [vmem:[%s23953_s4 + $0x914] ss:$20 sps:$4 sm:$0xff]   ;;  %v16650_v11 = vld [vmem:[%s23953_s4 + $0x910] ss:$20 sps:$4 sm:$0xff]   ;;  %v16656_v0 = vld [vmem:[%s23953_s4 + $0x938] ss:$20 sps:$4 sm:$0xff]  }
 0x27e   : > { %v16658_v38 = vld [vmem:[%s23953_s4 + $0x93c] ss:$20 sps:$4 sm:$0xff]   ;;  %v16667_v59 = vld [vmem:[%s23953_s4 + $0x96c] ss:$20 sps:$4 sm:$0xff]   ;;  %v16664_v22 = vld [vmem:[%s23953_s4 + $0x964] ss:$20 sps:$4 sm:$0xff]  }
 0x27f   : > { %v3095_v43 = vsel %vm2521_vm7, %v3065_v40, 0  ;;  %v16680_v56 = vld [vmem:[%s23953_s4 + $0x9d8] ss:$20 sps:$4 sm:$0xff]  }
 0x280   : > { %3205 = vmatpush1.bf16.msra.mxu1 %v3059_v33  ;;  %5225 = vmatpush1.bf16.msra.mxu0 %v16647_v14  ;;  %v16688_v30 = vld [vmem:[%s23953_s4 + $0xa04] ss:$20 sps:$4 sm:$0xff]  }
 0x281   : > { %13724 = vmatprep.subr.msk.bf16.mxu1 %vm2521_vm7, %v3066_v32  ;;  %13723 = vmatmul.mubr.msk.bf16.gmra.mrb[24].mxu1 %vm3075_vm1, %v19717_v6 }
 0x282   : > { %3234 = vmatprep.mubr.bf16.mxu1 %v23995_v13  ;;  %5226 = vmatprep.subr.bf16.mxu0 %v16655_v18  ;;  %v16694_v18 = vld [vmem:[%s23953_s4 + $0xa2c] ss:$20 sps:$4 sm:$0xff]  }
 0x284   : > { %3207 = vmatpush1.bf16.msra.mxu1 %v3095_v43  ;;  %5227 = vmatpush1.bf16.msra.mxu0 %v16653_v34 }
 0x285   : > { %5045 = vmatprep.subr.bf16.mxu1 %v16568_v45  ;;  %5228 = vmatprep.subr.bf16.mxu0 %v16661_v61  ;;  %v16697_v61 = vld [vmem:[%s23953_s4 + $0xa34] ss:$20 sps:$4 sm:$0xff]  }
 0x288   : > { %5229 = vmatpush1.bf16.msra.mxu0 %v16659_v5 }
 0x289   : > { %13725 = vmatmul.mubr.msk.bf16.vlgmr.msra.gmra.mrb[28].mxu1 %vm3075_vm1, %v19668_v36  ;;  %v16586_v36 = vld [vmem:[%s23953_s4 + $0x75c] ss:$20 sps:$4 sm:$0xff]   ;;  %5249 = vmatprep.subr.bf16.mxu0 %v16667_v59  ;;  %v16700_v59 = vld [vmem:[%s23953_s4 + $0xa54] ss:$20 sps:$4 sm:$0xff]  }
 0x28a   : > { %3244 = vmatprep.mubr.bf16.mxu1 %v23995_v13  ;;  %5046 = vmatpush1.bf16.msra.mxu1 %v16566_v44 }
 0x28b   : > { %5047 = vmatprep.subr.bf16.mxu1 %v16574_v26 }
 0x28e   : > { %5048 = vmatpush1.bf16.msra.mxu1 %v16572_v24 }
 0x28f   : > { %5049 = vmatprep.subr.bf16.mxu1 %v16580_v57 }
 0x291   : > { %13726 = vmatmul.mubr.msk.bf16.gmra.mrb[32].mxu1 %vm3075_vm1, %v19717_v6  ;;  %v16598_v6 = vld [vmem:[%s23953_s4 + $0x7ac] ss:$20 sps:$4 sm:$0xff]  }
 0x292   : > { %5050 = vmatpush1.bf16.msra.mxu1 %v16578_v19  ;;  %v16662_v19 = vld [vmem:[%s23953_s4 + $0x960] ss:$20 sps:$4 sm:$0xff]  }
 0x293   : > { %5051 = vmatprep.subr.bf16.mxu1 %v16586_v36  ;;  %v16665_v36 = vld [vmem:[%s23953_s4 + $0x968] ss:$20 sps:$4 sm:$0xff]  }
 0x296   : > { %5052 = vmatpush1.bf16.msra.mxu1 %v16584_v4 }
 0x297   : > { %5053 = vmatprep.subr.bf16.mxu1 %v16592_v20 }
 0x29a   : > { %5054 = vmatpush1.bf16.msra.mxu1 %v16590_v3 }
 0x29b   : > { %5055 = vmatprep.subr.bf16.mxu1 %v16598_v6 }
 0x29e   : > { %5056 = vmatpush1.bf16.msra.mxu1 %v16596_v12  ;;  %v16670_v12 = vld [vmem:[%s23953_s4 + $0x98c] ss:$20 sps:$4 sm:$0xff]  }
 0x29f   : > { %5057 = vmatprep.subr.bf16.mxu1 %v16604_v28  ;;  %v16673_v28 = vld [vmem:[%s23953_s4 + $0x994] ss:$20 sps:$4 sm:$0xff]  }
 0x2a2   : > { %5058 = vmatpush1.bf16.msra.mxu1 %v16602_v55  ;;  %v16668_v55 = vld [vmem:[%s23953_s4 + $0x988] ss:$20 sps:$4 sm:$0xff]  }
 0x2a3   : > { %5059 = vmatprep.subr.bf16.mxu1 %v16610_v37  ;;  %v16671_v37 = vld [vmem:[%s23953_s4 + $0x990] ss:$20 sps:$4 sm:$0xff]  }
 0x2a6   : > { %5060 = vmatpush1.bf16.msra.mxu1 %v16608_v23  ;;  %v16676_v23 = vld [vmem:[%s23953_s4 + $0x9b4] ss:$20 sps:$4 sm:$0xff]  }
 0x2a7   : > { %5061 = vmatprep.subr.bf16.mxu1 %v16616_v35  ;;  %v16679_v35 = vld [vmem:[%s23953_s4 + $0x9bc] ss:$20 sps:$4 sm:$0xff]  }
 0x2aa   : > { %5062 = vmatpush1.bf16.msra.mxu1 %v16614_v1 }
 0x2ab   : > { %5063 = vmatprep.subr.bf16.mxu1 %v16622_v7  ;;  %v16674_v7 = vld [vmem:[%s23953_s4 + $0x9b0] ss:$20 sps:$4 sm:$0xff]  }
 0x2ae   : > { %5064 = vmatpush1.bf16.msra.mxu1 %v16620_v8  ;;  %v16677_v8 = vld [vmem:[%s23953_s4 + $0x9b8] ss:$20 sps:$4 sm:$0xff]  }
 0x2af   : > { %5065 = vmatprep.subr.bf16.mxu1 %v16628_v50 }
 0x2b2   : > { %5066 = vmatpush1.bf16.msra.mxu1 %v16626_v25  ;;  %v16682_v25 = vld [vmem:[%s23953_s4 + $0x9dc] ss:$20 sps:$4 sm:$0xff]  }
 0x2b3   : > { %5067 = vmatprep.subr.bf16.mxu1 %v16634_v46  ;;  %v16685_v46 = vld [vmem:[%s23953_s4 + $0x9e4] ss:$20 sps:$4 sm:$0xff]  }
 0x2b6   : > { %5068 = vmatpush1.bf16.msra.mxu1 %v16632_v16  ;;  %v16683_v16 = vld [vmem:[%s23953_s4 + $0x9e0] ss:$20 sps:$4 sm:$0xff]  }
 0x2b7   : > { %5069 = vmatprep.subr.bf16.mxu1 %v16640_v53  ;;  %v16691_v53 = vld [vmem:[%s23953_s4 + $0xa0c] ss:$20 sps:$4 sm:$0xff]  }
 0x2ba   : > { %5070 = vmatpush1.bf16.msra.mxu1 %v16638_v58 }
 0x2bb   : > { %5071 = vmatprep.subr.bf16.mxu1 %v16646_v54  ;;  %v16686_v54 = vld [vmem:[%s23953_s4 + $0xa00] ss:$20 sps:$4 sm:$0xff]  }
 0x2be   : > { %5072 = vmatpush1.bf16.msra.mxu1 %v16644_v49  ;;  %v16689_v49 = vld [vmem:[%s23953_s4 + $0xa08] ss:$20 sps:$4 sm:$0xff]  }
 0x2bf   : > { %5073 = vmatprep.subr.bf16.mxu1 %v16652_v52 }
 0x2c2   : > { %5074 = vmatpush1.bf16.msra.mxu1 %v16650_v11 }
 0x2c3   : > { %5075 = vmatprep.subr.bf16.mxu1 %v16658_v38  ;;  %v16692_v38 = vld [vmem:[%s23953_s4 + $0xa28] ss:$20 sps:$4 sm:$0xff]  }
 0x2c6   : > { %5076 = vmatpush1.bf16.msra.mxu1 %v16656_v0  ;;  %v16695_v0 = vld [vmem:[%s23953_s4 + $0xa30] ss:$20 sps:$4 sm:$0xff]  }
 0x2c7   : > { %5096 = vmatprep.subr.bf16.mxu1 %v16664_v22  ;;  %v16703_v22 = vld [vmem:[%s23953_s4 + $0xa5c] ss:$20 sps:$4 sm:$0xff]  }
 0x330   : > { %v3134_v60 = vpop.f32.mrb[12].mxu1 }
 0x331   : > { %v3136_v62 = vpop.f32.mrb[13].mxu1 }
 0x332   : > { %v3138_v21 = vpop.f32.mrb[14].mxu1 }
 0x333   : > { %v19971_v17 = vpack.c.bf16 %v3138_v21, %v3134_v60  ;;  %v3140_v42 = vpop.f32.mrb[15].mxu1 }
 0x334   : > { %v19973_v2 = vpack.c.bf16 %v3140_v42, %v3136_v62 }
 0x335   : > { %v3797_v27 = vshll.u32 %v19971_v17, 16  ;;  %v3795_v45 = vshrl.u32 %v19971_v17, 16 }
 0x336   : > { %v3809_v51 = vshll.u32 %v19973_v2, 16  ;;  %v3807_v40 = vshrl.u32 %v19973_v2, 16 }
 0x337   : > { %v3799_v33 = vrot.slane %v3797_v27, 1 }
 0x338   : > { %v3144_v47 = vpop.f32.mrb[16].mxu1  ;;  %v3811_v29 = vrot.slane %v3809_v51, 1 }
 0x339   : > { %v19977_v10 = vpack.c.bf16 %v3144_v47, %v3144_v47  ;;  %v3146_v63 = vpop.f32.mrb[17].mxu1  ;;  %v3800_v4 = vor.u32 %v3799_v33, %v3795_v45  ;;  %v16698_v47 = vld [vmem:[%s23953_s4 + $0xa50] ss:$20 sps:$4 sm:$0xff]   ;;  %v16707_v45 = vld [vmem:[%s23953_s4 + $0xa80] ss:$20 sps:$4 sm:$0xff]  }
 0x33a   : > { %v19979_v9 = vpack.c.bf16 %v3146_v63, %v3146_v63  ;;  %v3148_v39 = vpop.f32.mrb[18].mxu1  ;;  %v3812_v26 = vor.u32 %v3811_v29, %v3807_v40  ;;  %v16701_v63 = vld [vmem:[%s23953_s4 + $0xa58] ss:$20 sps:$4 sm:$0xff]   ;;  %v16706_v29 = vld [vmem:[%s23953_s4 + $0xa7c] ss:$20 sps:$4 sm:$0xff]  }
 0x33b   : > { %v3149_v48 = vpop.f32.mrb[19].mxu1  ;;  %v3802_v32 = vshll.u32 %v19977_v10, 16  ;;  %v3866_v1 = vshrl.u32 %v19977_v10, 16 }
 0x33c   : > { %v3814_v43 = vshll.u32 %v19979_v9, 16  ;;  %v3869_v57 = vshrl.u32 %v19979_v9, 16  ;;  %v16709_v48 = vld [vmem:[%s23953_s4 + $0xa84] ss:$20 sps:$4 sm:$0xff]  }
 0x33d   : > { %v3804_v44 = vrot.slane %v3802_v32, 1 }
 0x33e   : > { %v3816_v24 = vrot.slane %v3814_v43, 1  ;;  %v16704_v43 = vld [vmem:[%s23953_s4 + $0xa78] ss:$20 sps:$4 sm:$0xff]  }
 0x33f   : > { %v20000_v6 = vsel %vm597_vm0, %v3800_v4, %v3804_v44  ;;  %v20031_v50 = vor.u32 %v3866_v1, %v3804_v44  ;;  %v16712_v44 = vld [vmem:[%s23953_s4 + $0xaa4] ss:$20 sps:$4 sm:$0xff]   ;;  %v16710_v4 = vld [vmem:[%s23953_s4 + $0xaa0] ss:$20 sps:$4 sm:$0xff]   ;;  %v16716_v1 = vld [vmem:[%s23953_s4 + $0xac8] ss:$20 sps:$4 sm:$0xff]  }
 0x340   : > { %v19993_v20 = vsel %vm597_vm0, %v3812_v26, %v3816_v24  ;;  %v19995_v3 = vor.u32 %v3869_v57, %v3816_v24  ;;  %v16715_v26 = vld [vmem:[%s23953_s4 + $0xaac] ss:$20 sps:$4 sm:$0xff]  }
 0x341   : > { %5077 = vmatprep.mubr.bf16.mxu1 %v19993_v20  ;;  %5230 = vmatprep.mubr.bf16.mxu0 %v19993_v20 }
 0x342   : > { %5078 = vmatmul.mubr.bf16.vlgmr.msra.gmra.mrb[36].mxu1 %v20000_v6  ;;  %5231 = vmatmul.mubr.bf16.vlgmr.msra.gmra.mrb[24].mxu0 %v20000_v6 }
 0x343   : > { %5097 = vmatpush1.bf16.msra.mxu1 %v16662_v19  ;;  %5250 = vmatpush1.bf16.msra.mxu0 %v16665_v36 }
 0x344   : > { %5087 = vmatprep.mubr.bf16.mxu1 %v19995_v3  ;;  %5240 = vmatprep.mubr.bf16.mxu0 %v19995_v3 }
 0x345   : > { %5098 = vmatprep.subr.bf16.mxu1 %v16670_v12  ;;  %5251 = vmatprep.subr.bf16.mxu0 %v16673_v28  ;;  %v16713_v12 = vld [vmem:[%s23953_s4 + $0xaa8] ss:$20 sps:$4 sm:$0xff]  }
 0x347   : > { %5099 = vmatpush1.bf16.msra.mxu1 %v16668_v55  ;;  %5252 = vmatpush1.bf16.msra.mxu0 %v16671_v37  ;;  %v16718_v37 = vld [vmem:[%s23953_s4 + $0xacc] ss:$20 sps:$4 sm:$0xff]  }
 0x348   : > { %5100 = vmatprep.subr.bf16.mxu1 %v16676_v23  ;;  %5253 = vmatprep.subr.bf16.mxu0 %v16679_v35  ;;  %v16721_v23 = vld [vmem:[%s23953_s4 + $0xad4] ss:$20 sps:$4 sm:$0xff]  }
 0x34a   : > { %5088 = vmatmul.mubr.bf16.gmra.mrb[40].mxu1 %v20031_v50  ;;  %5241 = vmatmul.mubr.bf16.gmra.mrb[28].mxu0 %v20031_v50 }
 0x34b   : > { %5101 = vmatpush1.bf16.msra.mxu1 %v16674_v7  ;;  %5254 = vmatpush1.bf16.msra.mxu0 %v16677_v8  ;;  %v16719_v7 = vld [vmem:[%s23953_s4 + $0xad0] ss:$20 sps:$4 sm:$0xff]   ;;  %v16724_v8 = vld [vmem:[%s23953_s4 + $0xaf4] ss:$20 sps:$4 sm:$0xff]  }
 0x34c   : > { %5102 = vmatprep.subr.bf16.mxu1 %v16682_v25  ;;  %5255 = vmatprep.subr.bf16.mxu0 %v16685_v46  ;;  %v3185_v14 = vpop.f32.mrb[20].mxu1  ;;  %v16727_v25 = vld [vmem:[%s23953_s4 + $0xafc] ss:$20 sps:$4 sm:$0xff]  }
 0x34d   : > { %v3187_v15 = vpop.f32.mrb[21].mxu1 }
 0x34e   : > { %v3189_v58 = vpop.f32.mrb[22].mxu1 }
 0x34f   : > { %5103 = vmatpush1.bf16.msra.mxu1 %v16680_v56  ;;  %5256 = vmatpush1.bf16.msra.mxu0 %v16683_v16  ;;  %v20059_v34 = vpack.c.bf16 %v3189_v58, %v3185_v14  ;;  %v3191_v52 = vpop.f32.mrb[23].mxu1  ;;  %v16733_v58 = vld [vmem:[%s23953_s4 + $0xb24] ss:$20 sps:$4 sm:$0xff]  }
 0x350   : > { %5104 = vmatprep.subr.bf16.mxu1 %v16688_v30  ;;  %5257 = vmatprep.subr.bf16.mxu0 %v16691_v53  ;;  %v20067_v11 = vpack.c.bf16 %v3191_v52, %v3187_v15  ;;  %v16722_v30 = vld [vmem:[%s23953_s4 + $0xaf0] ss:$20 sps:$4 sm:$0xff]   ;;  %v16725_v53 = vld [vmem:[%s23953_s4 + $0xaf8] ss:$20 sps:$4 sm:$0xff]  }
 0x351   : > { %v16730_v15 = vld [vmem:[%s23953_s4 + $0xb1c] ss:$20 sps:$4 sm:$0xff]   ;;  %v16736_v52 = vld [vmem:[%s23953_s4 + $0xb44] ss:$20 sps:$4 sm:$0xff]  }
 0x352   : > { %v3833_v5 = vshll.u32 %v20067_v11, 16  ;;  %v3831_v62 = vshrl.u32 %v20067_v11, 16 }
 0x353   : > { %5105 = vmatpush1.bf16.msra.mxu1 %v16686_v54  ;;  %5258 = vmatpush1.bf16.msra.mxu0 %v16689_v49  ;;  %v16728_v54 = vld [vmem:[%s23953_s4 + $0xb18] ss:$20 sps:$4 sm:$0xff]   ;;  %v16731_v49 = vld [vmem:[%s23953_s4 + $0xb20] ss:$20 sps:$4 sm:$0xff]  }
 0x354   : > { %5106 = vmatprep.subr.bf16.mxu1 %v16694_v18  ;;  %5259 = vmatprep.subr.bf16.mxu0 %v16697_v61  ;;  %v20082_v60 = vpop.f32.mrb[24].mxu1  ;;  %v3835_v21 = vrot.slane %v3833_v5, 1  ;;  %v16739_v18 = vld [vmem:[%s23953_s4 + $0xb4c] ss:$20 sps:$4 sm:$0xff]   ;;  %v16737_v5 = vld [vmem:[%s23953_s4 + $0xb48] ss:$20 sps:$4 sm:$0xff]  }
 0x355   : > { %v3197_v42 = vpop.f32.mrb[25].mxu1  ;;  %v16734_v61 = vld [vmem:[%s23953_s4 + $0xb40] ss:$20 sps:$4 sm:$0xff]  }
 0x356   : > { %v20085_v51 = vpack.c.bf16 %v3197_v42, %v3197_v42  ;;  %v3199_v27 = vpop.f32.mrb[26].mxu1  ;;  %v3836_v33 = vor.u32 %v3835_v21, %v3831_v62  ;;  %v16748_v62 = vld [vmem:[%s23953_s4 + $0xb94] ss:$20 sps:$4 sm:$0xff]   ;;  %v16751_v21 = vld [vmem:[%s23953_s4 + $0xb9c] ss:$20 sps:$4 sm:$0xff]   ;;  %v20200_v42 = vpack.c.bf16 %v20082_v60, %v20082_v60 }
 0x357   : > { %5107 = vmatpush1.bf16.msra.mxu1 %v16692_v38  ;;  %5260 = vmatpush1.bf16.msra.mxu0 %v16695_v0  ;;  %v3200_v39 = vpop.f32.mrb[27].mxu1  ;;  %v16742_v38 = vld [vmem:[%s23953_s4 + $0xb6c] ss:$20 sps:$4 sm:$0xff]   ;;  %v16745_v0 = vld [vmem:[%s23953_s4 + $0xb74] ss:$20 sps:$4 sm:$0xff]   ;;  %v3821_v27 = vshll.u32 %v20059_v34, 16 }
 0x358   : > { %5108 = vmatprep.subr.bf16.mxu1 %v16700_v59  ;;  %5261 = vmatprep.subr.bf16.mxu0 %v16703_v22  ;;  %v3838_v32 = vshll.u32 %v20085_v51, 16  ;;  %v16740_v59 = vld [vmem:[%s23953_s4 + $0xb68] ss:$20 sps:$4 sm:$0xff]   ;;  %v16743_v22 = vld [vmem:[%s23953_s4 + $0xb70] ss:$20 sps:$4 sm:$0xff]  }
 0x359   : > { %v16754_v39 = vld [vmem:[%s23953_s4 + $0xbbc] ss:$20 sps:$4 sm:$0xff]   ;;  %v16757_v60 = vld [vmem:[%s23953_s4 + $0xbc4] ss:$20 sps:$4 sm:$0xff]  }
 0x35a   : > { %v20100_v40 = vrot.slane %v3838_v32, 1  ;;  %v16752_v32 = vld [vmem:[%s23953_s4 + $0xbb8] ss:$20 sps:$4 sm:$0xff]  }
 0x35b   : > { %5109 = vmatpush1.bf16.msra.mxu1 %v16698_v47  ;;  %5262 = vmatpush1.bf16.msra.mxu0 %v16701_v63  ;;  %v16746_v47 = vld [vmem:[%s23953_s4 + $0xb90] ss:$20 sps:$4 sm:$0xff]   ;;  %v16749_v63 = vld [vmem:[%s23953_s4 + $0xb98] ss:$20 sps:$4 sm:$0xff]  }
 0x35c   : > { %5110 = vmatprep.subr.bf16.mxu1 %v16706_v29  ;;  %5263 = vmatprep.subr.bf16.mxu0 %v16709_v48  ;;  %v20116_v24 = vsel %vm597_vm0, %v3836_v33, %v20100_v40  ;;  %v3236_v57 = vpop.f32.mrb[28].mxu1  ;;  %v3819_v29 = vshrl.u32 %v20059_v34, 16  ;;  %v3823_v48 = vrot.slane %v3821_v27, 1  ;;  %v3826_v33 = vshll.u32 %v20200_v42, 16  ;;  %v16790_v27 = vld [vmem:[%s23953_s4 + $0xcac] ss:$20 sps:$4 sm:$0xff]  }
 0x35d   : > { %5128 = vmatprep.mubr.bf16.mxu1 %v20116_v24  ;;  %5281 = vmatprep.mubr.bf16.mxu0 %v20116_v24  ;;  %v3238_v19 = vpop.f32.mrb[29].mxu1 }
 0x35e   : > { %v3240_v36 = vpop.f32.mrb[30].mxu1 }
 0x35f   : > { %5111 = vmatpush1.bf16.msra.mxu1 %v16704_v43  ;;  %5264 = vmatpush1.bf16.msra.mxu0 %v16707_v45  ;;  %v20126_v28 = vpack.c.bf16 %v3240_v36, %v3236_v57  ;;  %v3242_v55 = vpop.f32.mrb[31].mxu1  ;;  %v16755_v43 = vld [vmem:[%s23953_s4 + $0xbc0] ss:$20 sps:$4 sm:$0xff]   ;;  %v16760_v45 = vld [vmem:[%s23953_s4 + $0xbe4] ss:$20 sps:$4 sm:$0xff]   ;;  %v3828_v36 = vrot.slane %v3826_v33, 1 }
 0x360   : > { %5112 = vmatprep.subr.bf16.mxu1 %v16712_v44  ;;  %5265 = vmatprep.subr.bf16.mxu0 %v16715_v26  ;;  %v20134_v35 = vpack.c.bf16 %v3242_v55, %v3238_v19  ;;  %v16763_v44 = vld [vmem:[%s23953_s4 + $0xbec] ss:$20 sps:$4 sm:$0xff]   ;;  %v3824_v19 = vor.u32 %v3823_v48, %v3819_v29  ;;  %v16761_v55 = vld [vmem:[%s23953_s4 + $0xbe8] ss:$20 sps:$4 sm:$0xff]   ;;  %v16794_v48 = vld [vmem:[%s23953_s4 + $0xcd0] ss:$20 sps:$4 sm:$0xff]  }
 0x361   : > { %v16799_v29 = vld [vmem:[%s23953_s4 + $0xcdc] ss:$20 sps:$4 sm:$0xff]   ;;  %v16797_v33 = vld [vmem:[%s23953_s4 + $0xcd8] ss:$20 sps:$4 sm:$0xff]  }
 0x362   : > { %v3857_v57 = vshll.u32 %v20134_v35, 16 }
 0x363   : > { %5113 = vmatpush1.bf16.msra.mxu1 %v16710_v4  ;;  %5266 = vmatpush1.bf16.msra.mxu0 %v16713_v12  ;;  %v3875_v4 = vshrl.u32 %v20085_v51, 16  ;;  %v16758_v12 = vld [vmem:[%s23953_s4 + $0xbe0] ss:$20 sps:$4 sm:$0xff]  }
 0x364   : > { %5114 = vmatprep.subr.bf16.mxu1 %v16718_v37  ;;  %5267 = vmatprep.subr.bf16.mxu0 %v16721_v23  ;;  %v20148_v46 = vpop.f32.mrb[32].mxu1  ;;  %v3855_v37 = vshrl.u32 %v20134_v35, 16  ;;  %v3859_v23 = vrot.slane %v3857_v57, 1  ;;  %v16808_v57 = vld [vmem:[%s23953_s4 + $0xd24] ss:$20 sps:$4 sm:$0xff]  }
 0x365   : > { %v3248_v56 = vpop.f32.mrb[33].mxu1 }
 0x366   : > { %v3250_v16 = vpop.f32.mrb[34].mxu1  ;;  %v20229_v26 = vpack.c.bf16 %v3248_v56, %v3248_v56  ;;  %v16769_v56 = vld [vmem:[%s23953_s4 + $0xc14] ss:$20 sps:$4 sm:$0xff]  }
 0x367   : > { %5115 = vmatpush1.bf16.msra.mxu1 %v16716_v1  ;;  %5268 = vmatpush1.bf16.msra.mxu0 %v16719_v7  ;;  %v3251_v14 = vpop.f32.mrb[35].mxu1  ;;  %v20242_v7 = vsel %vm597_vm0, %v3824_v19, %v3828_v36  ;;  %v16767_v16 = vld [vmem:[%s23953_s4 + $0xc10] ss:$20 sps:$4 sm:$0xff]   ;;  %v16811_v19 = vld [vmem:[%s23953_s4 + $0xd2c] ss:$20 sps:$4 sm:$0xff]  }
 0x368   : > { %5116 = vmatprep.subr.bf16.mxu1 %v16724_v8  ;;  %5269 = vmatprep.subr.bf16.mxu0 %v16727_v25  ;;  %v3862_v1 = vshll.u32 %v20229_v26, 16  ;;  %v20245_v8 = vor.u32 %v3875_v4, %v20100_v40  ;;  %v16766_v25 = vld [vmem:[%s23953_s4 + $0xc0c] ss:$20 sps:$4 sm:$0xff]   ;;  %v16764_v40 = vld [vmem:[%s23953_s4 + $0xc08] ss:$20 sps:$4 sm:$0xff]   ;;  %v3860_v14 = vor.u32 %v3859_v23, %v3855_v37 }
 0x369   : > { %v16809_v4 = vld [vmem:[%s23953_s4 + $0xd28] ss:$20 sps:$4 sm:$0xff]   ;;  %v16815_v23 = vld [vmem:[%s23953_s4 + $0xd50] ss:$20 sps:$4 sm:$0xff]  }
 0x36a   : > { %v16812_v37 = vld [vmem:[%s23953_s4 + $0xd48] ss:$20 sps:$4 sm:$0xff]  }
 0x36b   : > { %5117 = vmatpush1.bf16.msra.mxu1 %v16722_v30  ;;  %5270 = vmatpush1.bf16.msra.mxu0 %v16725_v53  ;;  %v3872_v30 = vshrl.u32 %v20200_v42, 16  ;;  %v16772_v53 = vld [vmem:[%s23953_s4 + $0xc34] ss:$20 sps:$4 sm:$0xff]  }
 0x36c   : > { %5118 = vmatprep.subr.bf16.mxu1 %v16730_v15  ;;  %5271 = vmatprep.subr.bf16.mxu0 %v16733_v58  ;;  %v20267_v15 = vrot.slane %v3862_v1, 1  ;;  %v16775_v58 = vld [vmem:[%s23953_s4 + $0xc3c] ss:$20 sps:$4 sm:$0xff]   ;;  %v16820_v1 = vld [vmem:[%s23953_s4 + $0xd74] ss:$20 sps:$4 sm:$0xff]  }
 0x36f   : > { %5119 = vmatpush1.bf16.msra.mxu1 %v16728_v54  ;;  %5272 = vmatpush1.bf16.msra.mxu0 %v16731_v49  ;;  %v16770_v54 = vld [vmem:[%s23953_s4 + $0xc30] ss:$20 sps:$4 sm:$0xff]   ;;  %v20275_v49 = vor.u32 %v3872_v30, %v3828_v36  ;;  %v16806_v36 = vld [vmem:[%s23953_s4 + $0xd20] ss:$20 sps:$4 sm:$0xff]   ;;  %v16821_v30 = vld [vmem:[%s23953_s4 + $0xd78] ss:$20 sps:$4 sm:$0xff]  }
 0x370   : > { %5120 = vmatprep.subr.bf16.mxu1 %v16736_v52  ;;  %5273 = vmatprep.subr.bf16.mxu0 %v16739_v18  ;;  %v16773_v52 = vld [vmem:[%s23953_s4 + $0xc38] ss:$20 sps:$4 sm:$0xff]   ;;  %v16778_v18 = vld [vmem:[%s23953_s4 + $0xc5c] ss:$20 sps:$4 sm:$0xff]  }
 0x373   : > { %5121 = vmatpush1.bf16.msra.mxu1 %v16734_v61  ;;  %5274 = vmatpush1.bf16.msra.mxu0 %v16737_v5  ;;  %v20285_v61 = vsel %vm597_vm0, %v3860_v14, %v20267_v15  ;;  %v16781_v5 = vld [vmem:[%s23953_s4 + $0xc64] ss:$20 sps:$4 sm:$0xff]   ;;  %v3843_v14 = vshrl.u32 %v20126_v28, 16 }
 0x374   : > { %5122 = vmatprep.subr.bf16.mxu1 %v16742_v38  ;;  %5275 = vmatprep.subr.bf16.mxu0 %v16745_v0  ;;  %v16776_v38 = vld [vmem:[%s23953_s4 + $0xc58] ss:$20 sps:$4 sm:$0xff]   ;;  %v16779_v0 = vld [vmem:[%s23953_s4 + $0xc60] ss:$20 sps:$4 sm:$0xff]  }
 0x377   : > { %5123 = vmatpush1.bf16.msra.mxu1 %v16740_v59  ;;  %5276 = vmatpush1.bf16.msra.mxu0 %v16743_v22  ;;  %v16784_v59 = vld [vmem:[%s23953_s4 + $0xc84] ss:$20 sps:$4 sm:$0xff]   ;;  %v16787_v22 = vld [vmem:[%s23953_s4 + $0xc8c] ss:$20 sps:$4 sm:$0xff]  }
 0x378   : > { %5124 = vmatprep.subr.bf16.mxu1 %v16748_v62  ;;  %5277 = vmatprep.subr.bf16.mxu0 %v16751_v21  ;;  %v16782_v62 = vld [vmem:[%s23953_s4 + $0xc80] ss:$20 sps:$4 sm:$0xff]   ;;  %v16785_v21 = vld [vmem:[%s23953_s4 + $0xc88] ss:$20 sps:$4 sm:$0xff]  }
 0x37b   : > { %5125 = vmatpush1.bf16.msra.mxu1 %v16746_v47  ;;  %5278 = vmatpush1.bf16.msra.mxu0 %v16749_v63  ;;  %v16793_v47 = vld [vmem:[%s23953_s4 + $0xcb4] ss:$20 sps:$4 sm:$0xff]  }
 0x37c   : > { %5126 = vmatprep.subr.bf16.mxu1 %v16754_v39  ;;  %5279 = vmatprep.subr.bf16.mxu0 %v16757_v60  ;;  %v16788_v63 = vld [vmem:[%s23953_s4 + $0xca8] ss:$20 sps:$4 sm:$0xff]   ;;  %v16791_v39 = vld [vmem:[%s23953_s4 + $0xcb0] ss:$20 sps:$4 sm:$0xff]  }
 0x37d   : > { %v16796_v60 = vld [vmem:[%s23953_s4 + $0xcd4] ss:$20 sps:$4 sm:$0xff]  }
 0x37f   : > { %5127 = vmatpush1.bf16.msra.mxu1 %v16752_v32  ;;  %5280 = vmatpush1.bf16.msra.mxu0 %v16755_v43  ;;  %v16802_v32 = vld [vmem:[%s23953_s4 + $0xcfc] ss:$20 sps:$4 sm:$0xff]   ;;  %v16805_v43 = vld [vmem:[%s23953_s4 + $0xd04] ss:$20 sps:$4 sm:$0xff]  }
 0x380   : > { %5147 = vmatprep.subr.bf16.mxu1 %v16760_v45  ;;  %5300 = vmatprep.subr.bf16.mxu0 %v16763_v44  ;;  %v16800_v45 = vld [vmem:[%s23953_s4 + $0xcf8] ss:$20 sps:$4 sm:$0xff]   ;;  %v16803_v44 = vld [vmem:[%s23953_s4 + $0xd00] ss:$20 sps:$4 sm:$0xff]  }
 0x382   : > { %5129 = vmatmul.mubr.bf16.vlgmr.msra.gmra.mrb[36].mxu1 %v20242_v7  ;;  %5282 = vmatmul.mubr.bf16.vlgmr.msra.gmra.mrb[24].mxu0 %v20242_v7 }
 0x383   : > { %5138 = vmatprep.mubr.bf16.mxu1 %v20245_v8  ;;  %5148 = vmatpush1.bf16.msra.mxu1 %v16758_v12  ;;  %v16814_v12 = vld [vmem:[%s23953_s4 + $0xd4c] ss:$20 sps:$4 sm:$0xff]  }
 0x384   : > { %5291 = vmatprep.mubr.bf16.mxu0 %v20245_v8  ;;  %5301 = vmatpush1.bf16.msra.mxu0 %v16761_v55  ;;  %v16817_v55 = vld [vmem:[%s23953_s4 + $0xd54] ss:$20 sps:$4 sm:$0xff]  }
 0x385   : > { %5149 = vmatprep.subr.bf16.mxu1 %v16766_v25  ;;  %5302 = vmatprep.subr.bf16.mxu0 %v16769_v56  ;;  %v20379_v25 = vpack.c.bf16 %v20148_v46, %v20148_v46  ;;  %v16823_v56 = vld [vmem:[%s23953_s4 + $0xd7c] ss:$20 sps:$4 sm:$0xff]  }
 0x386   : > { %v16826_v46 = vld [vmem:[%s23953_s4 + $0xd9c] ss:$20 sps:$4 sm:$0xff]  }
 0x387   : > { %5150 = vmatpush1.bf16.msra.mxu1 %v16764_v40  ;;  %v3845_v40 = vshll.u32 %v20126_v28, 16 }
 0x388   : > { %5303 = vmatpush1.bf16.msra.mxu0 %v16767_v16  ;;  %5151 = vmatprep.subr.bf16.mxu1 %v16772_v53  ;;  %v16818_v16 = vld [vmem:[%s23953_s4 + $0xd70] ss:$20 sps:$4 sm:$0xff]  }
 0x389   : > { %5304 = vmatprep.subr.bf16.mxu0 %v16775_v58  ;;  %v16829_v53 = vld [vmem:[%s23953_s4 + $0xda4] ss:$20 sps:$4 sm:$0xff]   ;;  %v3847_v58 = vrot.slane %v3845_v40, 1 }
 0x38a   : > { %5139 = vmatmul.mubr.bf16.gmra.mrb[44].mxu1 %v20275_v49  ;;  %5292 = vmatmul.mubr.bf16.gmra.mrb[32].mxu0 %v20275_v49  ;;  %v16855_v40 = vld [vmem:[%s23953_s4 + $0x970] ss:$20 sps:$4 sm:$0xff]  }
 0x38b   : > { %5152 = vmatpush1.bf16.msra.mxu1 %v16770_v54  ;;  %14211 = vmatprep.mubr.msk.bf16.mxu1 %vm5038_vm3, %v20285_v61  ;;  %v3850_v54 = vshll.u32 %v20379_v25, 16 }
 0x38c   : > { %5305 = vmatpush1.bf16.msra.mxu0 %v16773_v52  ;;  %5153 = vmatprep.subr.bf16.mxu1 %v16778_v18  ;;  %v16824_v52 = vld [vmem:[%s23953_s4 + $0xd98] ss:$20 sps:$4 sm:$0xff]   ;;  %v16827_v18 = vld [vmem:[%s23953_s4 + $0xda0] ss:$20 sps:$4 sm:$0xff]  }
 0x38d   : > { %5306 = vmatprep.subr.bf16.mxu0 %v16781_v5  ;;  %14213 = vmatprep.mubr.msk.bf16.mxu0 %vm5038_vm3, %v20285_v61  ;;  %v16830_v5 = vld [vmem:[%s23953_s4 + $0x830] ss:$20 sps:$4 sm:$0xff]  }
 0x38f   : > { %5154 = vmatpush1.bf16.msra.mxu1 %v16776_v38  ;;  %v3848_v38 = vor.u32 %v3847_v58, %v3843_v14  ;;  %v16860_v14 = vld [vmem:[%s23953_s4 + $0xb00] ss:$20 sps:$4 sm:$0xff]   ;;  %v16863_v58 = vld [vmem:[%s23953_s4 + $0xb28] ss:$20 sps:$4 sm:$0xff]  }
 0x390   : > { %5307 = vmatpush1.bf16.msra.mxu0 %v16779_v0  ;;  %5155 = vmatprep.subr.bf16.mxu1 %v16784_v59  ;;  %v3852_v0 = vrot.slane %v3850_v54, 1  ;;  %v3881_v59 = vshrl.u32 %v20229_v26, 16  ;;  %v16864_v54 = vld [vmem:[%s23953_s4 + $0x9e8] ss:$20 sps:$4 sm:$0xff]  }
 0x391   : > { %5308 = vmatprep.subr.bf16.mxu0 %v16787_v22  ;;  %v16831_v22 = vld [vmem:[%s23953_s4 + $0x6f0] ss:$20 sps:$4 sm:$0xff]  }
 0x393   : > { %5156 = vmatpush1.bf16.msra.mxu1 %v16782_v62  ;;  %v20413_v62 = vsel %vm597_vm0, %v3848_v38, %v3852_v0  ;;  %v16871_v38 = vld [vmem:[%s23953_s4 + $0xb78] ss:$20 sps:$4 sm:$0xff]  }
 0x394   : > { %5309 = vmatpush1.bf16.msra.mxu0 %v16785_v21  ;;  %5157 = vmatprep.subr.bf16.mxu1 %v16790_v27  ;;  %v20417_v21 = vor.u32 %v3881_v59, %v20267_v15  ;;  %v16832_v27 = vld [vmem:[%s23953_s4 + $0xbf0] ss:$20 sps:$4 sm:$0xff]   ;;  %v16834_v15 = vld [vmem:[%s23953_s4 + $0x718] ss:$20 sps:$4 sm:$0xff]  }
 0x395   : > { %5310 = vmatprep.subr.bf16.mxu0 %v16793_v47  ;;  %v16833_v47 = vld [vmem:[%s23953_s4 + $0x858] ss:$20 sps:$4 sm:$0xff]  }
 0x396   : > { %v16875_v59 = vld [vmem:[%s23953_s4 + $0xa38] ss:$20 sps:$4 sm:$0xff]  }
 0x397   : > { %5158 = vmatpush1.bf16.msra.mxu1 %v16788_v63  ;;  %v3878_v63 = vshrl.u32 %v20379_v25, 16 }
 0x398   : > { %5311 = vmatpush1.bf16.msra.mxu0 %v16791_v39  ;;  %5159 = vmatprep.subr.bf16.mxu1 %v16796_v60  ;;  %v16835_v39 = vld [vmem:[%s23953_s4 + $0xc18] ss:$20 sps:$4 sm:$0xff]   ;;  %v16836_v60 = vld [vmem:[%s23953_s4 + $0x880] ss:$20 sps:$4 sm:$0xff]  }
 0x399   : > { %5312 = vmatprep.subr.bf16.mxu0 %v16799_v29  ;;  %v20442_v29 = vor.u32 %v3878_v63, %v3852_v0  ;;  %v16874_v0 = vld [vmem:[%s23953_s4 + $0x34] ss:$20 sps:$4 sm:$0xff]   ;;  %v16884_v63 = vld [vmem:[%s23953_s4 + $0x84] ss:$20 sps:$4 sm:$0xff]  }
 0x39b   : > { %5160 = vmatpush1.bf16.msra.mxu1 %v16794_v48  ;;  %v16837_v48 = vld [vmem:[%s23953_s4 + $0x740] ss:$20 sps:$4 sm:$0xff]  }
 0x39c   : > { %5313 = vmatpush1.bf16.msra.mxu0 %v16797_v33  ;;  %5161 = vmatprep.subr.bf16.mxu1 %v16802_v32  ;;  %v16838_v33 = vld [vmem:[%s23953_s4 + $0xc40] ss:$20 sps:$4 sm:$0xff]   ;;  %v16839_v32 = vld [vmem:[%s23953_s4 + $0x8a8] ss:$20 sps:$4 sm:$0xff]  }
 0x39d   : > { %5314 = vmatprep.subr.bf16.mxu0 %v16805_v43  ;;  %v16840_v43 = vld [vmem:[%s23953_s4 + $0x768] ss:$20 sps:$4 sm:$0xff]  }
 0x39f   : > { %5162 = vmatpush1.bf16.msra.mxu1 %v16800_v45  ;;  %v16841_v45 = vld [vmem:[%s23953_s4 + $0xc68] ss:$20 sps:$4 sm:$0xff]  }
 0x3a0   : > { %5315 = vmatpush1.bf16.msra.mxu0 %v16803_v44  ;;  %5163 = vmatprep.subr.bf16.mxu1 %v16808_v57  ;;  %v16842_v44 = vld [vmem:[%s23953_s4 + $0x8d0] ss:$20 sps:$4 sm:$0xff]   ;;  %v16845_v57 = vld [vmem:[%s23953_s4 + $0x8f8] ss:$20 sps:$4 sm:$0xff]  }
 0x3a1   : > { %5316 = vmatprep.subr.bf16.mxu0 %v16811_v19  ;;  %v16846_v19 = vld [vmem:[%s23953_s4 + $0x7b8] ss:$20 sps:$4 sm:$0xff]  }
 0x3a3   : > { %5164 = vmatpush1.bf16.msra.mxu1 %v16806_v36  ;;  %v16847_v36 = vld [vmem:[%s23953_s4 + $0xcb8] ss:$20 sps:$4 sm:$0xff]  }
 0x3a4   : > { %5317 = vmatpush1.bf16.msra.mxu0 %v16809_v4  ;;  %5165 = vmatprep.subr.bf16.mxu1 %v16814_v12  ;;  %v16848_v4 = vld [vmem:[%s23953_s4 + $0x920] ss:$20 sps:$4 sm:$0xff]  }
 0x3a5   : > { %5318 = vmatprep.subr.bf16.mxu0 %v16817_v55  ;;  %v16849_v12 = vld [vmem:[%s23953_s4 + $0x7e0] ss:$20 sps:$4 sm:$0xff]  }
 0x3a6   : > { %v16850_v55 = vld [vmem:[%s23953_s4 + $0xce0] ss:$20 sps:$4 sm:$0xff]  }
 0x3a7   : > { %5166 = vmatpush1.bf16.msra.mxu1 %v16812_v37  ;;  %v16851_v37 = vld [vmem:[%s23953_s4 + $0x948] ss:$20 sps:$4 sm:$0xff]  }
 0x3a8   : > { %5319 = vmatpush1.bf16.msra.mxu0 %v16815_v23  ;;  %5167 = vmatprep.subr.bf16.mxu1 %v16820_v1  ;;  %v16852_v23 = vld [vmem:[%s23953_s4 + $0x808] ss:$20 sps:$4 sm:$0xff]  }
 0x3a9   : > { %5320 = vmatprep.subr.bf16.mxu0 %v16823_v56  ;;  %v16853_v1 = vld [vmem:[%s23953_s4 + $0xd08] ss:$20 sps:$4 sm:$0xff]   ;;  %v16854_v56 = vld [vmem:[%s23953_s4 + $0xab0] ss:$20 sps:$4 sm:$0xff]  }
 0x3ab   : > { %5168 = vmatpush1.bf16.msra.mxu1 %v16818_v16  ;;  %v16856_v16 = vld [vmem:[%s23953_s4 + $0xd30] ss:$20 sps:$4 sm:$0xff]  }
 0x3ac   : > { %5321 = vmatpush1.bf16.msra.mxu0 %v16821_v30  ;;  %5169 = vmatprep.subr.bf16.mxu1 %v16826_v46  ;;  %v16857_v30 = vld [vmem:[%s23953_s4 + $0xad8] ss:$20 sps:$4 sm:$0xff]  }
 0x3ad   : > { %5322 = vmatprep.subr.bf16.mxu0 %v16829_v53  ;;  %v16858_v46 = vld [vmem:[%s23953_s4 + $0x998] ss:$20 sps:$4 sm:$0xff]  }
 0x3ae   : > { %v16859_v53 = vld [vmem:[%s23953_s4 + $0xd58] ss:$20 sps:$4 sm:$0xff]  }
 0x3af   : > { %5170 = vmatpush1.bf16.msra.mxu1 %v16824_v52  ;;  %v16865_v52 = vld [vmem:[%s23953_s4 + $0xda8] ss:$20 sps:$4 sm:$0xff]  }
 0x3b0   : > { %5323 = vmatpush1.bf16.msra.mxu0 %v16827_v18  ;;  %15697 = vmatprep.subr.bf16.mxu1 %v16830_v5  ;;  %v16866_v18 = vld [vmem:[%s23953_s4 + $0xb50] ss:$20 sps:$4 sm:$0xff]   ;;  %v16867_v5 = vld [vmem:[%s23953_s4 + $0x8] ss:$20 sps:$4 sm:$0xff]  }
 0x3b1   : > { %5447 = vmatprep.subr.bf16.mxu0 %v23995_v13 }
 0x3b2   : > { %5180 = vmatmul.mubr.bf16.vlgmr.msra.gmra.mrb[36].mxu1 %v20413_v62 }
 0x3b3   : > { %5333 = vmatmul.mubr.bf16.vlgmr.msra.gmra.mrb[24].mxu0 %v20413_v62  ;;  %14212 = vmatprep.mubr.msk.bf16.mxu1 %vm5038_vm3, %v20417_v21 }
 0x3b4   : > { %14214 = vmatprep.mubr.msk.bf16.mxu0 %vm5038_vm3, %v20417_v21  ;;  %15698 = vmatpush3.bf16.msra.mxu1 %v16831_v22  ;;  %v16872_v22 = vld [vmem:[%s23953_s4 + $0x30] ss:$20 sps:$4 sm:$0xff]  }
 0x3b5   : > { %5448 = vmatpush1.bf16.msra.mxu0 %v16832_v27  ;;  %15699 = vmatprep.subr.bf16.mxu1 %v16833_v47  ;;  %v16876_v27 = vld [vmem:[%s23953_s4 + $0xba0] ss:$20 sps:$4 sm:$0xff]   ;;  %v16877_v47 = vld [vmem:[%s23953_s4 + $0x58] ss:$20 sps:$4 sm:$0xff]  }
 0x3b6   : > { %5449 = vmatprep.subr.bf16.mxu0 %v23995_v13 }
 0x3b8   : > { %15700 = vmatpush3.bf16.msra.mxu1 %v16834_v15  ;;  %v16881_v15 = vld [vmem:[%s23953_s4 + $0xbc8] ss:$20 sps:$4 sm:$0xff]  }
 0x3b9   : > { %5450 = vmatpush1.bf16.msra.mxu0 %v16835_v39  ;;  %15701 = vmatprep.subr.bf16.mxu1 %v16836_v60  ;;  %v16885_v39 = vld [vmem:[%s23953_s4 + $0xa88] ss:$20 sps:$4 sm:$0xff]   ;;  %v16882_v60 = vld [vmem:[%s23953_s4 + $0x80] ss:$20 sps:$4 sm:$0xff]  }
 0x3ba   : > { %5190 = vmatmul.mubr.bf16.gmra.mrb[48].mxu1 %v20442_v29  ;;  %5451 = vmatprep.subr.bf16.mxu0 %v23995_v13 }
 0x3bb   : > { %5343 = vmatmul.mubr.bf16.gmra.mrb[36].mxu0 %v20442_v29  ;;  %5383 = vmatprep.mubr.bf16.mxu1 %v19993_v20  ;;  %v16843_v20 = vld [vmem:[%s23953_s4 + $0x790] ss:$20 sps:$4 sm:$0xff]  }
 0x3bc   : > { %15702 = vmatpush3.bf16.msra.mxu1 %v16837_v48  ;;  %14215 = vmatprep.mubr.msk.bf16.mxu0 %vm5038_vm3, %v20285_v61  ;;  %v16844_v61 = vld [vmem:[%s23953_s4 + $0xc90] ss:$20 sps:$4 sm:$0xff]  }
 0x3bd   : > { %5452 = vmatpush1.bf16.msra.mxu0 %v16838_v33  ;;  %15703 = vmatprep.subr.bf16.mxu1 %v16839_v32  ;;  %v16888_v48 = vld [vmem:[%s23953_s4 + $0x4] ss:$20 sps:$4 sm:$0xff]   ;;  %v16886_v33 = vld [vmem:[%s23953_s4] ss:$20 sps:$4 sm:$0xff]   ;;  %v16889_v32 = vld [vmem:[%s23953_s4 + $0xa8] ss:$20 sps:$4 sm:$0xff]  }
 0x3be   : > { %5453 = vmatprep.subr.bf16.mxu0 %v23995_v13 }
 0x3c0   : > { %15704 = vmatpush3.bf16.msra.mxu1 %v16840_v43  ;;  %v16894_v43 = vld [vmem:[%s23953_s4 + $0x2c] ss:$20 sps:$4 sm:$0xff]  }
 0x3c1   : > { %5454 = vmatpush1.bf16.msra.mxu0 %v16841_v45  ;;  %15705 = vmatprep.subr.bf16.mxu1 %v16842_v44  ;;  %v16897_v45 = vld [vmem:[%s23953_s4 + $0xd4] ss:$20 sps:$4 sm:$0xff]  }
 0x3c2   : > { %5455 = vmatprep.subr.bf16.mxu0 %v23995_v13  ;;  %v16892_v44 = vld [vmem:[%s23953_s4 + $0x28] ss:$20 sps:$4 sm:$0xff]  }
 0x3c4   : > { %15706 = vmatpush3.bf16.msra.mxu1 %v16843_v20  ;;  %v16895_v20 = vld [vmem:[%s23953_s4 + $0xd0] ss:$20 sps:$4 sm:$0xff]  }
 0x3c5   : > { %5456 = vmatpush1.bf16.msra.mxu0 %v16844_v61  ;;  %15707 = vmatprep.subr.bf16.mxu1 %v16845_v57  ;;  %v16900_v61 = vld [vmem:[%s23953_s4 + $0x54] ss:$20 sps:$4 sm:$0xff]   ;;  %v16901_v57 = vld [vmem:[%s23953_s4 + $0xf8] ss:$20 sps:$4 sm:$0xff]  }
 0x3c6   : > { %5457 = vmatprep.subr.bf16.mxu0 %v23995_v13 }
 0x3c8   : > { %15708 = vmatpush3.bf16.msra.mxu1 %v16846_v19  ;;  %v16906_v19 = vld [vmem:[%s23953_s4 + $0x7c] ss:$20 sps:$4 sm:$0xff]  }
 0x3c9   : > { %5458 = vmatpush1.bf16.msra.mxu0 %v16847_v36  ;;  %15709 = vmatprep.subr.bf16.mxu1 %v16848_v4  ;;  %v16909_v36 = vld [vmem:[%s23953_s4 + $0x124] ss:$20 sps:$4 sm:$0xff]  }
 0x3ca   : > { %5459 = vmatprep.subr.bf16.mxu0 %v23995_v13  ;;  %v16904_v4 = vld [vmem:[%s23953_s4 + $0x78] ss:$20 sps:$4 sm:$0xff]  }
 0x3cc   : > { %15710 = vmatpush3.bf16.msra.mxu1 %v16849_v12  ;;  %v16907_v12 = vld [vmem:[%s23953_s4 + $0x120] ss:$20 sps:$4 sm:$0xff]  }
 0x3cd   : > { %5460 = vmatpush1.bf16.msra.mxu0 %v16850_v55  ;;  %15711 = vmatprep.subr.bf16.mxu1 %v16851_v37  ;;  %v16912_v55 = vld [vmem:[%s23953_s4 + $0xa4] ss:$20 sps:$4 sm:$0xff]   ;;  %v16910_v37 = vld [vmem:[%s23953_s4 + $0xa0] ss:$20 sps:$4 sm:$0xff]  }
 0x3ce   : > { %5461 = vmatprep.subr.bf16.mxu0 %v23995_v13 }
 0x3d0   : > { %15712 = vmatpush3.bf16.msra.mxu1 %v16852_v23  ;;  %v16913_v23 = vld [vmem:[%s23953_s4 + $0x148] ss:$20 sps:$4 sm:$0xff]  }
 0x3d1   : > { %5462 = vmatpush1.bf16.msra.mxu0 %v16853_v1  ;;  %15725 = vmatprep.subr.bf16.mxu1 %v16854_v56  ;;  %v16918_v1 = vld [vmem:[%s23953_s4 + $0xcc] ss:$20 sps:$4 sm:$0xff]   ;;  %v16921_v56 = vld [vmem:[%s23953_s4 + $0x174] ss:$20 sps:$4 sm:$0xff]  }
 0x3d2   : > { %5463 = vmatprep.subr.bf16.mxu0 %v23995_v13 }
 0x3d3   : > { %5384 = vmatmul.mubr.bf16.vlgmr.msra.gmra.mrb[52].mxu1 %v20000_v6  ;;  %v16862_v6 = vld [vmem:[%s23953_s4 + $0xd80] ss:$20 sps:$4 sm:$0xff]  }
 0x3d4   : > { %5391 = vmatprep.mubr.bf16.mxu1 %v19995_v3  ;;  %15726 = vmatpush3.bf16.msra.mxu1 %v16855_v40  ;;  %v16861_v3 = vld [vmem:[%s23953_s4 + $0x9c0] ss:$20 sps:$4 sm:$0xff]   ;;  %v16916_v40 = vld [vmem:[%s23953_s4 + $0xc8] ss:$20 sps:$4 sm:$0xff]  }
 0x3d5   : > { %5464 = vmatpush1.bf16.msra.mxu0 %v16856_v16  ;;  %15727 = vmatprep.subr.bf16.mxu1 %v16857_v30  ;;  %v16919_v16 = vld [vmem:[%s23953_s4 + $0x170] ss:$20 sps:$4 sm:$0xff]   ;;  %v16924_v30 = vld [vmem:[%s23953_s4 + $0xf4] ss:$20 sps:$4 sm:$0xff]  }
 0x3d6   : > { %5465 = vmatprep.subr.bf16.mxu0 %v23995_v13 }
 0x3d8   : > { %15728 = vmatpush3.bf16.msra.mxu1 %v16858_v46  ;;  %v16927_v46 = vld [vmem:[%s23953_s4 + $0x19c] ss:$20 sps:$4 sm:$0xff]  }
 0x3d9   : > { %5466 = vmatpush1.bf16.msra.mxu0 %v16859_v53  ;;  %15729 = vmatprep.subr.bf16.mxu1 %v16860_v14  ;;  %v16922_v53 = vld [vmem:[%s23953_s4 + $0xf0] ss:$20 sps:$4 sm:$0xff]   ;;  %v16925_v14 = vld [vmem:[%s23953_s4 + $0x198] ss:$20 sps:$4 sm:$0xff]  }
 0x3da   : > { %5467 = vmatprep.subr.bf16.mxu0 %v23995_v13 }
 0x3db   : > { %5392 = vmatmul.mubr.bf16.gmra.mrb[56].mxu1 %v20031_v50  ;;  %v16869_v50 = vld [vmem:[%s23953_s4 + $0xc] ss:$20 sps:$4 sm:$0xff]  }
 0x3dc   : > { %15730 = vmatpush3.bf16.msra.mxu1 %v16861_v3  ;;  %5431 = vmatprep.mubr.bf16.mxu1 %v20116_v24  ;;  %v16870_v24 = vld [vmem:[%s23953_s4 + $0xa10] ss:$20 sps:$4 sm:$0xff]  }
 0x3dd   : > { %5468 = vmatpush1.bf16.msra.mxu0 %v16862_v6  ;;  %15731 = vmatprep.subr.bf16.mxu1 %v16863_v58  ;;  %v16930_v3 = vld [vmem:[%s23953_s4 + $0x11c] ss:$20 sps:$4 sm:$0xff]   ;;  %v16933_v6 = vld [vmem:[%s23953_s4 + $0x1c4] ss:$20 sps:$4 sm:$0xff]  }
 0x3de   : > { %5469 = vmatprep.subr.bf16.mxu0 %v23995_v13  ;;  %v16928_v58 = vld [vmem:[%s23953_s4 + $0x118] ss:$20 sps:$4 sm:$0xff]  }
 0x3e0   : > { %15732 = vmatpush3.bf16.msra.mxu1 %v16864_v54  ;;  %v16931_v54 = vld [vmem:[%s23953_s4 + $0x1c0] ss:$20 sps:$4 sm:$0xff]  }
 0x3e1   : > { %5470 = vmatpush1.bf16.msra.mxu0 %v16865_v52  ;;  %15733 = vmatprep.subr.bf16.mxu1 %v16866_v18  ;;  %v16936_v52 = vld [vmem:[%s23953_s4 + $0x144] ss:$20 sps:$4 sm:$0xff]   ;;  %v16939_v18 = vld [vmem:[%s23953_s4 + $0x1ec] ss:$20 sps:$4 sm:$0xff]  }
 0x3e2   : > { %6796 = vmatprep.subr.bf16.mxu0 %v16869_v50  ;;  %v16934_v50 = vld [vmem:[%s23953_s4 + $0x140] ss:$20 sps:$4 sm:$0xff]  }
 0x3e4   : > { %5480 = vmatmul.mubr.bf16.vlgmr.msra.gmra.mrb[40].mxu0 %v20413_v62  ;;  %15734 = vmatpush3.bf16.msra.mxu1 %v16870_v24  ;;  %v16879_v62 = vld [vmem:[%s23953_s4 + $0x5c] ss:$20 sps:$4 sm:$0xff]  }
 0x3e5   : > { %14216 = vmatprep.mubr.msk.bf16.mxu0 %vm5038_vm3, %v20417_v21  ;;  %6797 = vmatpush1.bf16.msra.mxu0 %v16867_v5  ;;  %v16880_v21 = vld [vmem:[%s23953_s4 + $0xa60] ss:$20 sps:$4 sm:$0xff]   ;;  %v16937_v24 = vld [vmem:[%s23953_s4 + $0x1e8] ss:$20 sps:$4 sm:$0xff]  }
 0x3e6   : > { %15735 = vmatprep.subr.bf16.mxu1 %v16871_v38  ;;  %6798 = vmatprep.subr.bf16.mxu0 %v16874_v0  ;;  %v16942_v5 = vld [vmem:[%s23953_s4 + $0x16c] ss:$20 sps:$4 sm:$0xff]   ;;  %v16945_v38 = vld [vmem:[%s23953_s4 + $0x214] ss:$20 sps:$4 sm:$0xff]  }
 0x3e7   : > { %v16940_v0 = vld [vmem:[%s23953_s4 + $0x168] ss:$20 sps:$4 sm:$0xff]  }
 0x3e8   : > { %15736 = vmatpush3.bf16.msra.mxu1 %v16875_v59  ;;  %v16943_v59 = vld [vmem:[%s23953_s4 + $0x210] ss:$20 sps:$4 sm:$0xff]  }
 0x3e9   : > { %6799 = vmatpush1.bf16.msra.mxu0 %v16872_v22  ;;  %15737 = vmatprep.subr.bf16.mxu1 %v16876_v27  ;;  %v16948_v22 = vld [vmem:[%s23953_s4 + $0x194] ss:$20 sps:$4 sm:$0xff]   ;;  %v16951_v27 = vld [vmem:[%s23953_s4 + $0x23c] ss:$20 sps:$4 sm:$0xff]  }
 0x3ea   : > { %6800 = vmatprep.subr.bf16.mxu0 %v16879_v62  ;;  %v16946_v62 = vld [vmem:[%s23953_s4 + $0x190] ss:$20 sps:$4 sm:$0xff]  }
 0x3ec   : > { %5488 = vmatmul.mubr.bf16.gmra.mrb[44].mxu0 %v20442_v29  ;;  %15738 = vmatpush3.bf16.msra.mxu1 %v16880_v21  ;;  %v16891_v29 = vld [vmem:[%s23953_s4 + $0xac] ss:$20 sps:$4 sm:$0xff]  }
 0x3ed   : > { %6801 = vmatpush1.bf16.msra.mxu0 %v16877_v47  ;;  %6828 = vmatprep.mubr.bf16.mxu0 %v19973_v2  ;;  %v16949_v21 = vld [vmem:[%s23953_s4 + $0x238] ss:$20 sps:$4 sm:$0xff]   ;;  %v16954_v47 = vld [vmem:[%s23953_s4 + $0x1bc] ss:$20 sps:$4 sm:$0xff]  }
 0x3ee   : > { %15739 = vmatprep.subr.bf16.mxu1 %v16881_v15  ;;  %6802 = vmatprep.subr.bf16.mxu0 %v16884_v63  ;;  %v16957_v15 = vld [vmem:[%s23953_s4 + $0x264] ss:$20 sps:$4 sm:$0xff]  }
 0x3ef   : > { %v16952_v63 = vld [vmem:[%s23953_s4 + $0x1b8] ss:$20 sps:$4 sm:$0xff]  }
 0x3f0   : > { %15740 = vmatpush3.bf16.msra.mxu1 %v16885_v39 }
 0x3f1   : > { %6803 = vmatpush1.bf16.msra.mxu0 %v16882_v60  ;;  %6643 = vmatprep.subr.bf16.mxu1 %v16888_v48  ;;  %v16955_v48 = vld [vmem:[%s23953_s4 + $0x260] ss:$20 sps:$4 sm:$0xff]  }
 0x3f2   : > { %6804 = vmatprep.subr.bf16.mxu0 %v16891_v29  ;;  %v16960_v29 = vld [vmem:[%s23953_s4 + $0x1e4] ss:$20 sps:$4 sm:$0xff]  }
 0x3f3   : > { %5432 = vmatmul.mubr.bf16.vlgmr.msra.gmra.mrb[60].mxu1 %v20242_v7  ;;  %v16903_v7 = vld [vmem:[%s23953_s4 + $0xfc] ss:$20 sps:$4 sm:$0xff]  }
 0x3f4   : > { %5439 = vmatprep.mubr.bf16.mxu1 %v20245_v8  ;;  %6644 = vmatpush1.bf16.msra.mxu1 %v16886_v33  ;;  %v16898_v8 = vld [vmem:[%s23953_s4 + $0x50] ss:$20 sps:$4 sm:$0xff]  }
 0x3f5   : > { %6805 = vmatpush1.bf16.msra.mxu0 %v16889_v32  ;;  %6645 = vmatprep.subr.bf16.mxu1 %v16894_v43  ;;  %v16963_v43 = vld [vmem:[%s23953_s4 + $0x28c] ss:$20 sps:$4 sm:$0xff]  }
 0x3f6   : > { %6806 = vmatprep.subr.bf16.mxu0 %v16897_v45 }
 0x3f8   : > { %6646 = vmatpush1.bf16.msra.mxu1 %v16892_v44 }
 0x3f9   : > { %6807 = vmatpush1.bf16.msra.mxu0 %v16895_v20  ;;  %6647 = vmatprep.subr.bf16.mxu1 %v16900_v61 }
 0x3fa   : > { %6808 = vmatprep.subr.bf16.mxu0 %v16903_v7  ;;  %v16958_v7 = vld [vmem:[%s23953_s4 + $0x1e0] ss:$20 sps:$4 sm:$0xff]  }
 0x3fb   : > { %5440 = vmatmul.mubr.bf16.gmra.mrb[64].mxu1 %v20275_v49  ;;  %v16915_v49 = vld [vmem:[%s23953_s4 + $0x14c] ss:$20 sps:$4 sm:$0xff]  }
 0x3fc   : > { %6648 = vmatpush1.bf16.msra.mxu1 %v16898_v8  ;;  %6675 = vmatprep.mubr.bf16.mxu1 %v19973_v2  ;;  %v16961_v8 = vld [vmem:[%s23953_s4 + $0x288] ss:$20 sps:$4 sm:$0xff]  }
 0x3fd   : > { %6809 = vmatpush1.bf16.msra.mxu0 %v16901_v57  ;;  %6649 = vmatprep.subr.bf16.mxu1 %v16906_v19  ;;  %v16966_v57 = vld [vmem:[%s23953_s4 + $0x20c] ss:$20 sps:$4 sm:$0xff]   ;;  %v16969_v19 = vld [vmem:[%s23953_s4 + $0x2b4] ss:$20 sps:$4 sm:$0xff]  }
 0x3fe   : > { %6810 = vmatprep.subr.bf16.mxu0 %v16909_v36  ;;  %v16964_v36 = vld [vmem:[%s23953_s4 + $0x208] ss:$20 sps:$4 sm:$0xff]  }
 0x400   : > { %6650 = vmatpush1.bf16.msra.mxu1 %v16904_v4  ;;  %v16967_v4 = vld [vmem:[%s23953_s4 + $0x2b0] ss:$20 sps:$4 sm:$0xff]  }
 0x401   : > { %6811 = vmatpush1.bf16.msra.mxu0 %v16907_v12  ;;  %6651 = vmatprep.subr.bf16.mxu1 %v16912_v55  ;;  %v16972_v12 = vld [vmem:[%s23953_s4 + $0x234] ss:$20 sps:$4 sm:$0xff]   ;;  %v16975_v55 = vld [vmem:[%s23953_s4 + $0x2dc] ss:$20 sps:$4 sm:$0xff]  }
 0x402   : > { %6812 = vmatprep.subr.bf16.mxu0 %v16915_v49  ;;  %v16970_v49 = vld [vmem:[%s23953_s4 + $0x230] ss:$20 sps:$4 sm:$0xff]  }
 0x404   : > { %6652 = vmatpush1.bf16.msra.mxu1 %v16910_v37  ;;  %v16973_v37 = vld [vmem:[%s23953_s4 + $0x2d8] ss:$20 sps:$4 sm:$0xff]  }
 0x405   : > { %6813 = vmatpush1.bf16.msra.mxu0 %v16913_v23  ;;  %6653 = vmatprep.subr.bf16.mxu1 %v16918_v1  ;;  %v16978_v23 = vld [vmem:[%s23953_s4 + $0x25c] ss:$20 sps:$4 sm:$0xff]   ;;  %v16981_v1 = vld [vmem:[%s23953_s4 + $0x304] ss:$20 sps:$4 sm:$0xff]  }
 0x406   : > { %6814 = vmatprep.subr.bf16.mxu0 %v16921_v56  ;;  %v16976_v56 = vld [vmem:[%s23953_s4 + $0x258] ss:$20 sps:$4 sm:$0xff]  }
 0x408   : > { %6654 = vmatpush1.bf16.msra.mxu1 %v16916_v40  ;;  %v16979_v40 = vld [vmem:[%s23953_s4 + $0x300] ss:$20 sps:$4 sm:$0xff]  }
 0x409   : > { %6815 = vmatpush1.bf16.msra.mxu0 %v16919_v16  ;;  %6655 = vmatprep.subr.bf16.mxu1 %v16924_v30  ;;  %v16984_v16 = vld [vmem:[%s23953_s4 + $0x284] ss:$20 sps:$4 sm:$0xff]   ;;  %v16987_v30 = vld [vmem:[%s23953_s4 + $0x32c] ss:$20 sps:$4 sm:$0xff]  }
 0x40a   : > { %6816 = vmatprep.subr.bf16.mxu0 %v16927_v46  ;;  %v16982_v46 = vld [vmem:[%s23953_s4 + $0x280] ss:$20 sps:$4 sm:$0xff]  }
 0x40c   : > { %6656 = vmatpush1.bf16.msra.mxu1 %v16922_v53  ;;  %v16985_v53 = vld [vmem:[%s23953_s4 + $0x328] ss:$20 sps:$4 sm:$0xff]  }
 0x40d   : > { %6817 = vmatpush1.bf16.msra.mxu0 %v16925_v14  ;;  %6657 = vmatprep.subr.bf16.mxu1 %v16930_v3  ;;  %v16990_v14 = vld [vmem:[%s23953_s4 + $0x2ac] ss:$20 sps:$4 sm:$0xff]   ;;  %v16993_v3 = vld [vmem:[%s23953_s4 + $0x354] ss:$20 sps:$4 sm:$0xff]  }
 0x40e   : > { %6818 = vmatprep.subr.bf16.mxu0 %v16933_v6  ;;  %v16988_v6 = vld [vmem:[%s23953_s4 + $0x2a8] ss:$20 sps:$4 sm:$0xff]  }
 0x410   : > { %6658 = vmatpush1.bf16.msra.mxu1 %v16928_v58  ;;  %v16991_v58 = vld [vmem:[%s23953_s4 + $0x350] ss:$20 sps:$4 sm:$0xff]  }
 0x411   : > { %6819 = vmatpush1.bf16.msra.mxu0 %v16931_v54  ;;  %6659 = vmatprep.subr.bf16.mxu1 %v16936_v52  ;;  %v16996_v54 = vld [vmem:[%s23953_s4 + $0x2d4] ss:$20 sps:$4 sm:$0xff]   ;;  %v16999_v52 = vld [vmem:[%s23953_s4 + $0x37c] ss:$20 sps:$4 sm:$0xff]  }
 0x412   : > { %6820 = vmatprep.subr.bf16.mxu0 %v16939_v18  ;;  %v16994_v18 = vld [vmem:[%s23953_s4 + $0x2d0] ss:$20 sps:$4 sm:$0xff]  }
 0x414   : > { %6660 = vmatpush1.bf16.msra.mxu1 %v16934_v50  ;;  %v16997_v50 = vld [vmem:[%s23953_s4 + $0x378] ss:$20 sps:$4 sm:$0xff]  }
 0x415   : > { %6821 = vmatpush1.bf16.msra.mxu0 %v16937_v24  ;;  %6661 = vmatprep.subr.bf16.mxu1 %v16942_v5  ;;  %v17002_v24 = vld [vmem:[%s23953_s4 + $0x2fc] ss:$20 sps:$4 sm:$0xff]   ;;  %v17005_v5 = vld [vmem:[%s23953_s4 + $0x3a4] ss:$20 sps:$4 sm:$0xff]  }
 0x416   : > { %6822 = vmatprep.subr.bf16.mxu0 %v16945_v38  ;;  %v17000_v38 = vld [vmem:[%s23953_s4 + $0x2f8] ss:$20 sps:$4 sm:$0xff]  }
 0x418   : > { %6662 = vmatpush1.bf16.msra.mxu1 %v16940_v0  ;;  %v17003_v0 = vld [vmem:[%s23953_s4 + $0x3a0] ss:$20 sps:$4 sm:$0xff]  }
 0x419   : > { %6823 = vmatpush1.bf16.msra.mxu0 %v16943_v59  ;;  %6663 = vmatprep.subr.bf16.mxu1 %v16948_v22  ;;  %v17008_v59 = vld [vmem:[%s23953_s4 + $0x324] ss:$20 sps:$4 sm:$0xff]   ;;  %v17011_v22 = vld [vmem:[%s23953_s4 + $0x3cc] ss:$20 sps:$4 sm:$0xff]  }
 0x41a   : > { %6824 = vmatprep.subr.bf16.mxu0 %v16951_v27  ;;  %v17006_v27 = vld [vmem:[%s23953_s4 + $0x320] ss:$20 sps:$4 sm:$0xff]  }
 0x41c   : > { %6664 = vmatpush1.bf16.msra.mxu1 %v16946_v62  ;;  %v17009_v62 = vld [vmem:[%s23953_s4 + $0x3c8] ss:$20 sps:$4 sm:$0xff]  }
 0x41d   : > { %6825 = vmatpush1.bf16.msra.mxu0 %v16949_v21  ;;  %v20748_v39 = vpop.f32.mrb[40].mxu1  ;;  %v20750_v60 = vpop.f32.mrb[28].mxu0  ;;  %6665 = vmatprep.subr.bf16.mxu1 %v16954_v47  ;;  %v17014_v21 = vld [vmem:[%s23953_s4 + $0x34c] ss:$20 sps:$4 sm:$0xff]   ;;  %v17017_v47 = vld [vmem:[%s23953_s4 + $0x3f4] ss:$20 sps:$4 sm:$0xff]  }
 0x41e   : > { %6826 = vmatprep.subr.bf16.mxu0 %v16957_v15  ;;  %v20758_v33 = vpop.f32.mrb[41].mxu1  ;;  %v20760_v32 = vpop.f32.mrb[29].mxu0  ;;  %v17012_v15 = vld [vmem:[%s23953_s4 + $0x348] ss:$20 sps:$4 sm:$0xff]  }
 0x41f   : > { %v5093_v45 = vpop.f32.mrb[42].mxu1  ;;  %v5246_v44 = vpop.f32.mrb[30].mxu0 }
 0x420   : > { %6666 = vmatpush1.bf16.msra.mxu1 %v16952_v63  ;;  %v5094_v20 = vpop.f32.mrb[43].mxu1  ;;  %v5247_v61 = vpop.f32.mrb[31].mxu0  ;;  %v17015_v63 = vld [vmem:[%s23953_s4 + $0x3f0] ss:$20 sps:$4 sm:$0xff]   ;;  %v17021_v45 = vld [vmem:[%s23953_s4 + $0x418] ss:$20 sps:$4 sm:$0xff]  }
 0x421   : > { %6827 = vmatpush1.bf16.msra.mxu0 %v16955_v48  ;;  %6667 = vmatprep.subr.bf16.mxu1 %v16960_v29  ;;  %v17020_v48 = vld [vmem:[%s23953_s4 + $0x374] ss:$20 sps:$4 sm:$0xff]   ;;  %v17023_v29 = vld [vmem:[%s23953_s4 + $0x41c] ss:$20 sps:$4 sm:$0xff]   ;;  %v17029_v20 = vld [vmem:[%s23953_s4 + $0x444] ss:$20 sps:$4 sm:$0xff]  }
 0x422   : > { %6847 = vmatprep.subr.bf16.mxu0 %v16963_v43  ;;  %v17018_v43 = vld [vmem:[%s23953_s4 + $0x370] ss:$20 sps:$4 sm:$0xff]   ;;  %v17024_v61 = vld [vmem:[%s23953_s4 + $0x398] ss:$20 sps:$4 sm:$0xff]  }
 0x423   : > { %v17026_v44 = vld [vmem:[%s23953_s4 + $0x39c] ss:$20 sps:$4 sm:$0xff]  }
 0x424   : > { %6829 = vmatmul.mubr.bf16.vlgmr.msra.gmra.mrb[24].mxu0 %v19971_v17  ;;  %6668 = vmatpush1.bf16.msra.mxu1 %v16958_v7  ;;  %v17027_v7 = vld [vmem:[%s23953_s4 + $0x440] ss:$20 sps:$4 sm:$0xff]  }
 0x425   : > { %6838 = vmatprep.mubr.bf16.mxu0 %v19979_v9  ;;  %6848 = vmatpush1.bf16.msra.mxu0 %v16961_v8  ;;  %v17032_v8 = vld [vmem:[%s23953_s4 + $0x3c4] ss:$20 sps:$4 sm:$0xff]  }
 0x426   : > { %6669 = vmatprep.subr.bf16.mxu1 %v16966_v57  ;;  %6849 = vmatprep.subr.bf16.mxu0 %v16969_v19  ;;  %v17035_v57 = vld [vmem:[%s23953_s4 + $0x46c] ss:$20 sps:$4 sm:$0xff]  }
 0x427   : > { %v17030_v19 = vld [vmem:[%s23953_s4 + $0x3c0] ss:$20 sps:$4 sm:$0xff]  }
 0x428   : > { %6670 = vmatpush1.bf16.msra.mxu1 %v16964_v36  ;;  %v17033_v36 = vld [vmem:[%s23953_s4 + $0x468] ss:$20 sps:$4 sm:$0xff]  }
 0x429   : > { %6850 = vmatpush1.bf16.msra.mxu0 %v16967_v4  ;;  %6671 = vmatprep.subr.bf16.mxu1 %v16972_v12  ;;  %v17038_v4 = vld [vmem:[%s23953_s4 + $0x3ec] ss:$20 sps:$4 sm:$0xff]   ;;  %v17041_v12 = vld [vmem:[%s23953_s4 + $0x494] ss:$20 sps:$4 sm:$0xff]  }
 0x42a   : > { %6851 = vmatprep.subr.bf16.mxu0 %v16975_v55  ;;  %v17036_v55 = vld [vmem:[%s23953_s4 + $0x3e8] ss:$20 sps:$4 sm:$0xff]  }
 0x42c   : > { %6839 = vmatmul.mubr.bf16.gmra.mrb[48].mxu0 %v19977_v10  ;;  %6672 = vmatpush1.bf16.msra.mxu1 %v16970_v49  ;;  %v17039_v49 = vld [vmem:[%s23953_s4 + $0x490] ss:$20 sps:$4 sm:$0xff]  }
 0x42d   : > { %6852 = vmatpush1.bf16.msra.mxu0 %v16973_v37  ;;  %6879 = vmatprep.mubr.bf16.mxu0 %v20067_v11  ;;  %v17044_v37 = vld [vmem:[%s23953_s4 + $0x414] ss:$20 sps:$4 sm:$0xff]  }
 0x42e   : > { %6673 = vmatprep.subr.bf16.mxu1 %v16978_v23  ;;  %6853 = vmatprep.subr.bf16.mxu0 %v16981_v1  ;;  %v17047_v23 = vld [vmem:[%s23953_s4 + $0x4bc] ss:$20 sps:$4 sm:$0xff]  }
 0x42f   : > { %v17042_v1 = vld [vmem:[%s23953_s4 + $0x410] ss:$20 sps:$4 sm:$0xff]  }
 0x430   : > { %6674 = vmatpush1.bf16.msra.mxu1 %v16976_v56  ;;  %v17045_v56 = vld [vmem:[%s23953_s4 + $0x4b8] ss:$20 sps:$4 sm:$0xff]  }
 0x431   : > { %6854 = vmatpush1.bf16.msra.mxu0 %v16979_v40  ;;  %6694 = vmatprep.subr.bf16.mxu1 %v16984_v16  ;;  %v17050_v40 = vld [vmem:[%s23953_s4 + $0x43c] ss:$20 sps:$4 sm:$0xff]   ;;  %v17053_v16 = vld [vmem:[%s23953_s4 + $0x4e4] ss:$20 sps:$4 sm:$0xff]  }
 0x432   : > { %6855 = vmatprep.subr.bf16.mxu0 %v16987_v30  ;;  %v17048_v30 = vld [vmem:[%s23953_s4 + $0x438] ss:$20 sps:$4 sm:$0xff]  }
 0x433   : > { %6676 = vmatmul.mubr.bf16.vlgmr.msra.gmra.mrb[36].mxu1 %v19971_v17 }
 0x434   : > { %6685 = vmatprep.mubr.bf16.mxu1 %v19979_v9  ;;  %6695 = vmatpush1.bf16.msra.mxu1 %v16982_v46 }
 0x435   : > { %6856 = vmatpush1.bf16.msra.mxu0 %v16985_v53  ;;  %6696 = vmatprep.subr.bf16.mxu1 %v16990_v14  ;;  %v17051_v14 = vld [vmem:[%s23953_s4 + $0x4e0] ss:$20 sps:$4 sm:$0xff]  }
 0x436   : > { %6857 = vmatprep.subr.bf16.mxu0 %v16993_v3  ;;  %v17056_v3 = vld [vmem:[%s23953_s4 + $0x464] ss:$20 sps:$4 sm:$0xff]  }
 0x438   : > { %6697 = vmatpush1.bf16.msra.mxu1 %v16988_v6 }
 0x439   : > { %6858 = vmatpush1.bf16.msra.mxu0 %v16991_v58  ;;  %6698 = vmatprep.subr.bf16.mxu1 %v16996_v54 }
 0x43a   : > { %6859 = vmatprep.subr.bf16.mxu0 %v16999_v52 }
 0x43b   : > { %6686 = vmatmul.mubr.bf16.gmra.mrb[68].mxu1 %v19977_v10 }
 0x43c   : > { %6699 = vmatpush1.bf16.msra.mxu1 %v16994_v18  ;;  %6726 = vmatprep.mubr.bf16.mxu1 %v20067_v11  ;;  %v17059_v18 = vld [vmem:[%s23953_s4 + $0x50c] ss:$20 sps:$4 sm:$0xff]  }
 0x43d   : > { %6860 = vmatpush1.bf16.msra.mxu0 %v16997_v50  ;;  %6700 = vmatprep.subr.bf16.mxu1 %v17002_v24 }
 0x43e   : > { %6861 = vmatprep.subr.bf16.mxu0 %v17005_v5 }
 0x440   : > { %6701 = vmatpush1.bf16.msra.mxu1 %v17000_v38 }
 0x441   : > { %6862 = vmatpush1.bf16.msra.mxu0 %v17003_v0  ;;  %6702 = vmatprep.subr.bf16.mxu1 %v17008_v59  ;;  %v17057_v59 = vld [vmem:[%s23953_s4 + $0x508] ss:$20 sps:$4 sm:$0xff]  }
 0x442   : > { %6863 = vmatprep.subr.bf16.mxu0 %v17011_v22  ;;  %v17060_v22 = vld [vmem:[%s23953_s4 + $0x488] ss:$20 sps:$4 sm:$0xff]  }
 0x444   : > { %6703 = vmatpush1.bf16.msra.mxu1 %v17006_v27  ;;  %v17063_v27 = vld [vmem:[%s23953_s4 + $0x530] ss:$20 sps:$4 sm:$0xff]  }
 0x445   : > { %6864 = vmatpush1.bf16.msra.mxu0 %v17009_v62  ;;  %6704 = vmatprep.subr.bf16.mxu1 %v17014_v21  ;;  %v17068_v62 = vld [vmem:[%s23953_s4 + $0x4b4] ss:$20 sps:$4 sm:$0xff]   ;;  %v17071_v21 = vld [vmem:[%s23953_s4 + $0x55c] ss:$20 sps:$4 sm:$0xff]  }
 0x446   : > { %6865 = vmatprep.subr.bf16.mxu0 %v17017_v47  ;;  %v17066_v47 = vld [vmem:[%s23953_s4 + $0x4b0] ss:$20 sps:$4 sm:$0xff]  }
 0x448   : > { %6705 = vmatpush1.bf16.msra.mxu1 %v17012_v15  ;;  %v17069_v15 = vld [vmem:[%s23953_s4 + $0x558] ss:$20 sps:$4 sm:$0xff]  }
 0x449   : > { %6866 = vmatpush1.bf16.msra.mxu0 %v17015_v63  ;;  %6706 = vmatprep.subr.bf16.mxu1 %v17020_v48  ;;  %v17074_v63 = vld [vmem:[%s23953_s4 + $0x4dc] ss:$20 sps:$4 sm:$0xff]   ;;  %v17077_v48 = vld [vmem:[%s23953_s4 + $0x584] ss:$20 sps:$4 sm:$0xff]  }
 0x44a   : > { %6867 = vmatprep.subr.bf16.mxu0 %v17023_v29  ;;  %v17072_v29 = vld [vmem:[%s23953_s4 + $0x4d8] ss:$20 sps:$4 sm:$0xff]  }
 0x44c   : > { %6707 = vmatpush1.bf16.msra.mxu1 %v17018_v43  ;;  %v17075_v43 = vld [vmem:[%s23953_s4 + $0x580] ss:$20 sps:$4 sm:$0xff]  }
 0x44d   : > { %6868 = vmatpush1.bf16.msra.mxu0 %v17021_v45  ;;  %6708 = vmatprep.subr.bf16.mxu1 %v17026_v44  ;;  %v17080_v45 = vld [vmem:[%s23953_s4 + $0x504] ss:$20 sps:$4 sm:$0xff]   ;;  %v17083_v44 = vld [vmem:[%s23953_s4 + $0x5ac] ss:$20 sps:$4 sm:$0xff]  }
 0x44e   : > { %6869 = vmatprep.subr.bf16.mxu0 %v17029_v20  ;;  %v17078_v20 = vld [vmem:[%s23953_s4 + $0x500] ss:$20 sps:$4 sm:$0xff]  }
 0x450   : > { %6709 = vmatpush1.bf16.msra.mxu1 %v17024_v61  ;;  %v17081_v61 = vld [vmem:[%s23953_s4 + $0x5a8] ss:$20 sps:$4 sm:$0xff]  }
 0x451   : > { %6870 = vmatpush1.bf16.msra.mxu0 %v17027_v7  ;;  %6710 = vmatprep.subr.bf16.mxu1 %v17032_v8  ;;  %v17086_v7 = vld [vmem:[%s23953_s4 + $0x52c] ss:$20 sps:$4 sm:$0xff]   ;;  %v17089_v8 = vld [vmem:[%s23953_s4 + $0x5d4] ss:$20 sps:$4 sm:$0xff]  }
 0x452   : > { %6871 = vmatprep.subr.bf16.mxu0 %v17035_v57  ;;  %v17084_v57 = vld [vmem:[%s23953_s4 + $0x528] ss:$20 sps:$4 sm:$0xff]  }
 0x454   : > { %6711 = vmatpush1.bf16.msra.mxu1 %v17030_v19  ;;  %v17087_v19 = vld [vmem:[%s23953_s4 + $0x5d0] ss:$20 sps:$4 sm:$0xff]  }
 0x455   : > { %6872 = vmatpush1.bf16.msra.mxu0 %v17033_v36  ;;  %6712 = vmatprep.subr.bf16.mxu1 %v17038_v4  ;;  %v17092_v36 = vld [vmem:[%s23953_s4 + $0x554] ss:$20 sps:$4 sm:$0xff]   ;;  %v17095_v4 = vld [vmem:[%s23953_s4 + $0x5fc] ss:$20 sps:$4 sm:$0xff]  }
 0x456   : > { %6873 = vmatprep.subr.bf16.mxu0 %v17041_v12  ;;  %v17090_v12 = vld [vmem:[%s23953_s4 + $0x550] ss:$20 sps:$4 sm:$0xff]  }
 0x458   : > { %6713 = vmatpush1.bf16.msra.mxu1 %v17036_v55  ;;  %v17093_v55 = vld [vmem:[%s23953_s4 + $0x5f8] ss:$20 sps:$4 sm:$0xff]  }
 0x459   : > { %6874 = vmatpush1.bf16.msra.mxu0 %v17039_v49  ;;  %6714 = vmatprep.subr.bf16.mxu1 %v17044_v37  ;;  %v17098_v49 = vld [vmem:[%s23953_s4 + $0x57c] ss:$20 sps:$4 sm:$0xff]   ;;  %v17101_v37 = vld [vmem:[%s23953_s4 + $0x624] ss:$20 sps:$4 sm:$0xff]  }
 0x45a   : > { %6875 = vmatprep.subr.bf16.mxu0 %v17047_v23  ;;  %v17096_v23 = vld [vmem:[%s23953_s4 + $0x578] ss:$20 sps:$4 sm:$0xff]  }
 0x45c   : > { %6715 = vmatpush1.bf16.msra.mxu1 %v17042_v1  ;;  %v17099_v1 = vld [vmem:[%s23953_s4 + $0x620] ss:$20 sps:$4 sm:$0xff]  }
 0x45d   : > { %6876 = vmatpush1.bf16.msra.mxu0 %v17045_v56  ;;  %v5140_v46 = vpop.f32.mrb[44].mxu1  ;;  %v5293_v53 = vpop.f32.mrb[32].mxu0  ;;  %6716 = vmatprep.subr.bf16.mxu1 %v17050_v40  ;;  %v17104_v56 = vld [vmem:[%s23953_s4 + $0x5a4] ss:$20 sps:$4 sm:$0xff]   ;;  %v17107_v40 = vld [vmem:[%s23953_s4 + $0x64c] ss:$20 sps:$4 sm:$0xff]  }
 0x45e   : > { %v20963_v6 = vadd.f32 %v5140_v46, %v20748_v39  ;;  %v20966_v58 = vadd.f32 %v5293_v53, %v20750_v60  ;;  %v5142_v54 = vpop.f32.mrb[45].mxu1  ;;  %v5295_v52 = vpop.f32.mrb[33].mxu0  ;;  %6877 = vmatprep.subr.bf16.mxu0 %v17053_v16  ;;  %v17054_v60 = vld [vmem:[%s23953_s4 + $0x460] ss:$20 sps:$4 sm:$0xff]  }
 0x45f   : > { %v20972_v50 = vadd.f32 %v5142_v54, %v20758_v33  ;;  %v20975_v24 = vadd.f32 %v5295_v52, %v20760_v32  ;;  %v5144_v5 = vpop.f32.mrb[46].mxu1  ;;  %v5297_v38 = vpop.f32.mrb[34].mxu0  ;;  %v17062_v33 = vld [vmem:[%s23953_s4 + $0x48c] ss:$20 sps:$4 sm:$0xff]   ;;  %v17065_v32 = vld [vmem:[%s23953_s4 + $0x534] ss:$20 sps:$4 sm:$0xff]  }
 0x460   : > { %6717 = vmatpush1.bf16.msra.mxu1 %v17048_v30  ;;  %v5145_v39 = vpop.f32.mrb[47].mxu1  ;;  %v5298_v0 = vpop.f32.mrb[35].mxu0  ;;  %v17102_v16 = vld [vmem:[%s23953_s4 + $0x5a0] ss:$20 sps:$4 sm:$0xff]   ;;  %v17105_v30 = vld [vmem:[%s23953_s4 + $0x648] ss:$20 sps:$4 sm:$0xff]  }
 0x461   : > { %6878 = vmatpush1.bf16.msra.mxu0 %v17051_v14  ;;  %6718 = vmatprep.subr.bf16.mxu1 %v17056_v3  ;;  %v17110_v46 = vld [vmem:[%s23953_s4 + $0x5cc] ss:$20 sps:$4 sm:$0xff]   ;;  %v17113_v53 = vld [vmem:[%s23953_s4 + $0x674] ss:$20 sps:$4 sm:$0xff]   ;;  %v17111_v3 = vld [vmem:[%s23953_s4 + $0x670] ss:$20 sps:$4 sm:$0xff]  }
 0x462   : > { %6898 = vmatprep.subr.bf16.mxu0 %v17059_v18  ;;  %v17108_v14 = vld [vmem:[%s23953_s4 + $0x5c8] ss:$20 sps:$4 sm:$0xff]   ;;  %v17114_v18 = vld [vmem:[%s23953_s4 + $0x5f0] ss:$20 sps:$4 sm:$0xff]   ;;  %v17117_v5 = vld [vmem:[%s23953_s4 + $0x698] ss:$20 sps:$4 sm:$0xff]  }
 0x463   : > { %v17116_v54 = vld [vmem:[%s23953_s4 + $0x5f4] ss:$20 sps:$4 sm:$0xff]   ;;  %v17119_v52 = vld [vmem:[%s23953_s4 + $0x69c] ss:$20 sps:$4 sm:$0xff]   ;;  %v17125_v39 = vld [vmem:[%s23953_s4 + $0x6c4] ss:$20 sps:$4 sm:$0xff]  }
 0x464   : > { %6880 = vmatmul.mubr.bf16.vlgmr.msra.gmra.mrb[24].mxu0 %v20059_v34  ;;  %6719 = vmatpush1.bf16.msra.mxu1 %v17054_v60  ;;  %v17122_v38 = vld [vmem:[%s23953_s4 + $0x61c] ss:$20 sps:$4 sm:$0xff]   ;;  %v17120_v0 = vld [vmem:[%s23953_s4 + $0x618] ss:$20 sps:$4 sm:$0xff]  }
 0x465   : > { %6889 = vmatprep.mubr.bf16.mxu0 %v20085_v51  ;;  %6899 = vmatpush1.bf16.msra.mxu0 %v17057_v59  ;;  %v17123_v59 = vld [vmem:[%s23953_s4 + $0x6c0] ss:$20 sps:$4 sm:$0xff]  }
 0x466   : > { %6720 = vmatprep.subr.bf16.mxu1 %v17062_v33  ;;  %6900 = vmatprep.subr.bf16.mxu0 %v17065_v32  ;;  %v17128_v33 = vld [vmem:[%s23953_s4 + $0x644] ss:$20 sps:$4 sm:$0xff]  }
 0x468   : > { %6721 = vmatpush1.bf16.msra.mxu1 %v17060_v22 }
 0x469   : > { %6901 = vmatpush1.bf16.msra.mxu0 %v17063_v27  ;;  %6722 = vmatprep.subr.bf16.mxu1 %v17068_v62 }
 0x46a   : > { %6902 = vmatprep.subr.bf16.mxu0 %v17071_v21 }
 0x46c   : > { %6890 = vmatmul.mubr.bf16.gmra.mrb[52].mxu0 %v20200_v42  ;;  %6723 = vmatpush1.bf16.msra.mxu1 %v17066_v47 }
 0x46d   : > { %6903 = vmatpush1.bf16.msra.mxu0 %v17069_v15  ;;  %14439 = vmatprep.mubr.msk.bf16.mxu0 %vm5038_vm3, %v20134_v35 }
 0x46e   : > { %6724 = vmatprep.subr.bf16.mxu1 %v17074_v63  ;;  %6904 = vmatprep.subr.bf16.mxu0 %v17077_v48 }
 0x470   : > { %6725 = vmatpush1.bf16.msra.mxu1 %v17072_v29 }
 0x471   : > { %6905 = vmatpush1.bf16.msra.mxu0 %v17075_v43  ;;  %6745 = vmatprep.subr.bf16.mxu1 %v17080_v45  ;;  %v17133_v45 = vld [vmem:[%s23953_s4 + $0x538] ss:$20 sps:$4 sm:$0xff]  }
 0x472   : > { %6906 = vmatprep.subr.bf16.mxu0 %v17083_v44  ;;  %v17136_v44 = vld [vmem:[%s23953_s4 + $0x694] ss:$20 sps:$4 sm:$0xff]  }
 0x473   : > { %6727 = vmatmul.mubr.bf16.vlgmr.msra.gmra.mrb[36].mxu1 %v20059_v34 }
 0x474   : > { %6736 = vmatprep.mubr.bf16.mxu1 %v20085_v51  ;;  %6746 = vmatpush1.bf16.msra.mxu1 %v17078_v20  ;;  %v17134_v20 = vld [vmem:[%s23953_s4 + $0x690] ss:$20 sps:$4 sm:$0xff]  }
 0x475   : > { %6907 = vmatpush1.bf16.msra.mxu0 %v17081_v61  ;;  %6747 = vmatprep.subr.bf16.mxu1 %v17086_v7  ;;  %v17137_v61 = vld [vmem:[%s23953_s4 + $0x560] ss:$20 sps:$4 sm:$0xff]   ;;  %v17140_v7 = vld [vmem:[%s23953_s4 + $0x6bc] ss:$20 sps:$4 sm:$0xff]  }
 0x476   : > { %6908 = vmatprep.subr.bf16.mxu0 %v17089_v8  ;;  %v17138_v8 = vld [vmem:[%s23953_s4 + $0x6b8] ss:$20 sps:$4 sm:$0xff]  }
 0x478   : > { %6748 = vmatpush1.bf16.msra.mxu1 %v17084_v57  ;;  %v17141_v57 = vld [vmem:[%s23953_s4 + $0x588] ss:$20 sps:$4 sm:$0xff]  }
 0x479   : > { %6909 = vmatpush1.bf16.msra.mxu0 %v17087_v19  ;;  %6749 = vmatprep.subr.bf16.mxu1 %v17092_v36  ;;  %v17142_v19 = vld [vmem:[%s23953_s4 + $0x150] ss:$20 sps:$4 sm:$0xff]  }
 0x47a   : > { %6910 = vmatprep.subr.bf16.mxu0 %v17095_v4  ;;  %v17143_v36 = vld [vmem:[%s23953_s4 + $0x10] ss:$20 sps:$4 sm:$0xff]  }
 0x47b   : > { %6737 = vmatmul.mubr.bf16.gmra.mrb[72].mxu1 %v20200_v42  ;;  %v17144_v4 = vld [vmem:[%s23953_s4 + $0x5b0] ss:$20 sps:$4 sm:$0xff]  }
 0x47c   : > { %6750 = vmatpush1.bf16.msra.mxu1 %v17090_v12  ;;  %14437 = vmatprep.mubr.msk.bf16.mxu1 %vm5038_vm3, %v20134_v35  ;;  %v17145_v12 = vld [vmem:[%s23953_s4 + $0x178] ss:$20 sps:$4 sm:$0xff]  }
 0x47d   : > { %6911 = vmatpush1.bf16.msra.mxu0 %v17093_v55  ;;  %6751 = vmatprep.subr.bf16.mxu1 %v17098_v49  ;;  %v17146_v55 = vld [vmem:[%s23953_s4 + $0x38] ss:$20 sps:$4 sm:$0xff]  }
 0x47e   : > { %6912 = vmatprep.subr.bf16.mxu0 %v17101_v37  ;;  %v17147_v49 = vld [vmem:[%s23953_s4 + $0x5d8] ss:$20 sps:$4 sm:$0xff]   ;;  %v17148_v37 = vld [vmem:[%s23953_s4 + $0x1a0] ss:$20 sps:$4 sm:$0xff]  }
 0x480   : > { %6752 = vmatpush1.bf16.msra.mxu1 %v17096_v23 }
 0x481   : > { %6913 = vmatpush1.bf16.msra.mxu0 %v17099_v1  ;;  %6753 = vmatprep.subr.bf16.mxu1 %v17104_v56 }
 0x482   : > { %6914 = vmatprep.subr.bf16.mxu0 %v17107_v40 }
 0x484   : > { %6754 = vmatpush1.bf16.msra.mxu1 %v17102_v16  ;;  %v17149_v16 = vld [vmem:[%s23953_s4 + $0x60] ss:$20 sps:$4 sm:$0xff]  }
 0x485   : > { %6915 = vmatpush1.bf16.msra.mxu0 %v17105_v30  ;;  %6755 = vmatprep.subr.bf16.mxu1 %v17110_v46  ;;  %v17150_v46 = vld [vmem:[%s23953_s4 + $0x600] ss:$20 sps:$4 sm:$0xff]  }
 0x486   : > { %6916 = vmatprep.subr.bf16.mxu0 %v17113_v53  ;;  %v17151_v53 = vld [vmem:[%s23953_s4 + $0x1c8] ss:$20 sps:$4 sm:$0xff]  }
 0x488   : > { %6756 = vmatpush1.bf16.msra.mxu1 %v17108_v14 }
 0x489   : > { %6917 = vmatpush1.bf16.msra.mxu0 %v17111_v3  ;;  %6757 = vmatprep.subr.bf16.mxu1 %v17116_v54  ;;  %v17152_v3 = vld [vmem:[%s23953_s4 + $0x88] ss:$20 sps:$4 sm:$0xff]  }
 0x48a   : > { %6918 = vmatprep.subr.bf16.mxu0 %v17119_v52  ;;  %v17153_v54 = vld [vmem:[%s23953_s4 + $0x628] ss:$20 sps:$4 sm:$0xff]   ;;  %v17154_v52 = vld [vmem:[%s23953_s4 + $0x1f0] ss:$20 sps:$4 sm:$0xff]  }
 0x48c   : > { %6758 = vmatpush1.bf16.msra.mxu1 %v17114_v18 }
 0x48d   : > { %6919 = vmatpush1.bf16.msra.mxu0 %v17117_v5  ;;  %v5191_v60 = vpop.f32.mrb[48].mxu1  ;;  %6759 = vmatprep.subr.bf16.mxu1 %v17122_v38 }
 0x48e   : > { %v21129_v32 = vadd.f32 %v5191_v60, %v20963_v6  ;;  %v5344_v22 = vpop.f32.mrb[36].mxu0  ;;  %v5193_v27 = vpop.f32.mrb[49].mxu1  ;;  %6920 = vmatprep.subr.bf16.mxu0 %v17125_v39  ;;  %v17126_v6 = vld [vmem:[%s23953_s4 + $0x640] ss:$20 sps:$4 sm:$0xff]  }
 0x48f   : > { %v21132_v62 = vadd.f32 %v5344_v22, %v20966_v58  ;;  %v21135_v21 = vadd.f32 %v5193_v27, %v20972_v50  ;;  %v5346_v47 = vpop.f32.mrb[37].mxu0  ;;  %v5195_v15 = vpop.f32.mrb[50].mxu1  ;;  %v17129_v58 = vld [vmem:[%s23953_s4 + $0x510] ss:$20 sps:$4 sm:$0xff]   ;;  %v17132_v50 = vld [vmem:[%s23953_s4 + $0x66c] ss:$20 sps:$4 sm:$0xff]  }
 0x490   : > { %v21138_v63 = vadd.f32 %v5346_v47, %v20975_v24  ;;  %v5348_v48 = vpop.f32.mrb[38].mxu0  ;;  %6760 = vmatpush1.bf16.msra.mxu1 %v17120_v0  ;;  %v5196_v29 = vpop.f32.mrb[51].mxu1  ;;  %v17130_v24 = vld [vmem:[%s23953_s4 + $0x668] ss:$20 sps:$4 sm:$0xff]   ;;  %v17155_v0 = vld [vmem:[%s23953_s4 + $0xb0] ss:$20 sps:$4 sm:$0xff]  }
 0x491   : > { %6921 = vmatpush1.bf16.msra.mxu0 %v17123_v59  ;;  %v5349_v43 = vpop.f32.mrb[39].mxu0  ;;  %6761 = vmatprep.subr.bf16.mxu1 %v17128_v33  ;;  %v17156_v59 = vld [vmem:[%s23953_s4 + $0x650] ss:$20 sps:$4 sm:$0xff]   ;;  %v17157_v33 = vld [vmem:[%s23953_s4 + $0x218] ss:$20 sps:$4 sm:$0xff]  }
 0x492   : > { %7045 = vmatprep.subr.bf16.mxu0 %v23995_v13  ;;  %v17158_v22 = vld [vmem:[%s23953_s4 + $0xd8] ss:$20 sps:$4 sm:$0xff]   ;;  %v17160_v47 = vld [vmem:[%s23953_s4 + $0x240] ss:$20 sps:$4 sm:$0xff]  }
 0x493   : > { %v17159_v27 = vld [vmem:[%s23953_s4 + $0x678] ss:$20 sps:$4 sm:$0xff]   ;;  %v17161_v29 = vld [vmem:[%s23953_s4 + $0x100] ss:$20 sps:$4 sm:$0xff]  }
 0x494   : > { %6931 = vmatmul.mubr.bf16.vlgmr.msra.gmra.mrb[24].mxu0 %v20126_v28  ;;  %6762 = vmatpush1.bf16.msra.mxu1 %v17126_v6  ;;  %v17162_v43 = vld [vmem:[%s23953_s4 + $0x6a0] ss:$20 sps:$4 sm:$0xff]  }
 0x495   : > { %14440 = vmatprep.mubr.msk.bf16.mxu0 %vm5038_vm3, %v20229_v26  ;;  %7046 = vmatpush1.bf16.msra.mxu0 %v17129_v58  ;;  %v17163_v58 = vld [vmem:[%s23953_s4 + $0x268] ss:$20 sps:$4 sm:$0xff]  }
 0x496   : > { %6763 = vmatprep.subr.bf16.mxu1 %v17132_v50  ;;  %7047 = vmatprep.subr.bf16.mxu0 %v23995_v13 }
 0x498   : > { %6764 = vmatpush1.bf16.msra.mxu1 %v17130_v24  ;;  %v17164_v24 = vld [vmem:[%s23953_s4 + $0x128] ss:$20 sps:$4 sm:$0xff]  }
 0x499   : > { %7048 = vmatpush1.bf16.msra.mxu0 %v17133_v45  ;;  %6765 = vmatprep.subr.bf16.mxu1 %v17136_v44  ;;  %v17165_v45 = vld [vmem:[%s23953_s4 + $0x6c8] ss:$20 sps:$4 sm:$0xff]   ;;  %v17166_v44 = vld [vmem:[%s23953_s4 + $0x3d0] ss:$20 sps:$4 sm:$0xff]  }
 0x49a   : > { %7049 = vmatprep.subr.bf16.mxu0 %v23995_v13 }
 0x49c   : > { %6941 = vmatmul.mubr.bf16.gmra.mrb[56].mxu0 %v20379_v25  ;;  %6766 = vmatpush1.bf16.msra.mxu1 %v17134_v20  ;;  %v17169_v20 = vld [vmem:[%s23953_s4 + $0xdcc] ss:$20 sps:$4 sm:$0xff]  }
 0x49d   : > { %7050 = vmatpush1.bf16.msra.mxu0 %v17137_v61  ;;  %14441 = vmatprep.mubr.msk.bf16.mxu0 %vm5038_vm3, %v20134_v35 }
 0x49e   : > { %6767 = vmatprep.subr.bf16.mxu1 %v17140_v7  ;;  %7051 = vmatprep.subr.bf16.mxu0 %v23995_v13 }
 0x4a0   : > { %6768 = vmatpush1.bf16.msra.mxu1 %v17138_v8 }
 0x4a1   : > { %7052 = vmatpush1.bf16.msra.mxu0 %v17141_v57  ;;  %15753 = vmatprep.subr.bf16.mxu1 %v17142_v19  ;;  %v17170_v57 = vld [vmem:[%s23953_s4 + $0x290] ss:$20 sps:$4 sm:$0xff]  }
 0x4a2   : > { %7053 = vmatprep.subr.bf16.mxu0 %v23995_v13 }
 0x4a3   : > { %6778 = vmatmul.mubr.bf16.vlgmr.msra.gmra.mrb[36].mxu1 %v20126_v28 }
 0x4a4   : > { %14438 = vmatprep.mubr.msk.bf16.mxu1 %vm5038_vm3, %v20229_v26  ;;  %15754 = vmatpush3.bf16.msra.mxu1 %v17143_v36  ;;  %v17167_v36 = vld [vmem:[%s23953_s4 + $0xdc8] ss:$20 sps:$4 sm:$0xff]  }
 0x4a5   : > { %7054 = vmatpush1.bf16.msra.mxu0 %v17144_v4  ;;  %15755 = vmatprep.subr.bf16.mxu1 %v17145_v12  ;;  %v17171_v4 = vld [vmem:[%s23953_s4 + $0x3f8] ss:$20 sps:$4 sm:$0xff]   ;;  %v17174_v12 = vld [vmem:[%s23953_s4 + $0xdf4] ss:$20 sps:$4 sm:$0xff]  }
 0x4a6   : > { %v15713_v23 = vpop.f32.mrb[52].mxu1  ;;  %7055 = vmatprep.subr.bf16.mxu0 %v23995_v13 }
 0x4a7   : > { %v15714_v1 = vpop.f32.mrb[53].mxu1 }
 0x4a8   : > { %v21209_v56 = vadd.f32 %v15714_v1, %v15713_v23  ;;  %v15716_v40 = vpop.f32.mrb[54].mxu1  ;;  %15756 = vmatpush3.bf16.msra.mxu1 %v17146_v55  ;;  %v17175_v55 = vld [vmem:[%s23953_s4 + $0x2b8] ss:$20 sps:$4 sm:$0xff]   ;;  %v17176_v23 = vld [vmem:[%s23953_s4 + $0x420] ss:$20 sps:$4 sm:$0xff]  }
 0x4a9   : > { %7056 = vmatpush1.bf16.msra.mxu0 %v17147_v49  ;;  %v15717_v30 = vpop.f32.mrb[55].mxu1  ;;  %15757 = vmatprep.subr.bf16.mxu1 %v17148_v37  ;;  %v17172_v37 = vld [vmem:[%s23953_s4 + $0xdf0] ss:$20 sps:$4 sm:$0xff]  }
 0x4aa   : > { %v21220_v14 = vadd.f32 %v15717_v30, %v15716_v40  ;;  %7057 = vmatprep.subr.bf16.mxu0 %v23995_v13  ;;  %v17179_v40 = vld [vmem:[%s23953_s4 + $0xe1c] ss:$20 sps:$4 sm:$0xff]  }
 0x4ab   : > { %6788 = vmatmul.mubr.bf16.gmra.mrb[76].mxu1 %v20379_v25 }
 0x4ac   : > { %15758 = vmatpush3.bf16.msra.mxu1 %v17149_v16  ;;  %6981 = vmatprep.mubr.bf16.mxu1 %v19973_v2 }
 0x4ad   : > { %7058 = vmatpush1.bf16.msra.mxu0 %v17150_v46  ;;  %15759 = vmatprep.subr.bf16.mxu1 %v17151_v53  ;;  %v21316_v46 = vrot.slane %v19979_v9, 1 }
 0x4ae   : > { %v15719_v18 = vpop.f32.mrb[56].mxu1  ;;  %7059 = vmatprep.subr.bf16.mxu0 %v23995_v13 }
 0x4af   : > { %v15720_v5 = vpop.f32.mrb[57].mxu1 }
 0x4b0   : > { %v21235_v38 = vadd.f32 %v15720_v5, %v15719_v18  ;;  %v15722_v39 = vpop.f32.mrb[58].mxu1  ;;  %15760 = vmatpush3.bf16.msra.mxu1 %v17152_v3  ;;  %v17180_v3 = vld [vmem:[%s23953_s4 + $0x2e0] ss:$20 sps:$4 sm:$0xff]   ;;  %v17177_v18 = vld [vmem:[%s23953_s4 + $0xe18] ss:$20 sps:$4 sm:$0xff]   ;;  %v7373_v5 = vrot.slane %v19973_v2, 1 }
 0x4b1   : > { %7060 = vmatpush1.bf16.msra.mxu0 %v17153_v54  ;;  %v15723_v60 = vpop.f32.mrb[59].mxu1  ;;  %15761 = vmatprep.subr.bf16.mxu1 %v17154_v52 }
 0x4b2   : > { %7061 = vmatprep.subr.bf16.mxu0 %v23995_v13  ;;  %v21338_v2 = vsel %vm1651_vm2, %v7373_v5, %v21316_v46  ;;  %v17185_v60 = vld [vmem:[%s23953_s4 + $0x308] ss:$20 sps:$4 sm:$0xff]   ;;  %v17224_v5 = vld [vmem:[%s23953_s4 + $0xe38] ss:$20 sps:$4 sm:$0xff]  }
 0x4b4   : > { %15762 = vmatpush3.bf16.msra.mxu1 %v17155_v0 }
 0x4b5   : > { %7062 = vmatpush1.bf16.msra.mxu0 %v17156_v59  ;;  %15763 = vmatprep.subr.bf16.mxu1 %v17157_v33  ;;  %v17182_v59 = vld [vmem:[%s23953_s4 + $0xe40] ss:$20 sps:$4 sm:$0xff]   ;;  %v17186_v33 = vld [vmem:[%s23953_s4 + $0x470] ss:$20 sps:$4 sm:$0xff]  }
 0x4b6   : > { %7063 = vmatprep.subr.bf16.mxu0 %v23995_v13 }
 0x4b7   : > { %v21257_v15 = vpop.f32.mrb[40].mxu0 }
 0x4b8   : > { %v5483_v48 = vpop.f32.mrb[41].mxu0  ;;  %15764 = vmatpush3.bf16.msra.mxu1 %v17158_v22 }
 0x4b9   : > { %v21262_v6 = vpop.f32.mrb[42].mxu0  ;;  %7064 = vmatpush1.bf16.msra.mxu0 %v17159_v27  ;;  %15765 = vmatprep.subr.bf16.mxu1 %v17160_v47  ;;  %v17189_v47 = vld [vmem:[%s23953_s4 + $0xe6c] ss:$20 sps:$4 sm:$0xff]  }
 0x4ba   : > { %v5486_v50 = vpop.f32.mrb[43].mxu0  ;;  %7065 = vmatprep.subr.bf16.mxu0 %v23995_v13 }
 0x4bb   : > { %v17191_v50 = vld [vmem:[%s23953_s4 + $0x498] ss:$20 sps:$4 sm:$0xff]  }
 0x4bc   : > { %15766 = vmatpush3.bf16.msra.mxu1 %v17161_v29 }
 0x4bd   : > { %7066 = vmatpush1.bf16.msra.mxu0 %v17162_v43  ;;  %15767 = vmatprep.subr.bf16.mxu1 %v17163_v58  ;;  %v17190_v43 = vld [vmem:[%s23953_s4 + $0x330] ss:$20 sps:$4 sm:$0xff]  }
 0x4be   : > { %7067 = vmatprep.subr.bf16.mxu0 %v23995_v13 }
 0x4bf   : > { %v21284_v61 = vpop.f32.mrb[44].mxu0 }
 0x4c0   : > { %v5491_v7 = vpop.f32.mrb[45].mxu0  ;;  %15768 = vmatpush3.bf16.msra.mxu1 %v17164_v24  ;;  %v17194_v24 = vld [vmem:[%s23953_s4 + $0xe94] ss:$20 sps:$4 sm:$0xff]  }
 0x4c1   : > { %v5492_v8 = vpop.f32.mrb[46].mxu0  ;;  %7068 = vmatpush1.bf16.msra.mxu0 %v17165_v45  ;;  %15781 = vmatprep.subr.bf16.mxu1 %v17166_v44  ;;  %v17192_v44 = vld [vmem:[%s23953_s4 + $0xe90] ss:$20 sps:$4 sm:$0xff]   ;;  %v17200_v7 = vld [vmem:[%s23953_s4 + $0x380] ss:$20 sps:$4 sm:$0xff]  }
 0x4c2   : > { %v5493_v19 = vpop.f32.mrb[47].mxu0  ;;  %8701 = vmatprep.subr.bf16.mxu0 %v17169_v20  ;;  %v17196_v20 = vld [vmem:[%s23953_s4 + $0x4c0] ss:$20 sps:$4 sm:$0xff]   ;;  %v17197_v8 = vld [vmem:[%s23953_s4 + $0xeb8] ss:$20 sps:$4 sm:$0xff]  }
 0x4c3   : > { %6982 = vmatmul.mubr.bf16.vlgmr.msra.gmra.mrb[80].mxu1 %v19971_v17  ;;  %v17204_v19 = vld [vmem:[%s23953_s4 + $0xee4] ss:$20 sps:$4 sm:$0xff]  }
 0x4c4   : > { %7078 = vmatmul.mubr.bf16.vlgmr.msra.gmra.mrb[60].mxu0 %v20126_v28  ;;  %6989 = vmatprep.mubr.bf16.mxu1 %v19979_v9  ;;  %v17181_v9 = vld [vmem:[%s23953_s4 + $0x448] ss:$20 sps:$4 sm:$0xff]  }
 0x4c5   : > { %15782 = vmatpush3.bf16.msra.mxu1 %v17170_v57  ;;  %14442 = vmatprep.mubr.msk.bf16.mxu0 %vm5038_vm3, %v20229_v26  ;;  %v17201_v57 = vld [vmem:[%s23953_s4 + $0x4e8] ss:$20 sps:$4 sm:$0xff]  }
 0x4c6   : > { %8702 = vmatpush1.bf16.msra.mxu0 %v17167_v36  ;;  %v15741_v49 = vpop.f32.mrb[60].mxu1  ;;  %15783 = vmatprep.subr.bf16.mxu1 %v17171_v4  ;;  %v17205_v36 = vld [vmem:[%s23953_s4 + $0x3a8] ss:$20 sps:$4 sm:$0xff]   ;;  %v17202_v4 = vld [vmem:[%s23953_s4 + $0xee0] ss:$20 sps:$4 sm:$0xff]  }
 0x4c7   : > { %v15742_v1 = vpop.f32.mrb[61].mxu1  ;;  %8703 = vmatprep.subr.bf16.mxu0 %v17174_v12  ;;  %v17208_v12 = vld [vmem:[%s23953_s4 + $0xdc4] ss:$20 sps:$4 sm:$0xff]  }
 0x4c8   : > { %v15743_v16 = vadd.f32 %v15742_v1, %v15741_v49  ;;  %v15744_v30 = vpop.f32.mrb[62].mxu1  ;;  %v17206_v49 = vld [vmem:[%s23953_s4 + $0xdc0] ss:$20 sps:$4 sm:$0xff]  }
 0x4c9   : > { %15784 = vmatpush3.bf16.msra.mxu1 %v17175_v55  ;;  %v15745_v53 = vpop.f32.mrb[63].mxu1  ;;  %v17211_v55 = vld [vmem:[%s23953_s4 + $0xf0c] ss:$20 sps:$4 sm:$0xff]   ;;  %v17217_v1 = vld [vmem:[%s23953_s4 + $0xf34] ss:$20 sps:$4 sm:$0xff]  }
 0x4ca   : > { %v5434_v54 = vadd.f32 %v15743_v16, %v21209_v56  ;;  %8704 = vmatpush1.bf16.msra.mxu0 %v17172_v37  ;;  %v15746_v52 = vadd.f32 %v15745_v53, %v15744_v30  ;;  %15785 = vmatprep.subr.bf16.mxu1 %v17176_v23  ;;  %v17184_v56 = vld [vmem:[%s23953_s4 + $0xe44] ss:$20 sps:$4 sm:$0xff]   ;;  %v17209_v37 = vld [vmem:[%s23953_s4 + $0xf08] ss:$20 sps:$4 sm:$0xff]   ;;  %v17214_v23 = vld [vmem:[%s23953_s4 + $0xdec] ss:$20 sps:$4 sm:$0xff]  }
 0x4cb   : > { %6990 = vmatmul.mubr.bf16.gmra.mrb[84].mxu1 %v19977_v10  ;;  %8705 = vmatprep.subr.bf16.mxu0 %v17179_v40  ;;  %v17212_v40 = vld [vmem:[%s23953_s4 + $0xde8] ss:$20 sps:$4 sm:$0xff]   ;;  %v17215_v16 = vld [vmem:[%s23953_s4 + $0xf30] ss:$20 sps:$4 sm:$0xff]  }
 0x4cc   : > { %v5437_v39 = vadd.f32 %v15746_v52, %v21220_v14  ;;  %7086 = vmatmul.mubr.bf16.gmra.mrb[64].mxu0 %v20379_v25  ;;  %7029 = vmatprep.mubr.bf16.mxu1 %v20067_v11  ;;  %v21341_v0 = vadd.f32 %v21257_v15, %v5434_v54  ;;  %v17220_v30 = vld [vmem:[%s23953_s4 + $0xe14] ss:$20 sps:$4 sm:$0xff]   ;;  %v17223_v53 = vld [vmem:[%s23953_s4 + $0xf5c] ss:$20 sps:$4 sm:$0xff]   ;;  %v17221_v54 = vld [vmem:[%s23953_s4 + $0xf58] ss:$20 sps:$4 sm:$0xff]  }
 0x4cd   : > { %15786 = vmatpush3.bf16.msra.mxu1 %v17180_v3  ;;  %8733 = vmatprep.mubr.bf16.mxu0 %v21338_v2  ;;  %v17218_v3 = vld [vmem:[%s23953_s4 + $0xe10] ss:$20 sps:$4 sm:$0xff]  }
 0x4ce   : > { %8706 = vmatpush1.bf16.msra.mxu0 %v17177_v18  ;;  %v15747_v14 = vpop.f32.mrb[64].mxu1  ;;  %15787 = vmatprep.subr.bf16.mxu1 %v17181_v9  ;;  %v21354_v22 = vadd.f32 %v21262_v6, %v5437_v39  ;;  %v17187_v6 = vld [vmem:[%s23953_s4 + $0xe68] ss:$20 sps:$4 sm:$0xff]   ;;  %v17229_v18 = vld [vmem:[%s23953_s4 + $0xf84] ss:$20 sps:$4 sm:$0xff]  }
 0x4cf   : > { %v15748_v27 = vpop.f32.mrb[65].mxu1  ;;  %8707 = vmatprep.subr.bf16.mxu0 %v17184_v56  ;;  %v17226_v52 = vld [vmem:[%s23953_s4 + $0xe3c] ss:$20 sps:$4 sm:$0xff]   ;;  %v17227_v9 = vld [vmem:[%s23953_s4 + $0xf80] ss:$20 sps:$4 sm:$0xff]  }
 0x4d0   : > { %v15749_v15 = vadd.f32 %v15748_v27, %v15747_v14  ;;  %v15750_v48 = vpop.f32.mrb[66].mxu1  ;;  %v17232_v56 = vld [vmem:[%s23953_s4 + $0xe64] ss:$20 sps:$4 sm:$0xff]   ;;  %v17235_v39 = vld [vmem:[%s23953_s4 + $0xfac] ss:$20 sps:$4 sm:$0xff]  }
 0x4d1   : > { %15788 = vmatpush3.bf16.msra.mxu1 %v17185_v60  ;;  %v15751_v29 = vpop.f32.mrb[67].mxu1  ;;  %v17230_v60 = vld [vmem:[%s23953_s4 + $0xe60] ss:$20 sps:$4 sm:$0xff]   ;;  %v17233_v14 = vld [vmem:[%s23953_s4 + $0xfa8] ss:$20 sps:$4 sm:$0xff]  }
 0x4d2   : > { %v5442_v58 = vadd.f32 %v15749_v15, %v21235_v38  ;;  %8708 = vmatpush1.bf16.msra.mxu0 %v17182_v59  ;;  %15789 = vmatprep.subr.bf16.mxu1 %v17186_v33  ;;  %v17195_v38 = vld [vmem:[%s23953_s4 + $0x358] ss:$20 sps:$4 sm:$0xff]   ;;  %v17241_v33 = vld [vmem:[%s23953_s4 + $0xfd4] ss:$20 sps:$4 sm:$0xff]   ;;  %v17247_v48 = vld [vmem:[%s23953_s4 + $0xffc] ss:$20 sps:$4 sm:$0xff]  }
 0x4d3   : > { %8709 = vmatprep.subr.bf16.mxu0 %v17189_v47  ;;  %v17238_v59 = vld [vmem:[%s23953_s4 + $0xe8c] ss:$20 sps:$4 sm:$0xff]   ;;  %v17236_v27 = vld [vmem:[%s23953_s4 + $0xe88] ss:$20 sps:$4 sm:$0xff]   ;;  %v17239_v47 = vld [vmem:[%s23953_s4 + $0xfd0] ss:$20 sps:$4 sm:$0xff]  }
 0x4d4   : > { %v21373_v45 = vadd.f32 %v21284_v61, %v5442_v58  ;;  %v17199_v61 = vld [vmem:[%s23953_s4 + $0xebc] ss:$20 sps:$4 sm:$0xff]   ;;  %v17244_v15 = vld [vmem:[%s23953_s4 + $0xeb4] ss:$20 sps:$4 sm:$0xff]  }
 0x4d5   : > { %15790 = vmatpush3.bf16.msra.mxu1 %v17190_v43  ;;  %v17242_v29 = vld [vmem:[%s23953_s4 + $0xeb0] ss:$20 sps:$4 sm:$0xff]   ;;  %v17245_v43 = vld [vmem:[%s23953_s4 + $0xff8] ss:$20 sps:$4 sm:$0xff]  }
 0x4d6   : > { %8710 = vmatpush1.bf16.msra.mxu0 %v17187_v6  ;;  %15791 = vmatprep.subr.bf16.mxu1 %v17191_v50  ;;  %v17250_v58 = vld [vmem:[%s23953_s4 + $0xedc] ss:$20 sps:$4 sm:$0xff]   ;;  %v17253_v6 = vld [vmem:[%s23953_s4 + $0x1024] ss:$20 sps:$4 sm:$0xff]  }
 0x4d7   : > { %8711 = vmatprep.subr.bf16.mxu0 %v17194_v24  ;;  %v17248_v50 = vld [vmem:[%s23953_s4 + $0xed8] ss:$20 sps:$4 sm:$0xff]   ;;  %v17251_v24 = vld [vmem:[%s23953_s4 + $0x1020] ss:$20 sps:$4 sm:$0xff]  }
 0x4d9   : > { %15792 = vmatpush3.bf16.msra.mxu1 %v17195_v38  ;;  %v17256_v38 = vld [vmem:[%s23953_s4 + $0xf04] ss:$20 sps:$4 sm:$0xff]  }
 0x4da   : > { %8712 = vmatpush1.bf16.msra.mxu0 %v17192_v44  ;;  %15793 = vmatprep.subr.bf16.mxu1 %v17196_v20  ;;  %v17259_v20 = vld [vmem:[%s23953_s4 + $0x104c] ss:$20 sps:$4 sm:$0xff]  }
 0x4db   : > { %8713 = vmatprep.subr.bf16.mxu0 %v17199_v61 }
 0x4dd   : > { %15794 = vmatpush3.bf16.msra.mxu1 %v17200_v7 }
 0x4de   : > { %8714 = vmatpush1.bf16.msra.mxu0 %v17197_v8  ;;  %15795 = vmatprep.subr.bf16.mxu1 %v17201_v57  ;;  %v21515_v8 = vrot.slane %v19977_v10, 1  ;;  %v17262_v10 = vld [vmem:[%s23953_s4 + $0xf2c] ss:$20 sps:$4 sm:$0xff]  }
 0x4df   : > { %8715 = vmatprep.subr.bf16.mxu0 %v17204_v19 }
 0x4e1   : > { %15796 = vmatpush3.bf16.msra.mxu1 %v17205_v36  ;;  %v17254_v36 = vld [vmem:[%s23953_s4 + $0xf00] ss:$20 sps:$4 sm:$0xff]  }
 0x4e2   : > { %8716 = vmatpush1.bf16.msra.mxu0 %v17202_v4  ;;  %8548 = vmatprep.subr.bf16.mxu1 %v17208_v12  ;;  %v7370_v12 = vrot.slane %v19971_v17, 1  ;;  %v17260_v17 = vld [vmem:[%s23953_s4 + $0xf28] ss:$20 sps:$4 sm:$0xff]  }
 0x4e3   : > { %8717 = vmatprep.subr.bf16.mxu0 %v17211_v55 }
 0x4e4   : > { %7030 = vmatmul.mubr.bf16.vlgmr.msra.gmra.mrb[88].mxu1 %v20059_v34  ;;  %v21535_v55 = vsel %vm1651_vm2, %v7370_v12, %v21515_v8  ;;  %v17311_v12 = vld [vmem:[%s23953_s4 + $0x11b0] ss:$20 sps:$4 sm:$0xff]  }
 0x4e5   : > { %7037 = vmatprep.mubr.bf16.mxu1 %v20085_v51  ;;  %8549 = vmatpush1.bf16.msra.mxu1 %v17206_v49  ;;  %v17263_v49 = vld [vmem:[%s23953_s4 + $0x1070] ss:$20 sps:$4 sm:$0xff]  }
 0x4e6   : > { %8718 = vmatpush1.bf16.msra.mxu0 %v17209_v37  ;;  %8550 = vmatprep.subr.bf16.mxu1 %v17214_v23  ;;  %v17268_v37 = vld [vmem:[%s23953_s4 + $0xf54] ss:$20 sps:$4 sm:$0xff]   ;;  %v17271_v23 = vld [vmem:[%s23953_s4 + $0x109c] ss:$20 sps:$4 sm:$0xff]  }
 0x4e7   : > { %8719 = vmatprep.subr.bf16.mxu0 %v17217_v1  ;;  %v17266_v1 = vld [vmem:[%s23953_s4 + $0xf50] ss:$20 sps:$4 sm:$0xff]  }
 0x4e9   : > { %8551 = vmatpush1.bf16.msra.mxu1 %v17212_v40  ;;  %v7379_v40 = vrot.slane %v20067_v11, 1 }
 0x4ea   : > { %8720 = vmatpush1.bf16.msra.mxu0 %v17215_v16  ;;  %8552 = vmatprep.subr.bf16.mxu1 %v17220_v30  ;;  %v21556_v16 = vrot.slane %v20085_v51, 1  ;;  %v17269_v30 = vld [vmem:[%s23953_s4 + $0x1098] ss:$20 sps:$4 sm:$0xff]  }
 0x4eb   : > { %8721 = vmatprep.subr.bf16.mxu0 %v17223_v53  ;;  %v17274_v53 = vld [vmem:[%s23953_s4 + $0xf7c] ss:$20 sps:$4 sm:$0xff]   ;;  %v17272_v51 = vld [vmem:[%s23953_s4 + $0xf78] ss:$20 sps:$4 sm:$0xff]  }
 0x4ec   : > { %7038 = vmatmul.mubr.bf16.gmra.mrb[92].mxu1 %v20200_v42  ;;  %v21570_v11 = vsel %vm1651_vm2, %v7379_v40, %v21556_v16  ;;  %v17328_v40 = vld [vmem:[%s23953_s4 + $0x10e4] ss:$20 sps:$4 sm:$0xff]  }
 0x4ed   : > { %8553 = vmatpush1.bf16.msra.mxu1 %v17218_v3  ;;  %8580 = vmatprep.mubr.bf16.mxu1 %v21338_v2  ;;  %v17277_v3 = vld [vmem:[%s23953_s4 + $0x10c4] ss:$20 sps:$4 sm:$0xff]  }
 0x4ee   : > { %8722 = vmatpush1.bf16.msra.mxu0 %v17221_v54  ;;  %8554 = vmatprep.subr.bf16.mxu1 %v17226_v52  ;;  %v17275_v52 = vld [vmem:[%s23953_s4 + $0x10c0] ss:$20 sps:$4 sm:$0xff]  }
 0x4ef   : > { %8723 = vmatprep.subr.bf16.mxu0 %v17229_v18  ;;  %v17280_v18 = vld [vmem:[%s23953_s4 + $0xfa4] ss:$20 sps:$4 sm:$0xff]  }
 0x4f1   : > { %8555 = vmatpush1.bf16.msra.mxu1 %v17224_v5 }
 0x4f2   : > { %8724 = vmatpush1.bf16.msra.mxu0 %v17227_v9  ;;  %8556 = vmatprep.subr.bf16.mxu1 %v17232_v56  ;;  %v17283_v56 = vld [vmem:[%s23953_s4 + $0x10ec] ss:$20 sps:$4 sm:$0xff]  }
 0x4f3   : > { %8725 = vmatprep.subr.bf16.mxu0 %v17235_v39 }
 0x4f5   : > { %8557 = vmatpush1.bf16.msra.mxu1 %v17230_v60 }
 0x4f6   : > { %8726 = vmatpush1.bf16.msra.mxu0 %v17233_v14  ;;  %8558 = vmatprep.subr.bf16.mxu1 %v17238_v59  ;;  %v17278_v59 = vld [vmem:[%s23953_s4 + $0xfa0] ss:$20 sps:$4 sm:$0xff]  }
 0x4f7   : > { %8727 = vmatprep.subr.bf16.mxu0 %v17241_v33  ;;  %v17286_v33 = vld [vmem:[%s23953_s4 + $0xfcc] ss:$20 sps:$4 sm:$0xff]  }
 0x4f9   : > { %8559 = vmatpush1.bf16.msra.mxu1 %v17236_v27  ;;  %v17284_v27 = vld [vmem:[%s23953_s4 + $0xfc8] ss:$20 sps:$4 sm:$0xff]  }
 0x4fa   : > { %8728 = vmatpush1.bf16.msra.mxu0 %v17239_v47  ;;  %8560 = vmatprep.subr.bf16.mxu1 %v17244_v15  ;;  %v17287_v47 = vld [vmem:[%s23953_s4 + $0x1110] ss:$20 sps:$4 sm:$0xff]   ;;  %v17292_v15 = vld [vmem:[%s23953_s4 + $0xff4] ss:$20 sps:$4 sm:$0xff]  }
 0x4fb   : > { %8729 = vmatprep.subr.bf16.mxu0 %v17247_v48  ;;  %v17295_v48 = vld [vmem:[%s23953_s4 + $0x113c] ss:$20 sps:$4 sm:$0xff]  }
 0x4fd   : > { %8561 = vmatpush1.bf16.msra.mxu1 %v17242_v29  ;;  %v17290_v29 = vld [vmem:[%s23953_s4 + $0xff0] ss:$20 sps:$4 sm:$0xff]  }
 0x4fe   : > { %8730 = vmatpush1.bf16.msra.mxu0 %v17245_v43  ;;  %8562 = vmatprep.subr.bf16.mxu1 %v17250_v58  ;;  %v17293_v43 = vld [vmem:[%s23953_s4 + $0x1138] ss:$20 sps:$4 sm:$0xff]   ;;  %v17298_v58 = vld [vmem:[%s23953_s4 + $0x101c] ss:$20 sps:$4 sm:$0xff]  }
 0x4ff   : > { %v6840_v44 = vpop.f32.mrb[48].mxu0  ;;  %8731 = vmatprep.subr.bf16.mxu0 %v17253_v6  ;;  %v17301_v6 = vld [vmem:[%s23953_s4 + $0x1164] ss:$20 sps:$4 sm:$0xff]  }
 0x500   : > { %v21512_v61 = vadd.f32 %v6840_v44, %v21132_v62  ;;  %v6842_v7 = vpop.f32.mrb[49].mxu0  ;;  %v17257_v62 = vld [vmem:[%s23953_s4 + $0x1048] ss:$20 sps:$4 sm:$0xff]   ;;  %v17307_v44 = vld [vmem:[%s23953_s4 + $0x118c] ss:$20 sps:$4 sm:$0xff]  }
 0x501   : > { %v21518_v57 = vadd.f32 %v6842_v7, %v21138_v63  ;;  %v6844_v19 = vpop.f32.mrb[50].mxu0  ;;  %8563 = vmatpush1.bf16.msra.mxu1 %v17248_v50  ;;  %v17265_v63 = vld [vmem:[%s23953_s4 + $0x1074] ss:$20 sps:$4 sm:$0xff]   ;;  %v17296_v50 = vld [vmem:[%s23953_s4 + $0x1018] ss:$20 sps:$4 sm:$0xff]  }
 0x502   : > { %8732 = vmatpush1.bf16.msra.mxu0 %v17251_v24  ;;  %v6845_v4 = vpop.f32.mrb[51].mxu0  ;;  %8564 = vmatprep.subr.bf16.mxu1 %v17256_v38  ;;  %v17299_v24 = vld [vmem:[%s23953_s4 + $0x1160] ss:$20 sps:$4 sm:$0xff]   ;;  %v17304_v38 = vld [vmem:[%s23953_s4 + $0x1044] ss:$20 sps:$4 sm:$0xff]  }
 0x503   : > { %8752 = vmatprep.subr.bf16.mxu0 %v17259_v20  ;;  %v17302_v20 = vld [vmem:[%s23953_s4 + $0x1040] ss:$20 sps:$4 sm:$0xff]   ;;  %v17305_v7 = vld [vmem:[%s23953_s4 + $0x1188] ss:$20 sps:$4 sm:$0xff]  }
 0x504   : > { %v17310_v19 = vld [vmem:[%s23953_s4 + $0x106c] ss:$20 sps:$4 sm:$0xff]   ;;  %v17308_v4 = vld [vmem:[%s23953_s4 + $0x1068] ss:$20 sps:$4 sm:$0xff]  }
 0x505   : > { %8734 = vmatmul.mubr.bf16.vlgmr.msra.gmra.mrb[24].mxu0 %v21535_v55  ;;  %8565 = vmatpush1.bf16.msra.mxu1 %v17254_v36  ;;  %v17313_v36 = vld [vmem:[%s23953_s4 + $0x11b4] ss:$20 sps:$4 sm:$0xff]  }
 0x506   : > { %8743 = vmatprep.mubr.bf16.mxu0 %v21316_v46  ;;  %8753 = vmatpush1.bf16.msra.mxu0 %v17257_v62  ;;  %v17316_v62 = vld [vmem:[%s23953_s4 + $0x1094] ss:$20 sps:$4 sm:$0xff]  }
 0x507   : > { %8566 = vmatprep.subr.bf16.mxu1 %v17262_v10  ;;  %8754 = vmatprep.subr.bf16.mxu0 %v17265_v63  ;;  %v17319_v10 = vld [vmem:[%s23953_s4 + $0x11dc] ss:$20 sps:$4 sm:$0xff]  }
 0x508   : > { %v17314_v63 = vld [vmem:[%s23953_s4 + $0x1090] ss:$20 sps:$4 sm:$0xff]  }
 0x509   : > { %8567 = vmatpush1.bf16.msra.mxu1 %v17260_v17  ;;  %v17317_v17 = vld [vmem:[%s23953_s4 + $0x11d8] ss:$20 sps:$4 sm:$0xff]  }
 0x50a   : > { %8755 = vmatpush1.bf16.msra.mxu0 %v17263_v49  ;;  %8568 = vmatprep.subr.bf16.mxu1 %v17268_v37  ;;  %v17322_v49 = vld [vmem:[%s23953_s4 + $0x10bc] ss:$20 sps:$4 sm:$0xff]   ;;  %v17325_v37 = vld [vmem:[%s23953_s4 + $0x1204] ss:$20 sps:$4 sm:$0xff]  }
 0x50b   : > { %8756 = vmatprep.subr.bf16.mxu0 %v17271_v23  ;;  %v17320_v23 = vld [vmem:[%s23953_s4 + $0x10b8] ss:$20 sps:$4 sm:$0xff]  }
 0x50d   : > { %8744 = vmatmul.mubr.bf16.gmra.mrb[68].mxu0 %v21515_v8  ;;  %8569 = vmatpush1.bf16.msra.mxu1 %v17266_v1  ;;  %v17323_v1 = vld [vmem:[%s23953_s4 + $0x1200] ss:$20 sps:$4 sm:$0xff]  }
 0x50e   : > { %8757 = vmatpush1.bf16.msra.mxu0 %v17269_v30  ;;  %8784 = vmatprep.mubr.bf16.mxu0 %v21570_v11  ;;  %v6687_v54 = vpop.f32.mrb[68].mxu1  ;;  %v17331_v30 = vld [vmem:[%s23953_s4 + $0x122c] ss:$20 sps:$4 sm:$0xff]  }
 0x50f   : > { %v21583_v5 = vadd.f32 %v6687_v54, %v21129_v32  ;;  %v6689_v9 = vpop.f32.mrb[69].mxu1  ;;  %8570 = vmatprep.subr.bf16.mxu1 %v17274_v53  ;;  %8758 = vmatprep.subr.bf16.mxu0 %v17277_v3  ;;  %v17281_v32 = vld [vmem:[%s23953_s4 + $0x10e8] ss:$20 sps:$4 sm:$0xff]   ;;  %v17326_v53 = vld [vmem:[%s23953_s4 + $0x10e0] ss:$20 sps:$4 sm:$0xff]  }
 0x510   : > { %v21589_v39 = vadd.f32 %v6689_v9, %v21135_v21  ;;  %v6691_v60 = vpop.f32.mrb[70].mxu1  ;;  %v17289_v21 = vld [vmem:[%s23953_s4 + $0x1114] ss:$20 sps:$4 sm:$0xff]  }
 0x511   : > { %8571 = vmatpush1.bf16.msra.mxu1 %v17272_v51  ;;  %v6692_v14 = vpop.f32.mrb[71].mxu1  ;;  %v17329_v3 = vld [vmem:[%s23953_s4 + $0x1228] ss:$20 sps:$4 sm:$0xff]   ;;  %v17334_v51 = vld [vmem:[%s23953_s4 + $0x110c] ss:$20 sps:$4 sm:$0xff]  }
 0x512   : > { %8759 = vmatpush1.bf16.msra.mxu0 %v17275_v52  ;;  %8572 = vmatprep.subr.bf16.mxu1 %v17280_v18  ;;  %v17337_v54 = vld [vmem:[%s23953_s4 + $0x1254] ss:$20 sps:$4 sm:$0xff]   ;;  %v17335_v18 = vld [vmem:[%s23953_s4 + $0x1250] ss:$20 sps:$4 sm:$0xff]   ;;  %v17341_v14 = vld [vmem:[%s23953_s4 + $0x1278] ss:$20 sps:$4 sm:$0xff]  }
 0x513   : > { %8760 = vmatprep.subr.bf16.mxu0 %v17283_v56  ;;  %v17332_v52 = vld [vmem:[%s23953_s4 + $0x1108] ss:$20 sps:$4 sm:$0xff]   ;;  %v17338_v60 = vld [vmem:[%s23953_s4 + $0x1130] ss:$20 sps:$4 sm:$0xff]  }
 0x514   : > { %v17340_v9 = vld [vmem:[%s23953_s4 + $0x1134] ss:$20 sps:$4 sm:$0xff]   ;;  %v17343_v56 = vld [vmem:[%s23953_s4 + $0x127c] ss:$20 sps:$4 sm:$0xff]  }
 0x515   : > { %8573 = vmatpush1.bf16.msra.mxu1 %v17278_v59  ;;  %v17346_v59 = vld [vmem:[%s23953_s4 + $0x115c] ss:$20 sps:$4 sm:$0xff]  }
 0x516   : > { %8761 = vmatpush1.bf16.msra.mxu0 %v17281_v32  ;;  %8574 = vmatprep.subr.bf16.mxu1 %v17286_v33  ;;  %v17349_v32 = vld [vmem:[%s23953_s4 + $0x12a4] ss:$20 sps:$4 sm:$0xff]  }
 0x517   : > { %8762 = vmatprep.subr.bf16.mxu0 %v17289_v21  ;;  %v17344_v33 = vld [vmem:[%s23953_s4 + $0x1158] ss:$20 sps:$4 sm:$0xff]   ;;  %v17347_v21 = vld [vmem:[%s23953_s4 + $0x12a0] ss:$20 sps:$4 sm:$0xff]  }
 0x519   : > { %8575 = vmatpush1.bf16.msra.mxu1 %v17284_v27  ;;  %v17352_v27 = vld [vmem:[%s23953_s4 + $0x1184] ss:$20 sps:$4 sm:$0xff]  }
 0x51a   : > { %8763 = vmatpush1.bf16.msra.mxu0 %v17287_v47  ;;  %8576 = vmatprep.subr.bf16.mxu1 %v17292_v15  ;;  %v17355_v15 = vld [vmem:[%s23953_s4 + $0x12cc] ss:$20 sps:$4 sm:$0xff]  }
 0x51b   : > { %8764 = vmatprep.subr.bf16.mxu0 %v17295_v48 }
 0x51d   : > { %8577 = vmatpush1.bf16.msra.mxu1 %v17290_v29 }
 0x51e   : > { %8765 = vmatpush1.bf16.msra.mxu0 %v17293_v43  ;;  %8578 = vmatprep.subr.bf16.mxu1 %v17298_v58  ;;  %v7376_v43 = vrot.slane %v20059_v34, 1  ;;  %v21744_v58 = vrot.slane %v20200_v42, 1  ;;  %v17358_v34 = vld [vmem:[%s23953_s4 + $0x11ac] ss:$20 sps:$4 sm:$0xff]   ;;  %v17361_v42 = vld [vmem:[%s23953_s4 + $0x12f4] ss:$20 sps:$4 sm:$0xff]  }
 0x51f   : > { %8766 = vmatprep.subr.bf16.mxu0 %v17301_v6 }
 0x521   : > { %8579 = vmatpush1.bf16.msra.mxu1 %v17296_v50 }
 0x522   : > { %8767 = vmatpush1.bf16.msra.mxu0 %v17299_v24  ;;  %8599 = vmatprep.subr.bf16.mxu1 %v17304_v38  ;;  %v17350_v24 = vld [vmem:[%s23953_s4 + $0x1180] ss:$20 sps:$4 sm:$0xff]  }
 0x523   : > { %8768 = vmatprep.subr.bf16.mxu0 %v17307_v44  ;;  %v17356_v44 = vld [vmem:[%s23953_s4 + $0x11a8] ss:$20 sps:$4 sm:$0xff]  }
 0x524   : > { %8581 = vmatmul.mubr.bf16.vlgmr.msra.gmra.mrb[36].mxu1 %v21535_v55 }
 0x525   : > { %8590 = vmatprep.mubr.bf16.mxu1 %v21316_v46  ;;  %8600 = vmatpush1.bf16.msra.mxu1 %v17302_v20  ;;  %v17359_v20 = vld [vmem:[%s23953_s4 + $0x12f0] ss:$20 sps:$4 sm:$0xff]  }
 0x526   : > { %8769 = vmatpush1.bf16.msra.mxu0 %v17305_v7  ;;  %8601 = vmatprep.subr.bf16.mxu1 %v17310_v19  ;;  %v17364_v7 = vld [vmem:[%s23953_s4 + $0x11d4] ss:$20 sps:$4 sm:$0xff]   ;;  %v17367_v19 = vld [vmem:[%s23953_s4 + $0x131c] ss:$20 sps:$4 sm:$0xff]  }
 0x527   : > { %8770 = vmatprep.subr.bf16.mxu0 %v17313_v36  ;;  %v17362_v36 = vld [vmem:[%s23953_s4 + $0x11d0] ss:$20 sps:$4 sm:$0xff]  }
 0x529   : > { %8602 = vmatpush1.bf16.msra.mxu1 %v17308_v4  ;;  %v7385_v4 = vrot.slane %v20134_v35, 1 }
 0x52a   : > { %8771 = vmatpush1.bf16.msra.mxu0 %v17311_v12  ;;  %8603 = vmatprep.subr.bf16.mxu1 %v17316_v62  ;;  %v21784_v12 = vrot.slane %v20229_v26, 1  ;;  %v17365_v62 = vld [vmem:[%s23953_s4 + $0x1318] ss:$20 sps:$4 sm:$0xff]  }
 0x52b   : > { %8772 = vmatprep.subr.bf16.mxu0 %v17319_v10  ;;  %v17370_v10 = vld [vmem:[%s23953_s4 + $0x11fc] ss:$20 sps:$4 sm:$0xff]   ;;  %v17368_v26 = vld [vmem:[%s23953_s4 + $0x11f8] ss:$20 sps:$4 sm:$0xff]  }
 0x52c   : > { %8591 = vmatmul.mubr.bf16.gmra.mrb[96].mxu1 %v21515_v8  ;;  %v21798_v35 = vsel %vm1651_vm2, %v7385_v4, %v21784_v12  ;;  %v17424_v4 = vld [vmem:[%s23953_s4 + $0x1364] ss:$20 sps:$4 sm:$0xff]  }
 0x52d   : > { %8604 = vmatpush1.bf16.msra.mxu1 %v17314_v63  ;;  %8631 = vmatprep.mubr.bf16.mxu1 %v21570_v11  ;;  %v17373_v63 = vld [vmem:[%s23953_s4 + $0x1344] ss:$20 sps:$4 sm:$0xff]  }
 0x52e   : > { %8773 = vmatpush1.bf16.msra.mxu0 %v17317_v17  ;;  %8605 = vmatprep.subr.bf16.mxu1 %v17322_v49  ;;  %v17371_v49 = vld [vmem:[%s23953_s4 + $0x1340] ss:$20 sps:$4 sm:$0xff]  }
 0x52f   : > { %8774 = vmatprep.subr.bf16.mxu0 %v17325_v37  ;;  %v17376_v37 = vld [vmem:[%s23953_s4 + $0x1224] ss:$20 sps:$4 sm:$0xff]  }
 0x531   : > { %8606 = vmatpush1.bf16.msra.mxu1 %v17320_v23 }
 0x532   : > { %8775 = vmatpush1.bf16.msra.mxu0 %v17323_v1  ;;  %8607 = vmatprep.subr.bf16.mxu1 %v17328_v40  ;;  %v17379_v40 = vld [vmem:[%s23953_s4 + $0x136c] ss:$20 sps:$4 sm:$0xff]  }
 0x533   : > { %8776 = vmatprep.subr.bf16.mxu0 %v17331_v30 }
 0x535   : > { %8608 = vmatpush1.bf16.msra.mxu1 %v17326_v53 }
 0x536   : > { %8777 = vmatpush1.bf16.msra.mxu0 %v17329_v3  ;;  %8609 = vmatprep.subr.bf16.mxu1 %v17334_v51  ;;  %v17374_v51 = vld [vmem:[%s23953_s4 + $0x1220] ss:$20 sps:$4 sm:$0xff]  }
 0x537   : > { %8778 = vmatprep.subr.bf16.mxu0 %v17337_v54  ;;  %v17382_v54 = vld [vmem:[%s23953_s4 + $0x124c] ss:$20 sps:$4 sm:$0xff]  }
 0x539   : > { %8610 = vmatpush1.bf16.msra.mxu1 %v17332_v52  ;;  %v17380_v52 = vld [vmem:[%s23953_s4 + $0x1248] ss:$20 sps:$4 sm:$0xff]  }
 0x53a   : > { %8779 = vmatpush1.bf16.msra.mxu0 %v17335_v18  ;;  %8611 = vmatprep.subr.bf16.mxu1 %v17340_v9  ;;  %v17383_v18 = vld [vmem:[%s23953_s4 + $0x1390] ss:$20 sps:$4 sm:$0xff]   ;;  %v17388_v9 = vld [vmem:[%s23953_s4 + $0x1274] ss:$20 sps:$4 sm:$0xff]  }
 0x53b   : > { %8780 = vmatprep.subr.bf16.mxu0 %v17343_v56  ;;  %v17391_v56 = vld [vmem:[%s23953_s4 + $0x13bc] ss:$20 sps:$4 sm:$0xff]  }
 0x53d   : > { %8612 = vmatpush1.bf16.msra.mxu1 %v17338_v60  ;;  %v17386_v60 = vld [vmem:[%s23953_s4 + $0x1270] ss:$20 sps:$4 sm:$0xff]  }
 0x53e   : > { %8781 = vmatpush1.bf16.msra.mxu0 %v17341_v14  ;;  %8613 = vmatprep.subr.bf16.mxu1 %v17346_v59  ;;  %v17389_v14 = vld [vmem:[%s23953_s4 + $0x13b8] ss:$20 sps:$4 sm:$0xff]   ;;  %v17394_v59 = vld [vmem:[%s23953_s4 + $0x129c] ss:$20 sps:$4 sm:$0xff]  }
 0x53f   : > { %v6891_v47 = vpop.f32.mrb[52].mxu0  ;;  %8782 = vmatprep.subr.bf16.mxu0 %v17349_v32  ;;  %v17397_v32 = vld [vmem:[%s23953_s4 + $0x13e4] ss:$20 sps:$4 sm:$0xff]  }
 0x540   : > { %v21740_v48 = vadd.f32 %v6891_v47, %v21512_v61  ;;  %v6893_v29 = vpop.f32.mrb[53].mxu0  ;;  %v17353_v61 = vld [vmem:[%s23953_s4 + $0x12c8] ss:$20 sps:$4 sm:$0xff]   ;;  %v17403_v47 = vld [vmem:[%s23953_s4 + $0x140c] ss:$20 sps:$4 sm:$0xff]  }
 0x541   : > { %v21747_v6 = vadd.f32 %v6893_v29, %v21518_v57  ;;  %v6895_v50 = vpop.f32.mrb[54].mxu0  ;;  %8614 = vmatpush1.bf16.msra.mxu1 %v17344_v33  ;;  %v21763_v57 = vsel %vm1651_vm2, %v7376_v43, %v21744_v58  ;;  %v17392_v33 = vld [vmem:[%s23953_s4 + $0x1298] ss:$20 sps:$4 sm:$0xff]   ;;  %v17401_v29 = vld [vmem:[%s23953_s4 + $0x1408] ss:$20 sps:$4 sm:$0xff]  }
 0x542   : > { %8783 = vmatpush1.bf16.msra.mxu0 %v17347_v21  ;;  %v6896_v38 = vpop.f32.mrb[55].mxu0  ;;  %8615 = vmatprep.subr.bf16.mxu1 %v17352_v27  ;;  %v17395_v21 = vld [vmem:[%s23953_s4 + $0x13e0] ss:$20 sps:$4 sm:$0xff]   ;;  %v17400_v27 = vld [vmem:[%s23953_s4 + $0x12c4] ss:$20 sps:$4 sm:$0xff]  }
 0x543   : > { %8803 = vmatprep.subr.bf16.mxu0 %v17355_v15  ;;  %v17398_v15 = vld [vmem:[%s23953_s4 + $0x12c0] ss:$20 sps:$4 sm:$0xff]   ;;  %v17407_v38 = vld [vmem:[%s23953_s4 + $0x1430] ss:$20 sps:$4 sm:$0xff]  }
 0x544   : > { %v17406_v43 = vld [vmem:[%s23953_s4 + $0x12ec] ss:$20 sps:$4 sm:$0xff]   ;;  %v17409_v50 = vld [vmem:[%s23953_s4 + $0x1434] ss:$20 sps:$4 sm:$0xff]  }
 0x545   : > { %8785 = vmatmul.mubr.bf16.vlgmr.msra.gmra.mrb[24].mxu0 %v21763_v57  ;;  %8616 = vmatpush1.bf16.msra.mxu1 %v17350_v24  ;;  %v17404_v24 = vld [vmem:[%s23953_s4 + $0x12e8] ss:$20 sps:$4 sm:$0xff]  }
 0x546   : > { %8794 = vmatprep.mubr.bf16.mxu0 %v21556_v16  ;;  %8804 = vmatpush1.bf16.msra.mxu0 %v17353_v61  ;;  %v17412_v61 = vld [vmem:[%s23953_s4 + $0x1314] ss:$20 sps:$4 sm:$0xff]  }
 0x547   : > { %8617 = vmatprep.subr.bf16.mxu1 %v17358_v34  ;;  %8805 = vmatprep.subr.bf16.mxu0 %v17361_v42  ;;  %v17415_v34 = vld [vmem:[%s23953_s4 + $0x145c] ss:$20 sps:$4 sm:$0xff]  }
 0x548   : > { %v17410_v42 = vld [vmem:[%s23953_s4 + $0x1310] ss:$20 sps:$4 sm:$0xff]  }
 0x549   : > { %8618 = vmatpush1.bf16.msra.mxu1 %v17356_v44  ;;  %v17413_v44 = vld [vmem:[%s23953_s4 + $0x1458] ss:$20 sps:$4 sm:$0xff]  }
 0x54a   : > { %8806 = vmatpush1.bf16.msra.mxu0 %v17359_v20  ;;  %8619 = vmatprep.subr.bf16.mxu1 %v17364_v7  ;;  %v17418_v20 = vld [vmem:[%s23953_s4 + $0x133c] ss:$20 sps:$4 sm:$0xff]   ;;  %v17421_v7 = vld [vmem:[%s23953_s4 + $0x1484] ss:$20 sps:$4 sm:$0xff]  }
 0x54b   : > { %8807 = vmatprep.subr.bf16.mxu0 %v17367_v19  ;;  %v17416_v19 = vld [vmem:[%s23953_s4 + $0x1338] ss:$20 sps:$4 sm:$0xff]  }
 0x54d   : > { %8795 = vmatmul.mubr.bf16.gmra.mrb[72].mxu0 %v21744_v58  ;;  %8620 = vmatpush1.bf16.msra.mxu1 %v17362_v36  ;;  %v17419_v36 = vld [vmem:[%s23953_s4 + $0x1480] ss:$20 sps:$4 sm:$0xff]  }
 0x54e   : > { %8808 = vmatpush1.bf16.msra.mxu0 %v17365_v62  ;;  %14929 = vmatprep.mubr.msk.bf16.mxu0 %vm5038_vm3, %v21798_v35  ;;  %v6738_v17 = vpop.f32.mrb[72].mxu1 }
 0x54f   : > { %v21812_v23 = vadd.f32 %v6738_v17, %v21583_v5  ;;  %v6740_v1 = vpop.f32.mrb[73].mxu1  ;;  %8621 = vmatprep.subr.bf16.mxu1 %v17370_v10  ;;  %8809 = vmatprep.subr.bf16.mxu0 %v17373_v63  ;;  %v17377_v5 = vld [vmem:[%s23953_s4 + $0x1368] ss:$20 sps:$4 sm:$0xff]   ;;  %v17425_v10 = vld [vmem:[%s23953_s4 + $0x1190] ss:$20 sps:$4 sm:$0xff]   ;;  %v7382_v17 = vrot.slane %v20126_v28, 1 }
 0x550   : > { %v21818_v30 = vadd.f32 %v6740_v1, %v21589_v39  ;;  %v6742_v53 = vpop.f32.mrb[74].mxu1  ;;  %v17385_v39 = vld [vmem:[%s23953_s4 + $0x1394] ss:$20 sps:$4 sm:$0xff]   ;;  %v17429_v28 = vld [vmem:[%s23953_s4 + $0x138c] ss:$20 sps:$4 sm:$0xff]  }
 0x551   : > { %8622 = vmatpush1.bf16.msra.mxu1 %v17368_v26  ;;  %v6743_v3 = vpop.f32.mrb[75].mxu1 }
 0x552   : > { %8810 = vmatpush1.bf16.msra.mxu0 %v17371_v49  ;;  %8623 = vmatprep.subr.bf16.mxu1 %v17376_v37  ;;  %v21926_v49 = vrot.slane %v20379_v25, 1  ;;  %v17430_v25 = vld [vmem:[%s23953_s4 + $0x11b8] ss:$20 sps:$4 sm:$0xff]   ;;  %v17427_v3 = vld [vmem:[%s23953_s4 + $0x1388] ss:$20 sps:$4 sm:$0xff]  }
 0x553   : > { %8811 = vmatprep.subr.bf16.mxu0 %v17379_v40  ;;  %v17422_v40 = vld [vmem:[%s23953_s4 + $0x1360] ss:$20 sps:$4 sm:$0xff]  }
 0x555   : > { %8624 = vmatpush1.bf16.msra.mxu1 %v17374_v51  ;;  %v17431_v51 = vld [vmem:[%s23953_s4 + $0x1078] ss:$20 sps:$4 sm:$0xff]  }
 0x556   : > { %8812 = vmatpush1.bf16.msra.mxu0 %v17377_v5  ;;  %8625 = vmatprep.subr.bf16.mxu1 %v17382_v54  ;;  %v17434_v5 = vld [vmem:[%s23953_s4 + $0x13b4] ss:$20 sps:$4 sm:$0xff]  }
 0x557   : > { %8813 = vmatprep.subr.bf16.mxu0 %v17385_v39  ;;  %v17435_v54 = vld [vmem:[%s23953_s4 + $0x11e0] ss:$20 sps:$4 sm:$0xff]   ;;  %v17432_v39 = vld [vmem:[%s23953_s4 + $0x13b0] ss:$20 sps:$4 sm:$0xff]  }
 0x559   : > { %8626 = vmatpush1.bf16.msra.mxu1 %v17380_v52  ;;  %v17436_v52 = vld [vmem:[%s23953_s4 + $0x10a0] ss:$20 sps:$4 sm:$0xff]  }
 0x55a   : > { %8814 = vmatpush1.bf16.msra.mxu0 %v17383_v18  ;;  %8627 = vmatprep.subr.bf16.mxu1 %v17388_v9  ;;  %v17439_v18 = vld [vmem:[%s23953_s4 + $0x13dc] ss:$20 sps:$4 sm:$0xff]  }
 0x55b   : > { %8815 = vmatprep.subr.bf16.mxu0 %v17391_v56  ;;  %v17440_v9 = vld [vmem:[%s23953_s4 + $0x1208] ss:$20 sps:$4 sm:$0xff]   ;;  %v17437_v56 = vld [vmem:[%s23953_s4 + $0x13d8] ss:$20 sps:$4 sm:$0xff]  }
 0x55d   : > { %8628 = vmatpush1.bf16.msra.mxu1 %v17386_v60 }
 0x55e   : > { %8816 = vmatpush1.bf16.msra.mxu0 %v17389_v14  ;;  %8629 = vmatprep.subr.bf16.mxu1 %v17394_v59  ;;  %v17441_v14 = vld [vmem:[%s23953_s4 + $0x10c8] ss:$20 sps:$4 sm:$0xff]   ;;  %v17444_v59 = vld [vmem:[%s23953_s4 + $0x1404] ss:$20 sps:$4 sm:$0xff]  }
 0x55f   : > { %8817 = vmatprep.subr.bf16.mxu0 %v17397_v32 }
 0x561   : > { %8630 = vmatpush1.bf16.msra.mxu1 %v17392_v33 }
 0x562   : > { %8818 = vmatpush1.bf16.msra.mxu0 %v17395_v21  ;;  %8650 = vmatprep.subr.bf16.mxu1 %v17400_v27  ;;  %v17445_v21 = vld [vmem:[%s23953_s4 + $0x1230] ss:$20 sps:$4 sm:$0xff]  }
 0x563   : > { %8819 = vmatprep.subr.bf16.mxu0 %v17403_v47 }
 0x564   : > { %8632 = vmatmul.mubr.bf16.vlgmr.msra.gmra.mrb[36].mxu1 %v21763_v57 }
 0x565   : > { %8641 = vmatprep.mubr.bf16.mxu1 %v21556_v16  ;;  %8651 = vmatpush1.bf16.msra.mxu1 %v17398_v15  ;;  %v17442_v15 = vld [vmem:[%s23953_s4 + $0x1400] ss:$20 sps:$4 sm:$0xff]  }
 0x566   : > { %8820 = vmatpush1.bf16.msra.mxu0 %v17401_v29  ;;  %8652 = vmatprep.subr.bf16.mxu1 %v17406_v43  ;;  %v17449_v29 = vld [vmem:[%s23953_s4 + $0x142c] ss:$20 sps:$4 sm:$0xff]   ;;  %v17447_v43 = vld [vmem:[%s23953_s4 + $0x1428] ss:$20 sps:$4 sm:$0xff]  }
 0x567   : > { %8821 = vmatprep.subr.bf16.mxu0 %v17409_v50  ;;  %v17451_v50 = vld [vmem:[%s23953_s4 + $0x1118] ss:$20 sps:$4 sm:$0xff]  }
 0x569   : > { %8653 = vmatpush1.bf16.msra.mxu1 %v17404_v24  ;;  %v17454_v24 = vld [vmem:[%s23953_s4 + $0x1454] ss:$20 sps:$4 sm:$0xff]  }
 0x56a   : > { %8822 = vmatpush1.bf16.msra.mxu0 %v17407_v38  ;;  %8654 = vmatprep.subr.bf16.mxu1 %v17412_v61  ;;  %v17455_v38 = vld [vmem:[%s23953_s4 + $0x1280] ss:$20 sps:$4 sm:$0xff]   ;;  %v17452_v61 = vld [vmem:[%s23953_s4 + $0x1450] ss:$20 sps:$4 sm:$0xff]  }
 0x56b   : > { %8823 = vmatprep.subr.bf16.mxu0 %v17415_v34  ;;  %v17456_v34 = vld [vmem:[%s23953_s4 + $0x1140] ss:$20 sps:$4 sm:$0xff]  }
 0x56c   : > { %8642 = vmatmul.mubr.bf16.gmra.mrb[100].mxu1 %v21744_v58 }
 0x56d   : > { %8655 = vmatpush1.bf16.msra.mxu1 %v17410_v42  ;;  %14927 = vmatprep.mubr.msk.bf16.mxu1 %vm5038_vm3, %v21798_v35  ;;  %v17459_v42 = vld [vmem:[%s23953_s4 + $0x147c] ss:$20 sps:$4 sm:$0xff]  }
 0x56e   : > { %8824 = vmatpush1.bf16.msra.mxu0 %v17413_v44  ;;  %8656 = vmatprep.subr.bf16.mxu1 %v17418_v20  ;;  %v17460_v44 = vld [vmem:[%s23953_s4 + $0x12a8] ss:$20 sps:$4 sm:$0xff]   ;;  %v17457_v20 = vld [vmem:[%s23953_s4 + $0x1478] ss:$20 sps:$4 sm:$0xff]  }
 0x56f   : > { %v6942_v62 = vpop.f32.mrb[56].mxu0  ;;  %8825 = vmatprep.subr.bf16.mxu0 %v17421_v7  ;;  %v17461_v7 = vld [vmem:[%s23953_s4 + $0x1168] ss:$20 sps:$4 sm:$0xff]  }
 0x570   : > { %v21922_v63 = vadd.f32 %v6942_v62, %v21740_v48  ;;  %v6944_v26 = vpop.f32.mrb[57].mxu0  ;;  %v17426_v48 = vld [vmem:[%s23953_s4 + $0x1050] ss:$20 sps:$4 sm:$0xff]  }
 0x571   : > { %v21929_v37 = vadd.f32 %v6944_v26, %v21747_v6  ;;  %v6946_v1 = vpop.f32.mrb[58].mxu0  ;;  %8657 = vmatpush1.bf16.msra.mxu1 %v17416_v19  ;;  %v21945_v6 = vsel %vm1651_vm2, %v7382_v17, %v21926_v49  ;;  %v17462_v19 = vld [vmem:[%s23953_s4 + $0xf10] ss:$20 sps:$4 sm:$0xff]  }
 0x572   : > { %8826 = vmatpush1.bf16.msra.mxu0 %v17419_v36  ;;  %v6947_v53 = vpop.f32.mrb[59].mxu0  ;;  %8658 = vmatprep.subr.bf16.mxu1 %v17424_v4  ;;  %v17463_v36 = vld [vmem:[%s23953_s4 + $0xdd0] ss:$20 sps:$4 sm:$0xff]   ;;  %v17464_v4 = vld [vmem:[%s23953_s4 + $0xf38] ss:$20 sps:$4 sm:$0xff]  }
 0x573   : > { %15837 = vmatprep.subr.bf16.mxu0 %v17425_v10  ;;  %v17465_v10 = vld [vmem:[%s23953_s4 + $0xdf8] ss:$20 sps:$4 sm:$0xff]   ;;  %v17466_v1 = vld [vmem:[%s23953_s4 + $0xf60] ss:$20 sps:$4 sm:$0xff]  }
 0x575   : > { %8836 = vmatmul.mubr.bf16.vlgmr.msra.gmra.mrb[24].mxu0 %v21945_v6  ;;  %8659 = vmatpush1.bf16.msra.mxu1 %v17422_v40 }
 0x576   : > { %14930 = vmatprep.mubr.msk.bf16.mxu0 %vm5038_vm3, %v21784_v12  ;;  %15838 = vmatpush3.bf16.msra.mxu0 %v17426_v48 }
 0x577   : > { %8660 = vmatprep.subr.bf16.mxu1 %v17429_v28  ;;  %15839 = vmatprep.subr.bf16.mxu0 %v17430_v25 }
 0x579   : > { %8661 = vmatpush1.bf16.msra.mxu1 %v17427_v3 }
 0x57a   : > { %15840 = vmatpush3.bf16.msra.mxu0 %v17431_v51  ;;  %8662 = vmatprep.subr.bf16.mxu1 %v17434_v5  ;;  %v17467_v51 = vld [vmem:[%s23953_s4 + $0xe20] ss:$20 sps:$4 sm:$0xff]   ;;  %v17468_v5 = vld [vmem:[%s23953_s4 + $0xf88] ss:$20 sps:$4 sm:$0xff]  }
 0x57b   : > { %15841 = vmatprep.subr.bf16.mxu0 %v17435_v54 }
 0x57d   : > { %8846 = vmatmul.mubr.bf16.gmra.mrb[76].mxu0 %v21926_v49  ;;  %8663 = vmatpush1.bf16.msra.mxu1 %v17432_v39  ;;  %v17469_v39 = vld [vmem:[%s23953_s4 + $0xe48] ss:$20 sps:$4 sm:$0xff]  }
 0x57e   : > { %15842 = vmatpush3.bf16.msra.mxu0 %v17436_v52  ;;  %8934 = vmatprep.mubr.bf16.mxu0 %v21570_v11  ;;  %v6789_v60 = vpop.f32.mrb[76].mxu1 }
 0x57f   : > { %v21986_v32 = vadd.f32 %v6789_v60, %v21812_v23  ;;  %v6791_v33 = vpop.f32.mrb[77].mxu1  ;;  %8664 = vmatprep.subr.bf16.mxu1 %v17439_v18  ;;  %15843 = vmatprep.subr.bf16.mxu0 %v17440_v9  ;;  %v17446_v23 = vld [vmem:[%s23953_s4 + $0x10f0] ss:$20 sps:$4 sm:$0xff]  }
 0x580   : > { %v21992_v11 = vadd.f32 %v6791_v33, %v21818_v30  ;;  %v6793_v27 = vpop.f32.mrb[78].mxu1  ;;  %v17450_v30 = vld [vmem:[%s23953_s4 + $0x1258] ss:$20 sps:$4 sm:$0xff]   ;;  %v17471_v33 = vld [vmem:[%s23953_s4 + $0xe70] ss:$20 sps:$4 sm:$0xff]  }
 0x581   : > { %8665 = vmatpush1.bf16.msra.mxu1 %v17437_v56  ;;  %v6794_v47 = vpop.f32.mrb[79].mxu1  ;;  %v17473_v27 = vld [vmem:[%s23953_s4 + $0xe98] ss:$20 sps:$4 sm:$0xff]  }
 0x582   : > { %15844 = vmatpush3.bf16.msra.mxu0 %v17441_v14  ;;  %8666 = vmatprep.subr.bf16.mxu1 %v17444_v59  ;;  %v17475_v47 = vld [vmem:[%s23953_s4 + $0xec0] ss:$20 sps:$4 sm:$0xff]  }
 0x583   : > { %15845 = vmatprep.subr.bf16.mxu0 %v17445_v21  ;;  %v17472_v21 = vld [vmem:[%s23953_s4 + $0xfd8] ss:$20 sps:$4 sm:$0xff]  }
 0x585   : > { %8667 = vmatpush1.bf16.msra.mxu1 %v17442_v15  ;;  %v17476_v15 = vld [vmem:[%s23953_s4 + $0x1028] ss:$20 sps:$4 sm:$0xff]  }
 0x586   : > { %15846 = vmatpush3.bf16.msra.mxu0 %v17446_v23  ;;  %8668 = vmatprep.subr.bf16.mxu1 %v17449_v29  ;;  %v17477_v23 = vld [vmem:[%s23953_s4 + $0xee8] ss:$20 sps:$4 sm:$0xff]   ;;  %v17478_v29 = vld [vmem:[%s23953_s4 + $0x12d0] ss:$20 sps:$4 sm:$0xff]  }
 0x587   : > { %15847 = vmatprep.subr.bf16.mxu0 %v17450_v30  ;;  %v17479_v30 = vld [vmem:[%s23953_s4 + $0x12f8] ss:$20 sps:$4 sm:$0xff]  }
 0x589   : > { %8669 = vmatpush1.bf16.msra.mxu1 %v17447_v43 }
 0x58a   : > { %15848 = vmatpush3.bf16.msra.mxu0 %v17451_v50  ;;  %8670 = vmatprep.subr.bf16.mxu1 %v17454_v24 }
 0x58b   : > { %15849 = vmatprep.subr.bf16.mxu0 %v17455_v38 }
 0x58d   : > { %8671 = vmatpush1.bf16.msra.mxu1 %v17452_v61 }
 0x58e   : > { %15850 = vmatpush3.bf16.msra.mxu0 %v17456_v34  ;;  %8672 = vmatprep.subr.bf16.mxu1 %v17459_v42  ;;  %v17480_v34 = vld [vmem:[%s23953_s4 + $0x1320] ss:$20 sps:$4 sm:$0xff]  }
 0x58f   : > { %15851 = vmatprep.subr.bf16.mxu0 %v17460_v44 }
 0x591   : > { %8673 = vmatpush1.bf16.msra.mxu1 %v17457_v20  ;;  %v17481_v20 = vld [vmem:[%s23953_s4 + $0x1348] ss:$20 sps:$4 sm:$0xff]  }
 0x592   : > { %15852 = vmatpush3.bf16.msra.mxu0 %v17461_v7  ;;  %15809 = vmatprep.subr.bf16.mxu1 %v17462_v19 }
 0x594   : > { %8683 = vmatmul.mubr.bf16.vlgmr.msra.gmra.mrb[36].mxu1 %v21945_v6 }
 0x595   : > { %8935 = vmatmul.mubr.bf16.vlgmr.msra.gmra.mrb[80].mxu0 %v21763_v57  ;;  %14928 = vmatprep.mubr.msk.bf16.mxu1 %vm5038_vm3, %v21784_v12 }
 0x596   : > { %15810 = vmatpush3.bf16.msra.mxu1 %v17463_v36  ;;  %8942 = vmatprep.mubr.bf16.mxu0 %v21556_v16  ;;  %v15769_v62 = vpop.f32.mrb[80].mxu1 }
 0x597   : > { %v22053_v26 = vpop.f32.mrb[60].mxu0  ;;  %v15770_v17 = vpop.f32.mrb[81].mxu1  ;;  %15811 = vmatprep.subr.bf16.mxu1 %v17464_v4 }
 0x598   : > { %v15771_v57 = vadd.f32 %v15770_v17, %v15769_v62  ;;  %v7081_v40 = vpop.f32.mrb[61].mxu0  ;;  %v15772_v53 = vpop.f32.mrb[82].mxu1  ;;  %v17483_v17 = vld [vmem:[%s23953_s4 + $0x1398] ss:$20 sps:$4 sm:$0xff]  }
 0x599   : > { %v22058_v48 = vpop.f32.mrb[62].mxu0  ;;  %v15773_v28 = vpop.f32.mrb[83].mxu1  ;;  %v17486_v40 = vld [vmem:[%s23953_s4 + $0x1410] ss:$20 sps:$4 sm:$0xff]  }
 0x59a   : > { %v6984_v16 = vadd.f32 %v15771_v57, %v21341_v0  ;;  %15812 = vmatpush3.bf16.msra.mxu1 %v17465_v10  ;;  %v15774_v25 = vadd.f32 %v15773_v28, %v15772_v53  ;;  %v7084_v3 = vpop.f32.mrb[63].mxu0  ;;  %v17482_v10 = vld [vmem:[%s23953_s4 + $0x1370] ss:$20 sps:$4 sm:$0xff]   ;;  %v17485_v57 = vld [vmem:[%s23953_s4 + $0x13e8] ss:$20 sps:$4 sm:$0xff]  }
 0x59b   : > { %15813 = vmatprep.subr.bf16.mxu1 %v17466_v1  ;;  %v17484_v1 = vld [vmem:[%s23953_s4 + $0x13c0] ss:$20 sps:$4 sm:$0xff]   ;;  %v17487_v53 = vld [vmem:[%s23953_s4 + $0x1438] ss:$20 sps:$4 sm:$0xff]   ;;  %v17489_v28 = vld [vmem:[%s23953_s4 + $0x1488] ss:$20 sps:$4 sm:$0xff]  }
 0x59c   : > { %v6987_v54 = vadd.f32 %v15774_v25, %v21354_v22  ;;  %8693 = vmatmul.mubr.bf16.gmra.mrb[104].mxu1 %v21926_v49  ;;  %v17470_v22 = vld [vmem:[%s23953_s4 + $0xfb0] ss:$20 sps:$4 sm:$0xff]  }
 0x59d   : > { %8943 = vmatmul.mubr.bf16.gmra.mrb[84].mxu0 %v21744_v58  ;;  %8886 = vmatprep.mubr.bf16.mxu1 %v21338_v2 }
 0x59e   : > { %15814 = vmatpush3.bf16.msra.mxu1 %v17467_v51  ;;  %v15775_v0 = vpop.f32.mrb[84].mxu1  ;;  %9497 = vmatprep.mubr.bf16.mxu0 %v23995_v13 }
 0x59f   : > { %v7087_v52 = vpop.f32.mrb[64].mxu0  ;;  %v15776_v18 = vpop.f32.mrb[85].mxu1  ;;  %15815 = vmatprep.subr.bf16.mxu1 %v17468_v5 }
 0x5a0   : > { %v15777_v9 = vadd.f32 %v15776_v18, %v15775_v0  ;;  %v7089_v56 = vpop.f32.mrb[65].mxu0  ;;  %v15778_v58 = vpop.f32.mrb[86].mxu1 }
 0x5a1   : > { %v7090_v60 = vpop.f32.mrb[66].mxu0  ;;  %v15779_v2 = vpop.f32.mrb[87].mxu1 }
 0x5a2   : > { %v6992_v14 = vadd.f32 %v15777_v9, %v21373_v45  ;;  %15816 = vmatpush3.bf16.msra.mxu1 %v17469_v39  ;;  %v7091_v59 = vpop.f32.mrb[67].mxu0  ;;  %v17474_v45 = vld [vmem:[%s23953_s4 + $0x1000] ss:$20 sps:$4 sm:$0xff]  }
 0x5a3   : > { %15817 = vmatprep.subr.bf16.mxu1 %v17470_v22  ;;  %v22173_v59 = vld [vmem:[%s23954_s5] sm:$0x1f] }
 0x5a6   : > { %15818 = vmatpush3.bf16.msra.mxu1 %v17471_v33  ;;  %v9026_v33 = vrot.slane %v22173_v59, %v18988_v31 }
 0x5a7   : > { %15819 = vmatprep.subr.bf16.mxu1 %v17472_v21  ;;  %v9030_v21 = vrot.slane %v22173_v59, %v18991_v41 }
 0x5aa   : > { %15820 = vmatpush3.bf16.msra.mxu1 %v17473_v27 }
 0x5ab   : > { %15821 = vmatprep.subr.bf16.mxu1 %v17474_v45  ;;  %v22179_v45 = vstv %s13407_s14 }
 0x5ae   : > { %15822 = vmatpush3.bf16.msra.mxu1 %v17475_v47 }
 0x5af   : > { %15823 = vmatprep.subr.bf16.mxu1 %v17476_v15 }
 0x5b2   : > { %15824 = vmatpush3.bf16.msra.mxu1 %v17477_v23 }
 0x5b3   : > { %8950 = vmatprep.subr.bf16.mxu1 %v23995_v13 }
 0x5b5   : > { %8887 = vmatmul.mubr.bf16.vlgmr.msra.gmra.mrb[108].mxu1 %v21535_v55 }
 0x5b6   : > { %8894 = vmatprep.mubr.bf16.mxu1 %v21316_v46  ;;  %8951 = vmatpush1.bf16.msra.mxu1 %v17478_v29 }
 0x5b7   : > { %v15797_v43 = vpop.f32.mrb[88].mxu1  ;;  %8952 = vmatprep.subr.bf16.mxu1 %v23995_v13 }
 0x5b8   : > { %v15798_v50 = vpop.f32.mrb[89].mxu1 }
 0x5b9   : > { %v15799_v24 = vadd.f32 %v15798_v50, %v15797_v43  ;;  %v15800_v38 = vpop.f32.mrb[90].mxu1 }
 0x5ba   : > { %8953 = vmatpush1.bf16.msra.mxu1 %v17479_v30  ;;  %v15801_v61 = vpop.f32.mrb[91].mxu1 }
 0x5bb   : > { %v7032_v55 = vadd.f32 %v15799_v24, %v6984_v16  ;;  %v15802_v42 = vadd.f32 %v15801_v61, %v15800_v38  ;;  %8954 = vmatprep.subr.bf16.mxu1 %v23995_v13 }
 0x5bd   : > { %v7035_v46 = vadd.f32 %v15802_v42, %v6987_v54  ;;  %8895 = vmatmul.mubr.bf16.gmra.mrb[112].mxu1 %v21515_v8  ;;  %v22116_v44 = vadd.f32 %v22053_v26, %v7032_v55 }
 0x5be   : > { %8955 = vmatpush1.bf16.msra.mxu1 %v17480_v34  ;;  %14931 = vmatprep.mubr.msk.bf16.mxu1 %vm5038_vm3, %v21798_v35 }
 0x5bf   : > { %v15803_v7 = vpop.f32.mrb[92].mxu1  ;;  %8956 = vmatprep.subr.bf16.mxu1 %v23995_v13  ;;  %v22125_v19 = vadd.f32 %v22058_v48, %v7035_v46  ;;  %v17488_v48 = vld [vmem:[%s23953_s4 + $0x1460] ss:$20 sps:$4 sm:$0xff]  }
 0x5c0   : > { %v15804_v36 = vpop.f32.mrb[93].mxu1 }
 0x5c1   : > { %v15805_v4 = vadd.f32 %v15804_v36, %v15803_v7  ;;  %v15806_v8 = vpop.f32.mrb[94].mxu1 }
 0x5c2   : > { %8957 = vmatpush1.bf16.msra.mxu1 %v17481_v20  ;;  %v15807_v62 = vpop.f32.mrb[95].mxu1 }
 0x5c3   : > { %v7040_v35 = vadd.f32 %v15805_v4, %v6992_v14  ;;  %8958 = vmatprep.subr.bf16.mxu1 %v23995_v13 }
 0x5c5   : > { %v22131_v26 = vadd.f32 %v7087_v52, %v7040_v35 }
 0x5c6   : > { %8959 = vmatpush1.bf16.msra.mxu1 %v17482_v10 }
 0x5c7   : > { %8960 = vmatprep.subr.bf16.mxu1 %v23995_v13 }
 0x5ca   : > { %8961 = vmatpush1.bf16.msra.mxu1 %v17483_v17 }
 0x5cb   : > { %8962 = vmatprep.subr.bf16.mxu1 %v23995_v13 }
 0x5ce   : > { %8963 = vmatpush1.bf16.msra.mxu1 %v17484_v1 }
 0x5cf   : > { %8964 = vmatprep.subr.bf16.mxu1 %v23995_v13 }
 0x5d2   : > { %8965 = vmatpush1.bf16.msra.mxu1 %v17485_v57 }
 0x5d3   : > { %8966 = vmatprep.subr.bf16.mxu1 %v23995_v13 }
 0x5d6   : > { %8967 = vmatpush1.bf16.msra.mxu1 %v17486_v40 }
 0x5d7   : > { %8968 = vmatprep.subr.bf16.mxu1 %v23995_v13 }
 0x5da   : > { %8969 = vmatpush1.bf16.msra.mxu1 %v17487_v53 }
 0x5db   : > { %8970 = vmatprep.subr.bf16.mxu1 %v23995_v13 }
 0x5de   : > { %8971 = vmatpush1.bf16.msra.mxu1 %v17488_v48 }
 0x5df   : > { %8972 = vmatprep.subr.bf16.mxu1 %v23995_v13 }
 0x5e0   : > { %v8745_v16 = vpop.f32.mrb[68].mxu0 }
 0x5e1   : > { %v8747_v25 = vpop.f32.mrb[69].mxu0 }
 0x5e2   : > { %v8749_v3 = vpop.f32.mrb[70].mxu0  ;;  %8973 = vmatpush1.bf16.msra.mxu1 %v17489_v28 }
 0x5e3   : > { %v8750_v51 = vpop.f32.mrb[71].mxu0 }
 0x5e5   : > { %8983 = vmatmul.mubr.bf16.vlgmr.msra.gmra.mrb[116].mxu1 %v21945_v6 }
 0x5e6   : > { %14932 = vmatprep.mubr.msk.bf16.mxu1 %vm5038_vm3, %v21784_v12 }
 0x5ed   : > { %8991 = vmatmul.mubr.bf16.gmra.mrb[120].mxu1 %v21926_v49 }
 0x5ee   : > { %9454 = vmatprep.mubr.bf16.mxu1 %v23995_v13 }
 0x5ff   : > { %v8592_v5 = vpop.f32.mrb[96].mxu1 }
 0x600   : > { %v8594_v54 = vpop.f32.mrb[97].mxu1 }
 0x601   : > { %v8596_v0 = vpop.f32.mrb[98].mxu1 }
 0x602   : > { %v8597_v39 = vpop.f32.mrb[99].mxu1 }
 0x620   : > { %v8796_v52 = vpop.f32.mrb[72].mxu0 }
 0x621   : > { %v8797_v18 = vadd.f32 %v8796_v52, %v8745_v16  ;;  %v8798_v22 = vpop.f32.mrb[73].mxu0 }
 0x622   : > { %v8799_v9 = vadd.f32 %v8798_v22, %v8747_v25  ;;  %v8800_v56 = vpop.f32.mrb[74].mxu0 }
 0x623   : > { %v8801_v58 = vpop.f32.mrb[75].mxu0 }
 0x63f   : > { %v8643_v60 = vpop.f32.mrb[100].mxu1 }
 0x640   : > { %v22166_v2 = vadd.f32 %v8643_v60, %v8592_v5  ;;  %v8645_v6 = vpop.f32.mrb[101].mxu1 }
 0x641   : > { %v22168_v12 = vadd.f32 %v8645_v6, %v8594_v54  ;;  %v8647_v49 = vpop.f32.mrb[102].mxu1 }
 0x642   : > { %v8648_v14 = vpop.f32.mrb[103].mxu1 }
 0x648   : > { %v8837_v27 = vpop.f32.mrb[24].mxu0 }
 0x649   : > { %v9042_v47 = vadd.f32 %v9026_v33, %v8837_v27  ;;  %v8839_v15 = vpop.f32.mrb[25].mxu0 }
 0x64a   : > { %v9043_v23 = vadd.f32 %v9030_v21, %v8839_v15  ;;  %v8841_v29 = vpop.f32.mrb[26].mxu0 }
 0x64b   : > { %vm9057_vm0 = vcmp.gt.f32.partialorder %v9042_v47, 0.0  ;;  %v9073_v30 = vmul.f32 %v22179_v45, %v9042_v47  ;;  %v9047_v43 = vadd.f32 %v9026_v33, %v8841_v29  ;;  %v8843_v50 = vpop.f32.mrb[27].mxu0 }
 0x64c   : > { %vm9058_vm4 = vcmp.gt.f32.partialorder %v9043_v23, 0.0  ;;  %v9074_v24 = vmul.f32 %v22179_v45, %v9043_v23  ;;  %v9048_v38 = vadd.f32 %v9030_v21, %v8843_v50 }
 0x64d   : > { %v9088_v61 = vsel %vm9057_vm0, %v9042_v47, %v9073_v30  ;;  %vm9062_vm5 = vcmp.gt.f32.partialorder %v9047_v43, 0.0  ;;  %v9078_v34 = vmul.f32 %v22179_v45, %v9047_v43 }
 0x64e   : > { %v9089_v55 = vsel %vm9058_vm4, %v9043_v23, %v9074_v24  ;;  %vm9063_vm6 = vcmp.gt.f32.partialorder %v9048_v38, 0.0  ;;  %v9079_v46 = vmul.f32 %v22179_v45, %v9048_v38  ;;  %v9122_v20 = vrot.slane %v9088_v61, 1 }
 0x64f   : > { %v9093_v42 = vsel %vm9062_vm5, %v9047_v43, %v9078_v34  ;;  %v9177_v7 = vrot.slane %v9088_v61, 2  ;;  %v9125_v62 = vrot.slane %v9089_v55, 1  ;;  %v9180_v10 = vrot.slane %v9089_v55, 2  ;;  %v24002_v34 = vld [vmem:[#allocation6_spill] sm:$0xff] }
 0x650   : > { %v9123_v36 = vrot.slane %v9093_v42, 1  ;;  %v9178_v4 = vrot.slane %v9093_v42, 2  ;;  %v8847_v8 = vpop.f32.mrb[76].mxu0  ;;  %v9094_v35 = vsel %vm9063_vm6, %v9048_v38, %v9079_v46 }
 0x651   : > { %v8848_v17 = vadd.f32 %v8847_v8, %v8797_v18  ;;  %v8849_v1 = vpop.f32.mrb[77].mxu0  ;;  %v9126_v57 = vrot.slane %v9094_v35, 1  ;;  %v9181_v40 = vrot.slane %v9094_v35, 2 }
 0x652   : > { %v8850_v53 = vadd.f32 %v8849_v1, %v8799_v9  ;;  %v8851_v48 = vpop.f32.mrb[78].mxu0  ;;  %v9124_v28 = vsel %vm1651_vm2, %v9122_v20, %v9123_v36  ;;  %v9179_v51 = vsel %vm2521_vm7, %v9177_v7, %v9178_v4 }
 0x653   : > { %v9010_v16 = vadd.f32 %v8848_v17, %v21922_v63  ;;  %v8852_v25 = vpop.f32.mrb[79].mxu0  ;;  %v9158_v3 = vmax.f32 %v9088_v61, %v9124_v28  ;;  %v9127_v54 = vsel %vm1651_vm2, %v9125_v62, %v9126_v57  ;;  %v9182_v0 = vsel %vm2521_vm7, %v9180_v10, %v9181_v40 }
 0x654   : > { %v9011_v5 = vadd.f32 %v8850_v53, %v21929_v37  ;;  %v9159_v18 = vmax.f32 %v9089_v55, %v9127_v54  ;;  %v9018_v55 = vrot.slane %v22173_v59, %v24002_v34 }
 0x655   : > { %v9052_v39 = vadd.f32 %v9026_v33, %v9010_v16  ;;  %v22191_v52 = vmax.f32 %v9158_v3, %v9179_v51 }
 0x656   : > { %v9053_v22 = vadd.f32 %v9030_v21, %v9011_v5  ;;  %v22194_v56 = vmax.f32 %v9159_v18, %v9182_v0 }
 0x657   : > { %vm9067_vm8 = vcmp.gt.f32.partialorder %v9052_v39, 0.0  ;;  %v9083_v9 = vmul.f32 %v22179_v45, %v9052_v39 }
 0x658   : > { %vm9068_vm9 = vcmp.gt.f32.partialorder %v9053_v22, 0.0  ;;  %v9084_v63 = vmul.f32 %v22179_v45, %v9053_v22 }
 0x659   : > { %v9098_v58 = vsel %vm9067_vm8, %v9052_v39, %v9083_v9 }
 0x65a   : > { %v9135_v60 = vrot.slane %v9098_v58, 1  ;;  %v9099_v37 = vsel %vm9068_vm9, %v9053_v22, %v9084_v63  ;;  %v9190_v6 = vrot.slane %v9098_v58, 2 }
 0x65b   : > { %v9137_v49 = vrot.slane %v9099_v37, 1  ;;  %v9192_v14 = vrot.slane %v9099_v37, 2 }
 0x65c   : > { %v9168_v27 = vmax.f32 %v9098_v58, %v9135_v60  ;;  %v9136_v33 = vsel %vm1651_vm2, %v9123_v36, %v9135_v60  ;;  %v9191_v47 = vsel %vm2521_vm7, %v9178_v4, %v9190_v6 }
 0x65d   : > { %v9169_v21 = vmax.f32 %v9099_v37, %v9137_v49  ;;  %v9163_v15 = vmax.f32 %v9093_v42, %v9136_v33  ;;  %v9138_v23 = vsel %vm1651_vm2, %v9126_v57, %v9137_v49  ;;  %v9193_v29 = vsel %vm2521_vm7, %v9181_v40, %v9192_v14  ;;  %v24003_v42 = vld [vmem:[#allocation7_spill] sm:$0xff] }
 0x65e   : > { %v22201_v30 = vmax.f32 %v9168_v27, %v9190_v6  ;;  %v9164_v43 = vmax.f32 %v9094_v35, %v9138_v23  ;;  %v9022_v46 = vrot.slane %v22173_v59, %v24003_v42 }
 0x65f   : > { %v22203_v50 = vmax.f32 %v9169_v21, %v9192_v14  ;;  %v22205_v24 = vmax.f32 %v9163_v15, %v9191_v47 }
 0x660   : > { %v22207_v38 = vmax.f32 %v9164_v43, %v9193_v29 }
 0x661   : > { %v22211_v61 = vpack.i.bf16 %v22203_v50, %v22201_v30 }
 0x663   : > { %16241 = vrot.lane.b32.xlu1 %v22211_v61, %s18202_s18 }
 0x667   : > { %v8684_v20 = vpop.f32.mrb[36].mxu1 }
 0x668   : > { %v9040_v7 = vadd.f32 %v9018_v55, %v8684_v20  ;;  %v15853_v36 = vpop.f32.mrb[80].mxu0  ;;  %v8686_v4 = vpop.f32.mrb[37].mxu1 }
 0x669   : > { %v9041_v8 = vadd.f32 %v9022_v46, %v8686_v4  ;;  %v15854_v62 = vpop.f32.mrb[81].mxu0  ;;  %v8688_v10 = vpop.f32.mrb[38].mxu1 }
 0x66a   : > { %vm9055_vm10 = vcmp.gt.f32.partialorder %v9040_v7, 0.0  ;;  %v9071_v35 = vmul.f32 %v22179_v45, %v9040_v7  ;;  %v22220_v17 = vadd.f32 %v15854_v62, %v15853_v36  ;;  %v9045_v1 = vadd.f32 %v9018_v55, %v8688_v10  ;;  %v15856_v57 = vpop.f32.mrb[82].mxu0  ;;  %v8690_v40 = vpop.f32.mrb[39].mxu1 }
 0x66b   : > { %vm9056_vm11 = vcmp.gt.f32.partialorder %v9041_v8, 0.0  ;;  %v9072_v53 = vmul.f32 %v22179_v45, %v9041_v8  ;;  %v9046_v48 = vadd.f32 %v9022_v46, %v8690_v40  ;;  %v15857_v28 = vpop.f32.mrb[83].mxu0 }
 0x66c   : > { %v9086_v16 = vsel %vm9055_vm10, %v9040_v7, %v9071_v35  ;;  %vm9060_vm12 = vcmp.gt.f32.partialorder %v9045_v1, 0.0  ;;  %v9076_v25 = vmul.f32 %v22179_v45, %v9045_v1  ;;  %v22224_v3 = vadd.f32 %v15857_v28, %v15856_v57 }
 0x66d   : > { %v9087_v51 = vsel %vm9056_vm11, %v9041_v8, %v9072_v53  ;;  %vm9061_vm13 = vcmp.gt.f32.partialorder %v9046_v48, 0.0  ;;  %v9077_v54 = vmul.f32 %v22179_v45, %v9046_v48  ;;  %v9116_v0 = vrot.slane %v9086_v16, 1 }
 0x66e   : > { %v9091_v5 = vsel %vm9060_vm12, %v9045_v1, %v9076_v25  ;;  %v9171_v39 = vrot.slane %v9086_v16, 2  ;;  %v9119_v63 = vrot.slane %v9087_v51, 1  ;;  %v9174_v58 = vrot.slane %v9087_v51, 2 }
 0x66f   : > { %v9117_v18 = vrot.slane %v9091_v5, 1  ;;  %v9172_v22 = vrot.slane %v9091_v5, 2  ;;  %v8694_v9 = vpop.f32.mrb[104].mxu1  ;;  %v9092_v60 = vsel %vm9061_vm13, %v9046_v48, %v9077_v54  ;;  %vm13331_vm13 = vcmask 342016  }
 0x670   : > { %v8695_v37 = vadd.f32 %v8694_v9, %v22166_v2  ;;  %v15859_v6 = vpop.f32.mrb[84].mxu0  ;;  %v8696_v49 = vpop.f32.mrb[105].mxu1  ;;  %v9120_v14 = vrot.slane %v9092_v60, 1  ;;  %v9175_v27 = vrot.slane %v9092_v60, 2 }
 0x671   : > { %v8697_v33 = vadd.f32 %v8696_v49, %v22168_v12  ;;  %v15860_v47 = vpop.f32.mrb[85].mxu0  ;;  %v8698_v21 = vpop.f32.mrb[106].mxu1  ;;  %v9118_v15 = vsel %vm1651_vm2, %v9116_v0, %v9117_v18  ;;  %v9173_v36 = vsel %vm2521_vm7, %v9171_v39, %v9172_v22 }
 0x672   : > { %v9008_v23 = vadd.f32 %v8695_v37, %v21986_v32  ;;  %v15861_v29 = vadd.f32 %v15860_v47, %v15859_v6  ;;  %v15862_v43 = vpop.f32.mrb[86].mxu0  ;;  %v8699_v20 = vpop.f32.mrb[107].mxu1  ;;  %v9156_v7 = vmax.f32 %v9086_v16, %v9118_v15  ;;  %v9121_v8 = vsel %vm1651_vm2, %v9119_v63, %v9120_v14 }
 0x673   : > { %v9009_v2 = vadd.f32 %v8697_v33, %v21992_v11  ;;  %v15863_v4 = vpop.f32.mrb[87].mxu0  ;;  %v9176_v62 = vsel %vm2521_vm7, %v9174_v58, %v9175_v27  ;;  %v9157_v10 = vmax.f32 %v9087_v51, %v9121_v8 }
 0x674   : > { %v9050_v12 = vadd.f32 %v9018_v55, %v9008_v23  ;;  %v22235_v35 = vmax.f32 %v9156_v7, %v9173_v36 }
 0x675   : > { %v9051_v1 = vadd.f32 %v9022_v46, %v9009_v2  ;;  %v22238_v57 = vmax.f32 %v9157_v10, %v9176_v62  ;;  %v24004_v10 = vld [vmem:[#allocation5_spill] sm:$0xff] }
 0x676   : > { %vm9065_vm14 = vcmp.gt.f32.partialorder %v9050_v12, 0.0  ;;  %v9081_v32 = vmul.f32 %v22179_v45, %v9050_v12 }
 0x677   : > { %vm9066_vm1 = vcmp.gt.f32.partialorder %v9051_v1, 0.0  ;;  %v9082_v40 = vmul.f32 %v22179_v45, %v9051_v1  ;;  %v16250_v11 = vpack.i.bf16 %v22191_v52, %v22238_v57 }
 0x678   : > { %v9096_v53 = vsel %vm9065_vm14, %v9050_v12, %v9081_v32 }
 0x679   : > { %v9131_v48 = vrot.slane %v9096_v53, 1  ;;  %v9186_v28 = vrot.slane %v9096_v53, 2  ;;  %v9097_v16 = vsel %vm9066_vm1, %v9051_v1, %v9082_v40  ;;  %16251 = vrot.lane.b32.xlu1 %v16250_v11, %s18205_s19  ;;  %16246 = vrot.lane.b32.xlu0 %v16250_v11, %s18202_s18  ;;  %v24005_v1 = vsub.s32 4, %v24004_v10 }
 0x67a   : > { %v9133_v55 = vrot.slane %v9097_v16, 1  ;;  %v9188_v46 = vrot.slane %v9097_v16, 2 }
 0x67b   : > { %v9132_v25 = vsel %vm1651_vm2, %v9117_v18, %v9131_v48  ;;  %v9187_v51 = vsel %vm2521_vm7, %v9172_v22, %v9186_v28  ;;  %v9166_v54 = vmax.f32 %v9096_v53, %v9131_v48  ;;  %v9034_v32 = vrot.slane %v22173_v59, %v24005_v1 }
 0x67c   : > { %v9161_v0 = vmax.f32 %v9091_v5, %v9132_v25  ;;  %v9167_v39 = vmax.f32 %v9097_v16, %v9133_v55  ;;  %v9134_v9 = vsel %vm1651_vm2, %v9120_v14, %v9133_v55  ;;  %v9189_v63 = vsel %vm2521_vm7, %v9175_v27, %v9188_v46 }
 0x67d   : > { %v9162_v58 = vmax.f32 %v9092_v60, %v9134_v9  ;;  %v22255_v33 = vmax.f32 %v9166_v54, %v9186_v28 }
 0x67e   : > { %v22249_v37 = vmax.f32 %v9161_v0, %v9187_v51  ;;  %v22257_v18 = vmax.f32 %v9167_v39, %v9188_v46 }
 0x67f   : > { %v22251_v6 = vmax.f32 %v9162_v58, %v9189_v63 }
 0x680   : > { %v16260_v49 = vpack.i.bf16 %v22249_v37, %v22235_v35  ;;  %v16270_v5 = vpack.i.bf16 %v22257_v18, %v22255_v33 }
 0x681   : > { %v16275_v60 = vpack.i.bf16 %v22205_v24, %v22251_v6 }
 0x682   : > { %16261 = vrot.lane.b32.xlu1 %v16260_v49, %s18205_s19  ;;  %16256 = vrot.lane.b32.xlu0 %v16260_v49, %s18202_s18 }
 0x686   : > { %16271 = vrot.lane.b32.xlu1 %v16270_v5, %s18205_s19  ;;  %16266 = vrot.lane.b32.xlu0 %v16270_v5, %s18202_s18 }
 0x688   : > { %v15825_v22 = vpop.f32.mrb[108].mxu1 }
 0x689   : > { %v15826_v14 = vpop.f32.mrb[109].mxu1 }
 0x68a   : > { %v15827_v27 = vadd.f32 %v15826_v14, %v15825_v22  ;;  %v15828_v47 = vpop.f32.mrb[110].mxu1  ;;  %16276 = vrot.lane.b32.xlu1 %v16275_v60, %s18202_s18  ;;  %16281 = vrot.lane.b32.xlu0 %v16275_v60, %s18205_s19 }
 0x68b   : > { %v15829_v21 = vpop.f32.mrb[111].mxu1 }
 0x68c   : > { %v15830_v15 = vadd.f32 %v15829_v21, %v15828_v47  ;;  %v8937_v23 = vadd.f32 %v22220_v17, %v15827_v27 }
 0x68e   : > { %v8940_v43 = vadd.f32 %v22224_v3, %v15830_v15 }
 0x690   : > { %v15831_v20 = vpop.f32.mrb[112].mxu1 }
 0x691   : > { %v15832_v7 = vpop.f32.mrb[113].mxu1 }
 0x692   : > { %v15833_v36 = vadd.f32 %v15832_v7, %v15831_v20  ;;  %v15834_v2 = vpop.f32.mrb[114].mxu1 }
 0x693   : > { %v15835_v4 = vpop.f32.mrb[115].mxu1 }
 0x694   : > { %v8945_v8 = vadd.f32 %v15861_v29, %v15833_v36 }
 0x6b8   : > { %v8984_v62 = vpop.f32.mrb[116].mxu1 }
 0x6b9   : > { %v8985_v12 = vadd.f32 %v8984_v62, %v8937_v23  ;;  %v8986_v40 = vpop.f32.mrb[117].mxu1 }
 0x6ba   : > { %v8987_v53 = vpop.f32.mrb[118].mxu1 }
 0x6bb   : > { %v9002_v11 = vadd.f32 %v8985_v12, %v22116_v44  ;;  %v8988_v48 = vadd.f32 %v8987_v53, %v8940_v43  ;;  %v8989_v17 = vpop.f32.mrb[119].mxu1 }
 0x6bd   : > { %v9044_v28 = vadd.f32 %v9034_v32, %v9002_v11  ;;  %v9007_v3 = vadd.f32 %v8988_v48, %v22125_v19 }
 0x6bf   : > { %vm9059_vm0 = vcmp.gt.f32.partialorder %v9044_v28, 0.0  ;;  %v9075_v16 = vmul.f32 %v22179_v45, %v9044_v28  ;;  %v9049_v55 = vadd.f32 %v9034_v32, %v9007_v3 }
 0x6c0   : > { %v8992_v29 = vpop.f32.mrb[120].mxu1 }
 0x6c1   : > { %v9090_v46 = vsel %vm9059_vm0, %v9044_v28, %v9075_v16  ;;  %vm9064_vm4 = vcmp.gt.f32.partialorder %v9049_v55, 0.0  ;;  %v9080_v25 = vmul.f32 %v22179_v45, %v9049_v55  ;;  %v8993_v51 = vadd.f32 %v8992_v29, %v8945_v8  ;;  %v8994_v59 = vpop.f32.mrb[121].mxu1 }
 0x6c2   : > { %v8995_v54 = vpop.f32.mrb[122].mxu1  ;;  %v9128_v9 = vrot.slane %v9090_v46, 1  ;;  %v9183_v63 = vrot.slane %v9090_v46, 2 }
 0x6c3   : > { %v9095_v0 = vsel %vm9064_vm4, %v9049_v55, %v9080_v25  ;;  %v9012_v44 = vadd.f32 %v8993_v51, %v22131_v26  ;;  %v8996_v39 = vpop.f32.mrb[123].mxu1 }
 0x6c4   : > { %v9129_v58 = vrot.slane %v9095_v0, 1  ;;  %v9184_v19 = vrot.slane %v9095_v0, 2 }
 0x6c5   : > { %v9054_v49 = vadd.f32 %v9034_v32, %v9012_v44 }
 0x6c6   : > { %v9130_v5 = vsel %vm1651_vm2, %v9128_v9, %v9129_v58  ;;  %v9185_v22 = vsel %vm2521_vm7, %v9183_v63, %v9184_v19 }
 0x6c7   : > { %vm9069_vm5 = vcmp.gt.f32.partialorder %v9054_v49, 0.0  ;;  %v9085_v60 = vmul.f32 %v22179_v45, %v9054_v49  ;;  %v9160_v14 = vmax.f32 %v9090_v46, %v9130_v5 }
 0x6c9   : > { %v22282_v27 = vmax.f32 %v9160_v14, %v9185_v22  ;;  %v9100_v47 = vsel %vm9069_vm5, %v9054_v49, %v9085_v60 }
 0x6ca   : > { %v9139_v21 = vrot.slane %v9100_v47, 1  ;;  %v9194_v15 = vrot.slane %v9100_v47, 2 }
 0x6cb   : > { %v16285_v26 = vpack.i.bf16 %v22282_v27, %v22194_v56 }
 0x6cc   : > { %v9170_v23 = vmax.f32 %v9100_v47, %v9139_v21  ;;  %v9140_v43 = vsel %vm1651_vm2, %v9129_v58, %v9139_v21  ;;  %v9195_v20 = vsel %vm2521_vm7, %v9184_v19, %v9194_v15  ;;  %vm9406_vm2 = vcmask 1040384  }
 0x6cd   : > { %16286 = vrot.lane.b32.xlu1 %v16285_v26, %s18202_s18  ;;  %16291 = vrot.lane.b32.xlu0 %v16285_v26, %s18205_s19  ;;  %v9165_v7 = vmax.f32 %v9095_v0, %v9140_v43  ;;  %vm9402_vm7 = vcmask 146432  }
 0x6ce   : > { %v22290_v45 = vmax.f32 %v9170_v23, %v9194_v15 }
 0x6cf   : > { %v22292_v36 = vmax.f32 %v9165_v7, %v9195_v20 }
 0x6d1   : > { %9269 = vrot.lane.b32.xlu0 %v22290_v45, %s18202_s18  ;;  %v16300_v2 = vpack.i.bf16 %v22292_v36, %v22207_v38 }
 0x6d3   : > { %16301 = vrot.lane.b32.xlu1 %v16300_v2, %s18205_s19 }
 0x6d5   : > { %16296 = vrot.lane.b32.xlu0 %v16300_v2, %s18202_s18  ;;  %v22304_v4 = vpop.permute.xlu1 %16241 }
 0x6d6   : > { %v16243_v53 = vunpack.i.l.bf16 %v22304_v4 }
 0x6d7   : > { %9341 = vrot.lane.b32.xlu1 %v22290_v45, %s18205_s19 }
 0x6d9   : > { %16306 = vrot.lane.b32.xlu0 %v22211_v61, %s18205_s19  ;;  %s13406_s19 = sshll.u32 %s24007_s26, 3 }
 0x6da   : > { %s452_s15 = scalar_lea.vmem %s23962_s13, %s13406_s19 }
 0x6eb   : > { %v22306_v8 = vpop.permute.xlu1 %16251  ;;  %v16247_v62 = vpop.permute.xlu0 %16246 }
 0x6ec   : > { %v16249_v1 = vunpack.i.h.bf16 %v16247_v62  ;;  %v16248_v32 = vunpack.i.l.bf16 %v16247_v62  ;;  %v16254_v16 = vunpack.i.h.bf16 %v22306_v8  ;;  %v16253_v55 = vunpack.i.l.bf16 %v22306_v8 }
 0x6ee   : > { %v9272_v29 = vsel %vm2943_vm15, %v16248_v32, %v16249_v1  ;;  %v9344_v26 = vsel %vm5038_vm3, %v16253_v55, %v16254_v16 }
 0x6ef   : > { %v9299_v5 = vmax.f32 %v22238_v57, %v9272_v29 }
 0x6f1   : > { %v9371_v7 = vmax.f32 %v9299_v5, %v9344_v26 }
 0x6f4   : > { %v16262_v12 = vpop.permute.xlu1 %16261  ;;  %v16257_v10 = vpop.permute.xlu0 %16256 }
 0x6f5   : > { %v16258_v40 = vunpack.i.l.bf16 %v16257_v10  ;;  %v16263_v59 = vunpack.i.l.bf16 %v16262_v12  ;;  %v16259_v54 = vunpack.i.h.bf16 %v16257_v10  ;;  %v16264_v14 = vunpack.i.h.bf16 %v16262_v12 }
 0x6f6   : > { %v16244_v10 = vunpack.i.h.bf16 %v22304_v4 }
 0x6f7   : > { %v9271_v46 = vsel %vm2943_vm15, %v16258_v40, %v16248_v32  ;;  %v9343_v23 = vsel %vm5038_vm3, %v16263_v59, %v16253_v55 }
 0x6f8   : > { %v22309_v11 = vpop.permute.xlu1 %16271  ;;  %v16267_v48 = vpop.permute.xlu0 %16266  ;;  %v9298_v22 = vmax.f32 %v22235_v35, %v9271_v46 }
 0x6f9   : > { %v16274_v17 = vunpack.i.h.bf16 %v22309_v11  ;;  %v16273_v28 = vunpack.i.l.bf16 %v22309_v11  ;;  %v16269_v61 = vunpack.i.h.bf16 %v16267_v48  ;;  %v16268_v3 = vunpack.i.l.bf16 %v16267_v48  ;;  %v17493_v11 = vld [vmem:[%s23955_s6 + $0x484] ss:$16 sps:$4 sm:$0xff]  }
 0x6fa   : > { %v9370_v35 = vmax.f32 %v9298_v22, %v9343_v23 }
 0x6fb   : > { %v22318_v25 = vsel %vm2943_vm15, %v16269_v61, %v16243_v53  ;;  %v9279_v51 = vsel %vm2943_vm15, %v16268_v3, %v16269_v61  ;;  %v9351_v0 = vsel %vm5038_vm3, %v16273_v28, %v16274_v17  ;;  %v9281_v61 = vsel %vm2943_vm15, %v16243_v53, %v16244_v10 }
 0x6fc   : > { %v9308_v44 = vmax.f32 %v22255_v33, %v9279_v51  ;;  %v16277_v39 = vpop.permute.xlu1 %16276  ;;  %v16282_v9 = vpop.permute.xlu0 %16281 }
 0x6fd   : > { %v16279_v63 = vunpack.i.h.bf16 %v16277_v39  ;;  %v16278_v58 = vunpack.i.l.bf16 %v16277_v39  ;;  %v16284_v19 = vunpack.i.h.bf16 %v16282_v9  ;;  %v16283_v49 = vunpack.i.l.bf16 %v16282_v9 }
 0x6fe   : > { %v22327_v60 = vmax.f32 %v9308_v44, %v9351_v0  ;;  %v9310_v44 = vmax.f32 %v22201_v30, %v9281_v61  ;;  %v17505_v61 = vld [vmem:[%s23955_s6 + $0x4c4] ss:$16 sps:$4 sm:$0xff]  }
 0x6ff   : > { %v9275_v47 = vsel %vm2943_vm15, %v16259_v54, %v16278_v58  ;;  %v9276_v21 = vsel %vm2943_vm15, %v16278_v58, %v16279_v63  ;;  %v9347_v43 = vsel %vm5038_vm3, %v16264_v14, %v16283_v49  ;;  %v9348_v57 = vsel %vm5038_vm3, %v16283_v49, %v16284_v19 }
 0x700   : > { %v9303_v15 = vmax.f32 %v22249_v37, %v9275_v47  ;;  %v9304_v33 = vmax.f32 %v22251_v6, %v9276_v21 }
 0x702   : > { %v9375_v20 = vmax.f32 %v9303_v15, %v9347_v43  ;;  %v9376_v2 = vmax.f32 %v9304_v33, %v9348_v57 }
 0x704   : > { %v9388_v8 = vpack.c.bf16 %v9376_v2, %v9371_v7  ;;  %v9387_v62 = vpack.c.bf16 %v9375_v20, %v9370_v35 }
 0x706   : > { %9422 = vmatprep.subr.bf16.mxu1 %v9388_v8 }
 0x707   : > { %9423 = vmatpush1.bf16.msra.mxu1 %v9387_v62  ;;  %v17490_v62 = vld [vmem:[%s23958_s9] sm:$0x1f]  }
 0x73f   : > { %v16287_v12 = vpop.permute.xlu1 %16286  ;;  %v22337_v37 = vpop.permute.xlu0 %16291 }
 0x740   : > { %v16288_v6 = vunpack.i.l.bf16 %v16287_v12  ;;  %v16289_v32 = vunpack.i.h.bf16 %v16287_v12  ;;  %v16293_v55 = vunpack.i.l.bf16 %v22337_v37  ;;  %v16294_v46 = vunpack.i.h.bf16 %v22337_v37 }
 0x742   : > { %v9273_v48 = vsel %vm2943_vm15, %v16249_v1, %v16288_v6  ;;  %v9274_v3 = vsel %vm2943_vm15, %v16288_v6, %v16289_v32  ;;  %v9309_v1 = vmax.f32 %v22257_v18, %v22318_v25  ;;  %v9345_v39 = vsel %vm5038_vm3, %v16254_v16, %v16293_v55  ;;  %v17499_v6 = vld [vmem:[%s23955_s6 + $0x4a4] ss:$16 sps:$4 sm:$0xff]  }
 0x743   : > { %v9270_v40 = vpop.permute.xlu0 %9269  ;;  %v9300_v29 = vmax.f32 %v22191_v52, %v9273_v48  ;;  %v9301_v53 = vmax.f32 %v22194_v56, %v9274_v3  ;;  %v9346_v49 = vsel %vm5038_vm3, %v16293_v55, %v16294_v46  ;;  %v17497_v48 = vld [vmem:[%s23955_s6 + $0x4a0] ss:$16 sps:$4 sm:$0xff]   ;;  %v17496_v3 = vld [vmem:[%s23955_s6 + $0x684] ss:$16 sps:$4 sm:$0xff]  }
 0x744   : > { %v9282_v9 = vsel %vm2943_vm15, %v16244_v10, %v9270_v40  ;;  %v17503_v55 = vld [vmem:[%s23955_s6 + $0x4c0] ss:$16 sps:$4 sm:$0xff]  }
 0x745   : > { %v16302_v28 = vpop.permute.xlu1 %16301  ;;  %v9372_v5 = vmax.f32 %v9300_v29, %v9345_v39  ;;  %v9311_v47 = vmax.f32 %v22203_v50, %v9282_v9  ;;  %v9373_v15 = vmax.f32 %v9301_v53, %v9346_v49  ;;  %v17523_v53 = vld [vmem:[%s23955_s6 + $0x524] ss:$16 sps:$4 sm:$0xff]   ;;  %v17506_v39 = vld [vmem:[%s23955_s6 + $0x6c0] ss:$16 sps:$4 sm:$0xff]  }
 0x746   : > { %v16304_v59 = vunpack.i.h.bf16 %v16302_v28  ;;  %v16303_v54 = vunpack.i.l.bf16 %v16302_v28  ;;  %v17514_v9 = vld [vmem:[%s23955_s6 + $0x6e4] ss:$16 sps:$4 sm:$0xff]   ;;  %v17512_v49 = vld [vmem:[%s23955_s6 + $0x6e0] ss:$16 sps:$4 sm:$0xff]  }
 0x747   : > { %v16297_v51 = vpop.permute.xlu0 %16296 }
 0x748   : > { %v16299_v0 = vunpack.i.h.bf16 %v16297_v51  ;;  %v16298_v4 = vunpack.i.l.bf16 %v16297_v51  ;;  %v9349_v18 = vsel %vm5038_vm3, %v16284_v19, %v16303_v54  ;;  %v9350_v56 = vsel %vm5038_vm3, %v16303_v54, %v16304_v59  ;;  %v17494_v51 = vld [vmem:[%s23955_s6 + $0x680] ss:$16 sps:$4 sm:$0xff]  }
 0x749   : > { %v9392_v19 = vpack.c.bf16 %v22327_v60, %v22327_v60  ;;  %v9312_v60 = vmax.f32 %v22290_v45, %v9270_v40  ;;  %v17509_v54 = vld [vmem:[%s23955_s6 + $0x4e0] ss:$16 sps:$4 sm:$0xff]  }
 0x74a   : > { %v9277_v52 = vsel %vm2943_vm15, %v16279_v63, %v16298_v4  ;;  %v9278_v58 = vsel %vm2943_vm15, %v16298_v4, %v16299_v0  ;;  %v9342_v63 = vpop.permute.xlu1 %9341  ;;  %v9307_v50 = vmax.f32 %v22292_v36, %v16299_v0  ;;  %vm18207_vm15 = vmmov 0   ;;  %v17517_v0 = vld [vmem:[%s23955_s6 + $0x504] ss:$16 sps:$4 sm:$0xff]   ;;  %v17500_v4 = vld [vmem:[%s23955_s6 + $0x6a0] ss:$16 sps:$4 sm:$0xff]  }
 0x74b   : > { %v9305_v22 = vmax.f32 %v22205_v24, %v9277_v52  ;;  %v9306_v30 = vmax.f32 %v22207_v38, %v9278_v58  ;;  %v16307_v14 = vpop.permute.xlu0 %16306  ;;  %v9408_v36 = vsel %vm9406_vm2, %v9392_v19, 0  ;;  %v9384_v37 = vmax.f32 %v9312_v60, %v9342_v63  ;;  %v17521_v52 = vld [vmem:[%s23955_s6 + $0x520] ss:$16 sps:$4 sm:$0xff]   ;;  %v17529_v58 = vld [vmem:[%s23955_s6 + $0x544] ss:$16 sps:$4 sm:$0xff]  }
 0x74c   : > { %v16309_v25 = vunpack.i.h.bf16 %v16307_v14  ;;  %v16308_v16 = vunpack.i.l.bf16 %v16307_v14  ;;  %v9379_v12 = vmax.f32 %v9307_v50, %v16304_v59  ;;  %v17502_v59 = vld [vmem:[%s23955_s6 + $0x6a4] ss:$16 sps:$4 sm:$0xff]   ;;  %v17518_v14 = vld [vmem:[%s23955_s6 + $0x700] ss:$16 sps:$4 sm:$0xff]  }
 0x74d   : > { %v9377_v21 = vmax.f32 %v9305_v22, %v9349_v18  ;;  %v9378_v33 = vmax.f32 %v9306_v30, %v9350_v56  ;;  %v9396_v28 = vpack.c.bf16 %v9384_v37, %v9384_v37  ;;  %v17527_v22 = vld [vmem:[%s23955_s6 + $0x540] ss:$16 sps:$4 sm:$0xff]   ;;  %v17535_v30 = vld [vmem:[%s23955_s6 + $0x564] ss:$16 sps:$4 sm:$0xff]  }
 0x74e   : > { %v9354_v26 = vsel %vm5038_vm3, %v16309_v25, %v9342_v63  ;;  %v9352_v24 = vsel %vm5038_vm3, %v16274_v17, %v16308_v16  ;;  %v9353_v38 = vsel %vm5038_vm3, %v16308_v16, %v16309_v25  ;;  %v9302_v17 = vmax.f32 %v22282_v27, %v16289_v32  ;;  %v17491_v27 = vld [vmem:[%s23955_s6 + $0x480] ss:$16 sps:$4 sm:$0xff]   ;;  %v17526_v18 = vld [vmem:[%s23955_s6 + $0x724] ss:$16 sps:$4 sm:$0xff]  }
 0x74f   : > { %v9383_v23 = vmax.f32 %v9311_v47, %v9354_v26  ;;  %v9381_v43 = vmax.f32 %v9309_v1, %v9352_v24  ;;  %v9390_v57 = vpack.c.bf16 %v9378_v33, %v9373_v15  ;;  %v9389_v35 = vpack.c.bf16 %v9377_v21, %v9372_v5  ;;  %v17515_v1 = vld [vmem:[%s23955_s6 + $0x500] ss:$16 sps:$4 sm:$0xff]   ;;  %v17520_v5 = vld [vmem:[%s23955_s6 + $0x704] ss:$16 sps:$4 sm:$0xff]  }
 0x750   : > { %v9382_v20 = vmax.f32 %v9310_v44, %v9353_v38  ;;  %v9374_v10 = vmax.f32 %v9302_v17, %v16294_v46  ;;  %v18206_v32 = vmov 0.0   ;;  %v9420_v29 = vsel %vm9406_vm2, %v9396_v28, 0  ;;  %v17511_v46 = vld [vmem:[%s23955_s6 + $0x4e4] ss:$16 sps:$4 sm:$0xff]   ;;  %v17533_v56 = vld [vmem:[%s23955_s6 + $0x560] ss:$16 sps:$4 sm:$0xff]  }
 0x751   : > { %v9395_v7 = vpack.c.bf16 %v9383_v23, %v9383_v23  ;;  %v9393_v2 = vpack.c.bf16 %v9381_v43, %v9381_v43  ;;  %9465 = vmatprep.subr.bf16.mxu0 %v9390_v57  ;;  %v17508_v44 = vld [vmem:[%s23955_s6 + $0x6c4] ss:$16 sps:$4 sm:$0xff]   ;;  %v17524_v16 = vld [vmem:[%s23955_s6 + $0x720] ss:$16 sps:$4 sm:$0xff]  }
 0x752   : > { %9466 = vmatpush1.bf16.msra.mxu0 %v9389_v35  ;;  %v9394_v8 = vpack.c.bf16 %v9382_v20, %v9382_v20  ;;  %v9391_v40 = vpack.c.bf16 %v9379_v12, %v9374_v10  ;;  %v17541_v25 = vld [vmem:[%s23955_s6 + $0x584] ss:$16 sps:$4 sm:$0xff]   ;;  %v17539_v21 = vld [vmem:[%s23955_s6 + $0x580] ss:$16 sps:$4 sm:$0xff]  }
 0x753   : > { %14934 = vmatprep.subr.msk.bf16.mxu1 %vm9406_vm2, %v9393_v2  ;;  %14936 = vmatprep.subr.msk.bf16.mxu0 %vm9406_vm2, %v9395_v7  ;;  %v17532_v47 = vld [vmem:[%s23955_s6 + $0x744] ss:$16 sps:$4 sm:$0xff]   ;;  %v17530_v15 = vld [vmem:[%s23955_s6 + $0x740] ss:$16 sps:$4 sm:$0xff]  }
 0x754   : > { %9425 = vmatpush1.bf16.msra.mxu1 %v9408_v36  ;;  %v9414_v45 = vsel %vm9406_vm2, %v9394_v8, 0  ;;  %v17547_v63 = vld [vmem:[%s23955_s6 + $0x5a4] ss:$16 sps:$4 sm:$0xff]   ;;  %v17545_v26 = vld [vmem:[%s23955_s6 + $0x5a0] ss:$16 sps:$4 sm:$0xff]  }
 0x755   : > { %10605 = vmatprep.subr.bf16.mxu1 %v17493_v11  ;;  %v17538_v33 = vld [vmem:[%s23955_s6 + $0x764] ss:$16 sps:$4 sm:$0xff]   ;;  %v17536_v38 = vld [vmem:[%s23955_s6 + $0x760] ss:$16 sps:$4 sm:$0xff]  }
 0x756   : > { %9468 = vmatpush1.bf16.msra.mxu0 %v9414_v45  ;;  %v17553_v24 = vld [vmem:[%s23955_s6 + $0x5c4] ss:$16 sps:$4 sm:$0xff]   ;;  %v17551_v23 = vld [vmem:[%s23955_s6 + $0x5c0] ss:$16 sps:$4 sm:$0xff]  }
 0x757   : > { %14935 = vmatmul.mubr.msk.bf16.vlgmr.msra.gmra.mrb[124].mxu1 %vm9402_vm7, %v17490_v62  ;;  %15890 = vmatprep.subr.bf16.mxu0 %v18206_v32  ;;  %v17544_v19 = vld [vmem:[%s23955_s6 + $0x784] ss:$16 sps:$4 sm:$0xff]   ;;  %v17542_v57 = vld [vmem:[%s23955_s6 + $0x780] ss:$16 sps:$4 sm:$0xff]  }
 0x758   : > { %10606 = vmatpush1.bf16.msra.mxu1 %v17491_v27  ;;  %v17559_v43 = vld [vmem:[%s23955_s6 + $0x5e4] ss:$16 sps:$4 sm:$0xff]   ;;  %v17557_v50 = vld [vmem:[%s23955_s6 + $0x5e0] ss:$16 sps:$4 sm:$0xff]  }
 0x759   : > { %14937 = vmatmul.mubr.msk.bf16.vlgmr.msra.gmra.mrb[88].mxu0 %vm9402_vm7, %v17490_v62  ;;  %10607 = vmatprep.subr.bf16.mxu1 %v17499_v6  ;;  %v17550_v35 = vld [vmem:[%s23955_s6 + $0x7a4] ss:$16 sps:$4 sm:$0xff]   ;;  %v17548_v7 = vld [vmem:[%s23955_s6 + $0x7a0] ss:$16 sps:$4 sm:$0xff]  }
 0x75a   : > { %15891 = vmatpush3.bf16.msra.mxu0 %v9391_v40  ;;  %15894 = vmatprep.mubr.msk.bf16.mxu0 %vm18207_vm15, %v18206_v32  ;;  %v17565_v20 = vld [vmem:[%s23955_s6 + $0x604] ss:$16 sps:$4 sm:$0xff]   ;;  %v17563_v11 = vld [vmem:[%s23955_s6 + $0x600] ss:$16 sps:$4 sm:$0xff]  }
 0x75b   : > { %15892 = vmatprep.subr.bf16.mxu0 %v18206_v32  ;;  %v17556_v2 = vld [vmem:[%s23955_s6 + $0x7c4] ss:$16 sps:$4 sm:$0xff]   ;;  %v17554_v8 = vld [vmem:[%s23955_s6 + $0x7c0] ss:$16 sps:$4 sm:$0xff]  }
 0x75c   : > { %10608 = vmatpush1.bf16.msra.mxu1 %v17497_v48  ;;  %v17571_v17 = vld [vmem:[%s23955_s6 + $0x624] ss:$16 sps:$4 sm:$0xff]   ;;  %v17569_v36 = vld [vmem:[%s23955_s6 + $0x620] ss:$16 sps:$4 sm:$0xff]  }
 0x75d   : > { %10609 = vmatprep.subr.bf16.mxu1 %v17505_v61  ;;  %v17562_v60 = vld [vmem:[%s23955_s6 + $0x7e4] ss:$16 sps:$4 sm:$0xff]   ;;  %v17566_v27 = vld [vmem:[%s23955_s6 + $0x800] ss:$16 sps:$4 sm:$0xff]  }
 0x75e   : > { %15893 = vmatpush3.bf16.msra.mxu0 %v9420_v29  ;;  %v17568_v12 = vld [vmem:[%s23955_s6 + $0x804] ss:$16 sps:$4 sm:$0xff]   ;;  %v17572_v37 = vld [vmem:[%s23955_s6 + $0x820] ss:$16 sps:$4 sm:$0xff]   ;;  %v17592_v29 = vld [vmem:[%s23955_s6 + $0x48c] ss:$16 sps:$4 sm:$0xff]  }
 0x75f   : > { %10646 = vmatprep.subr.bf16.mxu0 %v17496_v3  ;;  %v17574_v45 = vld [vmem:[%s23955_s6 + $0x824] ss:$16 sps:$4 sm:$0xff]   ;;  %v17575_v6 = vld [vmem:[%s23955_s6 + $0x640] ss:$16 sps:$4 sm:$0xff]  }
 0x760   : > { %10610 = vmatpush1.bf16.msra.mxu1 %v17503_v55  ;;  %v17577_v10 = vld [vmem:[%s23955_s6 + $0x644] ss:$16 sps:$4 sm:$0xff]   ;;  %v17578_v32 = vld [vmem:[%s23955_s6 + $0x840] ss:$16 sps:$4 sm:$0xff]  }
 0x761   : > { %15895 = vmatmul.mubr.msk.bf16.vlgmr.msra.gmra.mrb[92].mxu0 %vm9402_vm7, %v17490_v62  ;;  %10611 = vmatprep.subr.bf16.mxu1 %v17511_v46  ;;  %v17560_v62 = vld [vmem:[%s23955_s6 + $0x7e0] ss:$16 sps:$4 sm:$0xff]   ;;  %v17580_v40 = vld [vmem:[%s23955_s6 + $0x844] ss:$16 sps:$4 sm:$0xff]  }
 0x762   : > { %10647 = vmatpush1.bf16.msra.mxu0 %v17494_v51  ;;  %v17583_v48 = vld [vmem:[%s23955_s6 + $0x664] ss:$16 sps:$4 sm:$0xff]   ;;  %v17581_v61 = vld [vmem:[%s23955_s6 + $0x660] ss:$16 sps:$4 sm:$0xff]  }
 0x763   : > { %10648 = vmatprep.subr.bf16.mxu0 %v17502_v59  ;;  %v17586_v28 = vld [vmem:[%s23955_s6 + $0x864] ss:$16 sps:$4 sm:$0xff]   ;;  %v17584_v3 = vld [vmem:[%s23955_s6 + $0x860] ss:$16 sps:$4 sm:$0xff]  }
 0x764   : > { %10612 = vmatpush1.bf16.msra.mxu1 %v17509_v54  ;;  %v17589_v55 = vld [vmem:[%s23955_s6 + $0x884] ss:$16 sps:$4 sm:$0xff]  }
 0x765   : > { %10613 = vmatprep.subr.bf16.mxu1 %v17517_v0 }
 0x766   : > { %10649 = vmatpush1.bf16.msra.mxu0 %v17500_v4 }
 0x767   : > { %10650 = vmatprep.subr.bf16.mxu0 %v17508_v44 }
 0x768   : > { %10614 = vmatpush1.bf16.msra.mxu1 %v17515_v1 }
 0x769   : > { %10615 = vmatprep.subr.bf16.mxu1 %v17523_v53 }
 0x76a   : > { %10651 = vmatpush1.bf16.msra.mxu0 %v17506_v39 }
 0x76b   : > { %10652 = vmatprep.subr.bf16.mxu0 %v17514_v9 }
 0x76c   : > { %10616 = vmatpush1.bf16.msra.mxu1 %v17521_v52 }
 0x76d   : > { %10617 = vmatprep.subr.bf16.mxu1 %v17529_v58 }
 0x76e   : > { %10653 = vmatpush1.bf16.msra.mxu0 %v17512_v49 }
 0x76f   : > { %10654 = vmatprep.subr.bf16.mxu0 %v17520_v5 }
 0x770   : > { %10618 = vmatpush1.bf16.msra.mxu1 %v17527_v22 }
 0x771   : > { %10619 = vmatprep.subr.bf16.mxu1 %v17535_v30 }
 0x772   : > { %10655 = vmatpush1.bf16.msra.mxu0 %v17518_v14 }
 0x773   : > { %10656 = vmatprep.subr.bf16.mxu0 %v17526_v18 }
 0x774   : > { %10620 = vmatpush1.bf16.msra.mxu1 %v17533_v56 }
 0x775   : > { %10621 = vmatprep.subr.bf16.mxu1 %v17541_v25 }
 0x776   : > { %10657 = vmatpush1.bf16.msra.mxu0 %v17524_v16 }
 0x777   : > { %10658 = vmatprep.subr.bf16.mxu0 %v17532_v47 }
 0x778   : > { %10622 = vmatpush1.bf16.msra.mxu1 %v17539_v21 }
 0x779   : > { %10623 = vmatprep.subr.bf16.mxu1 %v17547_v63 }
 0x77a   : > { %10659 = vmatpush1.bf16.msra.mxu0 %v17530_v15  ;;  %v17587_v15 = vld [vmem:[%s23955_s6 + $0x880] ss:$16 sps:$4 sm:$0xff]  }
 0x77b   : > { %10660 = vmatprep.subr.bf16.mxu0 %v17538_v33 }
 0x77c   : > { %10624 = vmatpush1.bf16.msra.mxu1 %v17545_v26 }
 0x77d   : > { %10625 = vmatprep.subr.bf16.mxu1 %v17553_v24 }
 0x77e   : > { %10661 = vmatpush1.bf16.msra.mxu0 %v17536_v38 }
 0x77f   : > { %10662 = vmatprep.subr.bf16.mxu0 %v17544_v19  ;;  %v17595_v19 = vld [vmem:[%s23955_s6 + $0x8a4] ss:$16 sps:$4 sm:$0xff]  }
 0x780   : > { %10626 = vmatpush1.bf16.msra.mxu1 %v17551_v23 }
 0x781   : > { %10627 = vmatprep.subr.bf16.mxu1 %v17559_v43 }
 0x782   : > { %10663 = vmatpush1.bf16.msra.mxu0 %v17542_v57 }
 0x783   : > { %10664 = vmatprep.subr.bf16.mxu0 %v17550_v35  ;;  %v17590_v35 = vld [vmem:[%s23955_s6 + $0x488] ss:$16 sps:$4 sm:$0xff]  }
 0x784   : > { %10628 = vmatpush1.bf16.msra.mxu1 %v17557_v50 }
 0x785   : > { %10629 = vmatprep.subr.bf16.mxu1 %v17565_v20 }
 0x786   : > { %10665 = vmatpush1.bf16.msra.mxu0 %v17548_v7 }
 0x787   : > { %10666 = vmatprep.subr.bf16.mxu0 %v17556_v2  ;;  %v17593_v2 = vld [vmem:[%s23955_s6 + $0x8a0] ss:$16 sps:$4 sm:$0xff]  }
 0x788   : > { %10630 = vmatpush1.bf16.msra.mxu1 %v17563_v11  ;;  %v17598_v11 = vld [vmem:[%s23955_s6 + $0x4ac] ss:$16 sps:$4 sm:$0xff]  }
 0x789   : > { %10631 = vmatprep.subr.bf16.mxu1 %v17571_v17 }
 0x78a   : > { %10667 = vmatpush1.bf16.msra.mxu0 %v17554_v8  ;;  %v17601_v8 = vld [vmem:[%s23955_s6 + $0x8c4] ss:$16 sps:$4 sm:$0xff]  }
 0x78b   : > { %10668 = vmatprep.subr.bf16.mxu0 %v17562_v60 }
 0x78c   : > { %10632 = vmatpush1.bf16.msra.mxu1 %v17569_v36 }
 0x78d   : > { %10633 = vmatprep.subr.bf16.mxu1 %v17577_v10 }
 0x78e   : > { %10669 = vmatpush1.bf16.msra.mxu0 %v17560_v62  ;;  %v17596_v62 = vld [vmem:[%s23955_s6 + $0x4a8] ss:$16 sps:$4 sm:$0xff]  }
 0x78f   : > { %10670 = vmatprep.subr.bf16.mxu0 %v17568_v12 }
 0x790   : > { %10634 = vmatpush1.bf16.msra.mxu1 %v17575_v6 }
 0x791   : > { %10635 = vmatprep.subr.bf16.mxu1 %v17583_v48  ;;  %v17610_v48 = vld [vmem:[%s23955_s6 + $0x4ec] ss:$16 sps:$4 sm:$0xff]  }
 0x792   : > { %10671 = vmatpush1.bf16.msra.mxu0 %v17566_v27  ;;  %v17599_v27 = vld [vmem:[%s23955_s6 + $0x8c0] ss:$16 sps:$4 sm:$0xff]  }
 0x793   : > { %10672 = vmatprep.subr.bf16.mxu0 %v17574_v45  ;;  %v17607_v45 = vld [vmem:[%s23955_s6 + $0x8e4] ss:$16 sps:$4 sm:$0xff]  }
 0x794   : > { %10636 = vmatpush1.bf16.msra.mxu1 %v17581_v61 }
 0x795   : > { %10687 = vmatprep.subr.bf16.mxu1 %v17589_v55  ;;  %v17611_v55 = vld [vmem:[%s23955_s6 + $0x688] ss:$16 sps:$4 sm:$0xff]  }
 0x796   : > { %10673 = vmatpush1.bf16.msra.mxu0 %v17572_v37  ;;  %v17604_v37 = vld [vmem:[%s23955_s6 + $0x4cc] ss:$16 sps:$4 sm:$0xff]  }
 0x797   : > { %10674 = vmatprep.subr.bf16.mxu0 %v17580_v40  ;;  %v17605_v40 = vld [vmem:[%s23955_s6 + $0x8e0] ss:$16 sps:$4 sm:$0xff]  }
 0x79a   : > { %10675 = vmatpush1.bf16.msra.mxu0 %v17578_v32  ;;  %v17602_v32 = vld [vmem:[%s23955_s6 + $0x4c8] ss:$16 sps:$4 sm:$0xff]  }
 0x79b   : > { %10676 = vmatprep.subr.bf16.mxu0 %v17586_v28  ;;  %v17613_v28 = vld [vmem:[%s23955_s6 + $0x68c] ss:$16 sps:$4 sm:$0xff]  }
 0x79e   : > { %10677 = vmatpush1.bf16.msra.mxu0 %v17584_v3  ;;  %v17608_v3 = vld [vmem:[%s23955_s6 + $0x4e8] ss:$16 sps:$4 sm:$0xff]  }
 0x79f   : > { %10728 = vmatprep.subr.bf16.mxu0 %v17592_v29  ;;  %v17616_v29 = vld [vmem:[%s23955_s6 + $0x50c] ss:$16 sps:$4 sm:$0xff]  }
 0x82a   : > { %v22579_v46 = vpop.f32.mrb[124].mxu1 }
 0x82b   : > { %v22583_v51 = vpack.c.bf16 %v22579_v46, %v22579_v46  ;;  %v22585_v59 = vpop.f32.mrb[125].mxu1 }
 0x82c   : > { %v22589_v54 = vpack.c.bf16 %v22585_v59, %v22585_v59  ;;  %v22591_v0 = vpop.f32.mrb[88].mxu0  ;;  %v22593_v4 = vpop.f32.mrb[126].mxu1 }
 0x82d   : > { %v9846_v44 = vshll.u32 %v22583_v51, 16  ;;  %v22598_v1 = vpack.c.bf16 %v22591_v0, %v22591_v0  ;;  %v22600_v53 = vpop.f32.mrb[89].mxu0  ;;  %v11819_v39 = vpack.c.bf16 %v22593_v4, %v22579_v46  ;;  %v22604_v9 = vpop.f32.mrb[127].mxu1  ;;  %v9844_v47 = vshrl.u32 %v22583_v51, 16  ;;  %v18025_v46 = vld [vmem:[%s23955_s6 + $0xd20] ss:$16 sps:$4 sm:$0xff]  }
 0x82e   : > { %v22608_v52 = vpack.c.bf16 %v22600_v53, %v22600_v53  ;;  %v11820_v58 = vpack.c.bf16 %v22604_v9, %v22585_v59  ;;  %v22612_v49 = vpop.f32.mrb[90].mxu0  ;;  %v9853_v5 = vshll.u32 %v22589_v54, 16  ;;  %v9851_v56 = vshrl.u32 %v22589_v54, 16  ;;  %v17934_v59 = vld [vmem:[%s23955_s6 + $0xb24] ss:$16 sps:$4 sm:$0xff]  }
 0x82f   : > { %v9860_v22 = vshll.u32 %v22598_v1, 16  ;;  %v11821_v30 = vpack.c.bf16 %v22612_v49, %v22591_v0  ;;  %v22618_v14 = vpop.f32.mrb[91].mxu0  ;;  %v9848_v18 = vrot.slane %v9846_v44, 1  ;;  %v9858_v23 = vshrl.u32 %v22598_v1, 16  ;;  %v17619_v44 = vld [vmem:[%s23955_s6 + $0x6ac] ss:$16 sps:$4 sm:$0xff]  }
 0x830   : > { %v9855_v25 = vrot.slane %v9853_v5, 1  ;;  %v11822_v16 = vpack.c.bf16 %v22618_v14, %v22600_v53  ;;  %v9867_v21 = vshll.u32 %v22608_v52, 16  ;;  %v9865_v24 = vshrl.u32 %v22608_v52, 16  ;;  %v17614_v5 = vld [vmem:[%s23955_s6 + $0x508] ss:$16 sps:$4 sm:$0xff]  }
 0x831   : > { %v9862_v33 = vrot.slane %v9860_v22, 1  ;;  %v22628_v26 = vor.u32 %v9848_v18, %v9844_v47  ;;  %v17617_v22 = vld [vmem:[%s23955_s6 + $0x6a8] ss:$16 sps:$4 sm:$0xff]   ;;  %v17622_v18 = vld [vmem:[%s23955_s6 + $0x52c] ss:$16 sps:$4 sm:$0xff]  }
 0x832   : > { %v9856_v63 = vor.u32 %v9855_v25, %v9851_v56  ;;  %v9869_v38 = vrot.slane %v9867_v21, 1  ;;  %v17625_v56 = vld [vmem:[%s23955_s6 + $0x6cc] ss:$16 sps:$4 sm:$0xff]   ;;  %v17620_v25 = vld [vmem:[%s23955_s6 + $0x528] ss:$16 sps:$4 sm:$0xff]   ;;  %v23363_v9 = vrot.slane %v11822_v16, 1 }
 0x833   : > { %v22645_v7 = vor.u32 %v9862_v33, %v9858_v23  ;;  %v17623_v47 = vld [vmem:[%s23955_s6 + $0x6c8] ss:$16 sps:$4 sm:$0xff]   ;;  %v17628_v21 = vld [vmem:[%s23955_s6 + $0x54c] ss:$16 sps:$4 sm:$0xff]   ;;  %v17932_v53 = vld [vmem:[%s23955_s6 + $0xb20] ss:$16 sps:$4 sm:$0xff]  }
 0x834   : > { %10637 = vmatprep.mubr.bf16.mxu1 %v9856_v63  ;;  %v22635_v43 = vpop.f32.mrb[92].mxu0  ;;  %v9870_v57 = vor.u32 %v9869_v38, %v9865_v24  ;;  %v17629_v33 = vld [vmem:[%s23955_s6 + $0x6e8] ss:$16 sps:$4 sm:$0xff]   ;;  %v17634_v24 = vld [vmem:[%s23955_s6 + $0x56c] ss:$16 sps:$4 sm:$0xff]  }
 0x835   : > { %10638 = vmatmul.mubr.bf16.vlgmr.msra.gmra.mrb[128].mxu1 %v22628_v26  ;;  %v22643_v50 = vpack.c.bf16 %v22635_v43, %v22635_v43  ;;  %v15896_v20 = vpop.f32.mrb[93].mxu0  ;;  %v17637_v38 = vld [vmem:[%s23955_s6 + $0x70c] ss:$16 sps:$4 sm:$0xff]   ;;  %v17635_v23 = vld [vmem:[%s23955_s6 + $0x708] ss:$16 sps:$4 sm:$0xff]  }
 0x836   : > { %10688 = vmatpush1.bf16.msra.mxu1 %v17587_v15  ;;  %10719 = vmatprep.mubr.bf16.mxu1 %v23995_v13  ;;  %v22654_v17 = vpop.f32.mrb[94].mxu0  ;;  %v17626_v15 = vld [vmem:[%s23955_s6 + $0x548] ss:$16 sps:$4 sm:$0xff]   ;;  %v17935_v16 = vld [vmem:[%s23955_s6 + $0x940] ss:$16 sps:$4 sm:$0xff]  }
 0x837   : > { %10678 = vmatprep.mubr.bf16.mxu0 %v9870_v57  ;;  %10689 = vmatprep.subr.bf16.mxu1 %v17595_v19  ;;  %v11823_v60 = vpack.c.bf16 %v22654_v17, %v22635_v43  ;;  %v15897_v36 = vpop.f32.mrb[95].mxu0  ;;  %v9874_v12 = vshll.u32 %v22643_v50, 16  ;;  %v9872_v6 = vshrl.u32 %v22643_v50, 16  ;;  %v17632_v19 = vld [vmem:[%s23955_s6 + $0x568] ss:$16 sps:$4 sm:$0xff]  }
 0x838   : > { %10679 = vmatmul.mubr.bf16.vlgmr.msra.gmra.mrb[96].mxu0 %v22645_v7  ;;  %v17638_v20 = vld [vmem:[%s23955_s6 + $0x588] ss:$16 sps:$4 sm:$0xff]   ;;  %v18030_v4 = vld [vmem:[%s23955_s6 + $0x92c] ss:$16 sps:$4 sm:$0xff]  }
 0x839   : > { %10729 = vmatpush1.bf16.msra.mxu0 %v17590_v35  ;;  %10760 = vmatprep.mubr.bf16.mxu0 %v9856_v63  ;;  %v9876_v10 = vrot.slane %v9874_v12, 1  ;;  %v17631_v63 = vld [vmem:[%s23955_s6 + $0x6ec] ss:$16 sps:$4 sm:$0xff]   ;;  %v17644_v36 = vld [vmem:[%s23955_s6 + $0x5a8] ss:$16 sps:$4 sm:$0xff]  }
 0x83a   : > { %10690 = vmatpush1.bf16.msra.mxu1 %v17593_v2  ;;  %10730 = vmatprep.subr.bf16.mxu0 %v17598_v11  ;;  %v17643_v35 = vld [vmem:[%s23955_s6 + $0x72c] ss:$16 sps:$4 sm:$0xff]   ;;  %v17641_v2 = vld [vmem:[%s23955_s6 + $0x728] ss:$16 sps:$4 sm:$0xff]  }
 0x83b   : > { %10691 = vmatprep.subr.bf16.mxu1 %v17601_v8  ;;  %v22688_v61 = vor.u32 %v9876_v10, %v9872_v6  ;;  %v17646_v11 = vld [vmem:[%s23955_s6 + $0x5ac] ss:$16 sps:$4 sm:$0xff]   ;;  %v18049_v43 = vld [vmem:[%s23955_s6 + $0xb28] ss:$16 sps:$4 sm:$0xff]  }
 0x83c   : > { %v17649_v8 = vld [vmem:[%s23955_s6 + $0x74c] ss:$16 sps:$4 sm:$0xff]  }
 0x83d   : > { %10731 = vmatpush1.bf16.msra.mxu0 %v17596_v62  ;;  %v17647_v62 = vld [vmem:[%s23955_s6 + $0x748] ss:$16 sps:$4 sm:$0xff]   ;;  %v17652_v12 = vld [vmem:[%s23955_s6 + $0x5cc] ss:$16 sps:$4 sm:$0xff]  }
 0x83e   : > { %10692 = vmatpush1.bf16.msra.mxu1 %v17599_v27  ;;  %10732 = vmatprep.subr.bf16.mxu0 %v17604_v37  ;;  %v17655_v27 = vld [vmem:[%s23955_s6 + $0x76c] ss:$16 sps:$4 sm:$0xff]   ;;  %v17650_v37 = vld [vmem:[%s23955_s6 + $0x5c8] ss:$16 sps:$4 sm:$0xff]  }
 0x83f   : > { %10693 = vmatprep.subr.bf16.mxu1 %v17607_v45  ;;  %v17653_v45 = vld [vmem:[%s23955_s6 + $0x768] ss:$16 sps:$4 sm:$0xff]   ;;  %v17658_v6 = vld [vmem:[%s23955_s6 + $0x5ec] ss:$16 sps:$4 sm:$0xff]  }
 0x840   : > { %v17661_v10 = vld [vmem:[%s23955_s6 + $0x78c] ss:$16 sps:$4 sm:$0xff]  }
 0x841   : > { %10733 = vmatpush1.bf16.msra.mxu0 %v17602_v32  ;;  %v17656_v32 = vld [vmem:[%s23955_s6 + $0x5e8] ss:$16 sps:$4 sm:$0xff]   ;;  %v18054_v17 = vld [vmem:[%s23955_s6 + $0x9ac] ss:$16 sps:$4 sm:$0xff]  }
 0x842   : > { %10694 = vmatpush1.bf16.msra.mxu1 %v17605_v40  ;;  %10734 = vmatprep.subr.bf16.mxu0 %v17610_v48  ;;  %v17659_v40 = vld [vmem:[%s23955_s6 + $0x788] ss:$16 sps:$4 sm:$0xff]   ;;  %v17664_v48 = vld [vmem:[%s23955_s6 + $0x60c] ss:$16 sps:$4 sm:$0xff]  }
 0x843   : > { %10769 = vmatprep.subr.bf16.mxu1 %v17613_v28  ;;  %v17667_v28 = vld [vmem:[%s23955_s6 + $0x7ac] ss:$16 sps:$4 sm:$0xff]  }
 0x845   : > { %10735 = vmatpush1.bf16.msra.mxu0 %v17608_v3  ;;  %15227 = vmatmul.mubr.msk.bf16.vlgmr.msra.gmra.mrb[132].mxu1 %vm5038_vm3, %v22688_v61  ;;  %v17662_v3 = vld [vmem:[%s23955_s6 + $0x608] ss:$16 sps:$4 sm:$0xff]  }
 0x846   : > { %10770 = vmatpush1.bf16.msra.mxu1 %v17611_v55  ;;  %10801 = vmatprep.mubr.bf16.mxu1 %v9870_v57  ;;  %v17640_v57 = vld [vmem:[%s23955_s6 + $0x58c] ss:$16 sps:$4 sm:$0xff]   ;;  %v17665_v55 = vld [vmem:[%s23955_s6 + $0x7a8] ss:$16 sps:$4 sm:$0xff]  }
 0x847   : > { %10736 = vmatprep.subr.bf16.mxu0 %v17616_v29  ;;  %10771 = vmatprep.subr.bf16.mxu1 %v17619_v44  ;;  %v17670_v29 = vld [vmem:[%s23955_s6 + $0x62c] ss:$16 sps:$4 sm:$0xff]  }
 0x848   : > { %v17673_v44 = vld [vmem:[%s23955_s6 + $0x7cc] ss:$16 sps:$4 sm:$0xff]  }
 0x849   : > { %10737 = vmatpush1.bf16.msra.mxu0 %v17614_v5  ;;  %v17668_v5 = vld [vmem:[%s23955_s6 + $0x628] ss:$16 sps:$4 sm:$0xff]  }
 0x84a   : > { %10772 = vmatpush1.bf16.msra.mxu1 %v17617_v22  ;;  %10738 = vmatprep.subr.bf16.mxu0 %v17622_v18  ;;  %v17671_v22 = vld [vmem:[%s23955_s6 + $0x7c8] ss:$16 sps:$4 sm:$0xff]   ;;  %v17676_v18 = vld [vmem:[%s23955_s6 + $0x64c] ss:$16 sps:$4 sm:$0xff]  }
 0x84b   : > { %10773 = vmatprep.subr.bf16.mxu1 %v17625_v56  ;;  %v17679_v56 = vld [vmem:[%s23955_s6 + $0x7ec] ss:$16 sps:$4 sm:$0xff]  }
 0x84d   : > { %10739 = vmatpush1.bf16.msra.mxu0 %v17620_v25  ;;  %v17674_v25 = vld [vmem:[%s23955_s6 + $0x648] ss:$16 sps:$4 sm:$0xff]  }
 0x84e   : > { %10774 = vmatpush1.bf16.msra.mxu1 %v17623_v47  ;;  %10740 = vmatprep.subr.bf16.mxu0 %v17628_v21  ;;  %v17677_v47 = vld [vmem:[%s23955_s6 + $0x7e8] ss:$16 sps:$4 sm:$0xff]   ;;  %v17682_v21 = vld [vmem:[%s23955_s6 + $0x66c] ss:$16 sps:$4 sm:$0xff]  }
 0x84f   : > { %10775 = vmatprep.subr.bf16.mxu1 %v17631_v63  ;;  %v17685_v63 = vld [vmem:[%s23955_s6 + $0x80c] ss:$16 sps:$4 sm:$0xff]  }
 0x851   : > { %10741 = vmatpush1.bf16.msra.mxu0 %v17626_v15  ;;  %v17680_v15 = vld [vmem:[%s23955_s6 + $0x668] ss:$16 sps:$4 sm:$0xff]  }
 0x852   : > { %10776 = vmatpush1.bf16.msra.mxu1 %v17629_v33  ;;  %10742 = vmatprep.subr.bf16.mxu0 %v17634_v24  ;;  %v17683_v33 = vld [vmem:[%s23955_s6 + $0x808] ss:$16 sps:$4 sm:$0xff]   ;;  %v17688_v24 = vld [vmem:[%s23955_s6 + $0x88c] ss:$16 sps:$4 sm:$0xff]  }
 0x853   : > { %10777 = vmatprep.subr.bf16.mxu1 %v17637_v38  ;;  %v17691_v38 = vld [vmem:[%s23955_s6 + $0x82c] ss:$16 sps:$4 sm:$0xff]  }
 0x855   : > { %10743 = vmatpush1.bf16.msra.mxu0 %v17632_v19  ;;  %v17686_v19 = vld [vmem:[%s23955_s6 + $0x888] ss:$16 sps:$4 sm:$0xff]  }
 0x856   : > { %10778 = vmatpush1.bf16.msra.mxu1 %v17635_v23  ;;  %10744 = vmatprep.subr.bf16.mxu0 %v17640_v57  ;;  %v17689_v23 = vld [vmem:[%s23955_s6 + $0x828] ss:$16 sps:$4 sm:$0xff]   ;;  %v17694_v57 = vld [vmem:[%s23955_s6 + $0x8ac] ss:$16 sps:$4 sm:$0xff]  }
 0x857   : > { %10779 = vmatprep.subr.bf16.mxu1 %v17643_v35  ;;  %v17697_v35 = vld [vmem:[%s23955_s6 + $0x84c] ss:$16 sps:$4 sm:$0xff]  }
 0x859   : > { %10745 = vmatpush1.bf16.msra.mxu0 %v17638_v20  ;;  %v17692_v20 = vld [vmem:[%s23955_s6 + $0x8a8] ss:$16 sps:$4 sm:$0xff]  }
 0x85a   : > { %10780 = vmatpush1.bf16.msra.mxu1 %v17641_v2  ;;  %10746 = vmatprep.subr.bf16.mxu0 %v17646_v11  ;;  %v17695_v2 = vld [vmem:[%s23955_s6 + $0x848] ss:$16 sps:$4 sm:$0xff]   ;;  %v17700_v11 = vld [vmem:[%s23955_s6 + $0x8cc] ss:$16 sps:$4 sm:$0xff]  }
 0x85b   : > { %10781 = vmatprep.subr.bf16.mxu1 %v17649_v8  ;;  %v17698_v8 = vld [vmem:[%s23955_s6 + $0x8c8] ss:$16 sps:$4 sm:$0xff]  }
 0x85d   : > { %10747 = vmatpush1.bf16.msra.mxu0 %v17644_v36  ;;  %v17701_v36 = vld [vmem:[%s23955_s6 + $0x868] ss:$16 sps:$4 sm:$0xff]  }
 0x85e   : > { %10782 = vmatpush1.bf16.msra.mxu1 %v17647_v62  ;;  %10748 = vmatprep.subr.bf16.mxu0 %v17652_v12  ;;  %v17706_v62 = vld [vmem:[%s23955_s6 + $0x8ec] ss:$16 sps:$4 sm:$0xff]   ;;  %v17709_v12 = vld [vmem:[%s23955_s6 + $0x4] ss:$16 sps:$4 sm:$0xff]  }
 0x85f   : > { %10783 = vmatprep.subr.bf16.mxu1 %v17655_v27  ;;  %v17704_v27 = vld [vmem:[%s23955_s6 + $0x8e8] ss:$16 sps:$4 sm:$0xff]  }
 0x861   : > { %10749 = vmatpush1.bf16.msra.mxu0 %v17650_v37  ;;  %v17707_v37 = vld [vmem:[%s23955_s6] ss:$16 sps:$4 sm:$0xff]  }
 0x862   : > { %10784 = vmatpush1.bf16.msra.mxu1 %v17653_v45  ;;  %10750 = vmatprep.subr.bf16.mxu0 %v17658_v6  ;;  %v17712_v45 = vld [vmem:[%s23955_s6 + $0x204] ss:$16 sps:$4 sm:$0xff]  }
 0x863   : > { %10785 = vmatprep.subr.bf16.mxu1 %v17661_v10  ;;  %v17715_v6 = vld [vmem:[%s23955_s6 + $0x24] ss:$16 sps:$4 sm:$0xff]   ;;  %v17710_v10 = vld [vmem:[%s23955_s6 + $0x200] ss:$16 sps:$4 sm:$0xff]  }
 0x865   : > { %10751 = vmatpush1.bf16.msra.mxu0 %v17656_v32  ;;  %v17713_v32 = vld [vmem:[%s23955_s6 + $0x20] ss:$16 sps:$4 sm:$0xff]  }
 0x866   : > { %10786 = vmatpush1.bf16.msra.mxu1 %v17659_v40  ;;  %10752 = vmatprep.subr.bf16.mxu0 %v17664_v48  ;;  %v17718_v40 = vld [vmem:[%s23955_s6 + $0x224] ss:$16 sps:$4 sm:$0xff]   ;;  %v17716_v48 = vld [vmem:[%s23955_s6 + $0x220] ss:$16 sps:$4 sm:$0xff]  }
 0x867   : > { %10787 = vmatprep.subr.bf16.mxu1 %v17667_v28  ;;  %v17719_v28 = vld [vmem:[%s23955_s6 + $0x40] ss:$16 sps:$4 sm:$0xff]  }
 0x869   : > { %10753 = vmatpush1.bf16.msra.mxu0 %v17662_v3  ;;  %v17724_v3 = vld [vmem:[%s23955_s6 + $0x244] ss:$16 sps:$4 sm:$0xff]  }
 0x86a   : > { %10788 = vmatpush1.bf16.msra.mxu1 %v17665_v55  ;;  %10754 = vmatprep.subr.bf16.mxu0 %v17670_v29  ;;  %v17722_v55 = vld [vmem:[%s23955_s6 + $0x240] ss:$16 sps:$4 sm:$0xff]  }
 0x86b   : > { %10789 = vmatprep.subr.bf16.mxu1 %v17673_v44  ;;  %v17725_v29 = vld [vmem:[%s23955_s6 + $0x60] ss:$16 sps:$4 sm:$0xff]   ;;  %v17730_v44 = vld [vmem:[%s23955_s6 + $0x264] ss:$16 sps:$4 sm:$0xff]  }
 0x86d   : > { %10755 = vmatpush1.bf16.msra.mxu0 %v17668_v5  ;;  %v17733_v5 = vld [vmem:[%s23955_s6 + $0x84] ss:$16 sps:$4 sm:$0xff]  }
 0x86e   : > { %10790 = vmatpush1.bf16.msra.mxu1 %v17671_v22  ;;  %10756 = vmatprep.subr.bf16.mxu0 %v17676_v18  ;;  %v17728_v22 = vld [vmem:[%s23955_s6 + $0x260] ss:$16 sps:$4 sm:$0xff]  }
 0x86f   : > { %10791 = vmatprep.subr.bf16.mxu1 %v17679_v56  ;;  %v17731_v18 = vld [vmem:[%s23955_s6 + $0x80] ss:$16 sps:$4 sm:$0xff]   ;;  %v17736_v56 = vld [vmem:[%s23955_s6 + $0x284] ss:$16 sps:$4 sm:$0xff]  }
 0x871   : > { %10757 = vmatpush1.bf16.msra.mxu0 %v17674_v25  ;;  %v17739_v25 = vld [vmem:[%s23955_s6 + $0xa4] ss:$16 sps:$4 sm:$0xff]  }
 0x872   : > { %10792 = vmatpush1.bf16.msra.mxu1 %v17677_v47  ;;  %10758 = vmatprep.subr.bf16.mxu0 %v17682_v21  ;;  %v17734_v47 = vld [vmem:[%s23955_s6 + $0x280] ss:$16 sps:$4 sm:$0xff]  }
 0x873   : > { %10793 = vmatprep.subr.bf16.mxu1 %v17685_v63  ;;  %v17737_v21 = vld [vmem:[%s23955_s6 + $0xa0] ss:$16 sps:$4 sm:$0xff]   ;;  %v17742_v63 = vld [vmem:[%s23955_s6 + $0x2a4] ss:$16 sps:$4 sm:$0xff]  }
 0x875   : > { %10759 = vmatpush1.bf16.msra.mxu0 %v17680_v15  ;;  %v17745_v15 = vld [vmem:[%s23955_s6 + $0xc4] ss:$16 sps:$4 sm:$0xff]  }
 0x876   : > { %10794 = vmatpush1.bf16.msra.mxu1 %v17683_v33  ;;  %10810 = vmatprep.subr.bf16.mxu0 %v17688_v24  ;;  %v17740_v33 = vld [vmem:[%s23955_s6 + $0x2a0] ss:$16 sps:$4 sm:$0xff]  }
 0x877   : > { %10795 = vmatprep.subr.bf16.mxu1 %v17691_v38  ;;  %v17743_v24 = vld [vmem:[%s23955_s6 + $0xc0] ss:$16 sps:$4 sm:$0xff]   ;;  %v17748_v38 = vld [vmem:[%s23955_s6 + $0x2c4] ss:$16 sps:$4 sm:$0xff]  }
 0x878   : > { %10761 = vmatmul.mubr.bf16.vlgmr.msra.gmra.mrb[100].mxu0 %v22628_v26  ;;  %v17703_v26 = vld [vmem:[%s23955_s6 + $0x86c] ss:$16 sps:$4 sm:$0xff]  }
 0x879   : > { %10811 = vmatpush1.bf16.msra.mxu0 %v17686_v19  ;;  %10842 = vmatprep.mubr.bf16.mxu0 %v23995_v13  ;;  %v17751_v19 = vld [vmem:[%s23955_s6 + $0xe4] ss:$16 sps:$4 sm:$0xff]  }
 0x87a   : > { %10796 = vmatpush1.bf16.msra.mxu1 %v17689_v23  ;;  %10812 = vmatprep.subr.bf16.mxu0 %v17694_v57  ;;  %v17746_v23 = vld [vmem:[%s23955_s6 + $0x2c0] ss:$16 sps:$4 sm:$0xff]  }
 0x87b   : > { %10797 = vmatprep.subr.bf16.mxu1 %v17697_v35  ;;  %v17749_v57 = vld [vmem:[%s23955_s6 + $0xe0] ss:$16 sps:$4 sm:$0xff]   ;;  %v17754_v35 = vld [vmem:[%s23955_s6 + $0x2e4] ss:$16 sps:$4 sm:$0xff]  }
 0x87d   : > { %10813 = vmatpush1.bf16.msra.mxu0 %v17692_v20  ;;  %v17757_v20 = vld [vmem:[%s23955_s6 + $0x104] ss:$16 sps:$4 sm:$0xff]  }
 0x87e   : > { %10798 = vmatpush1.bf16.msra.mxu1 %v17695_v2  ;;  %10814 = vmatprep.subr.bf16.mxu0 %v17700_v11  ;;  %v17752_v2 = vld [vmem:[%s23955_s6 + $0x2e0] ss:$16 sps:$4 sm:$0xff]  }
 0x87f   : > { %10799 = vmatprep.subr.bf16.mxu1 %v17703_v26  ;;  %v17755_v11 = vld [vmem:[%s23955_s6 + $0x100] ss:$16 sps:$4 sm:$0xff]   ;;  %v17760_v26 = vld [vmem:[%s23955_s6 + $0x304] ss:$16 sps:$4 sm:$0xff]  }
 0x881   : > { %10815 = vmatpush1.bf16.msra.mxu0 %v17698_v8  ;;  %v17763_v8 = vld [vmem:[%s23955_s6 + $0x124] ss:$16 sps:$4 sm:$0xff]  }
 0x882   : > { %10800 = vmatpush1.bf16.msra.mxu1 %v17701_v36  ;;  %10816 = vmatprep.subr.bf16.mxu0 %v17706_v62  ;;  %v17758_v36 = vld [vmem:[%s23955_s6 + $0x300] ss:$16 sps:$4 sm:$0xff]  }
 0x883   : > { %11573 = vmatprep.subr.bf16.mxu1 %v17709_v12  ;;  %v17761_v62 = vld [vmem:[%s23955_s6 + $0x120] ss:$16 sps:$4 sm:$0xff]   ;;  %v17766_v12 = vld [vmem:[%s23955_s6 + $0x324] ss:$16 sps:$4 sm:$0xff]  }
 0x885   : > { %10817 = vmatpush1.bf16.msra.mxu0 %v17704_v27  ;;  %10802 = vmatmul.mubr.bf16.vlgmr.msra.gmra.mrb[136].mxu1 %v22645_v7  ;;  %v17721_v7 = vld [vmem:[%s23955_s6 + $0x44] ss:$16 sps:$4 sm:$0xff]  }
 0x886   : > { %11574 = vmatpush1.bf16.msra.mxu1 %v17707_v37  ;;  %11605 = vmatprep.mubr.bf16.mxu1 %v22589_v54  ;;  %v17769_v27 = vld [vmem:[%s23955_s6 + $0x144] ss:$16 sps:$4 sm:$0xff]   ;;  %v17764_v37 = vld [vmem:[%s23955_s6 + $0x320] ss:$16 sps:$4 sm:$0xff]  }
 0x887   : > { %11614 = vmatprep.subr.bf16.mxu0 %v17712_v45  ;;  %11575 = vmatprep.subr.bf16.mxu1 %v17715_v6  ;;  %v17767_v45 = vld [vmem:[%s23955_s6 + $0x140] ss:$16 sps:$4 sm:$0xff]   ;;  %v17772_v6 = vld [vmem:[%s23955_s6 + $0x344] ss:$16 sps:$4 sm:$0xff]  }
 0x888   : > { %15228 = vmatmul.mubr.msk.bf16.vlgmr.msra.gmra.mrb[104].mxu0 %vm5038_vm3, %v22688_v61  ;;  %v17727_v61 = vld [vmem:[%s23955_s6 + $0x64] ss:$16 sps:$4 sm:$0xff]  }
 0x889   : > { %11615 = vmatpush1.bf16.msra.mxu0 %v17710_v10  ;;  %11646 = vmatprep.mubr.bf16.mxu0 %v22608_v52  ;;  %v17775_v10 = vld [vmem:[%s23955_s6 + $0x164] ss:$16 sps:$4 sm:$0xff]  }
 0x88a   : > { %11576 = vmatpush1.bf16.msra.mxu1 %v17713_v32  ;;  %11616 = vmatprep.subr.bf16.mxu0 %v17718_v40  ;;  %v17770_v32 = vld [vmem:[%s23955_s6 + $0x340] ss:$16 sps:$4 sm:$0xff]  }
 0x88b   : > { %11577 = vmatprep.subr.bf16.mxu1 %v17721_v7  ;;  %v17773_v40 = vld [vmem:[%s23955_s6 + $0x160] ss:$16 sps:$4 sm:$0xff]   ;;  %v17778_v7 = vld [vmem:[%s23955_s6 + $0x364] ss:$16 sps:$4 sm:$0xff]  }
 0x88d   : > { %11617 = vmatpush1.bf16.msra.mxu0 %v17716_v48  ;;  %v17781_v48 = vld [vmem:[%s23955_s6 + $0x184] ss:$16 sps:$4 sm:$0xff]  }
 0x88e   : > { %11578 = vmatpush1.bf16.msra.mxu1 %v17719_v28  ;;  %11618 = vmatprep.subr.bf16.mxu0 %v17724_v3  ;;  %v17776_v28 = vld [vmem:[%s23955_s6 + $0x360] ss:$16 sps:$4 sm:$0xff]  }
 0x88f   : > { %11579 = vmatprep.subr.bf16.mxu1 %v17727_v61  ;;  %v17779_v3 = vld [vmem:[%s23955_s6 + $0x180] ss:$16 sps:$4 sm:$0xff]   ;;  %v17784_v61 = vld [vmem:[%s23955_s6 + $0x384] ss:$16 sps:$4 sm:$0xff]  }
 0x891   : > { %11619 = vmatpush1.bf16.msra.mxu0 %v17722_v55  ;;  %v17787_v55 = vld [vmem:[%s23955_s6 + $0x1a4] ss:$16 sps:$4 sm:$0xff]  }
 0x892   : > { %11580 = vmatpush1.bf16.msra.mxu1 %v17725_v29  ;;  %11620 = vmatprep.subr.bf16.mxu0 %v17730_v44  ;;  %v17782_v29 = vld [vmem:[%s23955_s6 + $0x380] ss:$16 sps:$4 sm:$0xff]  }
 0x893   : > { %11581 = vmatprep.subr.bf16.mxu1 %v17733_v5  ;;  %v17785_v44 = vld [vmem:[%s23955_s6 + $0x1a0] ss:$16 sps:$4 sm:$0xff]   ;;  %v17790_v5 = vld [vmem:[%s23955_s6 + $0x3a4] ss:$16 sps:$4 sm:$0xff]  }
 0x895   : > { %11621 = vmatpush1.bf16.msra.mxu0 %v17728_v22  ;;  %v17793_v22 = vld [vmem:[%s23955_s6 + $0x1c4] ss:$16 sps:$4 sm:$0xff]  }
 0x896   : > { %11582 = vmatpush1.bf16.msra.mxu1 %v17731_v18  ;;  %11622 = vmatprep.subr.bf16.mxu0 %v17736_v56  ;;  %v17788_v18 = vld [vmem:[%s23955_s6 + $0x3a0] ss:$16 sps:$4 sm:$0xff]  }
 0x897   : > { %11583 = vmatprep.subr.bf16.mxu1 %v17739_v25  ;;  %v17791_v56 = vld [vmem:[%s23955_s6 + $0x1c0] ss:$16 sps:$4 sm:$0xff]   ;;  %v17796_v25 = vld [vmem:[%s23955_s6 + $0x3c4] ss:$16 sps:$4 sm:$0xff]  }
 0x899   : > { %11623 = vmatpush1.bf16.msra.mxu0 %v17734_v47  ;;  %v17799_v47 = vld [vmem:[%s23955_s6 + $0x1e4] ss:$16 sps:$4 sm:$0xff]  }
 0x89a   : > { %11584 = vmatpush1.bf16.msra.mxu1 %v17737_v21  ;;  %11624 = vmatprep.subr.bf16.mxu0 %v17742_v63  ;;  %v17794_v21 = vld [vmem:[%s23955_s6 + $0x3c0] ss:$16 sps:$4 sm:$0xff]  }
 0x89b   : > { %11585 = vmatprep.subr.bf16.mxu1 %v17745_v15  ;;  %v17797_v63 = vld [vmem:[%s23955_s6 + $0x1e0] ss:$16 sps:$4 sm:$0xff]   ;;  %v17802_v15 = vld [vmem:[%s23955_s6 + $0x3e4] ss:$16 sps:$4 sm:$0xff]  }
 0x89d   : > { %11625 = vmatpush1.bf16.msra.mxu0 %v17740_v33  ;;  %v17805_v33 = vld [vmem:[%s23955_s6 + $0x404] ss:$16 sps:$4 sm:$0xff]  }
 0x89e   : > { %11586 = vmatpush1.bf16.msra.mxu1 %v17743_v24  ;;  %11626 = vmatprep.subr.bf16.mxu0 %v17748_v38  ;;  %v17800_v24 = vld [vmem:[%s23955_s6 + $0x3e0] ss:$16 sps:$4 sm:$0xff]  }
 0x89f   : > { %11587 = vmatprep.subr.bf16.mxu1 %v17751_v19  ;;  %v17803_v38 = vld [vmem:[%s23955_s6 + $0x400] ss:$16 sps:$4 sm:$0xff]   ;;  %v17808_v19 = vld [vmem:[%s23955_s6 + $0xc] ss:$16 sps:$4 sm:$0xff]  }
 0x8a1   : > { %11627 = vmatpush1.bf16.msra.mxu0 %v17746_v23  ;;  %v17811_v23 = vld [vmem:[%s23955_s6 + $0x424] ss:$16 sps:$4 sm:$0xff]  }
 0x8a2   : > { %11588 = vmatpush1.bf16.msra.mxu1 %v17749_v57  ;;  %11628 = vmatprep.subr.bf16.mxu0 %v17754_v35  ;;  %v17806_v57 = vld [vmem:[%s23955_s6 + $0x8] ss:$16 sps:$4 sm:$0xff]   ;;  %v17809_v35 = vld [vmem:[%s23955_s6 + $0x420] ss:$16 sps:$4 sm:$0xff]  }
 0x8a3   : > { %11589 = vmatprep.subr.bf16.mxu1 %v17757_v20  ;;  %v17814_v20 = vld [vmem:[%s23955_s6 + $0x2c] ss:$16 sps:$4 sm:$0xff]  }
 0x8a5   : > { %11629 = vmatpush1.bf16.msra.mxu0 %v17752_v2  ;;  %v17817_v2 = vld [vmem:[%s23955_s6 + $0x444] ss:$16 sps:$4 sm:$0xff]  }
 0x8a6   : > { %11590 = vmatpush1.bf16.msra.mxu1 %v17755_v11  ;;  %11630 = vmatprep.subr.bf16.mxu0 %v17760_v26  ;;  %v17812_v11 = vld [vmem:[%s23955_s6 + $0x28] ss:$16 sps:$4 sm:$0xff]   ;;  %v17815_v26 = vld [vmem:[%s23955_s6 + $0x440] ss:$16 sps:$4 sm:$0xff]  }
 0x8a7   : > { %11591 = vmatprep.subr.bf16.mxu1 %v17763_v8  ;;  %v17820_v8 = vld [vmem:[%s23955_s6 + $0x4c] ss:$16 sps:$4 sm:$0xff]  }
 0x8a9   : > { %11631 = vmatpush1.bf16.msra.mxu0 %v17758_v36  ;;  %v17823_v36 = vld [vmem:[%s23955_s6 + $0x464] ss:$16 sps:$4 sm:$0xff]  }
 0x8aa   : > { %11592 = vmatpush1.bf16.msra.mxu1 %v17761_v62  ;;  %11632 = vmatprep.subr.bf16.mxu0 %v17766_v12  ;;  %v17821_v62 = vld [vmem:[%s23955_s6 + $0x460] ss:$16 sps:$4 sm:$0xff]   ;;  %v17826_v12 = vld [vmem:[%s23955_s6 + $0x6c] ss:$16 sps:$4 sm:$0xff]  }
 0x8ab   : > { %11593 = vmatprep.subr.bf16.mxu1 %v17769_v27  ;;  %v17829_v27 = vld [vmem:[%s23955_s6 + $0x20c] ss:$16 sps:$4 sm:$0xff]  }
 0x8ad   : > { %11633 = vmatpush1.bf16.msra.mxu0 %v17764_v37  ;;  %v17824_v37 = vld [vmem:[%s23955_s6 + $0x68] ss:$16 sps:$4 sm:$0xff]  }
 0x8ae   : > { %11594 = vmatpush1.bf16.msra.mxu1 %v17767_v45  ;;  %11634 = vmatprep.subr.bf16.mxu0 %v17772_v6  ;;  %v17827_v45 = vld [vmem:[%s23955_s6 + $0x208] ss:$16 sps:$4 sm:$0xff]   ;;  %v17832_v6 = vld [vmem:[%s23955_s6 + $0x8c] ss:$16 sps:$4 sm:$0xff]  }
 0x8af   : > { %11595 = vmatprep.subr.bf16.mxu1 %v17775_v10  ;;  %v17835_v10 = vld [vmem:[%s23955_s6 + $0x22c] ss:$16 sps:$4 sm:$0xff]  }
 0x8b1   : > { %11635 = vmatpush1.bf16.msra.mxu0 %v17770_v32  ;;  %v17830_v32 = vld [vmem:[%s23955_s6 + $0x88] ss:$16 sps:$4 sm:$0xff]  }
 0x8b2   : > { %11596 = vmatpush1.bf16.msra.mxu1 %v17773_v40  ;;  %11636 = vmatprep.subr.bf16.mxu0 %v17778_v7  ;;  %v17833_v40 = vld [vmem:[%s23955_s6 + $0x228] ss:$16 sps:$4 sm:$0xff]   ;;  %v17838_v7 = vld [vmem:[%s23955_s6 + $0xac] ss:$16 sps:$4 sm:$0xff]  }
 0x8b3   : > { %11597 = vmatprep.subr.bf16.mxu1 %v17781_v48  ;;  %v17841_v48 = vld [vmem:[%s23955_s6 + $0x24c] ss:$16 sps:$4 sm:$0xff]  }
 0x8b5   : > { %11637 = vmatpush1.bf16.msra.mxu0 %v17776_v28  ;;  %v17836_v28 = vld [vmem:[%s23955_s6 + $0xa8] ss:$16 sps:$4 sm:$0xff]  }
 0x8b6   : > { %11598 = vmatpush1.bf16.msra.mxu1 %v17779_v3  ;;  %11638 = vmatprep.subr.bf16.mxu0 %v17784_v61  ;;  %v17844_v3 = vld [vmem:[%s23955_s6 + $0xcc] ss:$16 sps:$4 sm:$0xff]  }
 0x8b7   : > { %11599 = vmatprep.subr.bf16.mxu1 %v17787_v55  ;;  %v17847_v61 = vld [vmem:[%s23955_s6 + $0x26c] ss:$16 sps:$4 sm:$0xff]   ;;  %v17842_v55 = vld [vmem:[%s23955_s6 + $0xc8] ss:$16 sps:$4 sm:$0xff]  }
 0x8b9   : > { %11639 = vmatpush1.bf16.msra.mxu0 %v17782_v29  ;;  %v17845_v29 = vld [vmem:[%s23955_s6 + $0x268] ss:$16 sps:$4 sm:$0xff]  }
 0x8ba   : > { %11600 = vmatpush1.bf16.msra.mxu1 %v17785_v44  ;;  %11640 = vmatprep.subr.bf16.mxu0 %v17790_v5  ;;  %v17850_v44 = vld [vmem:[%s23955_s6 + $0xec] ss:$16 sps:$4 sm:$0xff]  }
 0x8bb   : > { %11601 = vmatprep.subr.bf16.mxu1 %v17793_v22  ;;  %v17853_v5 = vld [vmem:[%s23955_s6 + $0x28c] ss:$16 sps:$4 sm:$0xff]   ;;  %v17848_v22 = vld [vmem:[%s23955_s6 + $0xe8] ss:$16 sps:$4 sm:$0xff]  }
 0x8bd   : > { %11641 = vmatpush1.bf16.msra.mxu0 %v17788_v18  ;;  %v17851_v18 = vld [vmem:[%s23955_s6 + $0x288] ss:$16 sps:$4 sm:$0xff]  }
 0x8be   : > { %11602 = vmatpush1.bf16.msra.mxu1 %v17791_v56  ;;  %11642 = vmatprep.subr.bf16.mxu0 %v17796_v25  ;;  %v17856_v56 = vld [vmem:[%s23955_s6 + $0x10c] ss:$16 sps:$4 sm:$0xff]  }
 0x8bf   : > { %11603 = vmatprep.subr.bf16.mxu1 %v17799_v47  ;;  %v17859_v25 = vld [vmem:[%s23955_s6 + $0x2ac] ss:$16 sps:$4 sm:$0xff]   ;;  %v17854_v47 = vld [vmem:[%s23955_s6 + $0x108] ss:$16 sps:$4 sm:$0xff]  }
 0x8c1   : > { %11643 = vmatpush1.bf16.msra.mxu0 %v17794_v21  ;;  %v17857_v21 = vld [vmem:[%s23955_s6 + $0x2a8] ss:$16 sps:$4 sm:$0xff]  }
 0x8c2   : > { %11604 = vmatpush1.bf16.msra.mxu1 %v17797_v63  ;;  %11644 = vmatprep.subr.bf16.mxu0 %v17802_v15  ;;  %v17862_v63 = vld [vmem:[%s23955_s6 + $0x12c] ss:$16 sps:$4 sm:$0xff]  }
 0x8c3   : > { %11655 = vmatprep.subr.bf16.mxu1 %v17805_v33  ;;  %v17865_v15 = vld [vmem:[%s23955_s6 + $0x2cc] ss:$16 sps:$4 sm:$0xff]   ;;  %v17860_v33 = vld [vmem:[%s23955_s6 + $0x128] ss:$16 sps:$4 sm:$0xff]  }
 0x8c5   : > { %11645 = vmatpush1.bf16.msra.mxu0 %v17800_v24  ;;  %11606 = vmatmul.mubr.bf16.vlgmr.msra.gmra.mrb[140].mxu1 %v22583_v51  ;;  %v17863_v24 = vld [vmem:[%s23955_s6 + $0x2c8] ss:$16 sps:$4 sm:$0xff]  }
 0x8c6   : > { %11656 = vmatpush1.bf16.msra.mxu1 %v17803_v38  ;;  %11696 = vmatprep.subr.bf16.mxu0 %v17808_v19  ;;  %v17868_v38 = vld [vmem:[%s23955_s6 + $0x14c] ss:$16 sps:$4 sm:$0xff]  }
 0x8c7   : > { %11657 = vmatprep.subr.bf16.mxu1 %v17811_v23  ;;  %11687 = vmatprep.mubr.bf16.mxu1 %v23995_v13  ;;  %v17871_v19 = vld [vmem:[%s23955_s6 + $0x2ec] ss:$16 sps:$4 sm:$0xff]   ;;  %v17866_v23 = vld [vmem:[%s23955_s6 + $0x148] ss:$16 sps:$4 sm:$0xff]  }
 0x8c8   : > { %11647 = vmatmul.mubr.bf16.vlgmr.msra.gmra.mrb[108].mxu0 %v22598_v1 }
 0x8c9   : > { %11697 = vmatpush1.bf16.msra.mxu0 %v17806_v57  ;;  %11728 = vmatprep.mubr.bf16.mxu0 %v22589_v54  ;;  %v17818_v54 = vld [vmem:[%s23955_s6 + $0x48] ss:$16 sps:$4 sm:$0xff]  }
 0x8ca   : > { %11658 = vmatpush1.bf16.msra.mxu1 %v17809_v35  ;;  %11698 = vmatprep.subr.bf16.mxu0 %v17814_v20  ;;  %v17869_v57 = vld [vmem:[%s23955_s6 + $0x2e8] ss:$16 sps:$4 sm:$0xff]   ;;  %v17874_v35 = vld [vmem:[%s23955_s6 + $0x16c] ss:$16 sps:$4 sm:$0xff]  }
 0x8cb   : > { %11659 = vmatprep.subr.bf16.mxu1 %v17817_v2  ;;  %v17877_v20 = vld [vmem:[%s23955_s6 + $0x30c] ss:$16 sps:$4 sm:$0xff]   ;;  %v17872_v2 = vld [vmem:[%s23955_s6 + $0x168] ss:$16 sps:$4 sm:$0xff]  }
 0x8cd   : > { %11699 = vmatpush1.bf16.msra.mxu0 %v17812_v11  ;;  %v17875_v11 = vld [vmem:[%s23955_s6 + $0x308] ss:$16 sps:$4 sm:$0xff]  }
 0x8ce   : > { %11660 = vmatpush1.bf16.msra.mxu1 %v17815_v26  ;;  %11700 = vmatprep.subr.bf16.mxu0 %v17820_v8  ;;  %v17880_v26 = vld [vmem:[%s23955_s6 + $0x18c] ss:$16 sps:$4 sm:$0xff]  }
 0x8cf   : > { %11661 = vmatprep.subr.bf16.mxu1 %v17823_v36  ;;  %v17883_v8 = vld [vmem:[%s23955_s6 + $0x32c] ss:$16 sps:$4 sm:$0xff]   ;;  %v17878_v36 = vld [vmem:[%s23955_s6 + $0x188] ss:$16 sps:$4 sm:$0xff]  }
 0x8d1   : > { %11701 = vmatpush1.bf16.msra.mxu0 %v17818_v54  ;;  %v17881_v54 = vld [vmem:[%s23955_s6 + $0x328] ss:$16 sps:$4 sm:$0xff]  }
 0x8d2   : > { %11662 = vmatpush1.bf16.msra.mxu1 %v17821_v62  ;;  %11702 = vmatprep.subr.bf16.mxu0 %v17826_v12  ;;  %v17886_v62 = vld [vmem:[%s23955_s6 + $0x1ac] ss:$16 sps:$4 sm:$0xff]  }
 0x8d3   : > { %11737 = vmatprep.subr.bf16.mxu1 %v17829_v27  ;;  %v17889_v12 = vld [vmem:[%s23955_s6 + $0x34c] ss:$16 sps:$4 sm:$0xff]   ;;  %v17884_v27 = vld [vmem:[%s23955_s6 + $0x1a8] ss:$16 sps:$4 sm:$0xff]  }
 0x8d5   : > { %11703 = vmatpush1.bf16.msra.mxu0 %v17824_v37  ;;  %15373 = vmatmul.mubr.msk.bf16.vlgmr.msra.gmra.mrb[144].mxu1 %vm5038_vm3, %v22643_v50  ;;  %v17887_v37 = vld [vmem:[%s23955_s6 + $0x348] ss:$16 sps:$4 sm:$0xff]  }
 0x8d6   : > { %11738 = vmatpush1.bf16.msra.mxu1 %v17827_v45  ;;  %11769 = vmatprep.mubr.bf16.mxu1 %v22608_v52  ;;  %v17839_v52 = vld [vmem:[%s23955_s6 + $0x248] ss:$16 sps:$4 sm:$0xff]   ;;  %v17892_v45 = vld [vmem:[%s23955_s6 + $0x1cc] ss:$16 sps:$4 sm:$0xff]  }
 0x8d7   : > { %11704 = vmatprep.subr.bf16.mxu0 %v17832_v6  ;;  %11739 = vmatprep.subr.bf16.mxu1 %v17835_v10  ;;  %v17895_v6 = vld [vmem:[%s23955_s6 + $0x36c] ss:$16 sps:$4 sm:$0xff]   ;;  %v17890_v10 = vld [vmem:[%s23955_s6 + $0x1c8] ss:$16 sps:$4 sm:$0xff]  }
 0x8d9   : > { %11705 = vmatpush1.bf16.msra.mxu0 %v17830_v32  ;;  %v17893_v32 = vld [vmem:[%s23955_s6 + $0x368] ss:$16 sps:$4 sm:$0xff]  }
 0x8da   : > { %11740 = vmatpush1.bf16.msra.mxu1 %v17833_v40  ;;  %11706 = vmatprep.subr.bf16.mxu0 %v17838_v7  ;;  %v17898_v40 = vld [vmem:[%s23955_s6 + $0x1ec] ss:$16 sps:$4 sm:$0xff]  }
 0x8db   : > { %11741 = vmatprep.subr.bf16.mxu1 %v17841_v48  ;;  %v17901_v7 = vld [vmem:[%s23955_s6 + $0x38c] ss:$16 sps:$4 sm:$0xff]   ;;  %v17896_v48 = vld [vmem:[%s23955_s6 + $0x1e8] ss:$16 sps:$4 sm:$0xff]  }
 0x8dd   : > { %11707 = vmatpush1.bf16.msra.mxu0 %v17836_v28  ;;  %v17899_v28 = vld [vmem:[%s23955_s6 + $0x388] ss:$16 sps:$4 sm:$0xff]  }
 0x8de   : > { %11742 = vmatpush1.bf16.msra.mxu1 %v17839_v52  ;;  %11708 = vmatprep.subr.bf16.mxu0 %v17844_v3  ;;  %v17904_v52 = vld [vmem:[%s23955_s6 + $0x40c] ss:$16 sps:$4 sm:$0xff]  }
 0x8df   : > { %11743 = vmatprep.subr.bf16.mxu1 %v17847_v61  ;;  %v17907_v3 = vld [vmem:[%s23955_s6 + $0x3ac] ss:$16 sps:$4 sm:$0xff]   ;;  %v17902_v61 = vld [vmem:[%s23955_s6 + $0x408] ss:$16 sps:$4 sm:$0xff]  }
 0x8e1   : > { %11709 = vmatpush1.bf16.msra.mxu0 %v17842_v55  ;;  %v17905_v55 = vld [vmem:[%s23955_s6 + $0x3a8] ss:$16 sps:$4 sm:$0xff]  }
 0x8e2   : > { %11744 = vmatpush1.bf16.msra.mxu1 %v17845_v29  ;;  %11710 = vmatprep.subr.bf16.mxu0 %v17850_v44  ;;  %v17910_v29 = vld [vmem:[%s23955_s6 + $0x42c] ss:$16 sps:$4 sm:$0xff]  }
 0x8e3   : > { %11745 = vmatprep.subr.bf16.mxu1 %v17853_v5  ;;  %v17913_v44 = vld [vmem:[%s23955_s6 + $0x3cc] ss:$16 sps:$4 sm:$0xff]  }
 0x8e5   : > { %11711 = vmatpush1.bf16.msra.mxu0 %v17848_v22  ;;  %v17908_v22 = vld [vmem:[%s23955_s6 + $0x428] ss:$16 sps:$4 sm:$0xff]  }
 0x8e6   : > { %11746 = vmatpush1.bf16.msra.mxu1 %v17851_v18  ;;  %11712 = vmatprep.subr.bf16.mxu0 %v17856_v56 }
 0x8e7   : > { %11747 = vmatprep.subr.bf16.mxu1 %v17859_v25  ;;  %v17911_v25 = vld [vmem:[%s23955_s6 + $0x3c8] ss:$16 sps:$4 sm:$0xff]  }
 0x8e9   : > { %11713 = vmatpush1.bf16.msra.mxu0 %v17854_v47 }
 0x8ea   : > { %11748 = vmatpush1.bf16.msra.mxu1 %v17857_v21  ;;  %11714 = vmatprep.subr.bf16.mxu0 %v17862_v63  ;;  %v17919_v63 = vld [vmem:[%s23955_s6 + $0x3ec] ss:$16 sps:$4 sm:$0xff]  }
 0x8eb   : > { %11749 = vmatprep.subr.bf16.mxu1 %v17865_v15 }
 0x8ed   : > { %11715 = vmatpush1.bf16.msra.mxu0 %v17860_v33 }
 0x8ee   : > { %11750 = vmatpush1.bf16.msra.mxu1 %v17863_v24  ;;  %11716 = vmatprep.subr.bf16.mxu0 %v17868_v38 }
 0x8ef   : > { %11751 = vmatprep.subr.bf16.mxu1 %v17871_v19  ;;  %v17914_v19 = vld [vmem:[%s23955_s6 + $0x448] ss:$16 sps:$4 sm:$0xff]  }
 0x8f1   : > { %11717 = vmatpush1.bf16.msra.mxu0 %v17866_v23 }
 0x8f2   : > { %11752 = vmatpush1.bf16.msra.mxu1 %v17869_v57  ;;  %11718 = vmatprep.subr.bf16.mxu0 %v17874_v35  ;;  %v17917_v57 = vld [vmem:[%s23955_s6 + $0x3e8] ss:$16 sps:$4 sm:$0xff]   ;;  %v17922_v35 = vld [vmem:[%s23955_s6 + $0x46c] ss:$16 sps:$4 sm:$0xff]  }
 0x8f3   : > { %11753 = vmatprep.subr.bf16.mxu1 %v17877_v20  ;;  %v17925_v20 = vld [vmem:[%s23955_s6 + $0x904] ss:$16 sps:$4 sm:$0xff]  }
 0x8f5   : > { %11719 = vmatpush1.bf16.msra.mxu0 %v17872_v2  ;;  %v17920_v2 = vld [vmem:[%s23955_s6 + $0x468] ss:$16 sps:$4 sm:$0xff]  }
 0x8f6   : > { %11754 = vmatpush1.bf16.msra.mxu1 %v17875_v11  ;;  %11720 = vmatprep.subr.bf16.mxu0 %v17880_v26  ;;  %v17923_v11 = vld [vmem:[%s23955_s6 + $0x900] ss:$16 sps:$4 sm:$0xff]   ;;  %v17928_v26 = vld [vmem:[%s23955_s6 + $0xb04] ss:$16 sps:$4 sm:$0xff]  }
 0x8f7   : > { %11755 = vmatprep.subr.bf16.mxu1 %v17883_v8  ;;  %v17931_v8 = vld [vmem:[%s23955_s6 + $0x924] ss:$16 sps:$4 sm:$0xff]  }
 0x8f9   : > { %11721 = vmatpush1.bf16.msra.mxu0 %v17878_v36  ;;  %v23347_v36 = vrot.slane %v11820_v58, 1 }
 0x8fa   : > { %11756 = vmatpush1.bf16.msra.mxu1 %v17881_v54  ;;  %11722 = vmatprep.subr.bf16.mxu0 %v17886_v62  ;;  %v17926_v54 = vld [vmem:[%s23955_s6 + $0xb00] ss:$16 sps:$4 sm:$0xff]  }
 0x8fb   : > { %11757 = vmatprep.subr.bf16.mxu1 %v17889_v12  ;;  %v17929_v62 = vld [vmem:[%s23955_s6 + $0x920] ss:$16 sps:$4 sm:$0xff]  }
 0x8fd   : > { %11723 = vmatpush1.bf16.msra.mxu0 %v17884_v27 }
 0x8fe   : > { %11758 = vmatpush1.bf16.msra.mxu1 %v17887_v37  ;;  %11724 = vmatprep.subr.bf16.mxu0 %v17892_v45  ;;  %v17940_v37 = vld [vmem:[%s23955_s6 + $0xb44] ss:$16 sps:$4 sm:$0xff]  }
 0x8ff   : > { %11759 = vmatprep.subr.bf16.mxu1 %v17895_v6  ;;  %v17943_v6 = vld [vmem:[%s23955_s6 + $0x964] ss:$16 sps:$4 sm:$0xff]  }
 0x901   : > { %11725 = vmatpush1.bf16.msra.mxu0 %v17890_v10  ;;  %v17938_v10 = vld [vmem:[%s23955_s6 + $0xb40] ss:$16 sps:$4 sm:$0xff]  }
 0x902   : > { %11760 = vmatpush1.bf16.msra.mxu1 %v17893_v32  ;;  %11726 = vmatprep.subr.bf16.mxu0 %v17898_v40  ;;  %v17941_v32 = vld [vmem:[%s23955_s6 + $0x960] ss:$16 sps:$4 sm:$0xff]   ;;  %v17946_v40 = vld [vmem:[%s23955_s6 + $0xb64] ss:$16 sps:$4 sm:$0xff]  }
 0x903   : > { %11761 = vmatprep.subr.bf16.mxu1 %v17901_v7  ;;  %v17949_v7 = vld [vmem:[%s23955_s6 + $0x984] ss:$16 sps:$4 sm:$0xff]  }
 0x905   : > { %11727 = vmatpush1.bf16.msra.mxu0 %v17896_v48  ;;  %v17944_v48 = vld [vmem:[%s23955_s6 + $0xb60] ss:$16 sps:$4 sm:$0xff]  }
 0x906   : > { %11762 = vmatpush1.bf16.msra.mxu1 %v17899_v28  ;;  %11778 = vmatprep.subr.bf16.mxu0 %v17904_v52  ;;  %v17947_v28 = vld [vmem:[%s23955_s6 + $0x980] ss:$16 sps:$4 sm:$0xff]   ;;  %v17952_v52 = vld [vmem:[%s23955_s6 + $0xb84] ss:$16 sps:$4 sm:$0xff]  }
 0x907   : > { %11763 = vmatprep.subr.bf16.mxu1 %v17907_v3  ;;  %v17955_v3 = vld [vmem:[%s23955_s6 + $0x9a4] ss:$16 sps:$4 sm:$0xff]  }
 0x908   : > { %11729 = vmatmul.mubr.bf16.vlgmr.msra.gmra.mrb[112].mxu0 %v22583_v51  ;;  %v10639_v5 = vpop.f32.mrb[128].mxu1  ;;  %v17916_v51 = vld [vmem:[%s23955_s6 + $0x44c] ss:$16 sps:$4 sm:$0xff]  }
 0x909   : > { %11779 = vmatpush1.bf16.msra.mxu0 %v17902_v61  ;;  %v10641_v18 = vpop.f32.mrb[129].mxu1  ;;  %11810 = vmatprep.mubr.bf16.mxu0 %v23995_v13  ;;  %v17950_v61 = vld [vmem:[%s23955_s6 + $0xb80] ss:$16 sps:$4 sm:$0xff]  }
 0x90a   : > { %11764 = vmatpush1.bf16.msra.mxu1 %v17905_v55  ;;  %11780 = vmatprep.subr.bf16.mxu0 %v17910_v29  ;;  %v10643_v56 = vpop.f32.mrb[130].mxu1  ;;  %v17953_v55 = vld [vmem:[%s23955_s6 + $0x9a0] ss:$16 sps:$4 sm:$0xff]   ;;  %v17958_v29 = vld [vmem:[%s23955_s6 + $0xba4] ss:$16 sps:$4 sm:$0xff]  }
 0x90b   : > { %v10680_v47 = vpop.f32.mrb[96].mxu0  ;;  %11765 = vmatprep.subr.bf16.mxu1 %v17913_v44  ;;  %v10644_v21 = vpop.f32.mrb[131].mxu1  ;;  %v17961_v44 = vld [vmem:[%s23955_s6 + $0x9c4] ss:$16 sps:$4 sm:$0xff]  }
 0x90c   : > { %v10681_v15 = vadd.f32 %v10680_v47, %v10639_v5  ;;  %v10682_v33 = vpop.f32.mrb[97].mxu0  ;;  %v17956_v5 = vld [vmem:[%s23955_s6 + $0xba0] ss:$16 sps:$4 sm:$0xff]   ;;  %v17967_v56 = vld [vmem:[%s23955_s6 + $0x9e4] ss:$16 sps:$4 sm:$0xff]  }
 0x90d   : > { %11781 = vmatpush1.bf16.msra.mxu0 %v17908_v22  ;;  %v10683_v24 = vadd.f32 %v10682_v33, %v10641_v18  ;;  %v10684_v38 = vpop.f32.mrb[98].mxu0  ;;  %v17959_v22 = vld [vmem:[%s23955_s6 + $0x9c0] ss:$16 sps:$4 sm:$0xff]   ;;  %v17964_v18 = vld [vmem:[%s23955_s6 + $0xbc4] ss:$16 sps:$4 sm:$0xff]  }
 0x90e   : > { %11766 = vmatpush1.bf16.msra.mxu1 %v17911_v25  ;;  %11782 = vmatprep.subr.bf16.mxu0 %v17916_v51  ;;  %v10685_v23 = vpop.f32.mrb[99].mxu0  ;;  %v17962_v25 = vld [vmem:[%s23955_s6 + $0xbc0] ss:$16 sps:$4 sm:$0xff]   ;;  %v17970_v47 = vld [vmem:[%s23955_s6 + $0xbe4] ss:$16 sps:$4 sm:$0xff]  }
 0x90f   : > { %11767 = vmatprep.subr.bf16.mxu1 %v17919_v63  ;;  %v17965_v51 = vld [vmem:[%s23955_s6 + $0x9e0] ss:$16 sps:$4 sm:$0xff]   ;;  %v17973_v21 = vld [vmem:[%s23955_s6 + $0xa04] ss:$16 sps:$4 sm:$0xff]  }
 0x910   : > { %v17968_v63 = vld [vmem:[%s23955_s6 + $0xbe0] ss:$16 sps:$4 sm:$0xff]   ;;  %v17976_v33 = vld [vmem:[%s23955_s6 + $0xc04] ss:$16 sps:$4 sm:$0xff]  }
 0x911   : > { %11783 = vmatpush1.bf16.msra.mxu0 %v17914_v19  ;;  %v17974_v38 = vld [vmem:[%s23955_s6 + $0xc00] ss:$16 sps:$4 sm:$0xff]   ;;  %v17982_v23 = vld [vmem:[%s23955_s6 + $0xc24] ss:$16 sps:$4 sm:$0xff]  }
 0x912   : > { %11768 = vmatpush1.bf16.msra.mxu1 %v17917_v57  ;;  %11784 = vmatprep.subr.bf16.mxu0 %v17922_v35  ;;  %v17977_v19 = vld [vmem:[%s23955_s6 + $0xa20] ss:$16 sps:$4 sm:$0xff]   ;;  %v17985_v57 = vld [vmem:[%s23955_s6 + $0xa44] ss:$16 sps:$4 sm:$0xff]  }
 0x913   : > { %12706 = vmatprep.subr.bf16.mxu1 %v17925_v20  ;;  %v17980_v35 = vld [vmem:[%s23955_s6 + $0xc20] ss:$16 sps:$4 sm:$0xff]  }
 0x914   : > { %v17983_v20 = vld [vmem:[%s23955_s6 + $0xa40] ss:$16 sps:$4 sm:$0xff]  }
 0x915   : > { %11785 = vmatpush1.bf16.msra.mxu0 %v17920_v2  ;;  %11770 = vmatmul.mubr.bf16.vlgmr.msra.gmra.mrb[148].mxu1 %v22598_v1  ;;  %v17937_v1 = vld [vmem:[%s23955_s6 + $0x944] ss:$16 sps:$4 sm:$0xff]  }
 0x916   : > { %12707 = vmatpush1.bf16.msra.mxu1 %v17923_v11  ;;  %12738 = vmatprep.mubr.bf16.mxu1 %v23347_v36  ;;  %v17988_v2 = vld [vmem:[%s23955_s6 + $0xc44] ss:$16 sps:$4 sm:$0xff]  }
 0x917   : > { %12747 = vmatprep.subr.bf16.mxu0 %v17928_v26  ;;  %12708 = vmatprep.subr.bf16.mxu1 %v17931_v8  ;;  %v17991_v11 = vld [vmem:[%s23955_s6 + $0xa64] ss:$16 sps:$4 sm:$0xff]   ;;  %v17986_v26 = vld [vmem:[%s23955_s6 + $0xc40] ss:$16 sps:$4 sm:$0xff]  }
 0x918   : > { %15374 = vmatmul.mubr.msk.bf16.vlgmr.msra.gmra.mrb[116].mxu0 %vm5038_vm3, %v22643_v50  ;;  %v10721_v58 = vpop.f32.mrb[132].mxu1  ;;  %v17989_v8 = vld [vmem:[%s23955_s6 + $0xa60] ss:$16 sps:$4 sm:$0xff]  }
 0x919   : > { %v23370_v12 = vadd.f32 %v10721_v58, %v10681_v15  ;;  %12748 = vmatpush1.bf16.msra.mxu0 %v17926_v54  ;;  %12779 = vmatprep.mubr.bf16.mxu0 %v23363_v9  ;;  %v10723_v27 = vpop.f32.mrb[133].mxu1  ;;  %v17971_v15 = vld [vmem:[%s23955_s6 + $0xa00] ss:$16 sps:$4 sm:$0xff]   ;;  %v17994_v54 = vld [vmem:[%s23955_s6 + $0xc64] ss:$16 sps:$4 sm:$0xff]  }
 0x91a   : > { %v23376_v14 = vadd.f32 %v10723_v27, %v10683_v24  ;;  %12709 = vmatpush1.bf16.msra.mxu1 %v17929_v62  ;;  %12749 = vmatprep.subr.bf16.mxu0 %v17934_v59  ;;  %v10725_v50 = vpop.f32.mrb[134].mxu1  ;;  %v17979_v24 = vld [vmem:[%s23955_s6 + $0xa24] ss:$16 sps:$4 sm:$0xff]   ;;  %v17992_v59 = vld [vmem:[%s23955_s6 + $0xc60] ss:$16 sps:$4 sm:$0xff]  }
 0x91b   : > { %12710 = vmatprep.subr.bf16.mxu1 %v17937_v1  ;;  %v10726_v45 = vpop.f32.mrb[135].mxu1  ;;  %v17997_v62 = vld [vmem:[%s23955_s6 + $0xa84] ss:$16 sps:$4 sm:$0xff]   ;;  %v17995_v1 = vld [vmem:[%s23955_s6 + $0xa80] ss:$16 sps:$4 sm:$0xff]  }
 0x91c   : > { %v18000_v58 = vld [vmem:[%s23955_s6 + $0xc84] ss:$16 sps:$4 sm:$0xff]   ;;  %v18004_v45 = vld [vmem:[%s23955_s6 + $0xca0] ss:$16 sps:$4 sm:$0xff]  }
 0x91d   : > { %12750 = vmatpush1.bf16.msra.mxu0 %v17932_v53  ;;  %v18003_v27 = vld [vmem:[%s23955_s6 + $0xaa4] ss:$16 sps:$4 sm:$0xff]   ;;  %v17998_v53 = vld [vmem:[%s23955_s6 + $0xc80] ss:$16 sps:$4 sm:$0xff]  }
 0x91e   : > { %12711 = vmatpush1.bf16.msra.mxu1 %v17935_v16  ;;  %12751 = vmatprep.subr.bf16.mxu0 %v17940_v37  ;;  %v18001_v16 = vld [vmem:[%s23955_s6 + $0xaa0] ss:$16 sps:$4 sm:$0xff]   ;;  %v18006_v50 = vld [vmem:[%s23955_s6 + $0xca4] ss:$16 sps:$4 sm:$0xff]  }
 0x91f   : > { %12712 = vmatprep.subr.bf16.mxu1 %v17943_v6  ;;  %v18009_v37 = vld [vmem:[%s23955_s6 + $0xac4] ss:$16 sps:$4 sm:$0xff]   ;;  %v18007_v6 = vld [vmem:[%s23955_s6 + $0xac0] ss:$16 sps:$4 sm:$0xff]  }
 0x921   : > { %12752 = vmatpush1.bf16.msra.mxu0 %v17938_v10  ;;  %v18012_v10 = vld [vmem:[%s23955_s6 + $0xcc4] ss:$16 sps:$4 sm:$0xff]  }
 0x922   : > { %12713 = vmatpush1.bf16.msra.mxu1 %v17941_v32  ;;  %12753 = vmatprep.subr.bf16.mxu0 %v17946_v40  ;;  %v18015_v40 = vld [vmem:[%s23955_s6 + $0xae4] ss:$16 sps:$4 sm:$0xff]  }
 0x923   : > { %12714 = vmatprep.subr.bf16.mxu1 %v17949_v7 }
 0x925   : > { %12754 = vmatpush1.bf16.msra.mxu0 %v17944_v48 }
 0x926   : > { %12715 = vmatpush1.bf16.msra.mxu1 %v17947_v28  ;;  %12755 = vmatprep.subr.bf16.mxu0 %v17952_v52  ;;  %v18010_v28 = vld [vmem:[%s23955_s6 + $0xcc0] ss:$16 sps:$4 sm:$0xff]  }
 0x927   : > { %12716 = vmatprep.subr.bf16.mxu1 %v17955_v3  ;;  %v18013_v3 = vld [vmem:[%s23955_s6 + $0xae0] ss:$16 sps:$4 sm:$0xff]  }
 0x929   : > { %12756 = vmatpush1.bf16.msra.mxu0 %v17950_v61  ;;  %v18018_v61 = vld [vmem:[%s23955_s6 + $0xce4] ss:$16 sps:$4 sm:$0xff]  }
 0x92a   : > { %12717 = vmatpush1.bf16.msra.mxu1 %v17953_v55  ;;  %12757 = vmatprep.subr.bf16.mxu0 %v17958_v29  ;;  %v18021_v55 = vld [vmem:[%s23955_s6 + $0xd04] ss:$16 sps:$4 sm:$0xff]   ;;  %v18016_v29 = vld [vmem:[%s23955_s6 + $0xce0] ss:$16 sps:$4 sm:$0xff]  }
 0x92b   : > { %12718 = vmatprep.subr.bf16.mxu1 %v17961_v44  ;;  %v18019_v44 = vld [vmem:[%s23955_s6 + $0xd00] ss:$16 sps:$4 sm:$0xff]  }
 0x92d   : > { %12758 = vmatpush1.bf16.msra.mxu0 %v17956_v5  ;;  %v18024_v5 = vld [vmem:[%s23955_s6 + $0x90c] ss:$16 sps:$4 sm:$0xff]  }
 0x92e   : > { %12719 = vmatpush1.bf16.msra.mxu1 %v17959_v22  ;;  %12759 = vmatprep.subr.bf16.mxu0 %v17964_v18  ;;  %v23555_v22 = vrot.slane %v11819_v39, 1  ;;  %v18027_v18 = vld [vmem:[%s23955_s6 + $0xd24] ss:$16 sps:$4 sm:$0xff]  }
 0x92f   : > { %12720 = vmatprep.subr.bf16.mxu1 %v17967_v56  ;;  %v18022_v56 = vld [vmem:[%s23955_s6 + $0x908] ss:$16 sps:$4 sm:$0xff]   ;;  %v18033_v39 = vld [vmem:[%s23955_s6 + $0xd44] ss:$16 sps:$4 sm:$0xff]  }
 0x931   : > { %12760 = vmatpush1.bf16.msra.mxu0 %v17962_v25  ;;  %v23567_v25 = vrot.slane %v11821_v30, 1 }
 0x932   : > { %12721 = vmatpush1.bf16.msra.mxu1 %v17965_v51  ;;  %12761 = vmatprep.subr.bf16.mxu0 %v17970_v47  ;;  %v18028_v51 = vld [vmem:[%s23955_s6 + $0x928] ss:$16 sps:$4 sm:$0xff]  }
 0x933   : > { %12722 = vmatprep.subr.bf16.mxu1 %v17973_v21 }
 0x935   : > { %12762 = vmatpush1.bf16.msra.mxu0 %v17968_v63  ;;  %v18031_v63 = vld [vmem:[%s23955_s6 + $0xd40] ss:$16 sps:$4 sm:$0xff]  }
 0x936   : > { %12723 = vmatpush1.bf16.msra.mxu1 %v17971_v15  ;;  %12763 = vmatprep.subr.bf16.mxu0 %v17976_v33  ;;  %v18036_v15 = vld [vmem:[%s23955_s6 + $0x94c] ss:$16 sps:$4 sm:$0xff]  }
 0x937   : > { %12724 = vmatprep.subr.bf16.mxu1 %v17979_v24 }
 0x939   : > { %12764 = vmatpush1.bf16.msra.mxu0 %v17974_v38 }
 0x93a   : > { %12725 = vmatpush1.bf16.msra.mxu1 %v17977_v19  ;;  %12765 = vmatprep.subr.bf16.mxu0 %v17982_v23 }
 0x93b   : > { %12726 = vmatprep.subr.bf16.mxu1 %v17985_v57 }
 0x93d   : > { %12766 = vmatpush1.bf16.msra.mxu0 %v17980_v35  ;;  %v18034_v35 = vld [vmem:[%s23955_s6 + $0x948] ss:$16 sps:$4 sm:$0xff]  }
 0x93e   : > { %12727 = vmatpush1.bf16.msra.mxu1 %v17983_v20  ;;  %12767 = vmatprep.subr.bf16.mxu0 %v17988_v2  ;;  %v18037_v2 = vld [vmem:[%s23955_s6 + $0xd60] ss:$16 sps:$4 sm:$0xff]  }
 0x93f   : > { %12728 = vmatprep.subr.bf16.mxu1 %v17991_v11  ;;  %v18042_v11 = vld [vmem:[%s23955_s6 + $0x96c] ss:$16 sps:$4 sm:$0xff]  }
 0x941   : > { %12768 = vmatpush1.bf16.msra.mxu0 %v17986_v26  ;;  %v18045_v26 = vld [vmem:[%s23955_s6 + $0xb0c] ss:$16 sps:$4 sm:$0xff]  }
 0x942   : > { %12729 = vmatpush1.bf16.msra.mxu1 %v17989_v8  ;;  %12769 = vmatprep.subr.bf16.mxu0 %v17994_v54  ;;  %v18040_v8 = vld [vmem:[%s23955_s6 + $0x968] ss:$16 sps:$4 sm:$0xff]  }
 0x943   : > { %12730 = vmatprep.subr.bf16.mxu1 %v17997_v62  ;;  %v18043_v54 = vld [vmem:[%s23955_s6 + $0xb08] ss:$16 sps:$4 sm:$0xff]   ;;  %v23618_v62 = vrot.slane %v11823_v60, 1  ;;  %v18057_v60 = vld [vmem:[%s23955_s6 + $0xb4c] ss:$16 sps:$4 sm:$0xff]  }
 0x945   : > { %12770 = vmatpush1.bf16.msra.mxu0 %v17992_v59  ;;  %v18048_v59 = vld [vmem:[%s23955_s6 + $0x98c] ss:$16 sps:$4 sm:$0xff]  }
 0x946   : > { %12731 = vmatpush1.bf16.msra.mxu1 %v17995_v1  ;;  %12771 = vmatprep.subr.bf16.mxu0 %v18000_v58  ;;  %v18051_v1 = vld [vmem:[%s23955_s6 + $0xb2c] ss:$16 sps:$4 sm:$0xff]   ;;  %v18046_v58 = vld [vmem:[%s23955_s6 + $0x988] ss:$16 sps:$4 sm:$0xff]  }
 0x947   : > { %12732 = vmatprep.subr.bf16.mxu1 %v18003_v27  ;;  %v18052_v27 = vld [vmem:[%s23955_s6 + $0x9a8] ss:$16 sps:$4 sm:$0xff]  }
 0x949   : > { %12772 = vmatpush1.bf16.msra.mxu0 %v17998_v53  ;;  %v18060_v53 = vld [vmem:[%s23955_s6 + $0x9cc] ss:$16 sps:$4 sm:$0xff]  }
 0x94a   : > { %12733 = vmatpush1.bf16.msra.mxu1 %v18001_v16  ;;  %12773 = vmatprep.subr.bf16.mxu0 %v18006_v50  ;;  %v18063_v16 = vld [vmem:[%s23955_s6 + $0xb6c] ss:$16 sps:$4 sm:$0xff]   ;;  %v18058_v50 = vld [vmem:[%s23955_s6 + $0x9c8] ss:$16 sps:$4 sm:$0xff]  }
 0x94b   : > { %v10762_v32 = vpop.f32.mrb[100].mxu0  ;;  %12734 = vmatprep.subr.bf16.mxu1 %v18009_v37  ;;  %v18061_v37 = vld [vmem:[%s23955_s6 + $0xb68] ss:$16 sps:$4 sm:$0xff]  }
 0x94c   : > { %v10764_v7 = vpop.f32.mrb[101].mxu0 }
 0x94d   : > { %v10766_v48 = vpop.f32.mrb[102].mxu0  ;;  %12774 = vmatpush1.bf16.msra.mxu0 %v18004_v45  ;;  %v18066_v45 = vld [vmem:[%s23955_s6 + $0x9ec] ss:$16 sps:$4 sm:$0xff]  }
 0x94e   : > { %v10767_v52 = vpop.f32.mrb[103].mxu0  ;;  %12735 = vmatpush1.bf16.msra.mxu1 %v18007_v6  ;;  %12775 = vmatprep.subr.bf16.mxu0 %v18012_v10  ;;  %v18069_v6 = vld [vmem:[%s23955_s6 + $0xb8c] ss:$16 sps:$4 sm:$0xff]   ;;  %v18064_v10 = vld [vmem:[%s23955_s6 + $0x9e8] ss:$16 sps:$4 sm:$0xff]  }
 0x94f   : > { %12736 = vmatprep.subr.bf16.mxu1 %v18015_v40  ;;  %v18072_v40 = vld [vmem:[%s23955_s6 + $0xa0c] ss:$16 sps:$4 sm:$0xff]   ;;  %v18070_v48 = vld [vmem:[%s23955_s6 + $0xa08] ss:$16 sps:$4 sm:$0xff]  }
 0x950   : > { %v18078_v52 = vld [vmem:[%s23955_s6 + $0xa2c] ss:$16 sps:$4 sm:$0xff]  }
 0x951   : > { %12776 = vmatpush1.bf16.msra.mxu0 %v18010_v28  ;;  %v18073_v28 = vld [vmem:[%s23955_s6 + $0xba8] ss:$16 sps:$4 sm:$0xff]  }
 0x952   : > { %12737 = vmatpush1.bf16.msra.mxu1 %v18013_v3  ;;  %12777 = vmatprep.subr.bf16.mxu0 %v18018_v61  ;;  %v18081_v3 = vld [vmem:[%s23955_s6 + $0xbcc] ss:$16 sps:$4 sm:$0xff]   ;;  %v18076_v61 = vld [vmem:[%s23955_s6 + $0xa28] ss:$16 sps:$4 sm:$0xff]  }
 0x953   : > { %12788 = vmatprep.subr.bf16.mxu1 %v18021_v55  ;;  %v18079_v55 = vld [vmem:[%s23955_s6 + $0xbc8] ss:$16 sps:$4 sm:$0xff]  }
 0x955   : > { %12778 = vmatpush1.bf16.msra.mxu0 %v18016_v29  ;;  %12739 = vmatmul.mubr.bf16.vlgmr.msra.gmra.mrb[152].mxu1 %v23555_v22  ;;  %v18084_v29 = vld [vmem:[%s23955_s6 + $0xa4c] ss:$16 sps:$4 sm:$0xff]  }
 0x956   : > { %12789 = vmatpush1.bf16.msra.mxu1 %v18019_v44  ;;  %12829 = vmatprep.subr.bf16.mxu0 %v18024_v5  ;;  %v18087_v44 = vld [vmem:[%s23955_s6 + $0xbec] ss:$16 sps:$4 sm:$0xff]   ;;  %v18082_v5 = vld [vmem:[%s23955_s6 + $0xa48] ss:$16 sps:$4 sm:$0xff]  }
 0x957   : > { %12790 = vmatprep.subr.bf16.mxu1 %v18027_v18  ;;  %12820 = vmatprep.mubr.bf16.mxu1 %v23995_v13  ;;  %v18085_v18 = vld [vmem:[%s23955_s6 + $0xbe8] ss:$16 sps:$4 sm:$0xff]  }
 0x958   : > { %12780 = vmatmul.mubr.bf16.vlgmr.msra.gmra.mrb[120].mxu0 %v23567_v25  ;;  %v10803_v0 = vpop.f32.mrb[136].mxu1 }
 0x959   : > { %v10804_v49 = vadd.f32 %v10803_v0, %v10762_v32  ;;  %12830 = vmatpush1.bf16.msra.mxu0 %v18022_v56  ;;  %12861 = vmatprep.mubr.bf16.mxu0 %v23347_v36  ;;  %v10805_v30 = vpop.f32.mrb[137].mxu1  ;;  %v18039_v36 = vld [vmem:[%s23955_s6 + $0xd64] ss:$16 sps:$4 sm:$0xff]   ;;  %v18067_v32 = vld [vmem:[%s23955_s6 + $0xb88] ss:$16 sps:$4 sm:$0xff]  }
 0x95a   : > { %v10806_v47 = vadd.f32 %v10805_v30, %v10764_v7  ;;  %v10807_v21 = vpop.f32.mrb[138].mxu1  ;;  %12791 = vmatpush1.bf16.msra.mxu1 %v18025_v46  ;;  %12831 = vmatprep.subr.bf16.mxu0 %v18030_v4  ;;  %v18075_v7 = vld [vmem:[%s23955_s6 + $0xbac] ss:$16 sps:$4 sm:$0xff]   ;;  %v18088_v4 = vld [vmem:[%s23955_s6 + $0xa68] ss:$16 sps:$4 sm:$0xff]  }
 0x95b   : > { %v10844_v33 = vpop.f32.mrb[104].mxu0  ;;  %v10808_v24 = vpop.f32.mrb[139].mxu1  ;;  %12792 = vmatprep.subr.bf16.mxu1 %v18033_v39  ;;  %v18090_v56 = vld [vmem:[%s23955_s6 + $0xa6c] ss:$16 sps:$4 sm:$0xff]   ;;  %v18091_v39 = vld [vmem:[%s23955_s6 + $0xc08] ss:$16 sps:$4 sm:$0xff]  }
 0x95c   : > { %v23593_v38 = vadd.f32 %v10844_v33, %v10804_v49  ;;  %v10846_v19 = vpop.f32.mrb[105].mxu0  ;;  %v18093_v46 = vld [vmem:[%s23955_s6 + $0xc0c] ss:$16 sps:$4 sm:$0xff]   ;;  %v18094_v30 = vld [vmem:[%s23955_s6 + $0xa88] ss:$16 sps:$4 sm:$0xff]  }
 0x95d   : > { %v23595_v23 = vadd.f32 %v10846_v19, %v10806_v47  ;;  %v10848_v57 = vpop.f32.mrb[106].mxu0  ;;  %12832 = vmatpush1.bf16.msra.mxu0 %v18028_v51  ;;  %v18096_v0 = vld [vmem:[%s23955_s6 + $0xa8c] ss:$16 sps:$4 sm:$0xff]   ;;  %v18097_v51 = vld [vmem:[%s23955_s6 + $0xc28] ss:$16 sps:$4 sm:$0xff]  }
 0x95e   : > { %v10849_v20 = vpop.f32.mrb[107].mxu0  ;;  %12793 = vmatpush1.bf16.msra.mxu1 %v18031_v63  ;;  %12833 = vmatprep.subr.bf16.mxu0 %v18036_v15  ;;  %v18099_v49 = vld [vmem:[%s23955_s6 + $0xc2c] ss:$16 sps:$4 sm:$0xff]   ;;  %v18100_v63 = vld [vmem:[%s23955_s6 + $0xaa8] ss:$16 sps:$4 sm:$0xff]  }
 0x95f   : > { %12794 = vmatprep.subr.bf16.mxu1 %v18039_v36  ;;  %v18102_v47 = vld [vmem:[%s23955_s6 + $0xaac] ss:$16 sps:$4 sm:$0xff]   ;;  %v18103_v15 = vld [vmem:[%s23955_s6 + $0xc48] ss:$16 sps:$4 sm:$0xff]  }
 0x960   : > { %v18105_v21 = vld [vmem:[%s23955_s6 + $0xc4c] ss:$16 sps:$4 sm:$0xff]   ;;  %v18106_v36 = vld [vmem:[%s23955_s6 + $0xac8] ss:$16 sps:$4 sm:$0xff]  }
 0x961   : > { %12834 = vmatpush1.bf16.msra.mxu0 %v18034_v35  ;;  %v18108_v33 = vld [vmem:[%s23955_s6 + $0xacc] ss:$16 sps:$4 sm:$0xff]   ;;  %v18109_v19 = vld [vmem:[%s23955_s6 + $0xc68] ss:$16 sps:$4 sm:$0xff]  }
 0x962   : > { %12795 = vmatpush1.bf16.msra.mxu1 %v18037_v2  ;;  %12835 = vmatprep.subr.bf16.mxu0 %v18042_v11  ;;  %v18111_v24 = vld [vmem:[%s23955_s6 + $0xc6c] ss:$16 sps:$4 sm:$0xff]   ;;  %v18112_v20 = vld [vmem:[%s23955_s6 + $0xae8] ss:$16 sps:$4 sm:$0xff]  }
 0x963   : > { %12870 = vmatprep.subr.bf16.mxu1 %v18045_v26  ;;  %v18114_v57 = vld [vmem:[%s23955_s6 + $0xaec] ss:$16 sps:$4 sm:$0xff]   ;;  %v18115_v2 = vld [vmem:[%s23955_s6 + $0xc88] ss:$16 sps:$4 sm:$0xff]  }
 0x964   : > { %v18117_v35 = vld [vmem:[%s23955_s6 + $0xc8c] ss:$16 sps:$4 sm:$0xff]  }
 0x965   : > { %12836 = vmatpush1.bf16.msra.mxu0 %v18040_v8  ;;  %15663 = vmatmul.mubr.msk.bf16.vlgmr.msra.gmra.mrb[156].mxu1 %vm5038_vm3, %v23618_v62  ;;  %v18120_v11 = vld [vmem:[%s23955_s6 + $0xd0c] ss:$16 sps:$4 sm:$0xff]   ;;  %v18118_v8 = vld [vmem:[%s23955_s6 + $0xd08] ss:$16 sps:$4 sm:$0xff]  }
 0x966   : > { %12871 = vmatpush1.bf16.msra.mxu1 %v18043_v54  ;;  %12902 = vmatprep.mubr.bf16.mxu1 %v23363_v9  ;;  %v18055_v9 = vld [vmem:[%s23955_s6 + $0xb48] ss:$16 sps:$4 sm:$0xff]   ;;  %v18123_v26 = vld [vmem:[%s23955_s6 + $0xcac] ss:$16 sps:$4 sm:$0xff]  }
 0x967   : > { %12837 = vmatprep.subr.bf16.mxu0 %v18048_v59  ;;  %12872 = vmatprep.subr.bf16.mxu1 %v18051_v1  ;;  %v18121_v54 = vld [vmem:[%s23955_s6 + $0xca8] ss:$16 sps:$4 sm:$0xff]   ;;  %v18126_v59 = vld [vmem:[%s23955_s6 + $0xd2c] ss:$16 sps:$4 sm:$0xff]  }
 0x968   : > { %v18129_v1 = vld [vmem:[%s23955_s6 + $0xccc] ss:$16 sps:$4 sm:$0xff]  }
 0x969   : > { %12838 = vmatpush1.bf16.msra.mxu0 %v18046_v58 }
 0x96a   : > { %12873 = vmatpush1.bf16.msra.mxu1 %v18049_v43  ;;  %12839 = vmatprep.subr.bf16.mxu0 %v18054_v17 }
 0x96b   : > { %12874 = vmatprep.subr.bf16.mxu1 %v18057_v60  ;;  %v18124_v60 = vld [vmem:[%s23955_s6 + $0xd28] ss:$16 sps:$4 sm:$0xff]  }
 0x96d   : > { %12840 = vmatpush1.bf16.msra.mxu0 %v18052_v27 }
 0x96e   : > { %12875 = vmatpush1.bf16.msra.mxu1 %v18055_v9  ;;  %12841 = vmatprep.subr.bf16.mxu0 %v18060_v53 }
 0x96f   : > { %12876 = vmatprep.subr.bf16.mxu1 %v18063_v16 }
 0x971   : > { %12842 = vmatpush1.bf16.msra.mxu0 %v18058_v50  ;;  %v18135_v50 = vld [vmem:[%s23955_s6 + $0xcec] ss:$16 sps:$4 sm:$0xff]  }
 0x972   : > { %12877 = vmatpush1.bf16.msra.mxu1 %v18061_v37  ;;  %12843 = vmatprep.subr.bf16.mxu0 %v18066_v45 }
 0x973   : > { %12878 = vmatprep.subr.bf16.mxu1 %v18069_v6 }
 0x975   : > { %12844 = vmatpush1.bf16.msra.mxu0 %v18064_v10  ;;  %v18130_v10 = vld [vmem:[%s23955_s6 + $0xd48] ss:$16 sps:$4 sm:$0xff]  }
 0x976   : > { %12879 = vmatpush1.bf16.msra.mxu1 %v18067_v32  ;;  %12845 = vmatprep.subr.bf16.mxu0 %v18072_v40  ;;  %v18133_v40 = vld [vmem:[%s23955_s6 + $0xce8] ss:$16 sps:$4 sm:$0xff]  }
 0x977   : > { %12880 = vmatprep.subr.bf16.mxu1 %v18075_v7  ;;  %v18138_v7 = vld [vmem:[%s23955_s6 + $0xd6c] ss:$16 sps:$4 sm:$0xff]  }
 0x979   : > { %12846 = vmatpush1.bf16.msra.mxu0 %v18070_v48  ;;  %v18139_v48 = vld [vmem:[%s23959_s10 + $0x40] sm:$0xff]  }
 0x97a   : > { %12881 = vmatpush1.bf16.msra.mxu1 %v18073_v28  ;;  %12847 = vmatprep.subr.bf16.mxu0 %v18078_v52  ;;  %v18136_v28 = vld [vmem:[%s23955_s6 + $0xd68] ss:$16 sps:$4 sm:$0xff]   ;;  %v18140_v52 = vld [vmem:[%s23959_s10] sm:$0xff]  }
 0x97b   : > { %12882 = vmatprep.subr.bf16.mxu1 %v18081_v3 }
 0x97d   : > { %12848 = vmatpush1.bf16.msra.mxu0 %v18076_v61 }
 0x97e   : > { %12883 = vmatpush1.bf16.msra.mxu1 %v18079_v55  ;;  %12849 = vmatprep.subr.bf16.mxu0 %v18084_v29 }
 0x97f   : > { %12884 = vmatprep.subr.bf16.mxu1 %v18087_v44 }
 0x981   : > { %12850 = vmatpush1.bf16.msra.mxu0 %v18082_v5 }
 0x982   : > { %12885 = vmatpush1.bf16.msra.mxu1 %v18085_v18  ;;  %12851 = vmatprep.subr.bf16.mxu0 %v18090_v56  ;;  %v18141_v18 = vld [vmem:[%s23959_s10 + $0x48] sm:$0xff]   ;;  %v18144_v56 = vld [vmem:[%s23959_s10 + $0x10] sm:$0xff]  }
 0x983   : > { %12886 = vmatprep.subr.bf16.mxu1 %v18093_v46  ;;  %v18145_v46 = vld [vmem:[%s23959_s10 + $0x58] sm:$0xff]  }
 0x985   : > { %12852 = vmatpush1.bf16.msra.mxu0 %v18088_v4  ;;  %v18146_v4 = vld [vmem:[%s23959_s10 + $0x18] sm:$0xff]  }
 0x986   : > { %12887 = vmatpush1.bf16.msra.mxu1 %v18091_v39  ;;  %12853 = vmatprep.subr.bf16.mxu0 %v18096_v0  ;;  %v18147_v39 = vld [vmem:[%s23959_s10 + $0x60] sm:$0xff]  }
 0x987   : > { %12888 = vmatprep.subr.bf16.mxu1 %v18099_v49  ;;  %v18148_v0 = vld [vmem:[%s23959_s10 + $0x20] sm:$0xff]   ;;  %v18149_v49 = vld [vmem:[%s23959_s10 + $0x68] sm:$0xff]  }
 0x989   : > { %12854 = vmatpush1.bf16.msra.mxu0 %v18094_v30  ;;  %v18150_v30 = vld [vmem:[%s23959_s10 + $0x28] sm:$0xff]  }
 0x98a   : > { %12889 = vmatpush1.bf16.msra.mxu1 %v18097_v51  ;;  %12855 = vmatprep.subr.bf16.mxu0 %v18102_v47  ;;  %v18151_v51 = vld [vmem:[%s23959_s10 + $0x70] sm:$0xff]  }
 0x98b   : > { %12890 = vmatprep.subr.bf16.mxu1 %v18105_v21  ;;  %v18152_v47 = vld [vmem:[%s23959_s10 + $0x30] sm:$0xff]   ;;  %v18153_v21 = vld [vmem:[%s23959_s10 + $0x78] sm:$0xff]  }
 0x98d   : > { %12856 = vmatpush1.bf16.msra.mxu0 %v18100_v63  ;;  %v18154_v63 = vld [vmem:[%s23959_s10 + $0x38] sm:$0xff]  }
 0x98e   : > { %12891 = vmatpush1.bf16.msra.mxu1 %v18103_v15  ;;  %12857 = vmatprep.subr.bf16.mxu0 %v18108_v33  ;;  %v18155_v15 = vld [vmem:[%s23959_s10 + $0x80] sm:$0xff]   ;;  %v18156_v33 = vld [vmem:[%s23959_s10 + $0x88] sm:$0xff]  }
 0x98f   : > { %12892 = vmatprep.subr.bf16.mxu1 %v18111_v24  ;;  %v18157_v24 = vld [vmem:[%s23959_s10 + $0x90] sm:$0xff]  }
 0x991   : > { %12858 = vmatpush1.bf16.msra.mxu0 %v18106_v36  ;;  %v18158_v36 = vld [vmem:[%s23959_s10 + $0x98] sm:$0xff]  }
 0x992   : > { %12893 = vmatpush1.bf16.msra.mxu1 %v18109_v19  ;;  %12859 = vmatprep.subr.bf16.mxu0 %v18114_v57  ;;  %v18159_v19 = vld [vmem:[%s23959_s10 + $0xa0] sm:$0xff]  }
 0x993   : > { %12894 = vmatprep.subr.bf16.mxu1 %v18117_v35 }
 0x995   : > { %12860 = vmatpush1.bf16.msra.mxu0 %v18112_v20 }
 0x996   : > { %12895 = vmatpush1.bf16.msra.mxu1 %v18115_v2  ;;  %12911 = vmatprep.subr.bf16.mxu0 %v18120_v11 }
 0x997   : > { %12896 = vmatprep.subr.bf16.mxu1 %v18123_v26 }
 0x998   : > { %12862 = vmatmul.mubr.bf16.vlgmr.msra.gmra.mrb[124].mxu0 %v23555_v22  ;;  %v11607_v58 = vpop.f32.mrb[140].mxu1  ;;  %v18127_v22 = vld [vmem:[%s23955_s6 + $0xcc8] ss:$16 sps:$4 sm:$0xff]  }
 0x999   : > { %v11608_v43 = vadd.f32 %v11607_v58, %v23370_v12  ;;  %12912 = vmatpush1.bf16.msra.mxu0 %v18118_v8  ;;  %v11609_v17 = vpop.f32.mrb[141].mxu1  ;;  %12943 = vmatprep.mubr.bf16.mxu0 %v23995_v13  ;;  %v18132_v12 = vld [vmem:[%s23955_s6 + $0xd4c] ss:$16 sps:$4 sm:$0xff]  }
 0x99a   : > { %v11610_v27 = vadd.f32 %v11609_v17, %v23376_v14  ;;  %v11611_v9 = vpop.f32.mrb[142].mxu1  ;;  %12897 = vmatpush1.bf16.msra.mxu1 %v18121_v54  ;;  %12913 = vmatprep.subr.bf16.mxu0 %v18126_v59 }
 0x99b   : > { %v11648_v53 = vpop.f32.mrb[108].mxu0  ;;  %v11612_v16 = vpop.f32.mrb[143].mxu1  ;;  %12898 = vmatprep.subr.bf16.mxu1 %v18129_v1 }
 0x99c   : > { %v11649_v37 = vadd.f32 %v11648_v53, %v11608_v43  ;;  %v11650_v14 = vpop.f32.mrb[109].mxu0  ;;  %v18162_v53 = vld [vmem:[%s23959_s10 + $0xb8] sm:$0xff]   ;;  %v18163_v16 = vld [vmem:[%s23959_s10 + $0xc0] sm:$0xff]  }
 0x99d   : > { %v11651_v45 = vadd.f32 %v11650_v14, %v11610_v27  ;;  %v11652_v6 = vpop.f32.mrb[110].mxu0  ;;  %12914 = vmatpush1.bf16.msra.mxu0 %v18124_v60  ;;  %v18166_v14 = vld [vmem:[%s23959_s10 + $0xd8] sm:$0xff]  }
 0x99e   : > { %v11653_v32 = vpop.f32.mrb[111].mxu0  ;;  %12899 = vmatpush1.bf16.msra.mxu1 %v18127_v22  ;;  %12915 = vmatprep.subr.bf16.mxu0 %v18132_v12 }
 0x99f   : > { %12900 = vmatprep.subr.bf16.mxu1 %v18135_v50  ;;  %v18164_v50 = vld [vmem:[%s23959_s10 + $0xc8] sm:$0xff]  }
 0x9a1   : > { %12916 = vmatpush1.bf16.msra.mxu0 %v18130_v10 }
 0x9a2   : > { %12901 = vmatpush1.bf16.msra.mxu1 %v18133_v40  ;;  %12917 = vmatprep.subr.bf16.mxu0 %v18138_v7 }
 0x9a3   : > { %15868 = vmatprep.subr.bf16.mxu1 %v18139_v48 }
 0x9a5   : > { %12918 = vmatpush1.bf16.msra.mxu0 %v18136_v28  ;;  %12903 = vmatmul.mubr.bf16.vlgmr.msra.gmra.mrb[160].mxu1 %v23567_v25  ;;  %v18142_v25 = vld [vmem:[%s23959_s10 + $0x8] sm:$0xff]  }
 0x9a6   : > { %15869 = vmatpush3.bf16.msra.mxu1 %v18140_v52  ;;  %13273 = vmatprep.subr.bf16.mxu0 %v23995_v13 }
 0x9a7   : > { %15870 = vmatprep.subr.bf16.mxu1 %v18141_v18 }
 0x9a8   : > { %15664 = vmatmul.mubr.msk.bf16.vlgmr.msra.gmra.mrb[128].mxu0 %vm5038_vm3, %v23618_v62  ;;  %v11689_v3 = vpop.f32.mrb[144].mxu1  ;;  %v18143_v62 = vld [vmem:[%s23959_s10 + $0x50] sm:$0xff]  }
 0x9a9   : > { %v23823_v61 = vadd.f32 %v11689_v3, %v11649_v37  ;;  %v11691_v55 = vpop.f32.mrb[145].mxu1  ;;  %13274 = vmatpush1.bf16.msra.mxu0 %v18155_v15  ;;  %v18165_v37 = vld [vmem:[%s23959_s10 + $0xd0] sm:$0xff]  }
 0x9aa   : > { %v23825_v29 = vadd.f32 %v11691_v55, %v11651_v45  ;;  %v11693_v44 = vpop.f32.mrb[146].mxu1  ;;  %15871 = vmatpush3.bf16.msra.mxu1 %v18142_v25  ;;  %13275 = vmatprep.subr.bf16.mxu0 %v23995_v13  ;;  %v12956_v55 = vld [vmem:[%s23956_s7] sm:$0xf] }
 0x9ab   : > { %v11694_v5 = vpop.f32.mrb[147].mxu1  ;;  %15872 = vmatprep.subr.bf16.mxu1 %v18143_v62  ;;  %v12961_v18 = vrot.slane %v12956_v55, %v24002_v34 }
 0x9ad   : > { %13276 = vmatpush1.bf16.msra.mxu0 %v18156_v33 }
 0x9ae   : > { %15873 = vmatpush3.bf16.msra.mxu1 %v18144_v56  ;;  %13277 = vmatprep.subr.bf16.mxu0 %v23995_v13  ;;  %v12965_v56 = vrot.slane %v12956_v55, %v24003_v42 }
 0x9af   : > { %15874 = vmatprep.subr.bf16.mxu1 %v18145_v46 }
 0x9b1   : > { %13278 = vmatpush1.bf16.msra.mxu0 %v18157_v24 }
 0x9b2   : > { %15875 = vmatpush3.bf16.msra.mxu1 %v18146_v4  ;;  %13279 = vmatprep.subr.bf16.mxu0 %v23995_v13 }
 0x9b3   : > { %15876 = vmatprep.subr.bf16.mxu1 %v18147_v39 }
 0x9b5   : > { %13280 = vmatpush1.bf16.msra.mxu0 %v18158_v36 }
 0x9b6   : > { %15877 = vmatpush3.bf16.msra.mxu1 %v18148_v0  ;;  %13281 = vmatprep.subr.bf16.mxu0 %v23995_v13  ;;  %v12986_v0 = vstv %s13408_s27 }
 0x9b7   : > { %15878 = vmatprep.subr.bf16.mxu1 %v18149_v49 }
 0x9b9   : > { %13282 = vmatpush1.bf16.msra.mxu0 %v18159_v19 }
 0x9ba   : > { %15879 = vmatpush3.bf16.msra.mxu1 %v18150_v30  ;;  %13283 = vmatprep.subr.bf16.mxu0 %v23995_v13 }
 0x9bb   : > { %15880 = vmatprep.subr.bf16.mxu1 %v18151_v51 }
 0x9be   : > { %15881 = vmatpush3.bf16.msra.mxu1 %v18152_v47 }
 0x9bf   : > { %15882 = vmatprep.subr.bf16.mxu1 %v18153_v21 }
 0x9c2   : > { %15883 = vmatpush3.bf16.msra.mxu1 %v18154_v63 }
 0x9db   : > { %v11730_v57 = vpop.f32.mrb[112].mxu0 }
 0x9dc   : > { %v11731_v35 = vadd.f32 %v11730_v57, %v23593_v38  ;;  %v11732_v20 = vpop.f32.mrb[113].mxu0  ;;  %v18160_v38 = vld [vmem:[%s23959_s10 + $0xa8] sm:$0xff]  }
 0x9dd   : > { %v11733_v2 = vadd.f32 %v11732_v20, %v23595_v23  ;;  %v11734_v11 = vpop.f32.mrb[114].mxu0  ;;  %13284 = vmatpush1.bf16.msra.mxu0 %v18160_v38  ;;  %v18161_v23 = vld [vmem:[%s23959_s10 + $0xb0] sm:$0xff]  }
 0x9de   : > { %v11735_v26 = vpop.f32.mrb[115].mxu0  ;;  %13285 = vmatprep.subr.bf16.mxu0 %v23995_v13 }
 0x9e1   : > { %13286 = vmatpush1.bf16.msra.mxu0 %v18161_v23 }
 0x9e2   : > { %13287 = vmatprep.subr.bf16.mxu0 %v23995_v13 }
 0x9e5   : > { %13288 = vmatpush1.bf16.msra.mxu0 %v18162_v53 }
 0x9e6   : > { %13289 = vmatprep.subr.bf16.mxu0 %v23995_v13 }
 0x9e8   : > { %v11771_v8 = vpop.f32.mrb[148].mxu1 }
 0x9e9   : > { %v11772_v54 = vadd.f32 %v11771_v8, %v11731_v35  ;;  %v11773_v59 = vpop.f32.mrb[149].mxu1  ;;  %13290 = vmatpush1.bf16.msra.mxu0 %v18163_v16 }
 0x9ea   : > { %v11774_v1 = vadd.f32 %v11773_v59, %v11733_v2  ;;  %v11775_v58 = vpop.f32.mrb[150].mxu1  ;;  %13291 = vmatprep.subr.bf16.mxu0 %v23995_v13 }
 0x9eb   : > { %v11812_v43 = vpop.f32.mrb[116].mxu0  ;;  %v11776_v17 = vpop.f32.mrb[151].mxu1  ;;  %v12973_v58 = vrot.slane %v12956_v55, %v18991_v41 }
 0x9ec   : > { %v23891_v60 = vadd.f32 %v11812_v43, %v11772_v54  ;;  %v11814_v27 = vpop.f32.mrb[117].mxu0  ;;  %v12969_v54 = vrot.slane %v12956_v55, %v18988_v31 }
 0x9ed   : > { %v23893_v9 = vadd.f32 %v11814_v27, %v11774_v1  ;;  %v11816_v22 = vpop.f32.mrb[118].mxu0  ;;  %13292 = vmatpush1.bf16.msra.mxu0 %v18164_v50 }
 0x9ee   : > { %v11817_v12 = vpop.f32.mrb[119].mxu0  ;;  %13293 = vmatprep.subr.bf16.mxu0 %v23995_v13 }
 0x9f1   : > { %13294 = vmatpush1.bf16.msra.mxu0 %v18165_v37 }
 0x9f2   : > { %13295 = vmatprep.subr.bf16.mxu0 %v23995_v13 }
 0x9f5   : > { %13296 = vmatpush1.bf16.msra.mxu0 %v18166_v14 }
 0xa28   : > { %v12740_v45 = vpop.f32.mrb[152].mxu1 }
 0xa29   : > { %v12742_v6 = vpop.f32.mrb[153].mxu1 }
 0xa2a   : > { %v12744_v10 = vpop.f32.mrb[154].mxu1 }
 0xa2b   : > { %v12781_v32 = vpop.f32.mrb[120].mxu0  ;;  %v12745_v40 = vpop.f32.mrb[155].mxu1 }
 0xa2c   : > { %v12782_v7 = vadd.f32 %v12781_v32, %v12740_v45  ;;  %v12783_v48 = vpop.f32.mrb[121].mxu0 }
 0xa2d   : > { %v12784_v28 = vadd.f32 %v12783_v48, %v12742_v6  ;;  %v12785_v52 = vpop.f32.mrb[122].mxu0 }
 0xa2e   : > { %v12786_v3 = vpop.f32.mrb[123].mxu0 }
 0xa38   : > { %v12822_v44 = vpop.f32.mrb[156].mxu1 }
 0xa39   : > { %v12823_v5 = vadd.f32 %v12822_v44, %v12782_v7  ;;  %v12824_v25 = vpop.f32.mrb[157].mxu1 }
 0xa3a   : > { %v12825_v62 = vadd.f32 %v12824_v25, %v12784_v28  ;;  %v12826_v46 = vpop.f32.mrb[158].mxu1 }
 0xa3b   : > { %v12952_v4 = vadd.f32 %v12823_v5, %v23823_v61  ;;  %v12827_v39 = vpop.f32.mrb[159].mxu1 }
 0xa3c   : > { %v12953_v49 = vadd.f32 %v12825_v62, %v23825_v29 }
 0xa3d   : > { %v12978_v30 = vadd.f32 %v12961_v18, %v12952_v4  ;;  %v13322_v18 = vld [vmem:[%s23961_s12] sm:$0x1] }
 0xa3e   : > { %v12979_v51 = vadd.f32 %v12965_v56, %v12953_v49 }
 0xa3f   : > { %vm12982_vm6 = vcmp.gt.f32.partialorder %v12978_v30, 0.0  ;;  %v12987_v47 = vmul.f32 %v12986_v0, %v12978_v30 }
 0xa40   : > { %vm12983_vm8 = vcmp.gt.f32.partialorder %v12979_v51, 0.0  ;;  %v12988_v21 = vmul.f32 %v12986_v0, %v12979_v51 }
 0xa41   : > { %v12991_v63 = vsel %vm12982_vm6, %v12978_v30, %v12987_v47 }
 0xa42   : > { %v12992_v15 = vsel %vm12983_vm8, %v12979_v51, %v12988_v21  ;;  %v12995_v24 = vpack.c.bf16 %v12991_v63, %v12991_v63 }
 0xa43   : > { %v12996_v33 = vpack.c.bf16 %v12992_v15, %v12992_v15 }
 0xa45   : > { %13265 = vmatprep.mubr.bf16.mxu1 %v12996_v33 }
 0xa46   : > { %13266 = vmatmul.mubr.bf16.vlgmr.msra.gmra.mrb[164].mxu1 %v12995_v24 }
 0xa6b   : > { %v12863_v42 = vpop.f32.mrb[124].mxu0 }
 0xa6c   : > { %v12865_v36 = vpop.f32.mrb[125].mxu0 }
 0xa6d   : > { %v12867_v19 = vpop.f32.mrb[126].mxu0 }
 0xa6e   : > { %v12868_v61 = vpop.f32.mrb[127].mxu0 }
 0xa78   : > { %v12904_v57 = vpop.f32.mrb[160].mxu1 }
 0xa79   : > { %v12905_v35 = vadd.f32 %v12904_v57, %v12863_v42  ;;  %v12906_v20 = vpop.f32.mrb[161].mxu1 }
 0xa7a   : > { %v12907_v29 = vadd.f32 %v12906_v20, %v12865_v36  ;;  %v12908_v2 = vpop.f32.mrb[162].mxu1 }
 0xa7b   : > { %v12945_v11 = vpop.f32.mrb[128].mxu0  ;;  %v12909_v26 = vpop.f32.mrb[163].mxu1 }
 0xa7c   : > { %v12946_v8 = vadd.f32 %v12945_v11, %v12905_v35  ;;  %v12947_v59 = vpop.f32.mrb[129].mxu0 }
 0xa7d   : > { %v12948_v1 = vadd.f32 %v12947_v59, %v12907_v29  ;;  %v12949_v43 = vpop.f32.mrb[130].mxu0 }
 0xa7e   : > { %v12954_v17 = vadd.f32 %v12946_v8, %v23891_v60  ;;  %v12950_v27 = vpop.f32.mrb[131].mxu0 }
 0xa7f   : > { %v12955_v22 = vadd.f32 %v12948_v1, %v23893_v9  ;;  %v15665_v9 = vld [vmem:[%s23960_s11] ss:$0 sm:$0xff] }
 0xa80   : > { %v12980_v12 = vadd.f32 %v12969_v54, %v12954_v17 }
 0xa81   : > { %v12981_v38 = vadd.f32 %v12973_v58, %v12955_v22 }
 0xa82   : > { %vm12984_vm9 = vcmp.gt.f32.partialorder %v12980_v12, 0.0  ;;  %v12989_v23 = vmul.f32 %v12986_v0, %v12980_v12 }
 0xa83   : > { %vm12985_vm10 = vcmp.gt.f32.partialorder %v12981_v38, 0.0  ;;  %v12990_v53 = vmul.f32 %v12986_v0, %v12981_v38 }
 0xa84   : > { %v12993_v16 = vsel %vm12984_vm9, %v12980_v12, %v12989_v23 }
 0xa85   : > { %v12994_v50 = vsel %vm12985_vm10, %v12981_v38, %v12990_v53  ;;  %v12997_v31 = vpack.c.bf16 %v12993_v16, %v12993_v16 }
 0xa86   : > { %v12998_v37 = vpack.c.bf16 %v12994_v50, %v12994_v50 }
 0xa88   : > { %15694 = vmatprep.mubr.msk.bf16.mxu0 %vm5038_vm3, %v12998_v37  ;;  %vm13323_vm3 = vcmp.gt.f32.partialorder %v13322_v18, 0.5 }
 0xa89   : > { %13306 = vmatmul.mubr.bf16.vlgmr.msra.gmra.mrb[132].mxu0 %v12997_v31  ;;  %v13324_v25 = vsel %vm13323_vm3, 1, %v23995_v13 }
 0xa8a   : > { %v13328_v62 = vrot.slane %v13324_v25, %v24002_v34 }
 0xa8c   : > { %vm13329_vm11 = vcmp.eq.s32.totalorder %v13328_v62, 1 }
 0xb19   : > { %v15884_v41 = vpop.f32.mrb[164].mxu1 }
 0xb1a   : > { %v15885_v14 = vpop.f32.mrb[165].mxu1 }
 0xb1b   : > { %v15886_v45 = vadd.f32 %v15885_v14, %v15884_v41  ;;  %v15887_v60 = vpop.f32.mrb[166].mxu1 }
 0xb1c   : > { %v15888_v6 = vpop.f32.mrb[167].mxu1 }
 0xb1d   : > { %v13268_v10 = vadd.f32 %v15886_v45, %v15665_v9 }
 0xb5c   : > { %v13307_v32 = vpop.f32.mrb[132].mxu0 }
 0xb5d   : > { %v13308_v40 = vadd.f32 %v13307_v32, %v13268_v10  ;;  %v13309_v7 = vpop.f32.mrb[133].mxu0 }
 0xb5e   : > { %v13310_v48 = vpop.f32.mrb[134].mxu0 }
 0xb5f   : > { %v13313_v28 = vand.u32 2147483647, %v13308_v40  ;;  %v13311_v52 = vpop.f32.mrb[135].mxu0  ;;  %vm13319_vm12 = vcmp.ge.f32.partialorder %v13308_v40, 0.0 }
 0xb61   : > { %v13314_v3 = vsub.f32 0.0, %v13313_v28 }
 0xb63   : > { %v13315_v55 = vmul.f32 1.442695, %v13314_v3 }
 0xb65   : > { %18167 = vpow2.f32 %v13315_v55 }
 0xb6f   : > { %v18168_v44 = vpop.eup %18167 }
 0xb70   : > { %v13317_v5 = vadd.f32 1.0, %v18168_v44 }
 0xb72   : > { %18169 = vrcp.f32 %v13317_v5 }
 0xb7c   : > { %v18170_v56 = vpop.eup %18169 }
 0xb7d   : > { %v13320_v46 = vmul.f32 %v18170_v56, %v18168_v44 }
 0xb7f   : > { %v13321_v4 = vsel %vm13319_vm12, %v18170_v56, %v13320_v46 }
 0xb80   : > { %v13330_v39 = vsel %vm13329_vm11, %v13321_v4, %v13308_v40 }
 0xb81   : > { %13332 = vst.msk [vmem:[%s452_s15] sm:$0x7f] %vm13331_vm13, %v13330_v39 }
 0xb82 PF: > { %s24_s25 = sadd.s32 1, %s18199_s25  }
 0xb83   : > { %p21_p1 = scmp.ge.s32.totalorder %s24_s25, 4  }
 0xb85   :  { %23 = sbr.rel (!%p21_p1) target bundleno = 1 (0x1), region = 113 }
 0xb8c   :  { %13352 = vsyncpa [#allocation3], 1 }
 0xb8d   :  { %13354 = vsyncpa [#allocation3 + $0x1], 1 }

</bundles_post_ra>
